<compile_context>
chip_gen: v6e
topology: v6e:2x2x1
jax: 0.10.0
libtpu: 0.0.40
codegen_flags: <defaults>
</compile_context>

<pallas_src>
import functools

import jax
import jax.numpy as jnp
from jax.experimental import pallas as pl
from jax.experimental.pallas import tpu as pltpu  # noqa: F401  (used when scaling up: CompilerParams)


NEG_SLOPE = 0.2  # GATv2Conv default negative_slope


# ---------------------------------------------------------------------------
# In-kernel dense GATv2 layer (operates on VMEM *values*, not refs)
# ---------------------------------------------------------------------------
def _gatv2_layer(x, mask3, w_lr, b_lr, att_bd, out_bias, *, heads, out_ch, extra_cols=0):
    """Dense GATv2Conv(in -> out_ch, heads, concat=False) on in-kernel values.

    x:        [N, F_in]
    mask3:    [N, N, 1]  additive mask, 0 on edges (incl. self loops), -1e30 elsewhere
    w_lr:     [F_in, 2*H*C (+extra_cols)] = [lin_l.W^T | lin_r.W^T (| extra.W^T)]
    b_lr:     [1, 2*H*C (+extra_cols)]
    att_bd:   [H*C, H]   block-diagonal attention vectors (att[h] in rows h*C:(h+1)*C, col h)
    out_bias: [1, C]
    Returns (out [N, C], extra [N, extra_cols] or None).
    """
    n = x.shape[0]
    hc = heads * out_ch

    # fused lin_l / lin_r (+ optional residual) projection: one lane-dense MXU matmul
    xlr = jnp.dot(x, w_lr, preferred_element_type=jnp.float32) + b_lr      # [N, 2HC(+extra)]
    xl = xlr[:, :hc]                                                        # source proj (lin_l)
    xr = xlr[:, hc:2 * hc]                                                  # target proj (lin_r)
    extra = xlr[:, 2 * hc:2 * hc + extra_cols] if extra_cols else None

    # all-heads score tensor, lane-dense over H*C:
    #   s[i, j, h*C+c] = xr[i, h*C+c] + xl[j, h*C+c]   (i = target, j = source)
    s = xr[:, None, :] + xl[None, :, :]                                     # [N, N, H*C]
    s = jnp.maximum(s, NEG_SLOPE * s)                                       # leaky relu (mul+max)

    # e[(i,j), h] = att[h] . s[i, j, h*C:(h+1)*C]  -- single MXU contraction
    e = jnp.dot(s.reshape(n * n, hc), att_bd, preferred_element_type=jnp.float32)  # [N*N, H]
    e3 = e.reshape(n, n, heads) + mask3                                     # [N, N, H]

    # batched masked softmax over sources j (axis=1), all heads in one pass
    m = jnp.max(e3, axis=1, keepdims=True)                                  # [N, 1, H]
    p = jnp.exp(e3 - m)
    den = jnp.sum(p, axis=1, keepdims=True)                                 # [N, 1, H]
    alpha3 = p / den                                                        # [N, N, H] exact div

    # aggregate source messages (lin_l projections) weighted by alpha (MXU)
    acc = None
    for h in range(heads):
        msg = jnp.dot(alpha3[:, :, h], xl[:, h * out_ch:(h + 1) * out_ch],
                      preferred_element_type=jnp.float32)                   # [N, C]
        acc = msg if acc is None else acc + msg

    # concat=False -> mean over heads, then output bias
    out = acc * (1.0 / heads) + out_bias
    return out, extra


# ---------------------------------------------------------------------------
# Fused full-model kernel: (lin1 residual fused in conv1 proj) + conv1 + relu
#                          + (dropout = identity) + conv2 + residual add
# ---------------------------------------------------------------------------
def _gat_kernel(x_ref, mask_ref,
                w1_ref, b1_ref, attbd1_ref, bias1_ref,
                w2_ref, b2_ref, attbd2_ref, bias2_ref,
                o_ref, *, heads, hidden, num_classes):
    x = x_ref[...]
    mask3 = mask_ref[...][:, :, None]      # [N, N, 1], broadcasts over heads

    # conv1 (+ fused lin1 residual columns) + relu
    h1, residual = _gatv2_layer(
        x, mask3, w1_ref[...], b1_ref[...], attbd1_ref[...], bias1_ref[...],
        heads=heads, out_ch=hidden, extra_cols=num_classes)
    h1 = jnp.maximum(h1, 0.0)
    # TODO(synk): nn.Dropout(0.25) treated as identity (inference mode); training mask would
    #             need pltpu.prng_seed / pltpu.prng_random_bits.

    # conv2 + residual add
    h2, _ = _gatv2_layer(
        h1, mask3, w2_ref[...], b2_ref[...], attbd2_ref[...], bias2_ref[...],
        heads=heads, out_ch=num_classes, extra_cols=0)
    # TODO(synk): output is [N, num_classes=8] -> masked vst; pad/stack to a 128-lane slab
    #             (sliced outside) if this path ever becomes store-bound at scale.
    o_ref[...] = (h2 + residual).astype(o_ref.dtype)


def gat_forward(prep, x, mask_add, *, heads, hidden_channels, num_classes):
    """prep: kernel-layout params from prepare_params(); x: [N, F]; mask_add: [N, N]."""
    n = x.shape[0]
    kernel = functools.partial(_gat_kernel, heads=heads, hidden=hidden_channels,
                               num_classes=num_classes)
    # Single grid step: at these sizes every operand fits comfortably in VMEM, so all
    # inputs use default whole-array blocks (one launch, no pipeline steps).
    return pl.pallas_call(
        kernel,
        out_shape=jax.ShapeDtypeStruct((n, num_classes), jnp.float32),
    )(x, mask_add,
      prep["w1"], prep["b1"], prep["attbd1"], prep["bias1"],
      prep["w2"], prep["b2"], prep["attbd2"], prep["bias2"])


# ---------------------------------------------------------------------------
# One-time parameter layout prep (PyTorch layout -> kernel layout)
# ---------------------------------------------------------------------------
def _block_diag_att(att):
    """att [H, C] -> block-diagonal [H*C, H] with att[h] placed in rows h*C:(h+1)*C, col h."""
    h, c = att.shape
    eye = jnp.eye(h, dtype=att.dtype)
    return (att[:, :, None] * eye[:, None, :]).reshape(h * c, h)


def prepare_params(params):
    c1, c2 = params["conv1"], params["conv2"]
    # conv1 projection also carries the lin1 residual columns (fused matmul)
    w1 = jnp.concatenate([c1["w_l"].T, c1["w_r"].T, params["lin1_w"].T], axis=1)   # [F, 2HC+NC]
    b1 = jnp.concatenate([c1["b_l"], c1["b_r"], params["lin1_b"]]).reshape(1, -1)
    w2 = jnp.concatenate([c2["w_l"].T, c2["w_r"].T], axis=1)                       # [HID, 2HC]
    b2 = jnp.concatenate([c2["b_l"], c2["b_r"]]).reshape(1, -1)
    return {
        "w1": w1, "b1": b1, "attbd1": _block_diag_att(c1["att"]), "bias1": c1["bias"].reshape(1, -1),
        "w2": w2, "b2": b2, "attbd2": _block_diag_att(c2["att"]), "bias2": c2["bias"].reshape(1, -1),
    }


# ---------------------------------------------------------------------------
# Deterministic parameter init + example run
# ---------------------------------------------------------------------------
def _init_gatv2_params(key, in_ch, out_ch, heads):
    ks = jax.random.split(key, 4)
    scale_in = 1.0 / jnp.sqrt(in_ch)
    scale_att = 1.0 / jnp.sqrt(out_ch)
    return {
        "w_l": jax.random.normal(ks[0], (heads * out_ch, in_ch), jnp.float32) * scale_in,
        "b_l": jnp.zeros((heads * out_ch,), jnp.float32),
        "w_r": jax.random.normal(ks[1], (heads * out_ch, in_ch), jnp.float32) * scale_in,
        "b_r": jnp.zeros((heads * out_ch,), jnp.float32),
        "att": jax.random.normal(ks[2], (heads, out_ch), jnp.float32) * scale_att,
        "bias": jnp.zeros((out_ch,), jnp.float32),
    }


if __name__ == "__main__":
    N, F, HID, NC, HEADS, E = 16, 16, 32, 8, 8, 48

    key = jax.random.PRNGKey(0)
    kx, ksrc, kdst, klin, kc1, kc2 = jax.random.split(key, 6)

    x = jax.random.normal(kx, (N, F), jnp.float32)
    src = jax.random.randint(ksrc, (E,), 0, N)
    dst = jax.random.randint(kdst, (E,), 0, N)
    edge_index = jnp.stack([src, dst])                      # [2, E]

    # dense adjacency adj[target, source] = 1, plus self loops (GATv2 default),
    # converted once to an additive softmax mask (0 on edges, -1e30 elsewhere)
    adj = jnp.zeros((N, N), jnp.float32)
    adj = adj.at[edge_index[1], edge_index[0]].set(1.0)
    adj = adj.at[jnp.arange(N), jnp.arange(N)].set(1.0)
    mask_add = jnp.where(adj > 0.0, 0.0, -1e30).astype(jnp.float32)

    params = {
        "lin1_w": jax.random.normal(klin, (NC, F), jnp.float32) / jnp.sqrt(F),
        "lin1_b": jnp.zeros((NC,), jnp.float32),
        "conv1": _init_gatv2_params(kc1, F, HID, HEADS),
        "conv2": _init_gatv2_params(kc2, HID, NC, HEADS),
    }
    prep = prepare_params(params)   # weights transposed / fused / block-diagonalized once

    out = gat_forward(prep, x, mask_add,
                      heads=HEADS, hidden_channels=HID, num_classes=NC)
    jax.block_until_ready(out)
    assert out.shape == (N, NC)
    print("KERNEL_OK")
</pallas_src>

<mosaic_0001>
module attributes {stable_mosaic.version = 11 : i64} {
  func.func @_gat_kernel(%arg0: memref<16x16xf32, #tpu.memory_space<vmem>>, %arg1: memref<16x16xf32, #tpu.memory_space<vmem>>, %arg2: memref<16x520xf32, #tpu.memory_space<vmem>>, %arg3: memref<1x520xf32, #tpu.memory_space<vmem>>, %arg4: memref<256x8xf32, #tpu.memory_space<vmem>>, %arg5: memref<1x32xf32, #tpu.memory_space<vmem>>, %arg6: memref<32x128xf32, #tpu.memory_space<vmem>>, %arg7: memref<1x128xf32, #tpu.memory_space<vmem>>, %arg8: memref<64x8xf32, #tpu.memory_space<vmem>>, %arg9: memref<1x8xf32, #tpu.memory_space<vmem>>, %arg10: memref<16x8xf32, #tpu.memory_space<vmem>>) attributes {dimension_semantics = [], scalar_prefetch = 0 : i64, scratch_operands = 0 : i64, tpu.core_type = #tpu.core_type<tc>} {
    %c0 = arith.constant 0 : index
    %c0_0 = arith.constant 0 : index
    %0 = vector.load %arg0[%c0, %c0_0] : memref<16x16xf32, #tpu.memory_space<vmem>>, vector<16x16xf32>
    %c0_1 = arith.constant 0 : index
    %c0_2 = arith.constant 0 : index
    %1 = vector.load %arg1[%c0_1, %c0_2] : memref<16x16xf32, #tpu.memory_space<vmem>>, vector<16x16xf32>
    %2 = vector.shape_cast %1 : vector<16x16xf32> to vector<16x16x1xf32>
    %c0_3 = arith.constant 0 : index
    %c0_4 = arith.constant 0 : index
    %3 = vector.load %arg2[%c0_3, %c0_4] : memref<16x520xf32, #tpu.memory_space<vmem>>, vector<16x520xf32>
    %c0_5 = arith.constant 0 : index
    %c0_6 = arith.constant 0 : index
    %4 = vector.load %arg3[%c0_5, %c0_6] : memref<1x520xf32, #tpu.memory_space<vmem>>, vector<1x520xf32>
    %c0_7 = arith.constant 0 : index
    %c0_8 = arith.constant 0 : index
    %5 = vector.load %arg4[%c0_7, %c0_8] : memref<256x8xf32, #tpu.memory_space<vmem>>, vector<256x8xf32>
    %c0_9 = arith.constant 0 : index
    %c0_10 = arith.constant 0 : index
    %6 = vector.load %arg5[%c0_9, %c0_10] : memref<1x32xf32, #tpu.memory_space<vmem>>, vector<1x32xf32>
    %cst = arith.constant dense<0.000000e+00> : vector<16x520xf32>
    %7 = tpu.matmul %0, %3, %cst {dimension_numbers = #tpu.dot_dimension_numbers<[1], [0], [0], [1], [0, 0, 1, 1], [], []>} : vector<16x16xf32>, vector<16x520xf32>, vector<16x520xf32> -> vector<16x520xf32>
    %8 = vector.broadcast %4 : vector<1x520xf32> to vector<16x520xf32>
    %9 = arith.addf %7, %8 : vector<16x520xf32>
    %10 = vector.extract_strided_slice %9 {offsets = [0, 0], sizes = [16, 256], strides = [1, 1]} : vector<16x520xf32> to vector<16x256xf32>
    %11 = vector.extract_strided_slice %9 {offsets = [0, 256], sizes = [16, 256], strides = [1, 1]} : vector<16x520xf32> to vector<16x256xf32>
    %12 = vector.extract_strided_slice %9 {offsets = [0, 512], sizes = [16, 8], strides = [1, 1]} : vector<16x520xf32> to vector<16x8xf32>
    %13 = vector.shape_cast %11 : vector<16x256xf32> to vector<16x1x256xf32>
    %14 = vector.shape_cast %10 : vector<16x256xf32> to vector<1x16x256xf32>
    %15 = vector.broadcast %13 : vector<16x1x256xf32> to vector<16x16x256xf32>
    %16 = vector.broadcast %14 : vector<1x16x256xf32> to vector<16x16x256xf32>
    %17 = arith.addf %15, %16 : vector<16x16x256xf32>
    %cst_11 = arith.constant 2.000000e-01 : f32
    %18 = vector.broadcast %cst_11 : f32 to vector<16x16x256xf32>
    %19 = arith.mulf %18, %17 : vector<16x16x256xf32>
    %20 = arith.maximumf %17, %19 : vector<16x16x256xf32>
    %21 = vector.shape_cast %20 : vector<16x16x256xf32> to vector<256x256xf32>
    %cst_12 = arith.constant dense<0.000000e+00> : vector<256x8xf32>
    %22 = tpu.matmul %21, %5, %cst_12 {dimension_numbers = #tpu.dot_dimension_numbers<[1], [0], [0], [1], [0, 0, 1, 1], [], []>} : vector<256x256xf32>, vector<256x8xf32>, vector<256x8xf32> -> vector<256x8xf32>
    %23 = vector.shape_cast %22 : vector<256x8xf32> to vector<16x16x8xf32>
    %24 = vector.broadcast %2 : vector<16x16x1xf32> to vector<16x16x8xf32>
    %25 = arith.addf %23, %24 : vector<16x16x8xf32>
    %cst_13 = arith.constant dense<0xFF800000> : vector<16x8xf32>
    %26 = vector.multi_reduction <maximumf>, %25, %cst_13 [1] : vector<16x16x8xf32> to vector<16x8xf32>
    %27 = vector.shape_cast %26 : vector<16x8xf32> to vector<16x1x8xf32>
    %28 = vector.broadcast %27 : vector<16x1x8xf32> to vector<16x16x8xf32>
    %29 = arith.subf %25, %28 : vector<16x16x8xf32>
    %30 = math.exp %29 : vector<16x16x8xf32>
    %cst_14 = arith.constant dense<0.000000e+00> : vector<16x8xf32>
    %31 = vector.multi_reduction <add>, %30, %cst_14 [1] : vector<16x16x8xf32> to vector<16x8xf32>
    %32 = vector.shape_cast %31 : vector<16x8xf32> to vector<16x1x8xf32>
    %33 = vector.broadcast %32 : vector<16x1x8xf32> to vector<16x16x8xf32>
    %34 = arith.divf %30, %33 : vector<16x16x8xf32>
    %35 = vector.extract_strided_slice %34 {offsets = [0, 0, 0], sizes = [16, 16, 1], strides = [1, 1, 1]} : vector<16x16x8xf32> to vector<16x16x1xf32>
    %36 = vector.shape_cast %35 : vector<16x16x1xf32> to vector<16x16xf32>
    %37 = vector.extract_strided_slice %10 {offsets = [0, 0], sizes = [16, 32], strides = [1, 1]} : vector<16x256xf32> to vector<16x32xf32>
    %cst_15 = arith.constant dense<0.000000e+00> : vector<16x32xf32>
    %38 = tpu.matmul %36, %37, %cst_15 {dimension_numbers = #tpu.dot_dimension_numbers<[1], [0], [0], [1], [0, 0, 1, 1], [], []>} : vector<16x16xf32>, vector<16x32xf32>, vector<16x32xf32> -> vector<16x32xf32>
    %39 = vector.extract_strided_slice %34 {offsets = [0, 0, 1], sizes = [16, 16, 1], strides = [1, 1, 1]} : vector<16x16x8xf32> to vector<16x16x1xf32>
    %40 = vector.shape_cast %39 : vector<16x16x1xf32> to vector<16x16xf32>
    %41 = vector.extract_strided_slice %10 {offsets = [0, 32], sizes = [16, 32], strides = [1, 1]} : vector<16x256xf32> to vector<16x32xf32>
    %cst_16 = arith.constant dense<0.000000e+00> : vector<16x32xf32>
    %42 = tpu.matmul %40, %41, %cst_16 {dimension_numbers = #tpu.dot_dimension_numbers<[1], [0], [0], [1], [0, 0, 1, 1], [], []>} : vector<16x16xf32>, vector<16x32xf32>, vector<16x32xf32> -> vector<16x32xf32>
    %43 = arith.addf %38, %42 : vector<16x32xf32>
    %44 = vector.extract_strided_slice %34 {offsets = [0, 0, 2], sizes = [16, 16, 1], strides = [1, 1, 1]} : vector<16x16x8xf32> to vector<16x16x1xf32>
    %45 = vector.shape_cast %44 : vector<16x16x1xf32> to vector<16x16xf32>
    %46 = vector.extract_strided_slice %10 {offsets = [0, 64], sizes = [16, 32], strides = [1, 1]} : vector<16x256xf32> to vector<16x32xf32>
    %cst_17 = arith.constant dense<0.000000e+00> : vector<16x32xf32>
    %47 = tpu.matmul %45, %46, %cst_17 {dimension_numbers = #tpu.dot_dimension_numbers<[1], [0], [0], [1], [0, 0, 1, 1], [], []>} : vector<16x16xf32>, vector<16x32xf32>, vector<16x32xf32> -> vector<16x32xf32>
    %48 = arith.addf %43, %47 : vector<16x32xf32>
    %49 = vector.extract_strided_slice %34 {offsets = [0, 0, 3], sizes = [16, 16, 1], strides = [1, 1, 1]} : vector<16x16x8xf32> to vector<16x16x1xf32>
    %50 = vector.shape_cast %49 : vector<16x16x1xf32> to vector<16x16xf32>
    %51 = vector.extract_strided_slice %10 {offsets = [0, 96], sizes = [16, 32], strides = [1, 1]} : vector<16x256xf32> to vector<16x32xf32>
    %cst_18 = arith.constant dense<0.000000e+00> : vector<16x32xf32>
    %52 = tpu.matmul %50, %51, %cst_18 {dimension_numbers = #tpu.dot_dimension_numbers<[1], [0], [0], [1], [0, 0, 1, 1], [], []>} : vector<16x16xf32>, vector<16x32xf32>, vector<16x32xf32> -> vector<16x32xf32>
    %53 = arith.addf %48, %52 : vector<16x32xf32>
    %54 = vector.extract_strided_slice %34 {offsets = [0, 0, 4], sizes = [16, 16, 1], strides = [1, 1, 1]} : vector<16x16x8xf32> to vector<16x16x1xf32>
    %55 = vector.shape_cast %54 : vector<16x16x1xf32> to vector<16x16xf32>
    %56 = vector.extract_strided_slice %10 {offsets = [0, 128], sizes = [16, 32], strides = [1, 1]} : vector<16x256xf32> to vector<16x32xf32>
    %cst_19 = arith.constant dense<0.000000e+00> : vector<16x32xf32>
    %57 = tpu.matmul %55, %56, %cst_19 {dimension_numbers = #tpu.dot_dimension_numbers<[1], [0], [0], [1], [0, 0, 1, 1], [], []>} : vector<16x16xf32>, vector<16x32xf32>, vector<16x32xf32> -> vector<16x32xf32>
    %58 = arith.addf %53, %57 : vector<16x32xf32>
    %59 = vector.extract_strided_slice %34 {offsets = [0, 0, 5], sizes = [16, 16, 1], strides = [1, 1, 1]} : vector<16x16x8xf32> to vector<16x16x1xf32>
    %60 = vector.shape_cast %59 : vector<16x16x1xf32> to vector<16x16xf32>
    %61 = vector.extract_strided_slice %10 {offsets = [0, 160], sizes = [16, 32], strides = [1, 1]} : vector<16x256xf32> to vector<16x32xf32>
    %cst_20 = arith.constant dense<0.000000e+00> : vector<16x32xf32>
    %62 = tpu.matmul %60, %61, %cst_20 {dimension_numbers = #tpu.dot_dimension_numbers<[1], [0], [0], [1], [0, 0, 1, 1], [], []>} : vector<16x16xf32>, vector<16x32xf32>, vector<16x32xf32> -> vector<16x32xf32>
    %63 = arith.addf %58, %62 : vector<16x32xf32>
    %64 = vector.extract_strided_slice %34 {offsets = [0, 0, 6], sizes = [16, 16, 1], strides = [1, 1, 1]} : vector<16x16x8xf32> to vector<16x16x1xf32>
    %65 = vector.shape_cast %64 : vector<16x16x1xf32> to vector<16x16xf32>
    %66 = vector.extract_strided_slice %10 {offsets = [0, 192], sizes = [16, 32], strides = [1, 1]} : vector<16x256xf32> to vector<16x32xf32>
    %cst_21 = arith.constant dense<0.000000e+00> : vector<16x32xf32>
    %67 = tpu.matmul %65, %66, %cst_21 {dimension_numbers = #tpu.dot_dimension_numbers<[1], [0], [0], [1], [0, 0, 1, 1], [], []>} : vector<16x16xf32>, vector<16x32xf32>, vector<16x32xf32> -> vector<16x32xf32>
    %68 = arith.addf %63, %67 : vector<16x32xf32>
    %69 = vector.extract_strided_slice %34 {offsets = [0, 0, 7], sizes = [16, 16, 1], strides = [1, 1, 1]} : vector<16x16x8xf32> to vector<16x16x1xf32>
    %70 = vector.shape_cast %69 : vector<16x16x1xf32> to vector<16x16xf32>
    %71 = vector.extract_strided_slice %10 {offsets = [0, 224], sizes = [16, 32], strides = [1, 1]} : vector<16x256xf32> to vector<16x32xf32>
    %cst_22 = arith.constant dense<0.000000e+00> : vector<16x32xf32>
    %72 = tpu.matmul %70, %71, %cst_22 {dimension_numbers = #tpu.dot_dimension_numbers<[1], [0], [0], [1], [0, 0, 1, 1], [], []>} : vector<16x16xf32>, vector<16x32xf32>, vector<16x32xf32> -> vector<16x32xf32>
    %73 = arith.addf %68, %72 : vector<16x32xf32>
    %cst_23 = arith.constant 1.250000e-01 : f32
    %74 = vector.broadcast %cst_23 : f32 to vector<16x32xf32>
    %75 = arith.mulf %73, %74 : vector<16x32xf32>
    %76 = vector.broadcast %6 : vector<1x32xf32> to vector<16x32xf32>
    %77 = arith.addf %75, %76 : vector<16x32xf32>
    %cst_24 = arith.constant 0.000000e+00 : f32
    %78 = vector.broadcast %cst_24 : f32 to vector<16x32xf32>
    %79 = arith.maximumf %77, %78 : vector<16x32xf32>
    %c0_25 = arith.constant 0 : index
    %c0_26 = arith.constant 0 : index
    %80 = vector.load %arg6[%c0_25, %c0_26] : memref<32x128xf32, #tpu.memory_space<vmem>>, vector<32x128xf32>
    %c0_27 = arith.constant 0 : index
    %c0_28 = arith.constant 0 : index
    %81 = vector.load %arg7[%c0_27, %c0_28] : memref<1x128xf32, #tpu.memory_space<vmem>>, vector<1x128xf32>
    %c0_29 = arith.constant 0 : index
    %c0_30 = arith.constant 0 : index
    %82 = vector.load %arg8[%c0_29, %c0_30] : memref<64x8xf32, #tpu.memory_space<vmem>>, vector<64x8xf32>
    %c0_31 = arith.constant 0 : index
    %c0_32 = arith.constant 0 : index
    %83 = vector.load %arg9[%c0_31, %c0_32] : memref<1x8xf32, #tpu.memory_space<vmem>>, vector<1x8xf32>
    %cst_33 = arith.constant dense<0.000000e+00> : vector<16x128xf32>
    %84 = tpu.matmul %79, %80, %cst_33 {dimension_numbers = #tpu.dot_dimension_numbers<[1], [0], [0], [1], [0, 0, 1, 1], [], []>} : vector<16x32xf32>, vector<32x128xf32>, vector<16x128xf32> -> vector<16x128xf32>
    %85 = vector.broadcast %81 : vector<1x128xf32> to vector<16x128xf32>
    %86 = arith.addf %84, %85 : vector<16x128xf32>
    %87 = vector.extract_strided_slice %86 {offsets = [0, 0], sizes = [16, 64], strides = [1, 1]} : vector<16x128xf32> to vector<16x64xf32>
    %88 = vector.extract_strided_slice %86 {offsets = [0, 64], sizes = [16, 64], strides = [1, 1]} : vector<16x128xf32> to vector<16x64xf32>
    %89 = vector.shape_cast %88 : vector<16x64xf32> to vector<16x1x64xf32>
    %90 = vector.shape_cast %87 : vector<16x64xf32> to vector<1x16x64xf32>
    %91 = vector.broadcast %89 : vector<16x1x64xf32> to vector<16x16x64xf32>
    %92 = vector.broadcast %90 : vector<1x16x64xf32> to vector<16x16x64xf32>
    %93 = arith.addf %91, %92 : vector<16x16x64xf32>
    %cst_34 = arith.constant 2.000000e-01 : f32
    %94 = vector.broadcast %cst_34 : f32 to vector<16x16x64xf32>
    %95 = arith.mulf %94, %93 : vector<16x16x64xf32>
    %96 = arith.maximumf %93, %95 : vector<16x16x64xf32>
    %97 = vector.shape_cast %96 : vector<16x16x64xf32> to vector<256x64xf32>
    %cst_35 = arith.constant dense<0.000000e+00> : vector<256x8xf32>
    %98 = tpu.matmul %97, %82, %cst_35 {dimension_numbers = #tpu.dot_dimension_numbers<[1], [0], [0], [1], [0, 0, 1, 1], [], []>} : vector<256x64xf32>, vector<64x8xf32>, vector<256x8xf32> -> vector<256x8xf32>
    %99 = vector.shape_cast %98 : vector<256x8xf32> to vector<16x16x8xf32>
    %100 = vector.broadcast %2 : vector<16x16x1xf32> to vector<16x16x8xf32>
    %101 = arith.addf %99, %100 : vector<16x16x8xf32>
    %cst_36 = arith.constant dense<0xFF800000> : vector<16x8xf32>
    %102 = vector.multi_reduction <maximumf>, %101, %cst_36 [1] : vector<16x16x8xf32> to vector<16x8xf32>
    %103 = vector.shape_cast %102 : vector<16x8xf32> to vector<16x1x8xf32>
    %104 = vector.broadcast %103 : vector<16x1x8xf32> to vector<16x16x8xf32>
    %105 = arith.subf %101, %104 : vector<16x16x8xf32>
    %106 = math.exp %105 : vector<16x16x8xf32>
    %cst_37 = arith.constant dense<0.000000e+00> : vector<16x8xf32>
    %107 = vector.multi_reduction <add>, %106, %cst_37 [1] : vector<16x16x8xf32> to vector<16x8xf32>
    %108 = vector.shape_cast %107 : vector<16x8xf32> to vector<16x1x8xf32>
    %109 = vector.broadcast %108 : vector<16x1x8xf32> to vector<16x16x8xf32>
    %110 = arith.divf %106, %109 : vector<16x16x8xf32>
    %111 = vector.extract_strided_slice %110 {offsets = [0, 0, 0], sizes = [16, 16, 1], strides = [1, 1, 1]} : vector<16x16x8xf32> to vector<16x16x1xf32>
    %112 = vector.shape_cast %111 : vector<16x16x1xf32> to vector<16x16xf32>
    %113 = vector.extract_strided_slice %87 {offsets = [0, 0], sizes = [16, 8], strides = [1, 1]} : vector<16x64xf32> to vector<16x8xf32>
    %cst_38 = arith.constant dense<0.000000e+00> : vector<16x8xf32>
    %114 = tpu.matmul %112, %113, %cst_38 {dimension_numbers = #tpu.dot_dimension_numbers<[1], [0], [0], [1], [0, 0, 1, 1], [], []>} : vector<16x16xf32>, vector<16x8xf32>, vector<16x8xf32> -> vector<16x8xf32>
    %115 = vector.extract_strided_slice %110 {offsets = [0, 0, 1], sizes = [16, 16, 1], strides = [1, 1, 1]} : vector<16x16x8xf32> to vector<16x16x1xf32>
    %116 = vector.shape_cast %115 : vector<16x16x1xf32> to vector<16x16xf32>
    %117 = vector.extract_strided_slice %87 {offsets = [0, 8], sizes = [16, 8], strides = [1, 1]} : vector<16x64xf32> to vector<16x8xf32>
    %cst_39 = arith.constant dense<0.000000e+00> : vector<16x8xf32>
    %118 = tpu.matmul %116, %117, %cst_39 {dimension_numbers = #tpu.dot_dimension_numbers<[1], [0], [0], [1], [0, 0, 1, 1], [], []>} : vector<16x16xf32>, vector<16x8xf32>, vector<16x8xf32> -> vector<16x8xf32>
    %119 = arith.addf %114, %118 : vector<16x8xf32>
    %120 = vector.extract_strided_slice %110 {offsets = [0, 0, 2], sizes = [16, 16, 1], strides = [1, 1, 1]} : vector<16x16x8xf32> to vector<16x16x1xf32>
    %121 = vector.shape_cast %120 : vector<16x16x1xf32> to vector<16x16xf32>
    %122 = vector.extract_strided_slice %87 {offsets = [0, 16], sizes = [16, 8], strides = [1, 1]} : vector<16x64xf32> to vector<16x8xf32>
    %cst_40 = arith.constant dense<0.000000e+00> : vector<16x8xf32>
    %123 = tpu.matmul %121, %122, %cst_40 {dimension_numbers = #tpu.dot_dimension_numbers<[1], [0], [0], [1], [0, 0, 1, 1], [], []>} : vector<16x16xf32>, vector<16x8xf32>, vector<16x8xf32> -> vector<16x8xf32>
    %124 = arith.addf %119, %123 : vector<16x8xf32>
    %125 = vector.extract_strided_slice %110 {offsets = [0, 0, 3], sizes = [16, 16, 1], strides = [1, 1, 1]} : vector<16x16x8xf32> to vector<16x16x1xf32>
    %126 = vector.shape_cast %125 : vector<16x16x1xf32> to vector<16x16xf32>
    %127 = vector.extract_strided_slice %87 {offsets = [0, 24], sizes = [16, 8], strides = [1, 1]} : vector<16x64xf32> to vector<16x8xf32>
    %cst_41 = arith.constant dense<0.000000e+00> : vector<16x8xf32>
    %128 = tpu.matmul %126, %127, %cst_41 {dimension_numbers = #tpu.dot_dimension_numbers<[1], [0], [0], [1], [0, 0, 1, 1], [], []>} : vector<16x16xf32>, vector<16x8xf32>, vector<16x8xf32> -> vector<16x8xf32>
    %129 = arith.addf %124, %128 : vector<16x8xf32>
    %130 = vector.extract_strided_slice %110 {offsets = [0, 0, 4], sizes = [16, 16, 1], strides = [1, 1, 1]} : vector<16x16x8xf32> to vector<16x16x1xf32>
    %131 = vector.shape_cast %130 : vector<16x16x1xf32> to vector<16x16xf32>
    %132 = vector.extract_strided_slice %87 {offsets = [0, 32], sizes = [16, 8], strides = [1, 1]} : vector<16x64xf32> to vector<16x8xf32>
    %cst_42 = arith.constant dense<0.000000e+00> : vector<16x8xf32>
    %133 = tpu.matmul %131, %132, %cst_42 {dimension_numbers = #tpu.dot_dimension_numbers<[1], [0], [0], [1], [0, 0, 1, 1], [], []>} : vector<16x16xf32>, vector<16x8xf32>, vector<16x8xf32> -> vector<16x8xf32>
    %134 = arith.addf %129, %133 : vector<16x8xf32>
    %135 = vector.extract_strided_slice %110 {offsets = [0, 0, 5], sizes = [16, 16, 1], strides = [1, 1, 1]} : vector<16x16x8xf32> to vector<16x16x1xf32>
    %136 = vector.shape_cast %135 : vector<16x16x1xf32> to vector<16x16xf32>
    %137 = vector.extract_strided_slice %87 {offsets = [0, 40], sizes = [16, 8], strides = [1, 1]} : vector<16x64xf32> to vector<16x8xf32>
    %cst_43 = arith.constant dense<0.000000e+00> : vector<16x8xf32>
    %138 = tpu.matmul %136, %137, %cst_43 {dimension_numbers = #tpu.dot_dimension_numbers<[1], [0], [0], [1], [0, 0, 1, 1], [], []>} : vector<16x16xf32>, vector<16x8xf32>, vector<16x8xf32> -> vector<16x8xf32>
    %139 = arith.addf %134, %138 : vector<16x8xf32>
    %140 = vector.extract_strided_slice %110 {offsets = [0, 0, 6], sizes = [16, 16, 1], strides = [1, 1, 1]} : vector<16x16x8xf32> to vector<16x16x1xf32>
    %141 = vector.shape_cast %140 : vector<16x16x1xf32> to vector<16x16xf32>
    %142 = vector.extract_strided_slice %87 {offsets = [0, 48], sizes = [16, 8], strides = [1, 1]} : vector<16x64xf32> to vector<16x8xf32>
    %cst_44 = arith.constant dense<0.000000e+00> : vector<16x8xf32>
    %143 = tpu.matmul %141, %142, %cst_44 {dimension_numbers = #tpu.dot_dimension_numbers<[1], [0], [0], [1], [0, 0, 1, 1], [], []>} : vector<16x16xf32>, vector<16x8xf32>, vector<16x8xf32> -> vector<16x8xf32>
    %144 = arith.addf %139, %143 : vector<16x8xf32>
    %145 = vector.extract_strided_slice %110 {offsets = [0, 0, 7], sizes = [16, 16, 1], strides = [1, 1, 1]} : vector<16x16x8xf32> to vector<16x16x1xf32>
    %146 = vector.shape_cast %145 : vector<16x16x1xf32> to vector<16x16xf32>
    %147 = vector.extract_strided_slice %87 {offsets = [0, 56], sizes = [16, 8], strides = [1, 1]} : vector<16x64xf32> to vector<16x8xf32>
    %cst_45 = arith.constant dense<0.000000e+00> : vector<16x8xf32>
    %148 = tpu.matmul %146, %147, %cst_45 {dimension_numbers = #tpu.dot_dimension_numbers<[1], [0], [0], [1], [0, 0, 1, 1], [], []>} : vector<16x16xf32>, vector<16x8xf32>, vector<16x8xf32> -> vector<16x8xf32>
    %149 = arith.addf %144, %148 : vector<16x8xf32>
    %cst_46 = arith.constant 1.250000e-01 : f32
    %150 = vector.broadcast %cst_46 : f32 to vector<16x8xf32>
    %151 = arith.mulf %149, %150 : vector<16x8xf32>
    %152 = vector.broadcast %83 : vector<1x8xf32> to vector<16x8xf32>
    %153 = arith.addf %151, %152 : vector<16x8xf32>
    %154 = arith.addf %153, %12 : vector<16x8xf32>
    %c0_47 = arith.constant 0 : index
    %c0_48 = arith.constant 0 : index
    %155 = vector.load %arg10[%c0_47, %c0_48] : memref<16x8xf32, #tpu.memory_space<vmem>>, vector<16x8xf32>
    tpu.vector_store %arg10[%c0_47, %c0_48], %154 {strides = array<i32>} : memref<16x8xf32, #tpu.memory_space<vmem>>, vector<16x8xf32>,
    return
  }
}

</mosaic_0001>

<bundles_post_ra>
// kernel: tpu_custom_call.1
= control target key start
LH: loop header
LB: loop body
LE: loop exit
PB: predicated region body
PF: predicated region fallthrough
CT: control target
= control target key end

     0   :  { %v14659_v0 = vlaneseq  ;;  %v9532_v4 = vmov 0.0   ;;  %vm285_vm0 = vcmask 130048   ;;  %s9536_s21 = smov 64   ;;  %vm1234_vm1 = vcmask 64512   ;;  %s9545_s26 = smov 120   ;;  %s14648_s2 = inlined_call_operand.vmem [shape: f32[16,520], index: 2, kind: input, shape index: {}]   ;;  %s14649_s0 = inlined_call_operand.vmem [shape: f32[16,16], index: 0, kind: input, shape index: {}]   ;;  %s14650_s1 = inlined_call_operand.vmem [shape: f32[16,16], index: 1, kind: input, shape index: {}]   ;;  %s14651_s4 = inlined_call_operand.vmem [shape: f32[256,8], index: 4, kind: input, shape index: {}]   ;;  %s14652_s3 = inlined_call_operand.vmem [shape: f32[1,520], index: 3, kind: input, shape index: {}]   ;;  %s14653_s6 = inlined_call_operand.vmem [shape: f32[32,128], index: 6, kind: input, shape index: {}]   ;;  %s14654_s5 = inlined_call_operand.vmem [shape: f32[1,32], index: 5, kind: input, shape index: {}]   ;;  %s14655_s8 = inlined_call_operand.vmem [shape: f32[64,8], index: 8, kind: input, shape index: {}]   ;;  %s14656_s7 = inlined_call_operand.vmem [shape: f32[1,128], index: 7, kind: input, shape index: {}]   ;;  %s14657_s9 = inlined_call_operand.vmem [shape: f32[1,8], index: 9, kind: input, shape index: {}]   ;;  %s14658_s10 = inlined_call_operand.vmem [shape: f32[16,8], index: 10, kind: output, shape index: {}]  }
   0x1   :  { %v221_v1 = vld [vmem:[%s14648_s2 + $0x30] sm:$0xff]  ;;  %v220_v2 = vld [vmem:[%s14648_s2 + $0x28] sm:$0xff]  ;;  %356 = vmatprep.mubr.f32.mxu0 %v9532_v4  ;;  %977 = vmatprep.subr.mxu1 %v9532_v4  ;;  %v215_v5 = vld [vmem:[%s14648_s2] sm:$0xff]  ;;  %vm1806_vm2 = vcmask 130112   ;;  %vm1943_vm3 = vcmask 1041409   ;;  %vm1945_vm4 = vcmask 1042434  }
   0x2   :  { %v216_v3 = vld [vmem:[%s14648_s2 + $0x8] sm:$0xff]  ;;  %320 = vmatprep.subr.mxu0 %v221_v1  ;;  %v9621_v6 = vshrl.u32 %v14659_v0, 7  ;;  %v35_v7 = vld [vmem:[%s14649_s0] sm:$0xff]  ;;  %v222_v9 = vld [vmem:[%s14648_s2 + $0x38] sm:$0xff]  ;;  %vm1947_vm5 = vcmask 1043459   ;;  %vm1949_vm6 = vcmask 1044484  }
   0x3   :  { %321 = vmatpush1.msra.mxu0 %v220_v2  ;;  %v223_v8 = vld [vmem:[%s14648_s2 + $0x40] sm:$0xff]  ;;  %v241_v13 = vld [vmem:[%s14651_s4 + $0x78] sm:$0xff]  ;;  %v217_v15 = vld [vmem:[%s14648_s2 + $0x10] sm:$0xff]  ;;  %vm1951_vm7 = vcmask 1045509   ;;  %vm1953_vm8 = vcmask 1046534   ;;  %vm1955_vm9 = vcmask 1047559  }
   0x4   :  { %322 = vmatprep.subr.mxu0 %v216_v3  ;;  %v9635_v10 = vld [vmem:[%s14650_s1] sm:$0xff]  ;;  %v9638_v11 = vsub.s32 0, %v9621_v6  ;;  %v9641_v12 = vsub.s32 1, %v9621_v6  ;;  %v218_v14 = vld [vmem:[%s14648_s2 + $0x18] sm:$0xff]  ;;  %978 = vmatpush1.msra.mxu1 %v241_v13  ;;  %v9661_v18 = vld [vmem:[%s14649_s0 + $0x8] sm:$0xff]  ;;  %v9664_v19 = vsub.s32 2, %v9621_v6 }
   0x5   :  { %323 = vmatpush1.msra.mxu0 %v215_v5  ;;  %v240_v20 = vld [vmem:[%s14651_s4 + $0x70] sm:$0xff]  ;;  %979 = vmatprep.subr.mxu1 %v9532_v4  ;;  %v239_v21 = vld [vmem:[%s14651_s4 + $0x68] sm:$0xff]  ;;  %v9679_v23 = vsub.s32 3, %v9621_v6  ;;  %v238_v24 = vld [vmem:[%s14651_s4 + $0x60] sm:$0xff]  ;;  %v9694_v27 = vsub.s32 4, %v9621_v6  ;;  %v96_v31 = vsub.s32 5, %v9621_v6 }
   0x6   :  { %14761 = vst [vmem:[#allocation2_spill] sm:$0xff] %v9638_v11  ;;  %8440 = vmatmul.mubr.msk.f32.vlgmr.msra.gmra.mxu0 %vm285_vm0, %v35_v7  ;;  %397 = vmatprep.subr.mxu0 %v223_v8  ;;  %v53_v16 = vrot.slane %v9635_v10, %v9641_v12  ;;  %v42_v17 = vrot.slane %v9635_v10, %v9638_v11  ;;  %v237_v25 = vld [vmem:[%s14651_s4 + $0x58] sm:$0xff]  ;;  %v236_v28 = vld [vmem:[%s14651_s4 + $0x50] sm:$0xff]  ;;  %v235_v29 = vld [vmem:[%s14651_s4 + $0x48] sm:$0xff]  ;;  %v107_v35 = vsub.s32 6, %v9621_v6  ;;  %v118_v39 = vsub.s32 7, %v9621_v6 }
   0x7   :  { %398 = vmatpush1.msra.mxu0 %v222_v9  ;;  %362 = vmatprep.mubr.f32.mxu0 %v9532_v4  ;;  %v64_v22 = vrot.slane %v9635_v10, %v9664_v19  ;;  %v75_v26 = vrot.slane %v9635_v10, %v9679_v23  ;;  %14762 = vst [vmem:[#allocation3_spill] sm:$0xff] %v9694_v27  ;;  %v234_v32 = vld [vmem:[%s14651_s4 + $0x40] sm:$0xff]  ;;  %v233_v33 = vld [vmem:[%s14651_s4 + $0x38] sm:$0xff]  ;;  %v232_v36 = vld [vmem:[%s14651_s4 + $0x30] sm:$0xff]  ;;  %vm4458_vm10 = vcmask 261120   ;;  %s9549_s27 = smov 80  }
   0x8   :  { %399 = vmatprep.subr.mxu0 %v218_v14  ;;  %55 = vbcast.lane.b32.xlu1 %v53_v16, 256  ;;  %v86_v30 = vrot.slane %v9635_v10, %v9694_v27  ;;  %v97_v34 = vrot.slane %v9635_v10, %v96_v31  ;;  %v231_v37 = vld [vmem:[%s14651_s4 + $0x28] sm:$0xff]  ;;  %v108_v38 = vrot.slane %v9635_v10, %v107_v35  ;;  %v230_v40 = vld [vmem:[%s14651_s4 + $0x20] sm:$0xff]  ;;  %v229_v41 = vld [vmem:[%s14651_s4 + $0x18] sm:$0xff]  ;;  %vm4918_vm11 = vcmask 523264  }
   0x9   :  { %400 = vmatpush1.msra.mxu0 %v217_v15  ;;  %44 = vbcast.lane.b32.xlu0 %v42_v17, 256  ;;  %v119_v42 = vrot.slane %v9635_v10, %v118_v39  ;;  %v228_v43 = vld [vmem:[%s14651_s4 + $0x10] sm:$0xff]  ;;  %v38_v44 = vld [vmem:[%s14650_s1 + $0x8] sm:$0xff]  ;;  %v226_v47 = vld [vmem:[%s14651_s4] sm:$0xff]  ;;  %s9546_s1 = smov 112  }
   0xa   :  { %8441 = vmatmul.mubr.msk.f32.gmra.mxu0 %vm285_vm0, %v9661_v18  ;;  %980 = vmatpush1.msra.mxu1 %v240_v20  ;;  %v227_v45 = vld [vmem:[%s14651_s4 + $0x8] sm:$0xff]  ;;  %v130_v46 = vrot.slane %v38_v44, %v9638_v11  ;;  %v257_v48 = vld [vmem:[%s14651_s4 + $0xf8] sm:$0xff]  ;;  %v141_v49 = vrot.slane %v38_v44, %v9641_v12  ;;  %v256_v50 = vld [vmem:[%s14651_s4 + $0xf0] sm:$0xff]  ;;  %v152_v51 = vrot.slane %v38_v44, %v9664_v19 }
   0xb   :  { %433 = vmatprep.mubr.f32.mxu0 %v9532_v4  ;;  %981 = vmatprep.subr.mxu1 %v9532_v4  ;;  %v163_v52 = vrot.slane %v38_v44, %v9679_v23  ;;  %v174_v53 = vrot.slane %v38_v44, %v9694_v27  ;;  %v185_v54 = vrot.slane %v38_v44, %v96_v31  ;;  %v255_v57 = vld [vmem:[%s14651_s4 + $0xe8] sm:$0xff]  ;;  %v254_v58 = vld [vmem:[%s14651_s4 + $0xe0] sm:$0xff]  ;;  %v253_v59 = vld [vmem:[%s14651_s4 + $0xd8] sm:$0xff] }
   0xc   :  { %59 = vbcast.lane.b32.xlu1 %v53_v16, 264  ;;  %982 = vmatpush1.msra.mxu1 %v239_v21  ;;  %v196_v55 = vrot.slane %v38_v44, %v107_v35  ;;  %v207_v56 = vrot.slane %v38_v44, %v118_v39  ;;  %v252_v60 = vld [vmem:[%s14651_s4 + $0xd0] sm:$0xff]  ;;  %v251_v61 = vld [vmem:[%s14651_s4 + $0xc8] sm:$0xff]  ;;  %v250_v62 = vld [vmem:[%s14651_s4 + $0xc0] sm:$0xff]  ;;  %v9535_v21 = vmov 1966171168  }
   0xd   :  { %48 = vbcast.lane.b32.xlu0 %v42_v17, 264  ;;  %983 = vmatprep.subr.mxu1 %v9532_v4  ;;  %v249_v63 = vld [vmem:[%s14651_s4 + $0xb8] sm:$0xff]  ;;  %v248_v1 = vld [vmem:[%s14651_s4 + $0xb0] sm:$0xff]  ;;  %v247_v2 = vld [vmem:[%s14651_s4 + $0xa8] sm:$0xff] }
   0xe   :  { %8442 = vmatmul.mubr.msk.f32.vlgmr.msra.gmra.mxu0 %vm285_vm0, %v35_v7  ;;  %984 = vmatpush1.msra.mxu1 %v238_v24  ;;  %v246_v3 = vld [vmem:[%s14651_s4 + $0xa0] sm:$0xff]  ;;  %v245_v5 = vld [vmem:[%s14651_s4 + $0x98] sm:$0xff]  ;;  %v243_v8 = vld [vmem:[%s14651_s4 + $0x88] sm:$0xff] }
   0xf   :  { %439 = vmatprep.mubr.f32.mxu0 %v9532_v4  ;;  %985 = vmatprep.subr.mxu1 %v9532_v4  ;;  %v242_v9 = vld [vmem:[%s14651_s4 + $0x80] sm:$0xff]  ;;  %v224_v13 = vld [vmem:[%s14648_s2 + $0x48] sm:$0xff] }
  0x10   :  { %70 = vbcast.lane.b32.xlu1 %v64_v22, 264  ;;  %986 = vmatpush1.msra.mxu1 %v237_v25  ;;  %v225_v10 = vld [vmem:[%s14652_s3] sm:$0x1f] }
  0x11   :  { %66 = vbcast.lane.b32.xlu0 %v64_v22, 256  ;;  %987 = vmatprep.subr.mxu1 %v9532_v4  ;;  %v219_v14 = vld [vmem:[%s14648_s2 + $0x20] sm:$0xff]  ;;  %v263_v15 = vrot.slane %v225_v10, %v9638_v11  ;;  %v267_v17 = vrot.slane %v225_v10, %v9641_v12  ;;  %s9534_s2 = smov 96   ;;  %v528_v22 = vunpack.c.l.s4 %v9535_v21 }
  0x12   :  { %8443 = vmatmul.mubr.msk.f32.gmra.mxu0 %vm285_vm0, %v9661_v18  ;;  %988 = vmatpush1.msra.mxu1 %v236_v28  ;;  %v275_v28 = vrot.slane %v225_v10, %v9679_v23 }
  0x13   :  { %8633 = vmatprep.mubr.msk.f32.mxu0 %vm285_vm0, %v35_v7  ;;  %989 = vmatprep.subr.mxu1 %v9532_v4  ;;  %v244_v7 = vld [vmem:[%s14651_s4 + $0x90] sm:$0xff]  ;;  %s9533_s4 = smov 32  }
  0x14   :  { %81 = vbcast.lane.b32.xlu1 %v75_v26, 264  ;;  %990 = vmatpush1.msra.mxu1 %v235_v29  ;;  %v529_v29 = vunpack.c.0.s8 %v528_v22 }
  0x15   :  { %77 = vbcast.lane.b32.xlu0 %v75_v26, 256  ;;  %991 = vmatprep.subr.mxu1 %v9532_v4  ;;  %v271_v26 = vrot.slane %v225_v10, %v9664_v19 }
  0x16   :  { %992 = vmatpush1.msra.mxu1 %v234_v32  ;;  %8629 = vmatprep.subr.mxu0 %v224_v13  ;;  %v9858_v35 = vsub.s32 %v529_v29, %v9621_v6 }
  0x17   :  { %993 = vmatprep.subr.mxu1 %v9532_v4  ;;  %8630 = vmatpush3.msra.mxu0 %v224_v13 }
  0x18   :  { %92 = vbcast.lane.b32.xlu1 %v86_v30, 264  ;;  %994 = vmatpush1.msra.mxu1 %v233_v33  ;;  %14766 = vst [vmem:[#allocation7_spill] sm:$0xff] %v9858_v35 }
  0x19   :  { %88 = vbcast.lane.b32.xlu0 %v86_v30, 256  ;;  %995 = vmatprep.subr.mxu1 %v9532_v4 }
  0x1a   :  { %996 = vmatpush1.msra.mxu1 %v232_v36  ;;  %8631 = vmatprep.subr.mxu0 %v219_v14 }
  0x1b   :  { %997 = vmatprep.subr.mxu1 %v9532_v4  ;;  %8632 = vmatpush3.msra.mxu0 %v219_v14 }
  0x1c   :  { %103 = vbcast.lane.b32.xlu1 %v97_v34, 264  ;;  %998 = vmatpush1.msra.mxu1 %v231_v37 }
  0x1d   :  { %99 = vbcast.lane.b32.xlu0 %v97_v34, 256  ;;  %999 = vmatprep.subr.mxu1 %v9532_v4 }
  0x1e   :  { %1000 = vmatpush1.msra.mxu1 %v230_v40  ;;  %8634 = vmatmul.mubr.msk.f32.vlgmr.msra.gmra.mxu0 %vm285_vm0, %v9661_v18 }
  0x1f   :  { %1001 = vmatprep.subr.mxu1 %v9532_v4 }
  0x20   :  { %114 = vbcast.lane.b32.xlu1 %v108_v38, 264  ;;  %1002 = vmatpush1.msra.mxu1 %v229_v41 }
  0x21   :  { %110 = vbcast.lane.b32.xlu0 %v108_v38, 256  ;;  %1003 = vmatprep.subr.mxu1 %v9532_v4 }
  0x22   :  { %1004 = vmatpush1.msra.mxu1 %v228_v43 }
  0x23   :  { %1005 = vmatprep.subr.mxu1 %v9532_v4 }
  0x24   :  { %125 = vbcast.lane.b32.xlu1 %v119_v42, 264  ;;  %1006 = vmatpush1.msra.mxu1 %v227_v45 }
  0x25   :  { %121 = vbcast.lane.b32.xlu0 %v119_v42, 256  ;;  %1007 = vmatprep.subr.mxu1 %v9532_v4 }
  0x26   :  { %1008 = vmatpush1.msra.mxu1 %v226_v47 }
  0x27   :  { %1009 = vmatprep.subr.mxu1 %v9532_v4 }
  0x28   :  { %136 = vbcast.lane.b32.xlu1 %v130_v46, 264  ;;  %1010 = vmatpush2.msra.mxu1 %v257_v48 }
  0x29   :  { %132 = vbcast.lane.b32.xlu0 %v130_v46, 256  ;;  %1011 = vmatprep.subr.mxu1 %v9532_v4 }
  0x2a   :  { %1012 = vmatpush2.msra.mxu1 %v256_v50 }
  0x2b   :  { %1013 = vmatprep.subr.mxu1 %v9532_v4 }
  0x2c   :  { %147 = vbcast.lane.b32.xlu1 %v141_v49, 264  ;;  %1014 = vmatpush2.msra.mxu1 %v255_v57 }
  0x2d   :  { %143 = vbcast.lane.b32.xlu0 %v141_v49, 256  ;;  %1015 = vmatprep.subr.mxu1 %v9532_v4 }
  0x2e   :  { %1016 = vmatpush2.msra.mxu1 %v254_v58 }
  0x2f   :  { %1017 = vmatprep.subr.mxu1 %v9532_v4 }
  0x30   :  { %158 = vbcast.lane.b32.xlu1 %v152_v51, 264  ;;  %1018 = vmatpush2.msra.mxu1 %v253_v59 }
  0x31   :  { %154 = vbcast.lane.b32.xlu0 %v152_v51, 256  ;;  %1019 = vmatprep.subr.mxu1 %v9532_v4 }
  0x32   :  { %1020 = vmatpush2.msra.mxu1 %v252_v60 }
  0x33   :  { %1021 = vmatprep.subr.mxu1 %v9532_v4 }
  0x34   :  { %169 = vbcast.lane.b32.xlu1 %v163_v52, 264  ;;  %1022 = vmatpush2.msra.mxu1 %v251_v61 }
  0x35   :  { %165 = vbcast.lane.b32.xlu0 %v163_v52, 256  ;;  %1023 = vmatprep.subr.mxu1 %v9532_v4 }
  0x36   :  { %1024 = vmatpush2.msra.mxu1 %v250_v62 }
  0x37   :  { %1025 = vmatprep.subr.mxu1 %v9532_v4 }
  0x38   :  { %180 = vbcast.lane.b32.xlu1 %v174_v53, 264  ;;  %1026 = vmatpush2.msra.mxu1 %v249_v63 }
  0x39   :  { %176 = vbcast.lane.b32.xlu0 %v174_v53, 256  ;;  %1027 = vmatprep.subr.mxu1 %v9532_v4 }
  0x3a   :  { %1028 = vmatpush2.msra.mxu1 %v248_v1 }
  0x3b   :  { %1029 = vmatprep.subr.mxu1 %v9532_v4 }
  0x3c   :  { %191 = vbcast.lane.b32.xlu1 %v185_v54, 264  ;;  %1030 = vmatpush2.msra.mxu1 %v247_v2 }
  0x3d   :  { %187 = vbcast.lane.b32.xlu0 %v185_v54, 256  ;;  %1031 = vmatprep.subr.mxu1 %v9532_v4 }
  0x3e   :  { %1032 = vmatpush2.msra.mxu1 %v246_v3 }
  0x3f   :  { %1033 = vmatprep.subr.mxu1 %v9532_v4 }
  0x40   :  { %202 = vbcast.lane.b32.xlu1 %v196_v55, 264  ;;  %1034 = vmatpush2.msra.mxu1 %v245_v5 }
  0x41   :  { %198 = vbcast.lane.b32.xlu0 %v196_v55, 256  ;;  %1035 = vmatprep.subr.mxu1 %v9532_v4 }
  0x42   :  { %1036 = vmatpush2.msra.mxu1 %v244_v7 }
  0x43   :  { %1037 = vmatprep.subr.mxu1 %v9532_v4 }
  0x44   :  { %213 = vbcast.lane.b32.xlu1 %v207_v56, 264  ;;  %1038 = vmatpush2.msra.mxu1 %v243_v8 }
  0x45   :  { %209 = vbcast.lane.b32.xlu0 %v207_v56, 256  ;;  %1039 = vmatprep.subr.mxu1 %v9532_v4 }
  0x46   :  { %1040 = vmatpush2.msra.mxu1 %v242_v9 }
  0x7b   :  { %v9890_v51 = vpop.permute.xlu0 %44 }
  0x7c   :  { %14768 = vst [vmem:[#allocation9_spill] sm:$0xff] %v9890_v51 }
  0x7f   :  { %v9897_v1 = vpop.permute.xlu0 %48 }
  0x80   :  { %14769 = vst [vmem:[#allocation10_spill] sm:$0xff] %v9897_v1 }
  0x83   :  { %v9906_v22 = vpop.permute.xlu0 %66 }
  0x84   :  { %14771 = vst [vmem:[#allocation12_spill] sm:$0xff] %v9906_v22 }
  0xc6   :  { %v358_v4 = vpop.f32.mrf.mxu0 }
  0xc7   :  { %v9840_v16 = vadd.f32 %v358_v4, %v263_v15 }
  0xc8   :  { %v360_v20 = vpop.f32.mrf.mxu0 }
  0xc9   :  { %14763 = vst [vmem:[#allocation4_spill] sm:$0xff] %v9840_v16  ;;  %2979 = vrot.lane.b32.xlu0 %v9840_v16, %s9533_s4  ;;  %1966 = vrot.lane.b32.xlu1 %v9840_v16, %s9534_s2  ;;  %v9847_v25 = vadd.f32 %v360_v20, %v267_v17 }
  0xca   :  { %v364_v24 = vpop.f32.mrf.mxu0 }
  0xcb   :  { %14764 = vst [vmem:[#allocation5_spill] sm:$0xff] %v9847_v25  ;;  %v9855_v31 = vadd.f32 %v364_v24, %v263_v15  ;;  %v9903_v15 = vpop.permute.xlu1 %55 }
  0xcc   :  { %v366_v18 = vpop.f32.mrf.mxu0  ;;  %14770 = vst [vmem:[#allocation11_spill] sm:$0xff] %v9903_v15 }
  0xcd   :  { %3657 = vrot.lane.b32.xlu0 %v9847_v25, %s9534_s2  ;;  %2638 = vrot.lane.b32.xlu1 %v9840_v16, %s9536_s21  ;;  %14765 = vst [vmem:[#allocation6_spill] sm:$0xff] %v9855_v31  ;;  %v9873_v40 = vadd.f32 %v366_v18, %v267_v17 }
  0xce   :  { %v435_v30 = vpop.f32.mrf.mxu0 }
  0xcf   :  { %v436_v33 = vadd.f32 %v435_v30, %v271_v26  ;;  %14767 = vst [vmem:[#allocation8_spill] sm:$0xff] %v9873_v40 }
  0xd0   :  { %v437_v32 = vpop.f32.mrf.mxu0 }
  0xd1   :  { %v438_v34 = vadd.f32 %v437_v32, %v275_v28  ;;  %1968 = vrot.lane.b32.xlu0 %v9855_v31, %s9534_s2  ;;  %3998 = vrot.lane.b32.xlu1 %v9847_v25, %s9536_s21 }
  0xd2   :  { %v441_v36 = vpop.f32.mrf.mxu0 }
  0xd3   :  { %v525_v19 = vcombine.low %v436_v33, %v438_v34  ;;  %v9864_v37 = vadd.f32 %v441_v36, %v271_v26  ;;  %v526_v8 = vcombine.high %v436_v33, %v438_v34  ;;  %v9912_v34 = vpop.permute.xlu1 %59 }
  0xd4   :  { %v443_v23 = vpop.f32.mrf.mxu0  ;;  %14772 = vst [vmem:[#allocation13_spill] sm:$0xff] %v9912_v34 }
  0xd5   :  { %v533_v38 = vrot.slane %v525_v19, %v9858_v35  ;;  %v9867_v39 = vadd.f32 %v443_v23, %v275_v28  ;;  %2640 = vrot.lane.b32.xlu0 %v9855_v31, %s9536_s21  ;;  %2981 = vrot.lane.b32.xlu1 %v9855_v31, %s9533_s4  ;;  %v540_v24 = vrot.slane %v526_v8, %v9858_v35 }
  0xd7   :  { %v541_v41 = vcombine.high %v533_v38, %v533_v38  ;;  %v549_v42 = vrot.slane %v533_v38, %v9858_v35  ;;  %v575_v43 = vcombine.low %v9864_v37, %v9867_v39  ;;  %v576_v44 = vcombine.high %v9864_v37, %v9867_v39 }
  0xd9   :  { %v563_v45 = vrot.slane %v541_v41, %v9858_v35  ;;  %4000 = vrot.lane.b32.xlu0 %v9873_v40, %s9536_s21  ;;  %3659 = vrot.lane.b32.xlu1 %v9873_v40, %s9534_s2  ;;  %v632_v46 = vrot.slane %v549_v42, %v9641_v12  ;;  %v628_v47 = vrot.slane %v549_v42, %v9638_v11  ;;  %v9916_v41 = vpop.permute.xlu0 %77 }
  0xda   :  { %v571_v58 = vcombine.high %v549_v42, %v549_v42  ;;  %14773 = vst [vmem:[#allocation14_spill] sm:$0xff] %v9916_v41  ;;  %v556_v42 = vrot.slane %v540_v24, %v9858_v35 }
  0xdb   :  { %v786_v48 = vadd.f32 %v632_v46, %v9847_v25  ;;  %v788_v49 = vadd.f32 %v632_v46, %v9873_v40  ;;  %v640_v50 = vrot.slane %v563_v45, %v9641_v12  ;;  %v785_v53 = vadd.f32 %v628_v47, %v9840_v16 }
  0xdc   :  { %v787_v54 = vadd.f32 %v628_v47, %v9855_v31  ;;  %v636_v55 = vrot.slane %v563_v45, %v9638_v11  ;;  %v648_v7 = vrot.slane %v571_v58, %v9641_v12  ;;  %v644_v14 = vrot.slane %v571_v58, %v9638_v11 }
  0xdd   :  { %v850_v52 = vmul.f32 0.2, %v786_v48  ;;  %v852_v56 = vmul.f32 0.2, %v788_v49  ;;  %v790_v57 = vadd.f32 %v640_v50, %v9847_v25  ;;  %v849_v60 = vmul.f32 0.2, %v785_v53  ;;  %v9925_v58 = vpop.permute.xlu0 %88 }
  0xde   :  { %v851_v62 = vmul.f32 0.2, %v787_v54  ;;  %v789_v63 = vadd.f32 %v636_v55, %v9840_v16  ;;  %v792_v5 = vadd.f32 %v640_v50, %v9873_v40  ;;  %v791_v13 = vadd.f32 %v636_v55, %v9855_v31  ;;  %14775 = vst [vmem:[#allocation16_spill] sm:$0xff] %v9925_v58 }
  0xdf   :  { %v914_v59 = vmax.f32 %v786_v48, %v850_v52  ;;  %v913_v61 = vmax.f32 %v785_v53, %v849_v60  ;;  %v916_v2 = vmax.f32 %v788_v49, %v852_v56  ;;  %v854_v3 = vmul.f32 0.2, %v790_v57  ;;  %v9921_v53 = vpop.permute.xlu1 %70 }
  0xe0   :  { %v915_v9 = vmax.f32 %v787_v54, %v851_v62  ;;  %v853_v10 = vmul.f32 0.2, %v789_v63  ;;  %v856_v17 = vmul.f32 0.2, %v792_v5  ;;  %v794_v20 = vadd.f32 %v648_v7, %v9847_v25  ;;  %14774 = vst [vmem:[#allocation15_spill] sm:$0xff] %v9921_v53 }
  0xe1   :  { %1041 = vmatprep.mubr.f32.mxu1 %v914_v59  ;;  %v918_v4 = vmax.f32 %v790_v57, %v854_v3  ;;  %v573_v21 = vcombine.high %v563_v45, %v563_v45  ;;  %v855_v26 = vmul.f32 0.2, %v791_v13  ;;  %v793_v28 = vadd.f32 %v644_v14, %v9840_v16 }
  0xe2   :  { %1042 = vmatmul.mubr.f32.vlgmr.msra.gmra.mxu1 %v913_v61  ;;  %v917_v18 = vmax.f32 %v789_v63, %v853_v10  ;;  %v920_v29 = vmax.f32 %v792_v5, %v856_v17  ;;  %v858_v30 = vmul.f32 0.2, %v794_v20  ;;  %v796_v32 = vadd.f32 %v648_v7, %v9873_v40 }
  0xe3   :  { %1046 = vmatprep.mubr.f32.mxu1 %v916_v2  ;;  %v656_v33 = vrot.slane %v573_v21, %v9641_v12  ;;  %v919_v36 = vmax.f32 %v791_v13, %v855_v26  ;;  %v857_v19 = vmul.f32 0.2, %v793_v28  ;;  %v795_v23 = vadd.f32 %v644_v14, %v9855_v31  ;;  %v9931_v7 = vpop.permute.xlu1 %81  ;;  %v9934_v13 = vpop.permute.xlu0 %99 }
  0xe4   :  { %v652_v38 = vrot.slane %v573_v21, %v9638_v11  ;;  %v922_v45 = vmax.f32 %v794_v20, %v858_v30  ;;  %v860_v46 = vmul.f32 0.2, %v796_v32  ;;  %v542_v48 = vcombine.high %v540_v24, %v540_v24  ;;  %14776 = vst [vmem:[#allocation17_spill] sm:$0xff] %v9931_v7  ;;  %14777 = vst [vmem:[#allocation18_spill] sm:$0xff] %v9934_v13 }
  0xe5   :  { %v798_v47 = vadd.f32 %v656_v33, %v9847_v25  ;;  %v921_v49 = vmax.f32 %v793_v28, %v857_v19  ;;  %v859_v50 = vmul.f32 0.2, %v795_v23  ;;  %v800_v56 = vadd.f32 %v656_v33, %v9873_v40 }
  0xe6   :  { %1047 = vmatmul.mubr.f32.gmra.mxu1 %v915_v9  ;;  %v797_v52 = vadd.f32 %v652_v38, %v9840_v16  ;;  %v924_v54 = vmax.f32 %v796_v32, %v860_v46  ;;  %v664_v57 = vrot.slane %v556_v42, %v9641_v12  ;;  %v799_v61 = vadd.f32 %v652_v38, %v9855_v31 }
  0xe7   :  { %1051 = vmatprep.mubr.f32.mxu1 %v918_v4  ;;  %v862_v55 = vmul.f32 0.2, %v798_v47  ;;  %v923_v59 = vmax.f32 %v795_v23, %v859_v50  ;;  %v660_v62 = vrot.slane %v556_v42, %v9638_v11  ;;  %v570_v63 = vrot.slane %v542_v48, %v9858_v35  ;;  %v9940_v28 = vpop.permute.xlu1 %92 }
  0xe8   :  { %v861_v60 = vmul.f32 0.2, %v797_v52  ;;  %v864_v3 = vmul.f32 0.2, %v800_v56  ;;  %v802_v5 = vadd.f32 %v664_v57, %v9847_v25  ;;  %v863_v9 = vmul.f32 0.2, %v799_v61 }
  0xe9   :  { %v926_v2 = vmax.f32 %v798_v47, %v862_v55  ;;  %v801_v10 = vadd.f32 %v660_v62, %v9840_v16  ;;  %v804_v17 = vadd.f32 %v664_v57, %v9873_v40  ;;  %v672_v20 = vrot.slane %v570_v63, %v9641_v12  ;;  %14778 = vst [vmem:[#allocation19_spill] sm:$0xff] %v9940_v28 }
  0xea   :  { %1052 = vmatmul.mubr.f32.gmra.mxu1 %v917_v18  ;;  %v925_v8 = vmax.f32 %v797_v52, %v861_v60  ;;  %v928_v14 = vmax.f32 %v800_v56, %v864_v3  ;;  %v866_v4 = vmul.f32 0.2, %v802_v5  ;;  %v927_v21 = vmax.f32 %v799_v61, %v863_v9 }
  0xeb   :  { %1056 = vmatprep.mubr.f32.mxu1 %v920_v29  ;;  %v865_v24 = vmul.f32 0.2, %v801_v10  ;;  %v803_v18 = vadd.f32 %v660_v62, %v9855_v31  ;;  %v668_v26 = vrot.slane %v570_v63, %v9638_v11  ;;  %v868_v30 = vmul.f32 0.2, %v804_v17 }
  0xec   :  { %v930_v29 = vmax.f32 %v802_v5, %v866_v4  ;;  %v806_v32 = vadd.f32 %v672_v20, %v9847_v25  ;;  %v572_v33 = vcombine.high %v556_v42, %v556_v42  ;;  %v808_v47 = vadd.f32 %v672_v20, %v9873_v40 }
  0xed   :  { %v929_v19 = vmax.f32 %v801_v10, %v865_v24  ;;  %v867_v23 = vmul.f32 0.2, %v803_v18  ;;  %v805_v38 = vadd.f32 %v668_v26, %v9840_v16  ;;  %v807_v52 = vadd.f32 %v668_v26, %v9855_v31 }
  0xee   :  { %1057 = vmatmul.mubr.f32.gmra.mxu1 %v919_v36  ;;  %v9943_v36 = vpop.permute.xlu0 %110  ;;  %v870_v46 = vmul.f32 0.2, %v806_v32  ;;  %v680_v48 = vrot.slane %v572_v33, %v9641_v12  ;;  %v872_v57 = vmul.f32 0.2, %v808_v47  ;;  %v574_v60 = vcombine.high %v570_v63, %v570_v63 }
  0xef   :  { %1061 = vmatprep.mubr.f32.mxu1 %v922_v45  ;;  %14779 = vst [vmem:[#allocation20_spill] sm:$0xff] %v9943_v36  ;;  %v932_v45 = vmax.f32 %v804_v17, %v868_v30  ;;  %v931_v50 = vmax.f32 %v803_v18, %v867_v23  ;;  %v869_v42 = vmul.f32 0.2, %v805_v38  ;;  %v583_v61 = vrot.slane %v575_v43, %v9858_v35 }
  0xf0   :  { %v934_v56 = vmax.f32 %v806_v32, %v870_v46  ;;  %v812_v10 = vadd.f32 %v680_v48, %v9873_v40  ;;  %v684_v20 = vrot.slane %v574_v60, %v9638_v11 }
  0xf1   :  { %v933_v62 = vmax.f32 %v805_v38, %v869_v42  ;;  %v591_v30 = vcombine.high %v583_v61, %v583_v61 }
  0xf2   :  { %1062 = vmatmul.mubr.f32.gmra.mxu1 %v921_v49  ;;  %v9948_v49 = vpop.permute.xlu1 %103  ;;  %v9952_v55 = vpop.permute.xlu0 %121  ;;  %v876_v18 = vmul.f32 0.2, %v812_v10 }
  0xf3   :  { %1066 = vmatprep.mubr.f32.mxu1 %v924_v54  ;;  %14780 = vst [vmem:[#allocation21_spill] sm:$0xff] %v9948_v49  ;;  %v676_v54 = vrot.slane %v572_v33, %v9638_v11  ;;  %14781 = vst [vmem:[#allocation22_spill] sm:$0xff] %v9952_v55 }
  0xf4   :  { %v940_v38 = vmax.f32 %v812_v10, %v876_v18 }
  0xf5   :  { %v809_v3 = vadd.f32 %v676_v54, %v9840_v16  ;;  %v811_v43 = vadd.f32 %v676_v54, %v9855_v31 }
  0xf6   :  { %1067 = vmatmul.mubr.f32.gmra.mxu1 %v923_v59  ;;  %v810_v59 = vadd.f32 %v680_v48, %v9847_v25  ;;  %v9960_v5 = vpop.permute.xlu1 %114  ;;  %v9964_v63 = vpop.permute.xlu0 %132 }
  0xf7   :  { %1071 = vmatprep.mubr.f32.mxu1 %v926_v2  ;;  %v871_v2 = vmul.f32 0.2, %v807_v52  ;;  %14782 = vst [vmem:[#allocation23_spill] sm:$0xff] %v9960_v5  ;;  %14783 = vst [vmem:[#allocation24_spill] sm:$0xff] %v9964_v63  ;;  %v873_v17 = vmul.f32 0.2, %v809_v3 }
  0xf8   :  { %v874_v9 = vmul.f32 0.2, %v810_v59  ;;  %v875_v33 = vmul.f32 0.2, %v811_v43 }
  0xf9   :  { %v935_v4 = vmax.f32 %v807_v52, %v871_v2  ;;  %v937_v32 = vmax.f32 %v809_v3, %v873_v17  ;;  %v815_v52 = vadd.f32 %v684_v20, %v9855_v31 }
  0xfa   :  { %1072 = vmatmul.mubr.f32.gmra.mxu1 %v925_v8  ;;  %v936_v8 = vmax.f32 %v808_v47, %v872_v57  ;;  %v938_v24 = vmax.f32 %v810_v59, %v874_v9  ;;  %v9973_v23 = vpop.permute.xlu0 %143  ;;  %v939_v48 = vmax.f32 %v811_v43, %v875_v33 }
  0xfb   :  { %1076 = vmatprep.mubr.f32.mxu1 %v928_v14  ;;  %v688_v14 = vrot.slane %v574_v60, %v9641_v12  ;;  %14785 = vst [vmem:[#allocation26_spill] sm:$0xff] %v9973_v23  ;;  %v879_v2 = vmul.f32 0.2, %v815_v52 }
  0xfd   :  { %v814_v26 = vadd.f32 %v688_v14, %v9847_v25  ;;  %v816_v46 = vadd.f32 %v688_v14, %v9873_v40  ;;  %v943_v17 = vmax.f32 %v815_v52, %v879_v2 }
  0xfe   :  { %1077 = vmatmul.mubr.f32.gmra.mxu1 %v927_v21  ;;  %v599_v21 = vrot.slane %v583_v61, %v9858_v35  ;;  %v9983_v61 = vpop.permute.xlu0 %154 }
  0xff   :  { %1081 = vmatprep.mubr.f32.mxu1 %v930_v29  ;;  %v9970_v29 = vpop.permute.xlu1 %125  ;;  %v880_v59 = vmul.f32 0.2, %v816_v46  ;;  %14787 = vst [vmem:[#allocation28_spill] sm:$0xff] %v9983_v61 }
 0x100   :  { %14784 = vst [vmem:[#allocation25_spill] sm:$0xff] %v9970_v29  ;;  %v696_v47 = vrot.slane %v599_v21, %v9641_v12  ;;  %v692_v54 = vrot.slane %v599_v21, %v9638_v11  ;;  %v621_v33 = vcombine.high %v599_v21, %v599_v21 }
 0x102   :  { %1082 = vmatmul.mubr.f32.gmra.mxu1 %v929_v19  ;;  %v813_v19 = vadd.f32 %v684_v20, %v9840_v16  ;;  %v818_v60 = vadd.f32 %v696_v47, %v9847_v25  ;;  %v817_v3 = vadd.f32 %v692_v54, %v9840_v16  ;;  %v820_v10 = vadd.f32 %v696_v47, %v9873_v40 }
 0x103   :  { %1086 = vmatprep.mubr.f32.mxu1 %v932_v45  ;;  %v878_v45 = vmul.f32 0.2, %v814_v26  ;;  %v9977_v42 = vpop.permute.xlu1 %136  ;;  %v819_v20 = vadd.f32 %v692_v54, %v9855_v31  ;;  %v712_v52 = vrot.slane %v621_v33, %v9641_v12 }
 0x104   :  { %14786 = vst [vmem:[#allocation27_spill] sm:$0xff] %v9977_v42  ;;  %v882_v9 = vmul.f32 0.2, %v818_v60  ;;  %v881_v43 = vmul.f32 0.2, %v817_v3 }
 0x105   :  { %v942_v57 = vmax.f32 %v814_v26, %v878_v45  ;;  %v883_v45 = vmul.f32 0.2, %v819_v20 }
 0x106   :  { %1087 = vmatmul.mubr.f32.gmra.mxu1 %v931_v50  ;;  %v877_v50 = vmul.f32 0.2, %v813_v19  ;;  %v946_v26 = vmax.f32 %v818_v60, %v882_v9  ;;  %v708_v60 = vrot.slane %v621_v33, %v9638_v11 }
 0x107   :  { %1091 = vmatprep.mubr.f32.mxu1 %v934_v56  ;;  %v613_v56 = vrot.slane %v591_v30, %v9858_v35  ;;  %v884_v30 = vmul.f32 0.2, %v820_v10 }
 0x108   :  { %v827_v37 = vadd.f32 %v708_v60, %v9855_v31 }
 0x109   :  { %v704_v14 = vrot.slane %v613_v56, %v9641_v12  ;;  %v700_v18 = vrot.slane %v613_v56, %v9638_v11  ;;  %v948_v47 = vmax.f32 %v820_v10, %v884_v30  ;;  %v590_v10 = vrot.slane %v576_v44, %v9858_v35 }
 0x10a   :  { %1092 = vmatmul.mubr.f32.gmra.mxu1 %v933_v62  ;;  %v941_v62 = vmax.f32 %v813_v19, %v877_v50  ;;  %v945_v19 = vmax.f32 %v817_v3, %v881_v43  ;;  %v826_v3 = vadd.f32 %v712_v52, %v9847_v25  ;;  %v828_v30 = vadd.f32 %v712_v52, %v9873_v40 }
 0x10b   :  { %1096 = vmatprep.mubr.f32.mxu1 %v936_v8  ;;  %v944_v8 = vmax.f32 %v816_v46, %v880_v59  ;;  %v821_v46 = vadd.f32 %v700_v18, %v9840_v16  ;;  %v824_v50 = vadd.f32 %v704_v14, %v9873_v40  ;;  %v823_v59 = vadd.f32 %v700_v18, %v9855_v31 }
 0x10c   :  { %v606_v44 = vrot.slane %v590_v10, %v9858_v35 }
 0x10d   :  { %v885_v21 = vmul.f32 0.2, %v821_v46  ;;  %v888_v2 = vmul.f32 0.2, %v824_v50 }
 0x10e   :  { %1097 = vmatmul.mubr.f32.gmra.mxu1 %v935_v4  ;;  %v9988_v4 = vpop.permute.xlu1 %147 }
 0x10f   :  { %1101 = vmatprep.mubr.f32.mxu1 %v938_v24  ;;  %14788 = vst [vmem:[#allocation29_spill] sm:$0xff] %v9988_v4  ;;  %v9991_v24 = vpop.permute.xlu0 %165  ;;  %v952_v18 = vmax.f32 %v824_v50, %v888_v2  ;;  %v592_v50 = vcombine.high %v590_v10, %v590_v10  ;;  %v728_v2 = vrot.slane %v606_v44, %v9641_v12 }
 0x110   :  { %14789 = vst [vmem:[#allocation30_spill] sm:$0xff] %v9991_v24 }
 0x112   :  { %1102 = vmatmul.mubr.f32.gmra.mxu1 %v937_v32  ;;  %v822_v32 = vadd.f32 %v704_v14, %v9847_v25  ;;  %v949_v14 = vmax.f32 %v821_v46, %v885_v21  ;;  %v892_v46 = vmul.f32 0.2, %v828_v30 }
 0x113   :  { %1106 = vmatprep.mubr.f32.mxu1 %v940_v38  ;;  %v9995_v38 = vpop.permute.xlu1 %158  ;;  %v10000_v54 = vpop.permute.xlu0 %176 }
 0x114   :  { %14790 = vst [vmem:[#allocation31_spill] sm:$0xff] %v9995_v38  ;;  %14791 = vst [vmem:[#allocation32_spill] sm:$0xff] %v10000_v54 }
 0x116   :  { %1107 = vmatmul.mubr.f32.gmra.mxu1 %v939_v48  ;;  %v886_v48 = vmul.f32 0.2, %v822_v32 }
 0x117   :  { %1111 = vmatprep.mubr.f32.mxu1 %v942_v57  ;;  %v947_v57 = vmax.f32 %v819_v20, %v883_v45  ;;  %v10005_v9 = vpop.permute.xlu1 %169  ;;  %v10011_v43 = vpop.permute.xlu0 %187  ;;  %v825_v20 = vadd.f32 %v708_v60, %v9840_v16 }
 0x118   :  { %14792 = vst [vmem:[#allocation33_spill] sm:$0xff] %v10005_v9  ;;  %14793 = vst [vmem:[#allocation34_spill] sm:$0xff] %v10011_v43 }
 0x11a   :  { %1112 = vmatmul.mubr.f32.gmra.mxu1 %v941_v62  ;;  %v950_v62 = vmax.f32 %v822_v32, %v886_v48 }
 0x11b   :  { %1116 = vmatprep.mubr.f32.mxu1 %v944_v8  ;;  %v623_v8 = vcombine.high %v613_v56, %v613_v56  ;;  %v10016_v32 = vpop.permute.xlu1 %180  ;;  %v10022_v48 = vpop.permute.xlu0 %198 }
 0x11c   :  { %14794 = vst [vmem:[#allocation35_spill] sm:$0xff] %v10016_v32  ;;  %14795 = vst [vmem:[#allocation36_spill] sm:$0xff] %v10022_v48 }
 0x11d   :  { %v720_v56 = vrot.slane %v623_v8, %v9641_v12  ;;  %v716_v39 = vrot.slane %v623_v8, %v9638_v11 }
 0x11e   :  { %1117 = vmatmul.mubr.f32.gmra.mxu1 %v943_v17  ;;  %v887_v17 = vmul.f32 0.2, %v823_v59 }
 0x11f   :  { %1121 = vmatprep.mubr.f32.mxu1 %v946_v26  ;;  %v890_v26 = vmul.f32 0.2, %v826_v3  ;;  %v829_v21 = vadd.f32 %v716_v39, %v9840_v16  ;;  %v832_v60 = vadd.f32 %v720_v56, %v9873_v40  ;;  %v10027_v8 = vpop.permute.xlu1 %191  ;;  %v831_v10 = vadd.f32 %v716_v39, %v9855_v31 }
 0x120   :  { %v951_v33 = vmax.f32 %v823_v59, %v887_v17  ;;  %v956_v59 = vmax.f32 %v828_v30, %v892_v46  ;;  %14796 = vst [vmem:[#allocation37_spill] sm:$0xff] %v10027_v8  ;;  %v836_v39 = vadd.f32 %v728_v2, %v9873_v40 }
 0x121   :  { %v954_v45 = vmax.f32 %v826_v3, %v890_v26  ;;  %v893_v17 = vmul.f32 0.2, %v829_v21  ;;  %v896_v30 = vmul.f32 0.2, %v832_v60 }
 0x122   :  { %1122 = vmatmul.mubr.f32.gmra.mxu1 %v945_v19  ;;  %v889_v19 = vmul.f32 0.2, %v825_v20 }
 0x123   :  { %1126 = vmatprep.mubr.f32.mxu1 %v948_v47  ;;  %v830_v47 = vadd.f32 %v720_v56, %v9847_v25  ;;  %v834_v56 = vadd.f32 %v728_v2, %v9847_v25  ;;  %v960_v46 = vmax.f32 %v832_v60, %v896_v30  ;;  %v622_v60 = vcombine.high %v606_v44, %v606_v44 }
 0x124   :  { %v953_v52 = vmax.f32 %v825_v20, %v889_v19  ;;  %v724_v20 = vrot.slane %v606_v44, %v9638_v11  ;;  %v957_v19 = vmax.f32 %v829_v21, %v893_v17  ;;  %v900_v17 = vmul.f32 0.2, %v836_v39 }
 0x126   :  { %1127 = vmatmul.mubr.f32.gmra.mxu1 %v947_v57  ;;  %v891_v57 = vmul.f32 0.2, %v827_v37 }
 0x127   :  { %1131 = vmatprep.mubr.f32.mxu1 %v950_v62  ;;  %v894_v62 = vmul.f32 0.2, %v830_v47 }
 0x128   :  { %v955_v3 = vmax.f32 %v827_v37, %v891_v57  ;;  %v833_v37 = vadd.f32 %v724_v20, %v9840_v16 }
 0x129   :  { %v958_v26 = vmax.f32 %v830_v47, %v894_v62  ;;  %v835_v62 = vadd.f32 %v724_v20, %v9855_v31 }
 0x12a   :  { %1132 = vmatmul.mubr.f32.gmra.mxu1 %v949_v14  ;;  %v10029_v14 = vpop.permute.xlu0 %209 }
 0x12b   :  { %1136 = vmatprep.mubr.f32.mxu1 %v952_v18  ;;  %14797 = vst [vmem:[#allocation38_spill] sm:$0xff] %v10029_v14  ;;  %v620_v18 = vrot.slane %v592_v50, %v9858_v35  ;;  %v899_v0 = vmul.f32 0.2, %v835_v62 }
 0x12d   :  { %v736_v57 = vrot.slane %v620_v18, %v9641_v12 }
 0x12e   :  { %1137 = vmatmul.mubr.f32.gmra.mxu1 %v951_v33  ;;  %v10035_v33 = vpop.permute.xlu1 %202 }
 0x12f   :  { %1141 = vmatprep.mubr.f32.mxu1 %v954_v45  ;;  %14798 = vst [vmem:[#allocation39_spill] sm:$0xff] %v10035_v33  ;;  %v895_v45 = vmul.f32 0.2, %v831_v10  ;;  %v840_v20 = vadd.f32 %v736_v57, %v9873_v40 }
 0x131   :  { %v959_v47 = vmax.f32 %v831_v10, %v895_v45  ;;  %v964_v45 = vmax.f32 %v836_v39, %v900_v17  ;;  %v904_v39 = vmul.f32 0.2, %v840_v20 }
 0x132   :  { %1142 = vmatmul.mubr.f32.gmra.mxu1 %v953_v52  ;;  %v898_v52 = vmul.f32 0.2, %v834_v56  ;;  %v10045_v30 = vpop.permute.xlu1 %213 }
 0x133   :  { %1146 = vmatprep.mubr.f32.mxu1 %v956_v59  ;;  %v897_v59 = vmul.f32 0.2, %v833_v37  ;;  %14800 = vst [vmem:[#allocation41_spill] sm:$0xff] %v10045_v30 }
 0x134   :  { %v962_v21 = vmax.f32 %v834_v56, %v898_v52  ;;  %v744_v56 = vrot.slane %v622_v60, %v9641_v12 }
 0x136   :  { %1147 = vmatmul.mubr.f32.gmra.mxu1 %v955_v3  ;;  %v732_v3 = vrot.slane %v620_v18, %v9638_v11  ;;  %v842_v17 = vadd.f32 %v744_v56, %v9847_v25 }
 0x137   :  { %1151 = vmatprep.mubr.f32.mxu1 %v958_v26  ;;  %v838_v26 = vadd.f32 %v736_v57, %v9847_v25  ;;  %v624_v57 = vcombine.high %v620_v18, %v620_v18 }
 0x138   :  { %v837_v10 = vadd.f32 %v732_v3, %v9840_v16 }
 0x13a   :  { %1152 = vmatmul.mubr.f32.gmra.mxu1 %v957_v19  ;;  %v961_v19 = vmax.f32 %v833_v37, %v897_v59  ;;  %v901_v27 = vmul.f32 0.2, %v837_v10  ;;  %v740_v37 = vrot.slane %v622_v60, %v9638_v11  ;;  %v752_v60 = vrot.slane %v624_v57, %v9641_v12 }
 0x13b   :  { %v10040_v50 = vpop.permute.xlu0 %2979  ;;  %1156 = vmatprep.mubr.f32.mxu1 %v960_v46  ;;  %v902_v46 = vmul.f32 0.2, %v838_v26  ;;  %v1967_v44 = vpop.permute.xlu1 %1966 }
 0x13c   :  { %14799 = vst [vmem:[#allocation40_spill] sm:$0xff] %v10040_v50  ;;  %v843_v18 = vadd.f32 %v740_v37, %v9855_v31 }
 0x13d   :  { %v966_v59 = vmax.f32 %v838_v26, %v902_v46 }
 0x13e   :  { %1157 = vmatmul.mubr.f32.gmra.mxu1 %v959_v47  ;;  %v963_v47 = vmax.f32 %v835_v62, %v899_v0  ;;  %v841_v0 = vadd.f32 %v740_v37, %v9840_v16  ;;  %v968_v62 = vmax.f32 %v840_v20, %v904_v39  ;;  %v907_v20 = vmul.f32 0.2, %v843_v18 }
 0x13f   :  { %v10047_v2 = vpop.permute.xlu0 %3657  ;;  %1161 = vmatprep.mubr.f32.mxu1 %v962_v21  ;;  %v839_v21 = vadd.f32 %v732_v3, %v9855_v31  ;;  %v844_v3 = vadd.f32 %v744_v56, %v9873_v40 }
 0x140   :  { %14801 = vst [vmem:[#allocation42_spill] sm:$0xff] %v10047_v2  ;;  %v905_v46 = vmul.f32 0.2, %v841_v0 }
 0x142   :  { %1162 = vmatmul.mubr.f32.gmra.mxu1 %v961_v19  ;;  %v965_v19 = vmax.f32 %v837_v10, %v901_v27  ;;  %v846_v27 = vadd.f32 %v752_v60, %v9847_v25  ;;  %v969_v10 = vmax.f32 %v841_v0, %v905_v46 }
 0x143   :  { %v1969_v52 = vpop.permute.xlu0 %1968  ;;  %1166 = vmatprep.mubr.f32.mxu1 %v964_v45  ;;  %v903_v45 = vmul.f32 0.2, %v839_v21 }
 0x144   :  { %8636 = vmatprep.subr.mxu0 %v1969_v52  ;;  %v910_v12 = vmul.f32 0.2, %v846_v27 }
 0x145   :  { %8637 = vmatpush3.msra.mxu0 %v1969_v52  ;;  %v906_v52 = vmul.f32 0.2, %v842_v17  ;;  %v967_v26 = vmax.f32 %v839_v21, %v903_v45  ;;  %v971_v21 = vmax.f32 %v843_v18, %v907_v20 }
 0x146   :  { %8638 = vmatprep.subr.mxu0 %v1967_v44  ;;  %1167 = vmatmul.mubr.f32.gmra.mxu1 %v963_v47 }
 0x147   :  { %8639 = vmatpush3.msra.mxu0 %v1967_v44  ;;  %1171 = vmatprep.mubr.f32.mxu1 %v966_v59  ;;  %v748_v44 = vrot.slane %v624_v57, %v9638_v11  ;;  %v970_v47 = vmax.f32 %v842_v17, %v906_v52  ;;  %v908_v59 = vmul.f32 0.2, %v844_v3  ;;  %v974_v17 = vmax.f32 %v846_v27, %v910_v12 }
 0x148   :  { %8643 = vmatprep.subr.mxu0 %v9855_v31 }
 0x149   :  { %v845_v56 = vadd.f32 %v748_v44, %v9840_v16  ;;  %v972_v39 = vmax.f32 %v844_v3, %v908_v59  ;;  %v847_v57 = vadd.f32 %v748_v44, %v9855_v31  ;;  %v14661_v3 = vmov 1  }
 0x14a   :  { %1172 = vmatmul.mubr.f32.gmra.mxu1 %v965_v19  ;;  %v848_v19 = vadd.f32 %v752_v60, %v9873_v40  ;;  %8843 = vset.pattern.permute.xlu1 %v14661_v3 }
 0x14b   :  { %1176 = vmatprep.mubr.f32.mxu1 %v968_v62  ;;  %v909_v37 = vmul.f32 0.2, %v845_v56  ;;  %v911_v52 = vmul.f32 0.2, %v847_v57  ;;  %8842 = vset.pattern.permute.xlu0 %v14661_v3 }
 0x14c   :  { %v912_v45 = vmul.f32 0.2, %v848_v19 }
 0x14d   :  { %v973_v62 = vmax.f32 %v845_v56, %v909_v37 }
 0x14e   :  { %1177 = vmatmul.mubr.f32.gmra.mxu1 %v967_v26  ;;  %v976_v0 = vmax.f32 %v848_v19, %v912_v45  ;;  %v975_v26 = vmax.f32 %v847_v57, %v911_v52 }
 0x14f   :  { %1181 = vmatprep.mubr.f32.mxu1 %v970_v47 }
 0x152   :  { %1182 = vmatmul.mubr.f32.gmra.mxu1 %v969_v10 }
 0x153   :  { %1186 = vmatprep.mubr.f32.mxu1 %v972_v39 }
 0x156   :  { %1187 = vmatmul.mubr.f32.gmra.mxu1 %v971_v21 }
 0x157   :  { %1191 = vmatprep.mubr.f32.mxu1 %v974_v17 }
 0x15a   :  { %1192 = vmatmul.mubr.f32.gmra.mxu1 %v973_v62 }
 0x15b   :  { %1196 = vmatprep.mubr.f32.mxu1 %v976_v0 }
 0x15e   :  { %1197 = vmatmul.mubr.f32.gmra.mxu1 %v975_v26 }
 0x1a2   :  { %v1043_v60 = vpop.f32.mrf.mxu1 }
 0x1a3   :  { %v1202_v18 = vadd.f32 %v1043_v60, %v9890_v51 }
 0x1a4   :  { %v1045_v46 = vpop.f32.mrf.mxu1 }
 0x1a5   :  { %v1235_v27 = vsel %vm1234_vm1, %v1202_v18, -inf }
 0x1a6   :  { %v1048_v44 = vpop.f32.mrf.mxu1 }
 0x1a7   :  { %v1203_v47 = vadd.f32 %v1048_v44, %v9897_v1 }
 0x1a8   :  { %v1050_v59 = vpop.f32.mrf.mxu1 }
 0x1a9   :  { %v1236_v10 = vsel %vm1234_vm1, %v1203_v47, -inf }
 0x1aa   :  { %v1237_v20 = vmax.f32 %v1235_v27, %v1236_v10  ;;  %v1053_v56 = vpop.f32.mrf.mxu1 }
 0x1ab   :  { %v1204_v19 = vadd.f32 %v1053_v56, %v9903_v15 }
 0x1ac   :  { %v1238_v39 = vrot.slane %v1237_v20, 4  ;;  %v1055_v12 = vpop.f32.mrf.mxu1 }
 0x1ad   :  { %v1244_v62 = vsel %vm1234_vm1, %v1204_v19, -inf }
 0x1ae   :  { %v1239_v21 = vmax.f32 %v1237_v20, %v1238_v39  ;;  %v1058_v37 = vpop.f32.mrf.mxu1 }
 0x1af   :  { %v1205_v57 = vadd.f32 %v1058_v37, %v9912_v34 }
 0x1b0   :  { %v1240_v17 = vrot.slane %v1239_v21, 2  ;;  %v1060_v45 = vpop.f32.mrf.mxu1 }
 0x1b1   :  { %v1245_v52 = vsel %vm1234_vm1, %v1205_v57, -inf }
 0x1b2   :  { %v1241_v0 = vmax.f32 %v1239_v21, %v1240_v17  ;;  %v1246_v26 = vmax.f32 %v1244_v62, %v1245_v52  ;;  %v1063_v60 = vpop.f32.mrf.mxu1 }
 0x1b3   :  { %v10076_v27 = vadd.f32 %v1063_v60, %v9906_v22 }
 0x1b4   :  { %v1242_v46 = vrot.slane %v1241_v0, 1  ;;  %v1247_v44 = vrot.slane %v1246_v26, 4  ;;  %v1065_v59 = vpop.f32.mrf.mxu1 }
 0x1b5   :  { %v1253_v21 = vsel %vm1234_vm1, %v10076_v27, -inf }
 0x1b6   :  { %v1243_v10 = vmax.f32 %v1241_v0, %v1242_v46  ;;  %v1248_v20 = vmax.f32 %v1246_v26, %v1247_v44  ;;  %v1068_v56 = vpop.f32.mrf.mxu1 }
 0x1b7   :  { %v10079_v39 = vadd.f32 %v1068_v56, %v9921_v53 }
 0x1b8   :  { %v1379_v12 = vsub.f32 %v1202_v18, %v1243_v10  ;;  %v1380_v37 = vsub.f32 %v1203_v47, %v1243_v10  ;;  %v1249_v45 = vrot.slane %v1248_v20, 2  ;;  %v1070_v3 = vpop.f32.mrf.mxu1 }
 0x1b9   :  { %v1254_v17 = vsel %vm1234_vm1, %v10079_v39, -inf }
 0x1ba   :  { %v1411_v62 = vmul.f32 1.442695, %v1379_v12  ;;  %v1413_v52 = vmul.f32 1.442695, %v1380_v37  ;;  %v1250_v60 = vmax.f32 %v1248_v20, %v1249_v45  ;;  %v1255_v59 = vmax.f32 %v1253_v21, %v1254_v17  ;;  %v1073_v0 = vpop.f32.mrf.mxu1 }
 0x1bb   :  { %v1208_v18 = vadd.f32 %v1073_v0, %v9916_v41 }
 0x1bc   :  { %9339 = vpow2.f32 %v1411_v62  ;;  %v1251_v26 = vrot.slane %v1250_v60, 1  ;;  %v1256_v46 = vrot.slane %v1255_v59, 4  ;;  %v1075_v44 = vpop.f32.mrf.mxu1 }
 0x1bd   :  { %9341 = vpow2.f32 %v1413_v52  ;;  %v1262_v12 = vsel %vm1234_vm1, %v1208_v18, -inf }
 0x1be   :  { %v1252_v47 = vmax.f32 %v1250_v60, %v1251_v26  ;;  %v1257_v3 = vmax.f32 %v1255_v59, %v1256_v46  ;;  %v1078_v10 = vpop.f32.mrf.mxu1 }
 0x1bf   :  { %v1209_v56 = vadd.f32 %v1078_v10, %v9931_v7 }
 0x1c0   :  { %v1258_v53 = vrot.slane %v1257_v3, 2  ;;  %v1080_v22 = vpop.f32.mrf.mxu1  ;;  %v1381_v37 = vsub.f32 %v1204_v19, %v1252_v47  ;;  %v1382_v17 = vsub.f32 %v1205_v57, %v1252_v47 }
 0x1c1   :  { %v1263_v20 = vsel %vm1234_vm1, %v1209_v56, -inf }
 0x1c2   :  { %v1264_v45 = vmax.f32 %v1262_v12, %v1263_v20  ;;  %v1083_v21 = vpop.f32.mrf.mxu1  ;;  %v1259_v62 = vmax.f32 %v1257_v3, %v1258_v53  ;;  %v1415_v15 = vmul.f32 1.442695, %v1381_v37  ;;  %v1417_v26 = vmul.f32 1.442695, %v1382_v17 }
 0x1c3   :  { %v10090_v60 = vadd.f32 %v1083_v21, %v9925_v58 }
 0x1c4   :  { %v1265_v44 = vrot.slane %v1264_v45, 4  ;;  %v1085_v52 = vpop.f32.mrf.mxu1  ;;  %v1260_v46 = vrot.slane %v1259_v62, 1  ;;  %9343 = vpow2.f32 %v1415_v15 }
 0x1c5   :  { %v1271_v12 = vsel %vm1234_vm1, %v10090_v60, -inf  ;;  %9345 = vpow2.f32 %v1417_v26 }
 0x1c6   :  { %v1266_v0 = vmax.f32 %v1264_v45, %v1265_v44  ;;  %v1088_v59 = vpop.f32.mrf.mxu1  ;;  %v1261_v21 = vmax.f32 %v1259_v62, %v1260_v46 }
 0x1c7   :  { %v10093_v22 = vadd.f32 %v1088_v59, %v9940_v28 }
 0x1c8   :  { %v1267_v10 = vrot.slane %v1266_v0, 2  ;;  %v1090_v7 = vpop.f32.mrf.mxu1  ;;  %v1383_v34 = vsub.f32 %v10076_v27, %v1261_v21 }
 0x1c9   :  { %v10095_v19 = vpop.eup %9339  ;;  %v1272_v53 = vsel %vm1234_vm1, %v10093_v22, -inf }
 0x1ca   :  { %v10099_v57 = vpop.eup %9341  ;;  %v1475_v47 = vsel %vm1234_vm1, %v10095_v19, 0.0  ;;  %v1268_v3 = vmax.f32 %v1266_v0, %v1267_v10  ;;  %v1093_v20 = vpop.f32.mrf.mxu1  ;;  %v1273_v7 = vmax.f32 %v1271_v12, %v1272_v53  ;;  %v1419_v27 = vmul.f32 1.442695, %v1383_v34 }
 0x1cb   :  { %v1476_v37 = vsel %vm1234_vm1, %v10099_v57, 0.0  ;;  %v10108_v58 = vadd.f32 %v1093_v20, %v9934_v13 }
 0x1cc   :  { %v1477_v45 = vadd.f32 %v1476_v37, %v1475_v47  ;;  %v1269_v17 = vrot.slane %v1268_v3, 1  ;;  %v1095_v44 = vpop.f32.mrf.mxu1  ;;  %v1274_v52 = vrot.slane %v1273_v7, 4 }
 0x1cd   :  { %v1280_v20 = vsel %vm1234_vm1, %v10108_v58, -inf }
 0x1ce   :  { %v1478_v59 = vrot.slane %v1477_v45, 4  ;;  %v1270_v28 = vmax.f32 %v1268_v3, %v1269_v17  ;;  %v1098_v15 = vpop.f32.mrf.mxu1  ;;  %v1275_v0 = vmax.f32 %v1273_v7, %v1274_v52  ;;  %v1384_v17 = vsub.f32 %v10079_v39, %v1261_v21 }
 0x1cf   :  { %v10111_v10 = vadd.f32 %v1098_v15, %v9948_v49 }
 0x1d0   :  { %v1479_v41 = vadd.f32 %v1478_v59, %v1477_v45  ;;  %v1385_v26 = vsub.f32 %v1208_v18, %v1270_v28  ;;  %v1386_v53 = vsub.f32 %v1209_v56, %v1270_v28  ;;  %v1100_v47 = vpop.f32.mrf.mxu1  ;;  %v1276_v62 = vrot.slane %v1275_v0, 2 }
 0x1d1   :  { %v1281_v46 = vsel %vm1234_vm1, %v10111_v10, -inf }
 0x1d2   :  { %v1480_v12 = vrot.slane %v1479_v41, 2  ;;  %v1423_v3 = vmul.f32 1.442695, %v1385_v26  ;;  %v1425_v37 = vmul.f32 1.442695, %v1386_v53  ;;  %v1103_v7 = vpop.f32.mrf.mxu1  ;;  %v1277_v44 = vmax.f32 %v1275_v0, %v1276_v62  ;;  %v10122_v53 = vpop.eup %9343 }
 0x1d3   :  { %v1282_v45 = vmax.f32 %v1280_v20, %v1281_v46  ;;  %v10120_v28 = vadd.f32 %v1103_v7, %v9943_v36  ;;  %v10127_v21 = vpop.eup %9345  ;;  %v1484_v20 = vsel %vm1234_vm1, %v10122_v53, 0.0 }
 0x1d4   :  { %v1481_v52 = vadd.f32 %v1480_v12, %v1479_v41  ;;  %9347 = vpow2.f32 %v1423_v3  ;;  %v1105_v18 = vpop.f32.mrf.mxu1  ;;  %v1278_v56 = vrot.slane %v1277_v44, 1  ;;  %v1421_v41 = vmul.f32 1.442695, %v1384_v17 }
 0x1d5   :  { %9349 = vpow2.f32 %v1425_v37  ;;  %v1283_v59 = vrot.slane %v1282_v45, 4  ;;  %v1289_v0 = vsel %vm1234_vm1, %v10120_v28, -inf  ;;  %v1485_v17 = vsel %vm1234_vm1, %v10127_v21, 0.0 }
 0x1d6   :  { %v1482_v15 = vrot.slane %v1481_v52, 1  ;;  %v1108_v26 = vpop.f32.mrf.mxu1  ;;  %v1279_v47 = vmax.f32 %v1277_v44, %v1278_v56  ;;  %9351 = vpow2.f32 %v1419_v27  ;;  %v1486_v56 = vadd.f32 %v1485_v17, %v1484_v20 }
 0x1d7   :  { %v1284_v49 = vmax.f32 %v1282_v45, %v1283_v59  ;;  %v10125_v39 = vadd.f32 %v1108_v26, %v9960_v5 }
 0x1d8   :  { %v1483_v34 = vadd.f32 %v1482_v15, %v1481_v52  ;;  %v1110_v62 = vpop.f32.mrf.mxu1  ;;  %v1387_v46 = vsub.f32 %v10090_v60, %v1279_v47  ;;  %v1388_v12 = vsub.f32 %v10093_v22, %v1279_v47 }
 0x1d9   :  { %v1285_v3 = vrot.slane %v1284_v49, 2  ;;  %v1290_v37 = vsel %vm1234_vm1, %v10125_v39, -inf }
 0x1da   :  { %9353 = vrcp.f32 %v1483_v34  ;;  %v1291_v7 = vmax.f32 %v1289_v0, %v1290_v37  ;;  %v1113_v44 = vpop.f32.mrf.mxu1  ;;  %v1427_v45 = vmul.f32 1.442695, %v1387_v46  ;;  %v1429_v52 = vmul.f32 1.442695, %v1388_v12 }
 0x1db   :  { %v1286_v27 = vmax.f32 %v1284_v49, %v1285_v3  ;;  %9355 = vpow2.f32 %v1421_v41  ;;  %v10140_v15 = vadd.f32 %v1113_v44, %v9952_v55  ;;  %v1487_v37 = vrot.slane %v1486_v56, 4 }
 0x1dc   :  { %v1292_v60 = vrot.slane %v1291_v7, 4  ;;  %v1115_v18 = vpop.f32.mrf.mxu1  ;;  %9357 = vpow2.f32 %v1427_v45 }
 0x1dd   :  { %v1287_v22 = vrot.slane %v1286_v27, 1  ;;  %9359 = vpow2.f32 %v1429_v52  ;;  %v1298_v44 = vsel %vm1234_vm1, %v10140_v15, -inf }
 0x1de   :  { %v1293_v59 = vmax.f32 %v1291_v7, %v1292_v60  ;;  %v1118_v26 = vpop.f32.mrf.mxu1 }
 0x1df   :  { %v1288_v47 = vmax.f32 %v1286_v27, %v1287_v22  ;;  %v10143_v34 = vadd.f32 %v1118_v26, %v9970_v29 }
 0x1e0   :  { %v1294_v0 = vrot.slane %v1293_v59, 2  ;;  %v1120_v62 = vpop.f32.mrf.mxu1 }
 0x1e1   :  { %v10145_v46 = vpop.eup %9347  ;;  %v1389_v49 = vsub.f32 %v10108_v58, %v1288_v47  ;;  %v1390_v41 = vsub.f32 %v10111_v10, %v1288_v47  ;;  %v1299_v12 = vsel %vm1234_vm1, %v10143_v34, -inf  ;;  %v1488_v47 = vadd.f32 %v1487_v37, %v1486_v56 }
 0x1e2   :  { %v10151_v3 = vpop.eup %9349  ;;  %v1502_v20 = vsel %vm1234_vm1, %v10145_v46, 0.0  ;;  %v1295_v7 = vmax.f32 %v1293_v59, %v1294_v0  ;;  %v1123_v17 = vpop.f32.mrf.mxu1  ;;  %v1300_v10 = vmax.f32 %v1298_v44, %v1299_v12 }
 0x1e3   :  { %v1503_v45 = vsel %vm1234_vm1, %v10151_v3, 0.0  ;;  %v1431_v58 = vmul.f32 1.442695, %v1389_v49  ;;  %v1433_v52 = vmul.f32 1.442695, %v1390_v41  ;;  %v10160_v18 = vadd.f32 %v1123_v17, %v9964_v63  ;;  %v10162_v26 = vpop.eup %9351 }
 0x1e4   :  { %v1504_v27 = vadd.f32 %v1503_v45, %v1502_v20  ;;  %v1296_v60 = vrot.slane %v1295_v7, 1  ;;  %v1125_v22 = vpop.f32.mrf.mxu1  ;;  %v1301_v59 = vrot.slane %v1300_v10, 4 }
 0x1e5   :  { %9361 = vpow2.f32 %v1431_v58  ;;  %v1307_v44 = vsel %vm1234_vm1, %v10160_v18, -inf  ;;  %v1489_v58 = vrot.slane %v1488_v47, 2 }
 0x1e6   :  { %v1505_v0 = vrot.slane %v1504_v27, 4  ;;  %9363 = vpow2.f32 %v1433_v52  ;;  %v1297_v62 = vmax.f32 %v1295_v7, %v1296_v60  ;;  %v1128_v29 = vpop.f32.mrf.mxu1  ;;  %v1302_v5 = vmax.f32 %v1300_v10, %v1301_v59 }
 0x1e7   :  { %v9354_v55 = vpop.eup %9353  ;;  %v10165_v49 = vadd.f32 %v1128_v29, %v9977_v42  ;;  %v1490_v36 = vadd.f32 %v1489_v58, %v1488_v47 }
 0x1e8   :  { %v10168_v41 = vmul.f32 %v9354_v55, %v10095_v19  ;;  %v10171_v12 = vmul.f32 %v9354_v55, %v10099_v57  ;;  %v1506_v20 = vadd.f32 %v1505_v0, %v1504_v27  ;;  %v1130_v56 = vpop.f32.mrf.mxu1  ;;  %v10175_v37 = vpop.eup %9355  ;;  %v1391_v7 = vsub.f32 %v10120_v28, %v1297_v62 }
 0x1e9   :  { %v1392_v17 = vsub.f32 %v10125_v39, %v1297_v62  ;;  %v1303_v45 = vrot.slane %v1302_v5, 2  ;;  %v1308_v29 = vsel %vm1234_vm1, %v10165_v49, -inf  ;;  %v10181_v19 = vpop.eup %9357  ;;  %v1493_v55 = vsel %vm1234_vm1, %v10162_v26, 0.0 }
 0x1ea   :  { %v1507_v57 = vrot.slane %v1506_v20, 2  ;;  %v1309_v52 = vmax.f32 %v1307_v44, %v1308_v29  ;;  %1703 = vperm.xlu1 %8843, %v10171_v12   ;;  %1700 = vperm.xlu0 %8842, %v10168_v41   ;;  %v1133_v10 = vpop.f32.mrf.mxu1  ;;  %v10187_v28 = vpop.eup %9359  ;;  %v1511_v39 = vsel %vm1234_vm1, %v10181_v19, 0.0  ;;  %v1435_v27 = vmul.f32 1.442695, %v1391_v7 }
 0x1eb   :  { %v1437_v60 = vmul.f32 1.442695, %v1392_v17  ;;  %v1304_v22 = vmax.f32 %v1302_v5, %v1303_v45  ;;  %v1512_v0 = vsel %vm1234_vm1, %v10187_v28, 0.0  ;;  %v10194_v44 = vadd.f32 %v1133_v10, %v9973_v23 }
 0x1ec   :  { %v1508_v59 = vadd.f32 %v1507_v57, %v1506_v20  ;;  %v1310_v62 = vrot.slane %v1309_v52, 4  ;;  %v1135_v56 = vpop.f32.mrf.mxu1  ;;  %v1494_v29 = vsel %vm1234_vm1, %v10175_v37, 0.0  ;;  %v1513_v42 = vadd.f32 %v1512_v0, %v1511_v39 }
 0x1ed   :  { %9365 = vpow2.f32 %v1435_v27  ;;  %v1305_v63 = vrot.slane %v1304_v22, 1  ;;  %v14681_v5 = vmov 0   ;;  %v1495_v10 = vadd.f32 %v1494_v29, %v1493_v55 }
 0x1ee   :  { %v1509_v13 = vrot.slane %v1508_v59, 1  ;;  %9367 = vpow2.f32 %v1437_v60  ;;  %v1311_v7 = vmax.f32 %v1309_v52, %v1310_v62  ;;  %8844 = vset.pattern.permute.xlu1 %v14681_v5  ;;  %8845 = vset.pattern.permute.xlu0 %v14681_v5  ;;  %v1138_v20 = vpop.f32.mrf.mxu1  ;;  %v1514_v17 = vrot.slane %v1513_v42, 4 }
 0x1ef   :  { %v1306_v45 = vmax.f32 %v1304_v22, %v1305_v63  ;;  %2052 = vperm.xlu1 %8844, %v10168_v41   ;;  %2055 = vperm.xlu0 %8845, %v10171_v12   ;;  %v10203_v57 = vadd.f32 %v1138_v20, %v9988_v4  ;;  %v1316_v52 = vsel %vm1234_vm1, %v10194_v44, -inf  ;;  %v1491_v62 = vrot.slane %v1490_v36, 1 }
 0x1f0   :  { %v1510_v47 = vadd.f32 %v1509_v13, %v1508_v59  ;;  %v1312_v58 = vrot.slane %v1311_v7, 2  ;;  %v1140_v39 = vpop.f32.mrf.mxu1  ;;  %v1515_v27 = vadd.f32 %v1514_v17, %v1513_v42  ;;  %v14679_v17 = vmov 2  }
 0x1f1   :  { %v1393_v60 = vsub.f32 %v10140_v15, %v1306_v45  ;;  %v1394_v0 = vsub.f32 %v10143_v34, %v1306_v45  ;;  %v1317_v63 = vsel %vm1234_vm1, %v10203_v57, -inf }
 0x1f2   :  { %v10211_v22 = vpop.eup %9361  ;;  %9369 = vrcp.f32 %v1510_v47  ;;  %v1313_v56 = vmax.f32 %v1311_v7, %v1312_v58  ;;  %v1318_v55 = vmax.f32 %v1316_v52, %v1317_v63  ;;  %v1143_v13 = vpop.f32.mrf.mxu1  ;;  %v1516_v29 = vrot.slane %v1515_v27, 2 }
 0x1f3   :  { %v10213_v59 = vpop.eup %9363  ;;  %v1520_v42 = vsel %vm1234_vm1, %v10211_v22, 0.0  ;;  %v1439_v20 = vmul.f32 1.442695, %v1393_v60  ;;  %v1441_v15 = vmul.f32 1.442695, %v1394_v0  ;;  %8847 = vset.pattern.permute.xlu1 %v14679_v17  ;;  %8846 = vset.pattern.permute.xlu0 %v14679_v17  ;;  %v10222_v47 = vadd.f32 %v1143_v13, %v9983_v61 }
 0x1f4   :  { %v1521_v34 = vsel %vm1234_vm1, %v10213_v59, 0.0  ;;  %v1314_v45 = vrot.slane %v1313_v56, 1  ;;  %v1319_v7 = vrot.slane %v1318_v55, 4  ;;  %2388 = vperm.xlu1 %8847, %v10171_v12   ;;  %2385 = vperm.xlu0 %8846, %v10168_v41   ;;  %v1145_v58 = vpop.f32.mrf.mxu1  ;;  %v1517_v52 = vadd.f32 %v1516_v29, %v1515_v27 }
 0x1f5   :  { %v1522_v39 = vadd.f32 %v1521_v34, %v1520_v42  ;;  %9371 = vpow2.f32 %v1439_v20  ;;  %v1496_v60 = vrot.slane %v1495_v10, 4  ;;  %v1492_v13 = vadd.f32 %v1491_v62, %v1490_v36 }
 0x1f6   :  { %9373 = vpow2.f32 %v1441_v15  ;;  %v1315_v0 = vmax.f32 %v1313_v56, %v1314_v45  ;;  %v1320_v63 = vmax.f32 %v1318_v55, %v1319_v7  ;;  %v1148_v17 = vpop.f32.mrf.mxu1  ;;  %v1518_v5 = vrot.slane %v1517_v52, 1 }
 0x1f7   :  { %v1523_v4 = vrot.slane %v1522_v39, 4  ;;  %v10227_v23 = vadd.f32 %v1148_v17, %v9995_v38  ;;  %v1325_v27 = vsel %vm1234_vm1, %v10222_v47, -inf  ;;  %v14689_v29 = vmov 3  }
 0x1f8   :  { %v1395_v61 = vsub.f32 %v10160_v18, %v1315_v0  ;;  %v1396_v51 = vsub.f32 %v10165_v49, %v1315_v0  ;;  %8848 = vset.pattern.permute.xlu1 %v14689_v29  ;;  %v1150_v42 = vpop.f32.mrf.mxu1  ;;  %v1519_v56 = vadd.f32 %v1518_v5, %v1517_v52  ;;  %v1321_v20 = vrot.slane %v1320_v63, 2  ;;  %8849 = vset.pattern.permute.xlu0 %v14689_v29 }
 0x1f9   :  { %v1524_v55 = vadd.f32 %v1523_v4, %v1522_v39  ;;  %v1326_v15 = vsel %vm1234_vm1, %v10227_v23, -inf  ;;  %2726 = vperm.xlu1 %8848, %v10168_v41   ;;  %v1497_v18 = vadd.f32 %v1496_v60, %v1495_v10  ;;  %2729 = vperm.xlu0 %8849, %v10171_v12   ;;  %v14691_v60 = vmov 4  }
 0x1fa   :  { %v10238_v36 = vpop.eup %9365  ;;  %v1443_v49 = vmul.f32 1.442695, %v1395_v61  ;;  %v1445_v62 = vmul.f32 1.442695, %v1396_v51  ;;  %v1327_v17 = vmax.f32 %v1325_v27, %v1326_v15  ;;  %v1153_v34 = vpop.f32.mrf.mxu1  ;;  %9375 = vrcp.f32 %v1519_v56 }
 0x1fb   :  { %v10241_v45 = vpop.eup %9367  ;;  %v1525_v4 = vrot.slane %v1524_v55, 2  ;;  %v1529_v5 = vsel %vm1234_vm1, %v10238_v36, 0.0  ;;  %v1322_v7 = vmax.f32 %v1320_v63, %v1321_v20  ;;  %v1498_v0 = vrot.slane %v1497_v18, 2 }
 0x1fc   :  { %v1530_v58 = vsel %vm1234_vm1, %v10241_v45, 0.0  ;;  %9377 = vpow2.f32 %v1443_v49  ;;  %v1328_v52 = vrot.slane %v1327_v17, 4  ;;  %v1155_v10 = vpop.f32.mrf.mxu1  ;;  %v10249_v42 = vadd.f32 %v1153_v34, %v9991_v24 }
 0x1fd   :  { %v1526_v61 = vadd.f32 %v1525_v4, %v1524_v55  ;;  %v1531_v51 = vadd.f32 %v1530_v58, %v1529_v5  ;;  %9379 = vpow2.f32 %v1445_v62  ;;  %v1323_v39 = vrot.slane %v1322_v7, 1  ;;  %8851 = vset.pattern.permute.xlu1 %v14691_v60  ;;  %8850 = vset.pattern.permute.xlu0 %v14691_v60 }
 0x1fe   :  { %9381 = vrcp.f32 %v1492_v13  ;;  %v1329_v27 = vmax.f32 %v1327_v17, %v1328_v52  ;;  %3070 = vperm.xlu1 %8851, %v10171_v12   ;;  %v1158_v63 = vpop.f32.mrf.mxu1  ;;  %3067 = vperm.xlu0 %8850, %v10168_v41   ;;  %v10267_v10 = vadd.f32 %v1498_v0, %v1497_v18 }
 0x1ff   :  { %v9370_v56 = vpop.eup %9369  ;;  %v1527_v20 = vrot.slane %v1526_v61, 1  ;;  %v1532_v55 = vrot.slane %v1531_v51, 4  ;;  %v1324_v15 = vmax.f32 %v1322_v7, %v1323_v39  ;;  %v10255_v49 = vadd.f32 %v1158_v63, %v10005_v9 }
 0x200   :  { %v10258_v13 = vmul.f32 %v9370_v56, %v10145_v46  ;;  %v10261_v62 = vmul.f32 %v9370_v56, %v10151_v3  ;;  %v1330_v17 = vrot.slane %v1329_v27, 2  ;;  %v1160_v34 = vpop.f32.mrf.mxu1  ;;  %v1334_v46 = vsel %vm1234_vm1, %v10249_v42, -inf }
 0x201   :  { %v1528_v4 = vadd.f32 %v1527_v20, %v1526_v61  ;;  %v1533_v5 = vadd.f32 %v1532_v55, %v1531_v51  ;;  %v1397_v58 = vsub.f32 %v10194_v44, %v1324_v15  ;;  %v1398_v52 = vsub.f32 %v10203_v57, %v1324_v15 }
 0x202   :  { %v10265_v7 = vpop.eup %9371  ;;  %v1331_v39 = vmax.f32 %v1329_v27, %v1330_v17  ;;  %v1335_v3 = vsel %vm1234_vm1, %v10255_v49, -inf  ;;  %v14687_v63 = vmov 5   ;;  %v1163_v61 = vpop.f32.mrf.mxu1  ;;  %v1500_v29 = vrot.slane %v10267_v10, 1 }
 0x203   :  { %8852 = vset.pattern.permute.xlu1 %v14687_v63  ;;  %v10274_v51 = vpop.eup %9373  ;;  %9383 = vrcp.f32 %v1528_v4  ;;  %v1534_v44 = vrot.slane %v1533_v5, 2  ;;  %v1538_v57 = vsel %vm1234_vm1, %v10265_v7, 0.0  ;;  %v1447_v18 = vmul.f32 1.442695, %v1397_v58  ;;  %8853 = vset.pattern.permute.xlu0 %v14687_v63 }
 0x204   :  { %3402 = vperm.xlu1 %8852, %v10168_v41   ;;  %v1539_v0 = vsel %vm1234_vm1, %v10274_v51, 0.0  ;;  %v1449_v27 = vmul.f32 1.442695, %v1398_v52  ;;  %v1332_v56 = vrot.slane %v1331_v39, 1  ;;  %v1336_v20 = vmax.f32 %v1334_v46, %v1335_v3  ;;  %3405 = vperm.xlu0 %8853, %v10171_v12   ;;  %v1165_v55 = vpop.f32.mrf.mxu1 }
 0x205   :  { %v1535_v15 = vadd.f32 %v1534_v44, %v1533_v5  ;;  %v1540_v17 = vadd.f32 %v1539_v0, %v1538_v57  ;;  %9385 = vpow2.f32 %v1447_v18  ;;  %v10284_v34 = vadd.f32 %v1163_v61, %v10000_v54 }
 0x206   :  { %9387 = vpow2.f32 %v1449_v27  ;;  %v1333_v4 = vmax.f32 %v1331_v39, %v1332_v56  ;;  %v1337_v58 = vrot.slane %v1336_v20, 4  ;;  %v1168_v63 = vpop.f32.mrf.mxu1  ;;  %v14694_v52 = vmov 6  }
 0x207   :  { %v1536_v60 = vrot.slane %v1535_v15, 1  ;;  %v1541_v9 = vrot.slane %v1540_v17, 4  ;;  %v10289_v46 = vadd.f32 %v1168_v63, %v10016_v32  ;;  %v9376_v5 = vpop.eup %9375  ;;  %v1343_v39 = vsel %vm1234_vm1, %v10284_v34, -inf }
 0x208   :  { %8855 = vset.pattern.permute.xlu1 %v14694_v52  ;;  %v1399_v3 = vsub.f32 %v10222_v47, %v1333_v4  ;;  %v1400_v61 = vsub.f32 %v10227_v23, %v1333_v4  ;;  %v1338_v44 = vmax.f32 %v1336_v20, %v1337_v58  ;;  %8854 = vset.pattern.permute.xlu0 %v14694_v52  ;;  %v1170_v57 = vpop.f32.mrf.mxu1 }
 0x209   :  { %3748 = vperm.xlu1 %8855, %v10171_v12   ;;  %v10297_v18 = vpop.eup %9377  ;;  %v10300_v0 = vmul.f32 %v9376_v5, %v10181_v19  ;;  %v10303_v63 = vmul.f32 %v9376_v5, %v10187_v28  ;;  %v1537_v47 = vadd.f32 %v1536_v60, %v1535_v15  ;;  %v1542_v27 = vadd.f32 %v1541_v9, %v1540_v17 }
 0x20a   :  { %3745 = vperm.xlu0 %8854, %v10168_v41   ;;  %v10306_v23 = vpop.eup %9379  ;;  %v1547_v56 = vsel %vm1234_vm1, %v10297_v18, 0.0  ;;  %v1451_v20 = vmul.f32 1.442695, %v1399_v3  ;;  %v1453_v55 = vmul.f32 1.442695, %v1400_v61  ;;  %v1339_v4 = vrot.slane %v1338_v44, 2  ;;  %v1173_v58 = vpop.f32.mrf.mxu1 }
 0x20b   :  { %v9382_v57 = vpop.eup %9381  ;;  %9389 = vrcp.f32 %v1537_v47  ;;  %v1543_v19 = vrot.slane %v1542_v27, 2  ;;  %v1548_v28 = vsel %vm1234_vm1, %v10306_v23, 0.0  ;;  %v1344_v9 = vsel %vm1234_vm1, %v10289_v46, -inf }
 0x20c   :  { %v1549_v60 = vadd.f32 %v1548_v28, %v1547_v56  ;;  %9391 = vpow2.f32 %v1451_v20  ;;  %v1340_v15 = vmax.f32 %v1338_v44, %v1339_v4  ;;  %v1345_v17 = vmax.f32 %v1343_v39, %v1344_v9  ;;  %v1175_v3 = vpop.f32.mrf.mxu1 }
 0x20d   :  { %v14697_v5 = vmov 7   ;;  %v1544_v61 = vadd.f32 %v1543_v19, %v1542_v27  ;;  %9393 = vpow2.f32 %v1453_v55  ;;  %v10316_v52 = vadd.f32 %v1173_v58, %v10011_v43 }
 0x20e   :  { %8856 = vset.pattern.permute.xlu1 %v14697_v5  ;;  %8857 = vset.pattern.permute.xlu0 %v14697_v5  ;;  %v1501_v47 = vadd.f32 %v1500_v29, %v10267_v10  ;;  %v1550_v32 = vrot.slane %v1549_v60, 4  ;;  %v1341_v56 = vrot.slane %v1340_v15, 1  ;;  %v1346_v20 = vrot.slane %v1345_v17, 4  ;;  %v1178_v44 = vpop.f32.mrf.mxu1 }
 0x20f   :  { %4086 = vperm.xlu1 %8856, %v10168_v41   ;;  %4089 = vperm.xlu0 %8857, %v10171_v12   ;;  %v10323_v39 = vmul.f32 %v9382_v57, %v10122_v53  ;;  %v10326_v27 = vmul.f32 %v9382_v57, %v10127_v21  ;;  %v1545_v55 = vrot.slane %v1544_v61, 1  ;;  %v10329_v4 = vadd.f32 %v1178_v44, %v10027_v8 }
 0x210   :  { %v9384_v58 = vpop.eup %9383  ;;  %v1551_v41 = vadd.f32 %v1550_v32, %v1549_v60  ;;  %v1342_v19 = vmax.f32 %v1340_v15, %v1341_v56  ;;  %v1347_v29 = vmax.f32 %v1345_v17, %v1346_v20  ;;  %v1352_v10 = vsel %vm1234_vm1, %v10316_v52, -inf  ;;  %v1180_v28 = vpop.f32.mrf.mxu1 }
 0x211   :  { %v10334_v12 = vmul.f32 %v9384_v58, %v10211_v22  ;;  %v10337_v53 = vmul.f32 %v9384_v58, %v10213_v59  ;;  %v1546_v21 = vadd.f32 %v1545_v55, %v1544_v61  ;;  %v1353_v57 = vsel %vm1234_vm1, %v10329_v4, -inf }
 0x212   :  { %v14802_v9 = vmov 1   ;;  %v10342_v3 = vpop.eup %9385  ;;  %v1552_v32 = vrot.slane %v1551_v41, 2  ;;  %v1401_v60 = vsub.f32 %v10249_v42, %v1342_v19  ;;  %v1402_v15 = vsub.f32 %v10255_v49, %v1342_v19  ;;  %v1183_v22 = vpop.f32.mrf.mxu1 }
 0x213   :  { %8858 = vset.pattern.permute.xlu1 %v14802_v9  ;;  %v1348_v17 = vrot.slane %v1347_v29, 2  ;;  %8859 = vset.pattern.permute.xlu0 %v14802_v9  ;;  %v10348_v59 = vpop.eup %9387  ;;  %9395 = vrcp.f32 %v1546_v21  ;;  %v1556_v61 = vsel %vm1234_vm1, %v10342_v3, 0.0  ;;  %v1354_v56 = vmax.f32 %v1352_v10, %v1353_v57 }
 0x214   :  { %1706 = vperm.xlu1 %8858, %v10323_v39   ;;  %1709 = vperm.xlu0 %8859, %v10326_v27   ;;  %v10354_v20 = vadd.f32 %v1183_v22, %v10022_v48  ;;  %v1553_v42 = vadd.f32 %v1552_v32, %v1551_v41  ;;  %v1557_v49 = vsel %vm1234_vm1, %v10348_v59, 0.0  ;;  %v1455_v44 = vmul.f32 1.442695, %v1401_v60  ;;  %v1185_v58 = vpop.f32.mrf.mxu1 }
 0x215   :  { %v1457_v55 = vmul.f32 1.442695, %v1402_v15  ;;  %9397 = vrcp.f32 %v1501_v47  ;;  %v1558_v19 = vadd.f32 %v1557_v49, %v1556_v61  ;;  %v1349_v28 = vmax.f32 %v1347_v29, %v1348_v17 }
 0x216   :  { %v1355_v21 = vrot.slane %v1354_v56, 4  ;;  %v1554_v5 = vrot.slane %v1553_v42, 1  ;;  %9399 = vpow2.f32 %v1455_v44  ;;  %v14803_v8 = vmov 0   ;;  %v1188_v10 = vpop.f32.mrf.mxu1 }
 0x217   :  { %v1559_v57 = vrot.slane %v1558_v19, 4  ;;  %9401 = vpow2.f32 %v1457_v55  ;;  %v1350_v22 = vrot.slane %v1349_v28, 1  ;;  %v14804_v41 = vmov 2  }
 0x218   :  { %8860 = vset.pattern.permute.xlu1 %v14803_v8  ;;  %v1356_v48 = vmax.f32 %v1354_v56, %v1355_v21  ;;  %8862 = vset.pattern.permute.xlu0 %v14804_v41  ;;  %v9390_v32 = vpop.eup %9389  ;;  %v1555_v60 = vadd.f32 %v1554_v5, %v1553_v42  ;;  %v1361_v47 = vsel %vm1234_vm1, %v10354_v20, -inf  ;;  %v10365_v29 = vadd.f32 %v1188_v10, %v10035_v33  ;;  %v1190_v15 = vpop.f32.mrf.mxu1 }
 0x219   :  { %2058 = vperm.xlu1 %8860, %v10323_v39   ;;  %2394 = vperm.xlu0 %8862, %v10326_v27   ;;  %v10367_v17 = vpop.eup %9391  ;;  %v10370_v61 = vmul.f32 %v9390_v32, %v10238_v36  ;;  %v10373_v56 = vmul.f32 %v9390_v32, %v10241_v45  ;;  %v1560_v49 = vadd.f32 %v1559_v57, %v1558_v19  ;;  %v14805_v32 = vmov 4  }
 0x21a   :  { %v1351_v44 = vmax.f32 %v1349_v28, %v1350_v22  ;;  %v10375_v5 = vpop.eup %9393  ;;  %9403 = vrcp.f32 %v1555_v60  ;;  %v1565_v42 = vsel %vm1234_vm1, %v10367_v17, 0.0  ;;  %v1357_v55 = vrot.slane %v1356_v48, 2  ;;  %v1193_v21 = vpop.f32.mrf.mxu1 }
 0x21b   :  { %v1362_v58 = vsel %vm1234_vm1, %v10365_v29, -inf  ;;  %v1561_v10 = vrot.slane %v1560_v49, 2  ;;  %v1566_v36 = vsel %vm1234_vm1, %v10375_v5, 0.0  ;;  %v10388_v60 = vadd.f32 %v1193_v21, %v10029_v14 }
 0x21c   :  { %v1403_v45 = vsub.f32 %v10284_v34, %v1351_v44  ;;  %v1404_v19 = vsub.f32 %v10289_v46, %v1351_v44  ;;  %v1567_v28 = vadd.f32 %v1566_v36, %v1565_v42  ;;  %v1358_v57 = vmax.f32 %v1356_v48, %v1357_v55  ;;  %v1195_v15 = vpop.f32.mrf.mxu1 }
 0x21d   :  { %2061 = vperm.xlu1 %8860, %v10326_v27   ;;  %v1363_v22 = vmax.f32 %v1361_v47, %v1362_v58  ;;  %8865 = vset.pattern.permute.xlu0 %v14805_v32  ;;  %v1562_v33 = vadd.f32 %v1561_v10, %v1560_v49  ;;  %v1370_v48 = vsel %vm1234_vm1, %v10388_v60, -inf }
 0x21e   :  { %v1459_v43 = vmul.f32 1.442695, %v1403_v45  ;;  %v1461_v54 = vmul.f32 1.442695, %v1404_v19  ;;  %3076 = vperm.xlu0 %8865, %v10326_v27   ;;  %v1568_v24 = vrot.slane %v1567_v28, 4  ;;  %v1359_v34 = vrot.slane %v1358_v57, 1  ;;  %v1198_v46 = vpop.f32.mrf.mxu1 }
 0x21f   :  { %v1364_v38 = vrot.slane %v1363_v22, 4  ;;  %v1563_v44 = vrot.slane %v1562_v33, 1  ;;  %v10395_v47 = vadd.f32 %v1198_v46, %v10045_v30  ;;  %v14806_v19 = vmov 6  }
 0x220   :  { %9405 = vpow2.f32 %v1459_v43  ;;  %v9396_v42 = vpop.eup %9395  ;;  %v1569_v49 = vadd.f32 %v1568_v24, %v1567_v28  ;;  %v1360_v55 = vmax.f32 %v1358_v57, %v1359_v34  ;;  %v1200_v21 = vpop.f32.mrf.mxu1 }
 0x221   :  { %8861 = vset.pattern.permute.xlu1 %v14804_v41  ;;  %9407 = vpow2.f32 %v1461_v54  ;;  %v1365_v58 = vmax.f32 %v1363_v22, %v1364_v38  ;;  %v10399_v10 = vmul.f32 %v9396_v42, %v10265_v7  ;;  %v10402_v43 = vmul.f32 %v9396_v42, %v10274_v51 }
 0x222   :  { %2391 = vperm.xlu1 %8861, %v10323_v39   ;;  %v1564_v36 = vadd.f32 %v1563_v44, %v1562_v33  ;;  %v1371_v45 = vsel %vm1234_vm1, %v10395_v47, -inf  ;;  %8868 = vset.pattern.permute.xlu0 %v14806_v19  ;;  %v9398_v15 = vpop.eup %9397  ;;  %v1570_v24 = vrot.slane %v1569_v49, 2  ;;  %v1405_v54 = vsub.f32 %v10316_v52, %v1360_v55 }
 0x223   :  { %v1406_v38 = vsub.f32 %v10329_v4, %v1360_v55  ;;  %v1366_v28 = vrot.slane %v1365_v58, 2  ;;  %3754 = vperm.xlu0 %8868, %v10326_v27   ;;  %v10410_v7 = vpop.eup %9399  ;;  %v1372_v51 = vmax.f32 %v1370_v48, %v1371_v45  ;;  %v14807_v44 = vmov 3  }
 0x224   :  { %9409 = vrcp.f32 %v1564_v36  ;;  %v10412_v57 = vpop.eup %9401  ;;  %v1571_v33 = vadd.f32 %v1570_v24, %v1569_v49  ;;  %v1574_v22 = vsel %vm1234_vm1, %v10410_v7, 0.0  ;;  %v1463_v34 = vmul.f32 1.442695, %v1405_v54 }
 0x225   :  { %v1465_v46 = vmul.f32 1.442695, %v1406_v38  ;;  %v10418_v52 = vmul.f32 %v9398_v15, %v10175_v37  ;;  %v1575_v4 = vsel %vm1234_vm1, %v10412_v57, 0.0  ;;  %v1367_v42 = vmax.f32 %v1365_v58, %v1366_v28 }
 0x226   :  { %8863 = vset.pattern.permute.xlu1 %v14807_v44  ;;  %v1373_v55 = vrot.slane %v1372_v51, 4  ;;  %v1572_v48 = vrot.slane %v1571_v33, 1  ;;  %v1576_v21 = vadd.f32 %v1575_v4, %v1574_v22  ;;  %9411 = vpow2.f32 %v1463_v34 }
 0x227   :  { %2732 = vperm.xlu1 %8863, %v10323_v39   ;;  %8871 = vset.pattern.permute.xlu0 %v14802_v9  ;;  %v9404_v49 = vpop.eup %9403  ;;  %9413 = vpow2.f32 %v1465_v46  ;;  %v1368_v36 = vrot.slane %v1367_v42, 1  ;;  %v10433_v22 = vmul.f32 %v9398_v15, %v10162_v26 }
 0x228   :  { %v1374_v45 = vmax.f32 %v1372_v51, %v1373_v55  ;;  %1715 = vperm.xlu0 %8871, %v10418_v52   ;;  %v10426_v37 = vmul.f32 %v9404_v49, %v10297_v18  ;;  %v10429_v24 = vmul.f32 %v9404_v49, %v10306_v23  ;;  %v1573_v58 = vadd.f32 %v1572_v48, %v1571_v33 }
 0x229   :  { %v1577_v54 = vrot.slane %v1576_v21, 4  ;;  %v1369_v38 = vmax.f32 %v1367_v42, %v1368_v36 }
 0x22a   :  { %v1375_v28 = vrot.slane %v1374_v45, 2  ;;  %9415 = vrcp.f32 %v1573_v58 }
 0x22b   :  { %2735 = vperm.xlu1 %8863, %v10326_v27   ;;  %v1578_v34 = vadd.f32 %v1577_v54, %v1576_v21  ;;  %v1407_v51 = vsub.f32 %v10354_v20, %v1369_v38  ;;  %v1408_v46 = vsub.f32 %v10365_v29, %v1369_v38 }
 0x22c   :  { %v1376_v18 = vmax.f32 %v1374_v45, %v1375_v28  ;;  %8872 = vset.pattern.permute.xlu0 %v14803_v8 }
 0x22d   :  { %v10438_v23 = vpop.eup %9405  ;;  %v1579_v33 = vrot.slane %v1578_v34, 2  ;;  %2064 = vperm.xlu0 %8872, %v10433_v22   ;;  %v1467_v15 = vmul.f32 1.442695, %v1407_v51  ;;  %v1469_v42 = vmul.f32 1.442695, %v1408_v46  ;;  %v14808_v51 = vmov 5  }
 0x22e   :  { %v10441_v4 = vpop.eup %9407  ;;  %v1583_v26 = vsel %vm1234_vm1, %v10438_v23, 0.0  ;;  %v1377_v55 = vrot.slane %v1376_v18, 1 }
 0x22f   :  { %8864 = vset.pattern.permute.xlu1 %v14805_v32  ;;  %v1580_v20 = vadd.f32 %v1579_v33, %v1578_v34  ;;  %v1584_v29 = vsel %vm1234_vm1, %v10441_v4, 0.0  ;;  %9417 = vpow2.f32 %v1467_v15 }
 0x230   :  { %3073 = vperm.xlu1 %8864, %v10323_v39   ;;  %v1585_v48 = vadd.f32 %v1584_v29, %v1583_v26  ;;  %v1378_v21 = vmax.f32 %v1376_v18, %v1377_v55  ;;  %9419 = vpow2.f32 %v1469_v42 }
 0x231   :  { %v9410_v49 = vpop.eup %9409  ;;  %v1581_v36 = vrot.slane %v1580_v20, 1  ;;  %8875 = vset.pattern.permute.xlu0 %v14804_v41 }
 0x232   :  { %v10451_v45 = vmul.f32 %v9410_v49, %v10342_v3  ;;  %v10454_v58 = vmul.f32 %v9410_v49, %v10348_v59  ;;  %v1586_v54 = vrot.slane %v1585_v48, 4  ;;  %v1409_v38 = vsub.f32 %v10388_v60, %v1378_v21  ;;  %2400 = vperm.xlu0 %8875, %v10418_v52  }
 0x233   :  { %v1582_v28 = vadd.f32 %v1581_v36, %v1580_v20  ;;  %v1410_v34 = vsub.f32 %v10395_v47, %v1378_v21  ;;  %v10460_v46 = vpop.eup %9411 }
 0x234   :  { %8866 = vset.pattern.permute.xlu1 %v14808_v51  ;;  %v1587_v18 = vadd.f32 %v1586_v54, %v1585_v48  ;;  %v1471_v33 = vmul.f32 1.442695, %v1409_v38  ;;  %v10463_v3 = vpop.eup %9413  ;;  %v1592_v59 = vsel %vm1234_vm1, %v10460_v46, 0.0 }
 0x235   :  { %3408 = vperm.xlu1 %8866, %v10323_v39   ;;  %9421 = vrcp.f32 %v1582_v28  ;;  %v1473_v60 = vmul.f32 1.442695, %v1410_v34  ;;  %v1593_v15 = vsel %vm1234_vm1, %v10463_v3, 0.0 }
 0x236   :  { %v1588_v26 = vrot.slane %v1587_v18, 2  ;;  %9423 = vpow2.f32 %v1471_v33  ;;  %8876 = vset.pattern.permute.xlu0 %v14807_v44  ;;  %v1594_v47 = vadd.f32 %v1593_v15, %v1592_v59  ;;  %v14809_v59 = vmov 7  }
 0x237   :  { %9425 = vpow2.f32 %v1473_v60  ;;  %2738 = vperm.xlu0 %8876, %v10433_v22   ;;  %v9416_v42 = vpop.eup %9415 }
 0x238   :  { %v1589_v55 = vadd.f32 %v1588_v26, %v1587_v18  ;;  %v10473_v20 = vmul.f32 %v9416_v42, %v10367_v17  ;;  %v10476_v29 = vmul.f32 %v9416_v42, %v10375_v5  ;;  %v1595_v48 = vrot.slane %v1594_v47, 4 }
 0x239   :  { %3411 = vperm.xlu1 %8866, %v10326_v27  }
 0x23a   :  { %v1590_v21 = vrot.slane %v1589_v55, 1  ;;  %v1596_v49 = vadd.f32 %v1595_v48, %v1594_v47 }
 0x23b   :  { %8879 = vset.pattern.permute.xlu0 %v14805_v32 }
 0x23c   :  { %v1591_v36 = vadd.f32 %v1590_v21, %v1589_v55  ;;  %3082 = vperm.xlu0 %8879, %v10418_v52   ;;  %v10481_v54 = vpop.eup %9417  ;;  %v1597_v38 = vrot.slane %v1596_v49, 2 }
 0x23d   :  { %8867 = vset.pattern.permute.xlu1 %v14806_v19  ;;  %v10484_v17 = vpop.eup %9419  ;;  %v1601_v5 = vsel %vm1234_vm1, %v10481_v54, 0.0 }
 0x23e   :  { %3751 = vperm.xlu1 %8867, %v10323_v39   ;;  %9427 = vrcp.f32 %v1591_v36  ;;  %v1598_v28 = vadd.f32 %v1597_v38, %v1596_v49  ;;  %v1602_v34 = vsel %vm1234_vm1, %v10484_v17, 0.0 }
 0x23f   :  { %v1603_v18 = vadd.f32 %v1602_v34, %v1601_v5 }
 0x240   :  { %8880 = vset.pattern.permute.xlu0 %v14808_v51  ;;  %v1599_v33 = vrot.slane %v1598_v28, 1 }
 0x241   :  { %3414 = vperm.xlu0 %8880, %v10433_v22   ;;  %v1604_v26 = vrot.slane %v1603_v18, 4 }
 0x242   :  { %8869 = vset.pattern.permute.xlu1 %v14809_v59  ;;  %v9422_v60 = vpop.eup %9421  ;;  %v1600_v55 = vadd.f32 %v1599_v33, %v1598_v28 }
 0x243   :  { %4092 = vperm.xlu1 %8869, %v10323_v39   ;;  %v9424_v15 = vpop.eup %9423  ;;  %v10495_v47 = vmul.f32 %v9422_v60, %v10410_v7  ;;  %v10498_v42 = vmul.f32 %v9422_v60, %v10412_v57  ;;  %v1605_v21 = vadd.f32 %v1604_v26, %v1603_v18 }
 0x244   :  { %v9426_v48 = vpop.eup %9425  ;;  %v1610_v49 = vsel %vm1234_vm1, %v9424_v15, 0.0  ;;  %9429 = vrcp.f32 %v1600_v55  ;;  %v10517_v55 = vpop.permute.xlu1 %2638 }
 0x245   :  { %v1611_v36 = vsel %vm1234_vm1, %v9426_v48, 0.0  ;;  %8883 = vset.pattern.permute.xlu0 %v14806_v19  ;;  %v1606_v38 = vrot.slane %v1605_v21, 2  ;;  %14810 = vst [vmem:[#allocation43_spill] sm:$0xff] %v10517_v55 }
 0x246   :  { %v1612_v5 = vadd.f32 %v1611_v36, %v1610_v49  ;;  %3760 = vperm.xlu0 %8883, %v10418_v52  }
 0x247   :  { %4095 = vperm.xlu1 %8869, %v10326_v27   ;;  %v1607_v39 = vadd.f32 %v1606_v38, %v1605_v21 }
 0x248   :  { %v1613_v7 = vrot.slane %v1612_v5, 4  ;;  %v10531_v38 = vpop.permute.xlu1 %3998 }
 0x249   :  { %v1608_v57 = vrot.slane %v1607_v39, 1  ;;  %14811 = vst [vmem:[#allocation44_spill] sm:$0xff] %v10531_v38 }
 0x24a   :  { %v1614_v34 = vadd.f32 %v1613_v7, %v1612_v5  ;;  %8884 = vset.pattern.permute.xlu0 %v14809_v59 }
 0x24b   :  { %8870 = vset.pattern.permute.xlu1 %v14802_v9  ;;  %v9428_v28 = vpop.eup %9427  ;;  %4098 = vperm.xlu0 %8884, %v10433_v22   ;;  %v1609_v27 = vadd.f32 %v1608_v57, %v1607_v39 }
 0x24c   :  { %1712 = vperm.xlu1 %8870, %v10433_v22   ;;  %v10510_v18 = vmul.f32 %v9428_v28, %v10438_v23  ;;  %v10513_v33 = vmul.f32 %v9428_v28, %v10441_v4  ;;  %v1615_v60 = vrot.slane %v1614_v34, 2  ;;  %v10539_v5 = vpop.permute.xlu1 %2981 }
 0x24d   :  { %9431 = vrcp.f32 %v1609_v27  ;;  %14813 = vst [vmem:[#allocation46_spill] sm:$0xff] %v10539_v5 }
 0x24e   :  { %v1616_v26 = vadd.f32 %v1615_v60, %v1614_v34 }
 0x24f   :  { %8887 = vset.pattern.permute.xlu0 %v14802_v9 }
 0x250   :  { %8873 = vset.pattern.permute.xlu1 %v14803_v8  ;;  %v1617_v21 = vrot.slane %v1616_v26, 1  ;;  %1721 = vperm.xlu0 %8887, %v10261_v62   ;;  %v10553_v28 = vpop.permute.xlu1 %3659 }
 0x251   :  { %2067 = vperm.xlu1 %8873, %v10418_v52   ;;  %v9430_v23 = vpop.eup %9429  ;;  %14815 = vst [vmem:[#allocation48_spill] sm:$0xff] %v10553_v28 }
 0x252   :  { %v1618_v49 = vadd.f32 %v1617_v21, %v1616_v26  ;;  %v10522_v4 = vmul.f32 %v9430_v23, %v10460_v46  ;;  %v10525_v36 = vmul.f32 %v9430_v23, %v10463_v3  ;;  %v10537_v3 = vpop.permute.xlu0 %2640 }
 0x253   :  { %14812 = vst [vmem:[#allocation45_spill] sm:$0xff] %v10537_v3 }
 0x254   :  { %9433 = vrcp.f32 %v1618_v49  ;;  %8888 = vset.pattern.permute.xlu0 %v14803_v8 }
 0x255   :  { %8874 = vset.pattern.permute.xlu1 %v14804_v41  ;;  %2070 = vperm.xlu0 %8888, %v10258_v13  }
 0x256   :  { %2397 = vperm.xlu1 %8874, %v10433_v22   ;;  %v10551_v34 = vpop.permute.xlu0 %4000 }
 0x257   :  { %14814 = vst [vmem:[#allocation47_spill] sm:$0xff] %v10551_v34 }
 0x259   :  { %8891 = vset.pattern.permute.xlu0 %v14804_v41 }
 0x25a   :  { %8877 = vset.pattern.permute.xlu1 %v14807_v44  ;;  %2406 = vperm.xlu0 %8891, %v10261_v62   ;;  %v9432_v46 = vpop.eup %9431 }
 0x25b   :  { %2741 = vperm.xlu1 %8877, %v10418_v52   ;;  %v10542_v39 = vmul.f32 %v9432_v46, %v10481_v54  ;;  %v10545_v7 = vmul.f32 %v9432_v46, %v10484_v17 }
 0x25e   :  { %8892 = vset.pattern.permute.xlu0 %v14807_v44 }
 0x25f   :  { %8878 = vset.pattern.permute.xlu1 %v14805_v32  ;;  %2744 = vperm.xlu0 %8892, %v10258_v13  }
 0x260   :  { %3079 = vperm.xlu1 %8878, %v10433_v22  }
 0x261   :  { %v9434_v57 = vpop.eup %9433 }
 0x262   :  { %v10555_v27 = vmul.f32 %v9434_v57, %v9424_v15  ;;  %v10557_v54 = vmul.f32 %v9434_v57, %v9426_v48 }
 0x263   :  { %8895 = vset.pattern.permute.xlu0 %v14805_v32 }
 0x264   :  { %8881 = vset.pattern.permute.xlu1 %v14808_v51  ;;  %3088 = vperm.xlu0 %8895, %v10261_v62  }
 0x265   :  { %3417 = vperm.xlu1 %8881, %v10418_v52   ;;  %v10563_v17 = vpop.permute.xlu1 %1703  ;;  %v10565_v60 = vpop.permute.xlu0 %1700 }
 0x268   :  { %8896 = vset.pattern.permute.xlu0 %v14808_v51 }
 0x269   :  { %8882 = vset.pattern.permute.xlu1 %v14806_v19  ;;  %3420 = vperm.xlu0 %8896, %v10258_v13  }
 0x26a   :  { %3757 = vperm.xlu1 %8882, %v10433_v22   ;;  %v10571_v15 = vpop.permute.xlu1 %2052  ;;  %v10573_v48 = vpop.permute.xlu0 %2055 }
 0x26d   :  { %8899 = vset.pattern.permute.xlu0 %v14806_v19 }
 0x26e   :  { %8885 = vset.pattern.permute.xlu1 %v14809_v59  ;;  %3766 = vperm.xlu0 %8899, %v10261_v62  }
 0x26f   :  { %4101 = vperm.xlu1 %8885, %v10418_v52   ;;  %v10579_v26 = vpop.permute.xlu1 %2388  ;;  %v10581_v21 = vpop.permute.xlu0 %2385 }
 0x272   :  { %8900 = vset.pattern.permute.xlu0 %v14809_v59 }
 0x273   :  { %8886 = vset.pattern.permute.xlu1 %v14802_v9  ;;  %4104 = vperm.xlu0 %8900, %v10258_v13  }
 0x274   :  { %1718 = vperm.xlu1 %8886, %v10258_v13   ;;  %v10587_v22 = vpop.permute.xlu1 %2726  ;;  %v10589_v23 = vpop.permute.xlu0 %2729 }
 0x277   :  { %8903 = vset.pattern.permute.xlu0 %v14802_v9 }
 0x278   :  { %8889 = vset.pattern.permute.xlu1 %v14803_v8  ;;  %1727 = vperm.xlu0 %8903, %v10303_v63  }
 0x279   :  { %2073 = vperm.xlu1 %8889, %v10261_v62   ;;  %v10595_v52 = vpop.permute.xlu1 %3070  ;;  %v10597_v49 = vpop.permute.xlu0 %3067 }
 0x27c   :  { %8904 = vset.pattern.permute.xlu0 %v14803_v8 }
 0x27d   :  { %8890 = vset.pattern.permute.xlu1 %v14804_v41  ;;  %2076 = vperm.xlu0 %8904, %v10300_v0  }
 0x27e   :  { %2403 = vperm.xlu1 %8890, %v10258_v13  }
 0x27f   :  { %v10603_v46 = vpop.permute.xlu1 %3402  ;;  %v10605_v57 = vpop.permute.xlu0 %3405 }
 0x281   :  { %8907 = vset.pattern.permute.xlu0 %v14804_v41 }
 0x282   :  { %8893 = vset.pattern.permute.xlu1 %v14807_v44  ;;  %2412 = vperm.xlu0 %8907, %v10303_v63  }
 0x283   :  { %2747 = vperm.xlu1 %8893, %v10261_v62  }
 0x284   :  { %v10611_v30 = vpop.permute.xlu1 %3748 }
 0x285   :  { %v10613_v14 = vpop.permute.xlu0 %3745 }
 0x286   :  { %8908 = vset.pattern.permute.xlu0 %v14807_v44 }
 0x287   :  { %8894 = vset.pattern.permute.xlu1 %v14805_v32  ;;  %2750 = vperm.xlu0 %8908, %v10300_v0  }
 0x288   :  { %3085 = vperm.xlu1 %8894, %v10258_v13  }
 0x28a   :  { %v10619_v1 = vpop.permute.xlu1 %4086  ;;  %v10621_v11 = vpop.permute.xlu0 %4089 }
 0x28b   :  { %8911 = vset.pattern.permute.xlu0 %v14805_v32 }
 0x28c   :  { %8897 = vset.pattern.permute.xlu1 %v14808_v51  ;;  %3094 = vperm.xlu0 %8911, %v10303_v63  }
 0x28d   :  { %3423 = vperm.xlu1 %8897, %v10261_v62  }
 0x28f   :  { %v10627_v35 = vpop.permute.xlu1 %1706  ;;  %v10629_v38 = vpop.permute.xlu0 %1709 }
 0x290   :  { %8912 = vset.pattern.permute.xlu0 %v14808_v51 }
 0x291   :  { %8898 = vset.pattern.permute.xlu1 %v14806_v19  ;;  %3426 = vperm.xlu0 %8912, %v10300_v0  }
 0x292   :  { %3763 = vperm.xlu1 %8898, %v10258_v13  }
 0x294   :  { %v10635_v34 = vpop.permute.xlu1 %2058  ;;  %v10637_v2 = vpop.permute.xlu0 %2394 }
 0x295   :  { %14816 = vst [vmem:[#allocation49_spill] sm:$0xff] %v10635_v34  ;;  %14817 = vst [vmem:[#allocation50_spill] sm:$0xff] %v10637_v2  ;;  %8915 = vset.pattern.permute.xlu0 %v14806_v19 }
 0x296   :  { %8901 = vset.pattern.permute.xlu1 %v14809_v59  ;;  %3772 = vperm.xlu0 %8915, %v10303_v63  }
 0x297   :  { %4107 = vperm.xlu1 %8901, %v10261_v62  }
 0x298   :  { %v10643_v28 = vpop.permute.xlu1 %2061 }
 0x299   :  { %v10645_v50 = vpop.permute.xlu0 %3076 }
 0x29a   :  { %14818 = vst [vmem:[#allocation51_spill] sm:$0xff] %v10645_v50  ;;  %8916 = vset.pattern.permute.xlu0 %v14809_v59 }
 0x29b   :  { %8902 = vset.pattern.permute.xlu1 %v14802_v9  ;;  %4110 = vperm.xlu0 %8916, %v10300_v0  }
 0x29c   :  { %1724 = vperm.xlu1 %8902, %v10300_v0  }
 0x29d   :  { %v10651_v13 = vpop.permute.xlu1 %2391 }
 0x29e   :  { %v10653_v5 = vpop.permute.xlu0 %3754 }
 0x29f   :  { %14819 = vst [vmem:[#allocation52_spill] sm:$0xff] %v10653_v5  ;;  %8919 = vset.pattern.permute.xlu0 %v14802_v9 }
 0x2a0   :  { %8905 = vset.pattern.permute.xlu1 %v14803_v8  ;;  %1733 = vperm.xlu0 %8919, %v10337_v53  }
 0x2a1   :  { %2079 = vperm.xlu1 %8905, %v10303_v63  }
 0x2a2   :  { %v10659_v62 = vpop.permute.xlu1 %2732 }
 0x2a3   :  { %14820 = vst [vmem:[#allocation53_spill] sm:$0xff] %v10659_v62  ;;  %v10661_v55 = vpop.permute.xlu0 %1715 }
 0x2a4   :  { %8920 = vset.pattern.permute.xlu0 %v14803_v8 }
 0x2a5   :  { %8906 = vset.pattern.permute.xlu1 %v14804_v41  ;;  %2082 = vperm.xlu0 %8920, %v10334_v12  }
 0x2a6   :  { %v10666_v3 = vpop.permute.xlu1 %2735  ;;  %2409 = vperm.xlu1 %8906, %v10300_v0  }
 0x2a8   :  { %v10669_v16 = vpop.permute.xlu0 %2064 }
 0x2a9   :  { %14821 = vst [vmem:[#allocation54_spill] sm:$0xff] %v10669_v16  ;;  %8923 = vset.pattern.permute.xlu0 %v14804_v41 }
 0x2aa   :  { %8909 = vset.pattern.permute.xlu1 %v14807_v44  ;;  %2418 = vperm.xlu0 %8923, %v10337_v53  }
 0x2ab   :  { %v10674_v31 = vpop.permute.xlu1 %3073  ;;  %2753 = vperm.xlu1 %8909, %v10303_v63  }
 0x2ac   :  { %14822 = vst [vmem:[#allocation55_spill] sm:$0xff] %v10674_v31 }
 0x2ad   :  { %v10677_v5 = vpop.permute.xlu0 %2400 }
 0x2ae   :  { %14823 = vst [vmem:[#allocation56_spill] sm:$0xff] %v10677_v5  ;;  %8924 = vset.pattern.permute.xlu0 %v14807_v44 }
 0x2af   :  { %8910 = vset.pattern.permute.xlu1 %v14805_v32  ;;  %2756 = vperm.xlu0 %8924, %v10334_v12  }
 0x2b0   :  { %v10682_v50 = vpop.permute.xlu1 %3408  ;;  %3091 = vperm.xlu1 %8910, %v10300_v0  }
 0x2b1   :  { %14824 = vst [vmem:[#allocation57_spill] sm:$0xff] %v10682_v50 }
 0x2b2   :  { %v10685_v16 = vpop.permute.xlu0 %2738 }
 0x2b3   :  { %14825 = vst [vmem:[#allocation58_spill] sm:$0xff] %v10685_v16  ;;  %8927 = vset.pattern.permute.xlu0 %v14805_v32 }
 0x2b4   :  { %v10688_v62 = vpop.permute.xlu1 %3411  ;;  %8913 = vset.pattern.permute.xlu1 %v14808_v51  ;;  %3100 = vperm.xlu0 %8927, %v10337_v53  }
 0x2b5   :  { %14826 = vst [vmem:[#allocation59_spill] sm:$0xff] %v10688_v62  ;;  %3429 = vperm.xlu1 %8913, %v10303_v63   ;;  %v14897_v62 = vlaneseq }
 0x2b7   :  { %v10693_v5 = vpop.permute.xlu0 %3082  ;;  %v1796_v34 = vand.u32 127, %v14897_v62 }
 0x2b8   :  { %14827 = vst [vmem:[#allocation60_spill] sm:$0xff] %v10693_v5  ;;  %8928 = vset.pattern.permute.xlu0 %v14808_v51 }
 0x2b9   :  { %v10696_v31 = vpop.permute.xlu1 %3751  ;;  %8914 = vset.pattern.permute.xlu1 %v14806_v19  ;;  %3432 = vperm.xlu0 %8928, %v10334_v12   ;;  %v11023_v62 = vsub.s32 %v1796_v34, %v9621_v6 }
 0x2ba   :  { %14828 = vst [vmem:[#allocation61_spill] sm:$0xff] %v10696_v31  ;;  %3769 = vperm.xlu1 %8914, %v10300_v0  }
 0x2bc   :  { %v10701_v16 = vpop.permute.xlu0 %3414 }
 0x2bd   :  { %14829 = vst [vmem:[#allocation62_spill] sm:$0xff] %v10701_v16  ;;  %8931 = vset.pattern.permute.xlu0 %v14806_v19 }
 0x2be   :  { %v10704_v50 = vpop.permute.xlu1 %4092  ;;  %8917 = vset.pattern.permute.xlu1 %v14809_v59  ;;  %3778 = vperm.xlu0 %8931, %v10337_v53  }
 0x2bf   :  { %14830 = vst [vmem:[#allocation63_spill] sm:$0xff] %v10704_v50  ;;  %4113 = vperm.xlu1 %8917, %v10303_v63  }
 0x2c1   :  { %v10709_v5 = vpop.permute.xlu0 %3760 }
 0x2c2   :  { %14831 = vst [vmem:[#allocation64_spill] sm:$0xff] %v10709_v5  ;;  %v10711_v31 = vpop.permute.xlu1 %4095  ;;  %8932 = vset.pattern.permute.xlu0 %v14809_v59 }
 0x2c3   :  { %14832 = vst [vmem:[#allocation65_spill] sm:$0xff] %v10711_v31  ;;  %8918 = vset.pattern.permute.xlu1 %v14802_v9  ;;  %4116 = vperm.xlu0 %8932, %v10334_v12  }
 0x2c4   :  { %1730 = vperm.xlu1 %8918, %v10334_v12  }
 0x2c6   :  { %v10717_v0 = vpop.permute.xlu0 %4098 }
 0x2c7   :  { %14833 = vst [vmem:[#allocation66_spill] sm:$0xff] %v10717_v0  ;;  %v10719_v16 = vpop.permute.xlu1 %1712  ;;  %8935 = vset.pattern.permute.xlu0 %v14802_v9 }
 0x2c8   :  { %8921 = vset.pattern.permute.xlu1 %v14803_v8  ;;  %1739 = vperm.xlu0 %8935, %v10373_v56  }
 0x2c9   :  { %2085 = vperm.xlu1 %8921, %v10337_v53  }
 0x2cb   :  { %v10725_v63 = vpop.permute.xlu0 %1721 }
 0x2cc   :  { %v10727_v5 = vpop.permute.xlu1 %2067  ;;  %8936 = vset.pattern.permute.xlu0 %v14803_v8 }
 0x2cd   :  { %14834 = vst [vmem:[#allocation67_spill] sm:$0xff] %v10727_v5  ;;  %8922 = vset.pattern.permute.xlu1 %v14804_v41  ;;  %2088 = vperm.xlu0 %8936, %v10370_v61  }
 0x2ce   :  { %2415 = vperm.xlu1 %8922, %v10334_v12  }
 0x2d0   :  { %v10733_v0 = vpop.permute.xlu0 %2070 }
 0x2d1   :  { %14835 = vst [vmem:[#allocation68_spill] sm:$0xff] %v10733_v0  ;;  %v10735_v50 = vpop.permute.xlu1 %2397  ;;  %8939 = vset.pattern.permute.xlu0 %v14804_v41 }
 0x2d2   :  { %14836 = vst [vmem:[#allocation69_spill] sm:$0xff] %v10735_v50  ;;  %8925 = vset.pattern.permute.xlu1 %v14807_v44  ;;  %2424 = vperm.xlu0 %8939, %v10373_v56  }
 0x2d3   :  { %2759 = vperm.xlu1 %8925, %v10337_v53  }
 0x2d5   :  { %v10741_v5 = vpop.permute.xlu0 %2406 }
 0x2d6   :  { %14837 = vst [vmem:[#allocation70_spill] sm:$0xff] %v10741_v5  ;;  %v10743_v31 = vpop.permute.xlu1 %2741  ;;  %8940 = vset.pattern.permute.xlu0 %v14807_v44 }
 0x2d7   :  { %14838 = vst [vmem:[#allocation71_spill] sm:$0xff] %v10743_v31  ;;  %8926 = vset.pattern.permute.xlu1 %v14805_v32  ;;  %2762 = vperm.xlu0 %8940, %v10370_v61  }
 0x2d8   :  { %3097 = vperm.xlu1 %8926, %v10334_v12  }
 0x2da   :  { %v10749_v0 = vpop.permute.xlu0 %2744 }
 0x2db   :  { %14839 = vst [vmem:[#allocation72_spill] sm:$0xff] %v10749_v0  ;;  %v10751_v50 = vpop.permute.xlu1 %3079  ;;  %8943 = vset.pattern.permute.xlu0 %v14805_v32 }
 0x2dc   :  { %14840 = vst [vmem:[#allocation73_spill] sm:$0xff] %v10751_v50  ;;  %8929 = vset.pattern.permute.xlu1 %v14808_v51  ;;  %3106 = vperm.xlu0 %8943, %v10373_v56  }
 0x2dd   :  { %3435 = vperm.xlu1 %8929, %v10337_v53  }
 0x2df   :  { %v10757_v5 = vpop.permute.xlu0 %3088 }
 0x2e0   :  { %14841 = vst [vmem:[#allocation74_spill] sm:$0xff] %v10757_v5  ;;  %v10759_v31 = vpop.permute.xlu1 %3417  ;;  %8944 = vset.pattern.permute.xlu0 %v14808_v51 }
 0x2e1   :  { %14842 = vst [vmem:[#allocation75_spill] sm:$0xff] %v10759_v31  ;;  %8930 = vset.pattern.permute.xlu1 %v14806_v19  ;;  %3438 = vperm.xlu0 %8944, %v10370_v61  }
 0x2e2   :  { %3775 = vperm.xlu1 %8930, %v10334_v12  }
 0x2e4   :  { %v10765_v0 = vpop.permute.xlu0 %3420 }
 0x2e5   :  { %14843 = vst [vmem:[#allocation76_spill] sm:$0xff] %v10765_v0  ;;  %v10767_v50 = vpop.permute.xlu1 %3757  ;;  %8947 = vset.pattern.permute.xlu0 %v14806_v19 }
 0x2e6   :  { %14844 = vst [vmem:[#allocation77_spill] sm:$0xff] %v10767_v50  ;;  %8933 = vset.pattern.permute.xlu1 %v14809_v59  ;;  %3784 = vperm.xlu0 %8947, %v10373_v56  }
 0x2e7   :  { %4119 = vperm.xlu1 %8933, %v10337_v53  }
 0x2e9   :  { %v10773_v5 = vpop.permute.xlu0 %3766 }
 0x2ea   :  { %14845 = vst [vmem:[#allocation78_spill] sm:$0xff] %v10773_v5  ;;  %v10775_v31 = vpop.permute.xlu1 %4101  ;;  %8948 = vset.pattern.permute.xlu0 %v14809_v59 }
 0x2eb   :  { %14846 = vst [vmem:[#allocation79_spill] sm:$0xff] %v10775_v31  ;;  %8934 = vset.pattern.permute.xlu1 %v14802_v9  ;;  %4122 = vperm.xlu0 %8948, %v10370_v61  }
 0x2ec   :  { %1736 = vperm.xlu1 %8934, %v10370_v61  }
 0x2ee   :  { %v10781_v12 = vpop.permute.xlu0 %4104 }
 0x2ef   :  { %14847 = vst [vmem:[#allocation80_spill] sm:$0xff] %v10781_v12  ;;  %v10783_v0 = vpop.permute.xlu1 %1718  ;;  %8951 = vset.pattern.permute.xlu0 %v14802_v9 }
 0x2f0   :  { %8937 = vset.pattern.permute.xlu1 %v14803_v8  ;;  %1745 = vperm.xlu0 %8951, %v10402_v43  }
 0x2f1   :  { %2091 = vperm.xlu1 %8937, %v10373_v56  }
 0x2f3   :  { %v10789_v53 = vpop.permute.xlu0 %1727 }
 0x2f4   :  { %v10791_v5 = vpop.permute.xlu1 %2073  ;;  %8952 = vset.pattern.permute.xlu0 %v14803_v8 }
 0x2f5   :  { %14848 = vst [vmem:[#allocation81_spill] sm:$0xff] %v10791_v5  ;;  %8938 = vset.pattern.permute.xlu1 %v14804_v41  ;;  %2094 = vperm.xlu0 %8952, %v10399_v10  }
 0x2f6   :  { %2421 = vperm.xlu1 %8938, %v10370_v61  }
 0x2f8   :  { %v10797_v12 = vpop.permute.xlu0 %2076 }
 0x2f9   :  { %14849 = vst [vmem:[#allocation82_spill] sm:$0xff] %v10797_v12  ;;  %v10799_v31 = vpop.permute.xlu1 %2403  ;;  %8955 = vset.pattern.permute.xlu0 %v14804_v41 }
 0x2fa   :  { %14850 = vst [vmem:[#allocation83_spill] sm:$0xff] %v10799_v31  ;;  %8941 = vset.pattern.permute.xlu1 %v14807_v44  ;;  %2430 = vperm.xlu0 %8955, %v10402_v43  }
 0x2fb   :  { %2765 = vperm.xlu1 %8941, %v10373_v56  }
 0x2fd   :  { %v10805_v5 = vpop.permute.xlu0 %2412 }
 0x2fe   :  { %14851 = vst [vmem:[#allocation84_spill] sm:$0xff] %v10805_v5  ;;  %v10807_v50 = vpop.permute.xlu1 %2747  ;;  %8956 = vset.pattern.permute.xlu0 %v14807_v44 }
 0x2ff   :  { %14852 = vst [vmem:[#allocation85_spill] sm:$0xff] %v10807_v50  ;;  %8942 = vset.pattern.permute.xlu1 %v14805_v32  ;;  %2768 = vperm.xlu0 %8956, %v10399_v10  }
 0x300   :  { %3103 = vperm.xlu1 %8942, %v10370_v61  }
 0x302   :  { %v10813_v12 = vpop.permute.xlu0 %2750 }
 0x303   :  { %14853 = vst [vmem:[#allocation86_spill] sm:$0xff] %v10813_v12  ;;  %v10815_v31 = vpop.permute.xlu1 %3085  ;;  %8959 = vset.pattern.permute.xlu0 %v14805_v32 }
 0x304   :  { %14854 = vst [vmem:[#allocation87_spill] sm:$0xff] %v10815_v31  ;;  %8945 = vset.pattern.permute.xlu1 %v14808_v51  ;;  %3112 = vperm.xlu0 %8959, %v10402_v43  }
 0x305   :  { %3441 = vperm.xlu1 %8945, %v10373_v56  }
 0x307   :  { %v10821_v5 = vpop.permute.xlu0 %3094 }
 0x308   :  { %14855 = vst [vmem:[#allocation88_spill] sm:$0xff] %v10821_v5  ;;  %v10823_v50 = vpop.permute.xlu1 %3423  ;;  %8960 = vset.pattern.permute.xlu0 %v14808_v51 }
 0x309   :  { %14856 = vst [vmem:[#allocation89_spill] sm:$0xff] %v10823_v50  ;;  %8946 = vset.pattern.permute.xlu1 %v14806_v19  ;;  %3444 = vperm.xlu0 %8960, %v10399_v10  }
 0x30a   :  { %3781 = vperm.xlu1 %8946, %v10370_v61  }
 0x30c   :  { %v10829_v12 = vpop.permute.xlu0 %3426 }
 0x30d   :  { %14857 = vst [vmem:[#allocation90_spill] sm:$0xff] %v10829_v12  ;;  %v10831_v31 = vpop.permute.xlu1 %3763  ;;  %8963 = vset.pattern.permute.xlu0 %v14806_v19 }
 0x30e   :  { %14858 = vst [vmem:[#allocation91_spill] sm:$0xff] %v10831_v31  ;;  %8949 = vset.pattern.permute.xlu1 %v14809_v59  ;;  %3790 = vperm.xlu0 %8963, %v10402_v43  }
 0x30f   :  { %4125 = vperm.xlu1 %8949, %v10373_v56  }
 0x311   :  { %v10837_v5 = vpop.permute.xlu0 %3772 }
 0x312   :  { %14859 = vst [vmem:[#allocation92_spill] sm:$0xff] %v10837_v5  ;;  %v10839_v50 = vpop.permute.xlu1 %4107  ;;  %8964 = vset.pattern.permute.xlu0 %v14809_v59 }
 0x313   :  { %14860 = vst [vmem:[#allocation93_spill] sm:$0xff] %v10839_v50  ;;  %8950 = vset.pattern.permute.xlu1 %v14802_v9  ;;  %4128 = vperm.xlu0 %8964, %v10399_v10  }
 0x314   :  { %1742 = vperm.xlu1 %8950, %v10399_v10  }
 0x316   :  { %v10845_v61 = vpop.permute.xlu0 %4110 }
 0x317   :  { %14861 = vst [vmem:[#allocation94_spill] sm:$0xff] %v10845_v61  ;;  %v10847_v12 = vpop.permute.xlu1 %1724  ;;  %8967 = vset.pattern.permute.xlu0 %v14802_v9 }
 0x318   :  { %8953 = vset.pattern.permute.xlu1 %v14803_v8  ;;  %1751 = vperm.xlu0 %8967, %v10429_v24  }
 0x319   :  { %2097 = vperm.xlu1 %8953, %v10402_v43  }
 0x31b   :  { %v10853_v56 = vpop.permute.xlu0 %1733 }
 0x31c   :  { %v10855_v5 = vpop.permute.xlu1 %2079  ;;  %8968 = vset.pattern.permute.xlu0 %v14803_v8 }
 0x31d   :  { %14862 = vst [vmem:[#allocation95_spill] sm:$0xff] %v10855_v5  ;;  %8954 = vset.pattern.permute.xlu1 %v14804_v41  ;;  %2100 = vperm.xlu0 %8968, %v10426_v37  }
 0x31e   :  { %2427 = vperm.xlu1 %8954, %v10399_v10  }
 0x320   :  { %v10861_v61 = vpop.permute.xlu0 %2082 }
 0x321   :  { %14863 = vst [vmem:[#allocation96_spill] sm:$0xff] %v10861_v61  ;;  %v10863_v50 = vpop.permute.xlu1 %2409  ;;  %8971 = vset.pattern.permute.xlu0 %v14804_v41 }
 0x322   :  { %14864 = vst [vmem:[#allocation97_spill] sm:$0xff] %v10863_v50  ;;  %8957 = vset.pattern.permute.xlu1 %v14807_v44  ;;  %2436 = vperm.xlu0 %8971, %v10429_v24  }
 0x323   :  { %2771 = vperm.xlu1 %8957, %v10402_v43  }
 0x325   :  { %v10869_v5 = vpop.permute.xlu0 %2418 }
 0x326   :  { %14865 = vst [vmem:[#allocation98_spill] sm:$0xff] %v10869_v5  ;;  %v10871_v31 = vpop.permute.xlu1 %2753  ;;  %8972 = vset.pattern.permute.xlu0 %v14807_v44 }
 0x327   :  { %14866 = vst [vmem:[#allocation99_spill] sm:$0xff] %v10871_v31  ;;  %8958 = vset.pattern.permute.xlu1 %v14805_v32  ;;  %2774 = vperm.xlu0 %8972, %v10426_v37  }
 0x328   :  { %3109 = vperm.xlu1 %8958, %v10399_v10  }
 0x32a   :  { %v10877_v61 = vpop.permute.xlu0 %2756 }
 0x32b   :  { %14867 = vst [vmem:[#allocation100_spill] sm:$0xff] %v10877_v61  ;;  %v10879_v50 = vpop.permute.xlu1 %3091  ;;  %8975 = vset.pattern.permute.xlu0 %v14805_v32 }
 0x32c   :  { %14868 = vst [vmem:[#allocation101_spill] sm:$0xff] %v10879_v50  ;;  %8961 = vset.pattern.permute.xlu1 %v14808_v51  ;;  %3118 = vperm.xlu0 %8975, %v10429_v24  }
 0x32d   :  { %3447 = vperm.xlu1 %8961, %v10402_v43  }
 0x32f   :  { %v10885_v5 = vpop.permute.xlu0 %3100 }
 0x330   :  { %14869 = vst [vmem:[#allocation102_spill] sm:$0xff] %v10885_v5  ;;  %v10887_v31 = vpop.permute.xlu1 %3429  ;;  %8976 = vset.pattern.permute.xlu0 %v14808_v51 }
 0x331   :  { %14870 = vst [vmem:[#allocation103_spill] sm:$0xff] %v10887_v31  ;;  %8962 = vset.pattern.permute.xlu1 %v14806_v19  ;;  %3450 = vperm.xlu0 %8976, %v10426_v37  }
 0x332   :  { %3787 = vperm.xlu1 %8962, %v10399_v10  }
 0x334   :  { %v10893_v61 = vpop.permute.xlu0 %3432 }
 0x335   :  { %14871 = vst [vmem:[#allocation104_spill] sm:$0xff] %v10893_v61  ;;  %v10895_v50 = vpop.permute.xlu1 %3769  ;;  %8979 = vset.pattern.permute.xlu0 %v14806_v19 }
 0x336   :  { %14872 = vst [vmem:[#allocation105_spill] sm:$0xff] %v10895_v50  ;;  %8965 = vset.pattern.permute.xlu1 %v14809_v59  ;;  %3796 = vperm.xlu0 %8979, %v10429_v24  }
 0x337   :  { %4131 = vperm.xlu1 %8965, %v10402_v43  }
 0x339   :  { %v10901_v5 = vpop.permute.xlu0 %3778 }
 0x33a   :  { %14873 = vst [vmem:[#allocation106_spill] sm:$0xff] %v10901_v5  ;;  %v10903_v31 = vpop.permute.xlu1 %4113  ;;  %8981 = vset.pattern.permute.xlu0 %v14809_v59 }
 0x33b   :  { %14874 = vst [vmem:[#allocation107_spill] sm:$0xff] %v10903_v31  ;;  %8966 = vset.pattern.permute.xlu1 %v14802_v9  ;;  %4137 = vperm.xlu0 %8981, %v10429_v24  }
 0x33c   :  { %1748 = vperm.xlu1 %8966, %v10426_v37  }
 0x33e   :  { %v10909_v10 = vpop.permute.xlu0 %4116 }
 0x33f   :  { %14875 = vst [vmem:[#allocation108_spill] sm:$0xff] %v10909_v10  ;;  %v10911_v61 = vpop.permute.xlu1 %1730  ;;  %8983 = vset.pattern.permute.xlu0 %v14802_v9 }
 0x340   :  { %8969 = vset.pattern.permute.xlu1 %v14803_v8  ;;  %1757 = vperm.xlu0 %8983, %v10454_v58  }
 0x341   :  { %2103 = vperm.xlu1 %8969, %v10429_v24  }
 0x343   :  { %v10917_v43 = vpop.permute.xlu0 %1739 }
 0x344   :  { %v10919_v5 = vpop.permute.xlu1 %2085  ;;  %8984 = vset.pattern.permute.xlu0 %v14803_v8 }
 0x345   :  { %14876 = vst [vmem:[#allocation109_spill] sm:$0xff] %v10919_v5  ;;  %8970 = vset.pattern.permute.xlu1 %v14804_v41  ;;  %2106 = vperm.xlu0 %8984, %v10451_v45  }
 0x346   :  { %2433 = vperm.xlu1 %8970, %v10426_v37  }
 0x348   :  { %v10925_v10 = vpop.permute.xlu0 %2088 }
 0x349   :  { %14877 = vst [vmem:[#allocation110_spill] sm:$0xff] %v10925_v10  ;;  %v10927_v31 = vpop.permute.xlu1 %2415  ;;  %8987 = vset.pattern.permute.xlu0 %v14804_v41 }
 0x34a   :  { %14878 = vst [vmem:[#allocation111_spill] sm:$0xff] %v10927_v31  ;;  %8973 = vset.pattern.permute.xlu1 %v14807_v44  ;;  %2442 = vperm.xlu0 %8987, %v10454_v58  }
 0x34b   :  { %2777 = vperm.xlu1 %8973, %v10429_v24  }
 0x34d   :  { %v10933_v5 = vpop.permute.xlu0 %2424 }
 0x34e   :  { %14879 = vst [vmem:[#allocation112_spill] sm:$0xff] %v10933_v5  ;;  %v10935_v50 = vpop.permute.xlu1 %2759  ;;  %8988 = vset.pattern.permute.xlu0 %v14807_v44 }
 0x34f   :  { %14880 = vst [vmem:[#allocation113_spill] sm:$0xff] %v10935_v50  ;;  %8974 = vset.pattern.permute.xlu1 %v14805_v32  ;;  %2780 = vperm.xlu0 %8988, %v10451_v45  }
 0x350   :  { %3115 = vperm.xlu1 %8974, %v10426_v37  }
 0x352   :  { %v10941_v10 = vpop.permute.xlu0 %2762 }
 0x353   :  { %14881 = vst [vmem:[#allocation114_spill] sm:$0xff] %v10941_v10  ;;  %v10943_v31 = vpop.permute.xlu1 %3097  ;;  %8991 = vset.pattern.permute.xlu0 %v14805_v32 }
 0x354   :  { %14882 = vst [vmem:[#allocation115_spill] sm:$0xff] %v10943_v31  ;;  %8977 = vset.pattern.permute.xlu1 %v14808_v51  ;;  %3124 = vperm.xlu0 %8991, %v10454_v58  }
 0x355   :  { %3453 = vperm.xlu1 %8977, %v10429_v24  }
 0x357   :  { %v10949_v5 = vpop.permute.xlu0 %3106 }
 0x358   :  { %14883 = vst [vmem:[#allocation116_spill] sm:$0xff] %v10949_v5  ;;  %v10951_v50 = vpop.permute.xlu1 %3435  ;;  %8992 = vset.pattern.permute.xlu0 %v14808_v51 }
 0x359   :  { %14884 = vst [vmem:[#allocation117_spill] sm:$0xff] %v10951_v50  ;;  %8978 = vset.pattern.permute.xlu1 %v14806_v19  ;;  %3456 = vperm.xlu0 %8992, %v10451_v45  }
 0x35a   :  { %3793 = vperm.xlu1 %8978, %v10426_v37  }
 0x35c   :  { %v10957_v10 = vpop.permute.xlu0 %3438 }
 0x35d   :  { %14885 = vst [vmem:[#allocation118_spill] sm:$0xff] %v10957_v10  ;;  %v10959_v31 = vpop.permute.xlu1 %3775  ;;  %8995 = vset.pattern.permute.xlu0 %v14806_v19 }
 0x35e   :  { %14886 = vst [vmem:[#allocation119_spill] sm:$0xff] %v10959_v31  ;;  %8980 = vset.pattern.permute.xlu1 %v14809_v59  ;;  %3802 = vperm.xlu0 %8995, %v10454_v58  }
 0x35f   :  { %4134 = vperm.xlu1 %8980, %v10426_v37  }
 0x361   :  { %v10965_v24 = vpop.permute.xlu0 %3784 }
 0x362   :  { %14887 = vst [vmem:[#allocation120_spill] sm:$0xff] %v10965_v24  ;;  %v10967_v5 = vpop.permute.xlu1 %4119  ;;  %8997 = vset.pattern.permute.xlu0 %v14809_v59 }
 0x363   :  { %14888 = vst [vmem:[#allocation121_spill] sm:$0xff] %v10967_v5  ;;  %8982 = vset.pattern.permute.xlu1 %v14802_v9  ;;  %4143 = vperm.xlu0 %8997, %v10454_v58  }
 0x364   :  { %1754 = vperm.xlu1 %8982, %v10451_v45  }
 0x366   :  { %v10973_v10 = vpop.permute.xlu0 %4122 }
 0x367   :  { %14889 = vst [vmem:[#allocation122_spill] sm:$0xff] %v10973_v10  ;;  %v10975_v31 = vpop.permute.xlu1 %1736  ;;  %8999 = vset.pattern.permute.xlu0 %v14802_v9 }
 0x368   :  { %8985 = vset.pattern.permute.xlu1 %v14803_v8  ;;  %1763 = vperm.xlu0 %8999, %v10476_v29  }
 0x369   :  { %2109 = vperm.xlu1 %8985, %v10454_v58  }
 0x36b   :  { %v10981_v37 = vpop.permute.xlu0 %1745 }
 0x36c   :  { %v10983_v24 = vpop.permute.xlu1 %2091  ;;  %9000 = vset.pattern.permute.xlu0 %v14803_v8 }
 0x36d   :  { %14890 = vst [vmem:[#allocation123_spill] sm:$0xff] %v10983_v24  ;;  %8986 = vset.pattern.permute.xlu1 %v14804_v41  ;;  %2112 = vperm.xlu0 %9000, %v10473_v20  }
 0x36e   :  { %2439 = vperm.xlu1 %8986, %v10451_v45  }
 0x370   :  { %v10989_v10 = vpop.permute.xlu0 %2094 }
 0x371   :  { %14891 = vst [vmem:[#allocation124_spill] sm:$0xff] %v10989_v10  ;;  %v10991_v5 = vpop.permute.xlu1 %2421  ;;  %9003 = vset.pattern.permute.xlu0 %v14804_v41 }
 0x372   :  { %14892 = vst [vmem:[#allocation125_spill] sm:$0xff] %v10991_v5  ;;  %8989 = vset.pattern.permute.xlu1 %v14807_v44  ;;  %2448 = vperm.xlu0 %9003, %v10476_v29  }
 0x373   :  { %2783 = vperm.xlu1 %8989, %v10454_v58  }
 0x375   :  { %v10997_v24 = vpop.permute.xlu0 %2430 }
 0x376   :  { %14893 = vst [vmem:[#allocation126_spill] sm:$0xff] %v10997_v24  ;;  %v10999_v50 = vpop.permute.xlu1 %2765  ;;  %9004 = vset.pattern.permute.xlu0 %v14807_v44  ;;  %v1801_v24 = vadd.s32 4294967288, %v1796_v34  ;;  %v1820_v34 = vrot.slane %v10719_v16, %v11023_v62  ;;  %v1838_v16 = vrot.slane %v10847_v12, %v11023_v62  ;;  %v1856_v12 = vrot.slane %v10975_v31, %v11023_v62 }
 0x377   :  { %14894 = vst [vmem:[#allocation127_spill] sm:$0xff] %v10999_v50  ;;  %8990 = vset.pattern.permute.xlu1 %v14805_v32  ;;  %2786 = vperm.xlu0 %9004, %v10473_v20  }
 0x378   :  { %3121 = vperm.xlu1 %8990, %v10451_v45  }
 0x37a   :  { %v11005_v10 = vpop.permute.xlu0 %2768 }
 0x37b   :  { %14895 = vst [vmem:[#allocation128_spill] sm:$0xff] %v11005_v10  ;;  %v11007_v5 = vpop.permute.xlu1 %3103  ;;  %9007 = vset.pattern.permute.xlu0 %v14805_v32  ;;  %v11026_v10 = vsub.s32 %v1801_v24, %v9621_v6 }
 0x37c   :  { %14896 = vst [vmem:[#allocation129_spill] sm:$0xff] %v11007_v5  ;;  %8993 = vset.pattern.permute.xlu1 %v14808_v51  ;;  %3130 = vperm.xlu0 %9007, %v10476_v29  }
 0x37d   :  { %3459 = vperm.xlu1 %8993, %v10454_v58   ;;  %v1805_v6 = vrot.slane %v10563_v17, %v11026_v10  ;;  %v1824_v24 = vrot.slane %v10661_v55, %v11026_v10  ;;  %v1847_v17 = vrot.slane %v10911_v61, %v11023_v62  ;;  %v1842_v55 = vrot.slane %v10789_v53, %v11026_v10 }
 0x37e   :  { %v1860_v61 = vrot.slane %v10917_v43, %v11026_v10 }
 0x37f   :  { %v11014_v50 = vpop.permute.xlu0 %3112  ;;  %v1843_v31 = vsel %vm1806_vm2, %v1842_v55, %v1838_v16  ;;  %v1869_v16 = vrot.slane %v10981_v37, %v11026_v10 }
 0x380   :  { %14898 = vst [vmem:[#allocation130_spill] sm:$0xff] %v11014_v50  ;;  %v11016_v2 = vpop.permute.xlu1 %3441  ;;  %9008 = vset.pattern.permute.xlu0 %v14808_v51  ;;  %v1815_v50 = vrot.slane %v10629_v38, %v11026_v10  ;;  %v1800_v38 = vrot.slane %v10565_v60, %v11023_v62 }
 0x381   :  { %14899 = vst [vmem:[#allocation131_spill] sm:$0xff] %v11016_v2  ;;  %8994 = vset.pattern.permute.xlu1 %v14806_v19  ;;  %3462 = vperm.xlu0 %9008, %v10473_v20   ;;  %v1811_v2 = vrot.slane %v10627_v35, %v11023_v62  ;;  %v1829_v35 = vrot.slane %v10783_v0, %v11023_v62 }
 0x382   :  { %3799 = vperm.xlu1 %8994, %v10451_v45   ;;  %v1825_v0 = vsel %vm1806_vm2, %v1824_v24, %v1820_v34 }
 0x384   :  { %v11028_v58 = vpop.permute.xlu0 %3444 }
 0x385   :  { %14900 = vst [vmem:[#allocation132_spill] sm:$0xff] %v11028_v58  ;;  %v11030_v5 = vpop.permute.xlu1 %3781  ;;  %9011 = vset.pattern.permute.xlu0 %v14806_v19  ;;  %v1816_v58 = vsel %vm1806_vm2, %v1815_v50, %v1811_v2  ;;  %v1807_v50 = vsel %vm1806_vm2, %v1805_v6, %v1800_v38 }
 0x386   :  { %14901 = vst [vmem:[#allocation133_spill] sm:$0xff] %v11030_v5  ;;  %8996 = vset.pattern.permute.xlu1 %v14809_v59  ;;  %3808 = vperm.xlu0 %9011, %v10476_v29   ;;  %v1944_v53 = vsel %vm1943_vm3, %v1816_v58, %v1807_v50 }
 0x387   :  { %4140 = vperm.xlu1 %8996, %v10451_v45   ;;  %v1833_v45 = vrot.slane %v10725_v63, %v11026_v10  ;;  %v1851_v63 = vrot.slane %v10853_v56, %v11026_v10  ;;  %v1946_v34 = vsel %vm1945_vm4, %v1825_v0, %v1944_v53  ;;  %v1861_v56 = vsel %vm1806_vm2, %v1860_v61, %v1856_v12 }
 0x389   :  { %v11057_v60 = vpop.permute.xlu0 %3790  ;;  %v1834_v2 = vsel %vm1806_vm2, %v1833_v45, %v1829_v35  ;;  %v1852_v6 = vsel %vm1806_vm2, %v1851_v63, %v1847_v17 }
 0x38a   :  { %v11059_v5 = vpop.permute.xlu1 %4125  ;;  %9013 = vset.pattern.permute.xlu0 %v14809_v59  ;;  %v1948_v38 = vsel %vm1947_vm5, %v1834_v2, %v1946_v34 }
 0x38b   :  { %8998 = vset.pattern.permute.xlu1 %v14802_v9  ;;  %4149 = vperm.xlu0 %9013, %v10476_v29   ;;  %v1950_v58 = vsel %vm1949_vm6, %v1843_v31, %v1948_v38 }
 0x38c   :  { %1760 = vperm.xlu1 %8998, %v10473_v20   ;;  %v1952_v45 = vsel %vm1951_vm7, %v1852_v6, %v1950_v58 }
 0x38d   :  { %v1954_v0 = vsel %vm1953_vm8, %v1861_v56, %v1952_v45 }
 0x38e   :  { %v11082_v35 = vpop.permute.xlu0 %4128 }
 0x38f   :  { %v1743_v24 = vpop.permute.xlu1 %1742  ;;  %9015 = vset.pattern.permute.xlu0 %v14802_v9 }
 0x390   :  { %v1865_v43 = vrot.slane %v1743_v24, %v11023_v62  ;;  %9001 = vset.pattern.permute.xlu1 %v14803_v8  ;;  %1769 = vperm.xlu0 %9015, %v10498_v42  }
 0x391   :  { %2115 = vperm.xlu1 %9001, %v10476_v29  }
 0x392   :  { %v1870_v17 = vsel %vm1806_vm2, %v1869_v16, %v1865_v43 }
 0x393   :  { %v1956_v55 = vsel %vm1955_vm9, %v1870_v17, %v1954_v0  ;;  %v11096_v37 = vpop.permute.xlu0 %1751 }
 0x394   :  { %8640 = vmatprep.mubr.msk.f32.mxu0 %vm285_vm0, %v1956_v55  ;;  %v11099_v12 = vpop.permute.xlu1 %2097  ;;  %9016 = vset.pattern.permute.xlu0 %v14803_v8 }
 0x395   :  { %9002 = vset.pattern.permute.xlu1 %v14804_v41  ;;  %2118 = vperm.xlu0 %9016, %v10495_v47  }
 0x396   :  { %2445 = vperm.xlu1 %9002, %v10473_v20  }
 0x398   :  { %v11105_v50 = vpop.permute.xlu0 %2100 }
 0x399   :  { %v11107_v2 = vpop.permute.xlu1 %2427  ;;  %9019 = vset.pattern.permute.xlu0 %v14804_v41 }
 0x39a   :  { %9005 = vset.pattern.permute.xlu1 %v14807_v44  ;;  %2454 = vperm.xlu0 %9019, %v10498_v42  }
 0x39b   :  { %2789 = vperm.xlu1 %9005, %v10476_v29  }
 0x39d   :  { %v11113_v63 = vpop.permute.xlu0 %2436 }
 0x39e   :  { %v11115_v53 = vpop.permute.xlu1 %2771  ;;  %9020 = vset.pattern.permute.xlu0 %v14807_v44 }
 0x39f   :  { %9006 = vset.pattern.permute.xlu1 %v14805_v32  ;;  %2792 = vperm.xlu0 %9020, %v10495_v47  }
 0x3a0   :  { %3127 = vperm.xlu1 %9006, %v10473_v20  }
 0x3a2   :  { %v11121_v31 = vpop.permute.xlu0 %2774 }
 0x3a3   :  { %v11123_v61 = vpop.permute.xlu1 %3109  ;;  %9023 = vset.pattern.permute.xlu0 %v14805_v32 }
 0x3a4   :  { %9009 = vset.pattern.permute.xlu1 %v14808_v51  ;;  %3136 = vperm.xlu0 %9023, %v10498_v42  }
 0x3a5   :  { %3465 = vperm.xlu1 %9009, %v10476_v29  }
 0x3a7   :  { %v11129_v34 = vpop.permute.xlu0 %3118 }
 0x3a8   :  { %v11131_v6 = vpop.permute.xlu1 %3447  ;;  %9024 = vset.pattern.permute.xlu0 %v14808_v51 }
 0x3a9   :  { %9010 = vset.pattern.permute.xlu1 %v14806_v19  ;;  %3468 = vperm.xlu0 %9024, %v10495_v47  }
 0x3aa   :  { %3805 = vperm.xlu1 %9010, %v10473_v20  }
 0x3ac   :  { %v11137_v38 = vpop.permute.xlu0 %3450 }
 0x3ad   :  { %v11139_v56 = vpop.permute.xlu1 %3787  ;;  %9027 = vset.pattern.permute.xlu0 %v14806_v19 }
 0x3ae   :  { %9012 = vset.pattern.permute.xlu1 %v14809_v59  ;;  %3814 = vperm.xlu0 %9027, %v10498_v42  }
 0x3af   :  { %4146 = vperm.xlu1 %9012, %v10473_v20  }
 0x3b1   :  { %v11145_v29 = vpop.permute.xlu0 %3796 }
 0x3b2   :  { %v11147_v24 = vpop.permute.xlu1 %4131  ;;  %9028 = vset.pattern.permute.xlu0 %v14809_v59 }
 0x3b3   :  { %9014 = vset.pattern.permute.xlu1 %v14802_v9  ;;  %4152 = vperm.xlu0 %9028, %v10495_v47  }
 0x3b4   :  { %1766 = vperm.xlu1 %9014, %v10495_v47  }
 0x3b6   :  { %v11153_v58 = vpop.permute.xlu0 %4137 }
 0x3b7   :  { %v11155_v16 = vpop.permute.xlu1 %1748  ;;  %9031 = vset.pattern.permute.xlu0 %v14802_v9 }
 0x3b8   :  { %9017 = vset.pattern.permute.xlu1 %v14803_v8  ;;  %1775 = vperm.xlu0 %9031, %v10513_v33  }
 0x3b9   :  { %2121 = vperm.xlu1 %9017, %v10498_v42  }
 0x3bb   :  { %v11161_v20 = vpop.permute.xlu0 %1757 }
 0x3bc   :  { %14902 = vst [vmem:[#allocation134_spill] sm:$0xff] %v11161_v20  ;;  %v11163_v43 = vpop.permute.xlu1 %2103  ;;  %9032 = vset.pattern.permute.xlu0 %v14803_v8 }
 0x3bd   :  { %9018 = vset.pattern.permute.xlu1 %v14804_v41  ;;  %2124 = vperm.xlu0 %9032, %v10510_v18  }
 0x3be   :  { %2451 = vperm.xlu1 %9018, %v10495_v47  }
 0x3c0   :  { %v11169_v45 = vpop.permute.xlu0 %2106 }
 0x3c1   :  { %14903 = vst [vmem:[#allocation135_spill] sm:$0xff] %v11169_v45  ;;  %v11171_v17 = vpop.permute.xlu1 %2433  ;;  %9035 = vset.pattern.permute.xlu0 %v14804_v41 }
 0x3c2   :  { %9021 = vset.pattern.permute.xlu1 %v14807_v44  ;;  %2460 = vperm.xlu0 %9035, %v10513_v33  }
 0x3c3   :  { %2795 = vperm.xlu1 %9021, %v10498_v42  }
 0x3c5   :  { %v11177_v0 = vpop.permute.xlu0 %2442 }
 0x3c6   :  { %14904 = vst [vmem:[#allocation136_spill] sm:$0xff] %v11177_v0  ;;  %v11179_v55 = vpop.permute.xlu1 %2777  ;;  %9036 = vset.pattern.permute.xlu0 %v14807_v44 }
 0x3c7   :  { %14905 = vst [vmem:[#allocation137_spill] sm:$0xff] %v11179_v55  ;;  %9022 = vset.pattern.permute.xlu1 %v14805_v32  ;;  %2798 = vperm.xlu0 %9036, %v10510_v18  }
 0x3c8   :  { %3133 = vperm.xlu1 %9022, %v10495_v47  }
 0x3ca   :  { %v11185_v45 = vpop.permute.xlu0 %2780 }
 0x3cb   :  { %14906 = vst [vmem:[#allocation138_spill] sm:$0xff] %v11185_v45  ;;  %v11187_v20 = vpop.permute.xlu1 %3115  ;;  %9039 = vset.pattern.permute.xlu0 %v14805_v32 }
 0x3cc   :  { %14907 = vst [vmem:[#allocation139_spill] sm:$0xff] %v11187_v20  ;;  %9025 = vset.pattern.permute.xlu1 %v14808_v51  ;;  %3142 = vperm.xlu0 %9039, %v10513_v33  }
 0x3cd   :  { %3471 = vperm.xlu1 %9025, %v10498_v42  }
 0x3cf   :  { %v11193_v0 = vpop.permute.xlu0 %3124 }
 0x3d0   :  { %14908 = vst [vmem:[#allocation140_spill] sm:$0xff] %v11193_v0  ;;  %v11195_v55 = vpop.permute.xlu1 %3453  ;;  %9040 = vset.pattern.permute.xlu0 %v14808_v51 }
 0x3d1   :  { %14909 = vst [vmem:[#allocation141_spill] sm:$0xff] %v11195_v55  ;;  %9026 = vset.pattern.permute.xlu1 %v14806_v19  ;;  %3474 = vperm.xlu0 %9040, %v10510_v18  }
 0x3d2   :  { %3811 = vperm.xlu1 %9026, %v10495_v47  }
 0x3d4   :  { %v11201_v45 = vpop.permute.xlu0 %3456 }
 0x3d5   :  { %14910 = vst [vmem:[#allocation142_spill] sm:$0xff] %v11201_v45  ;;  %v11203_v20 = vpop.permute.xlu1 %3793  ;;  %9043 = vset.pattern.permute.xlu0 %v14806_v19 }
 0x3d6   :  { %9029 = vset.pattern.permute.xlu1 %v14809_v59  ;;  %3820 = vperm.xlu0 %9043, %v10513_v33  }
 0x3d7   :  { %4155 = vperm.xlu1 %9029, %v10498_v42  }
 0x3d9   :  { %v11209_v0 = vpop.permute.xlu0 %3802 }
 0x3da   :  { %14911 = vst [vmem:[#allocation143_spill] sm:$0xff] %v11209_v0  ;;  %v11211_v55 = vpop.permute.xlu1 %4134  ;;  %9044 = vset.pattern.permute.xlu0 %v14809_v59 }
 0x3db   :  { %14912 = vst [vmem:[#allocation144_spill] sm:$0xff] %v11211_v55  ;;  %9030 = vset.pattern.permute.xlu1 %v14802_v9  ;;  %4158 = vperm.xlu0 %9044, %v10510_v18  }
 0x3dc   :  { %1772 = vperm.xlu1 %9030, %v10510_v18  }
 0x3de   :  { %v11217_v47 = vpop.permute.xlu0 %4143 }
 0x3df   :  { %14913 = vst [vmem:[#allocation145_spill] sm:$0xff] %v11217_v47  ;;  %v11219_v45 = vpop.permute.xlu1 %1754  ;;  %9047 = vset.pattern.permute.xlu0 %v14802_v9 }
 0x3e0   :  { %9033 = vset.pattern.permute.xlu1 %v14803_v8  ;;  %1781 = vperm.xlu0 %9047, %v10525_v36  }
 0x3e1   :  { %2127 = vperm.xlu1 %9033, %v10513_v33  }
 0x3e3   :  { %v11225_v42 = vpop.permute.xlu0 %1763 }
 0x3e4   :  { %14914 = vst [vmem:[#allocation146_spill] sm:$0xff] %v11225_v42  ;;  %v11227_v0 = vpop.permute.xlu1 %2109  ;;  %9048 = vset.pattern.permute.xlu0 %v14803_v8 }
 0x3e5   :  { %14915 = vst [vmem:[#allocation147_spill] sm:$0xff] %v11227_v0  ;;  %9034 = vset.pattern.permute.xlu1 %v14804_v41  ;;  %2130 = vperm.xlu0 %9048, %v10522_v4  }
 0x3e6   :  { %2457 = vperm.xlu1 %9034, %v10510_v18  }
 0x3e8   :  { %v11233_v47 = vpop.permute.xlu0 %2112 }
 0x3e9   :  { %14916 = vst [vmem:[#allocation148_spill] sm:$0xff] %v11233_v47  ;;  %v11235_v55 = vpop.permute.xlu1 %2439  ;;  %9051 = vset.pattern.permute.xlu0 %v14804_v41 }
 0x3ea   :  { %14917 = vst [vmem:[#allocation149_spill] sm:$0xff] %v11235_v55  ;;  %9037 = vset.pattern.permute.xlu1 %v14807_v44  ;;  %2466 = vperm.xlu0 %9051, %v10525_v36  }
 0x3eb   :  { %2801 = vperm.xlu1 %9037, %v10513_v33  }
 0x3ed   :  { %v11241_v42 = vpop.permute.xlu0 %2448 }
 0x3ee   :  { %14918 = vst [vmem:[#allocation150_spill] sm:$0xff] %v11241_v42  ;;  %v11243_v0 = vpop.permute.xlu1 %2783  ;;  %9052 = vset.pattern.permute.xlu0 %v14807_v44 }
 0x3ef   :  { %14919 = vst [vmem:[#allocation151_spill] sm:$0xff] %v11243_v0  ;;  %9038 = vset.pattern.permute.xlu1 %v14805_v32  ;;  %2804 = vperm.xlu0 %9052, %v10522_v4  }
 0x3f0   :  { %3139 = vperm.xlu1 %9038, %v10510_v18  }
 0x3f2   :  { %v11249_v47 = vpop.permute.xlu0 %2786 }
 0x3f3   :  { %14920 = vst [vmem:[#allocation152_spill] sm:$0xff] %v11249_v47  ;;  %v11251_v55 = vpop.permute.xlu1 %3121  ;;  %9055 = vset.pattern.permute.xlu0 %v14805_v32 }
 0x3f4   :  { %14921 = vst [vmem:[#allocation153_spill] sm:$0xff] %v11251_v55  ;;  %9041 = vset.pattern.permute.xlu1 %v14808_v51  ;;  %3148 = vperm.xlu0 %9055, %v10525_v36  }
 0x3f5   :  { %3477 = vperm.xlu1 %9041, %v10513_v33  }
 0x3f7   :  { %v11257_v42 = vpop.permute.xlu0 %3130 }
 0x3f8   :  { %14922 = vst [vmem:[#allocation154_spill] sm:$0xff] %v11257_v42  ;;  %v11259_v0 = vpop.permute.xlu1 %3459  ;;  %9056 = vset.pattern.permute.xlu0 %v14808_v51 }
 0x3f9   :  { %14923 = vst [vmem:[#allocation155_spill] sm:$0xff] %v11259_v0  ;;  %9042 = vset.pattern.permute.xlu1 %v14806_v19  ;;  %3480 = vperm.xlu0 %9056, %v10522_v4  }
 0x3fa   :  { %3817 = vperm.xlu1 %9042, %v10510_v18  }
 0x3fc   :  { %v11265_v47 = vpop.permute.xlu0 %3462 }
 0x3fd   :  { %14924 = vst [vmem:[#allocation156_spill] sm:$0xff] %v11265_v47  ;;  %v11267_v55 = vpop.permute.xlu1 %3799  ;;  %9059 = vset.pattern.permute.xlu0 %v14806_v19 }
 0x3fe   :  { %9045 = vset.pattern.permute.xlu1 %v14809_v59  ;;  %3826 = vperm.xlu0 %9059, %v10525_v36  }
 0x3ff   :  { %4161 = vperm.xlu1 %9045, %v10513_v33  }
 0x401   :  { %v11273_v42 = vpop.permute.xlu0 %3808 }
 0x402   :  { %14925 = vst [vmem:[#allocation157_spill] sm:$0xff] %v11273_v42  ;;  %v11275_v0 = vpop.permute.xlu1 %4140  ;;  %9060 = vset.pattern.permute.xlu0 %v14809_v59 }
 0x403   :  { %14926 = vst [vmem:[#allocation158_spill] sm:$0xff] %v11275_v0  ;;  %9046 = vset.pattern.permute.xlu1 %v14802_v9  ;;  %4164 = vperm.xlu0 %9060, %v10522_v4  }
 0x404   :  { %1778 = vperm.xlu1 %9046, %v10522_v4  }
 0x406   :  { %v11281_v18 = vpop.permute.xlu0 %4149 }
 0x407   :  { %14927 = vst [vmem:[#allocation159_spill] sm:$0xff] %v11281_v18  ;;  %v11283_v47 = vpop.permute.xlu1 %1760  ;;  %9063 = vset.pattern.permute.xlu0 %v14802_v9 }
 0x408   :  { %9049 = vset.pattern.permute.xlu1 %v14803_v8  ;;  %1787 = vperm.xlu0 %9063, %v10545_v7  }
 0x409   :  { %2133 = vperm.xlu1 %9049, %v10525_v36  }
 0x40b   :  { %v11289_v33 = vpop.permute.xlu0 %1769 }
 0x40c   :  { %14928 = vst [vmem:[#allocation160_spill] sm:$0xff] %v11289_v33  ;;  %v11291_v0 = vpop.permute.xlu1 %2115  ;;  %9064 = vset.pattern.permute.xlu0 %v14803_v8 }
 0x40d   :  { %14929 = vst [vmem:[#allocation161_spill] sm:$0xff] %v11291_v0  ;;  %9050 = vset.pattern.permute.xlu1 %v14804_v41  ;;  %2136 = vperm.xlu0 %9064, %v10542_v39  }
 0x40e   :  { %2463 = vperm.xlu1 %9050, %v10522_v4  }
 0x410   :  { %v11297_v18 = vpop.permute.xlu0 %2118 }
 0x411   :  { %14930 = vst [vmem:[#allocation162_spill] sm:$0xff] %v11297_v18  ;;  %v11299_v42 = vpop.permute.xlu1 %2445  ;;  %9067 = vset.pattern.permute.xlu0 %v14804_v41 }
 0x412   :  { %14931 = vst [vmem:[#allocation163_spill] sm:$0xff] %v11299_v42  ;;  %9053 = vset.pattern.permute.xlu1 %v14807_v44  ;;  %2472 = vperm.xlu0 %9067, %v10545_v7  }
 0x413   :  { %2807 = vperm.xlu1 %9053, %v10525_v36  }
 0x415   :  { %v11305_v33 = vpop.permute.xlu0 %2454 }
 0x416   :  { %14932 = vst [vmem:[#allocation164_spill] sm:$0xff] %v11305_v33  ;;  %v11307_v0 = vpop.permute.xlu1 %2789  ;;  %9068 = vset.pattern.permute.xlu0 %v14807_v44 }
 0x417   :  { %14933 = vst [vmem:[#allocation165_spill] sm:$0xff] %v11307_v0  ;;  %9054 = vset.pattern.permute.xlu1 %v14805_v32  ;;  %2810 = vperm.xlu0 %9068, %v10542_v39  }
 0x418   :  { %3145 = vperm.xlu1 %9054, %v10522_v4  }
 0x41a   :  { %v11313_v18 = vpop.permute.xlu0 %2792 }
 0x41b   :  { %14934 = vst [vmem:[#allocation166_spill] sm:$0xff] %v11313_v18  ;;  %v11315_v42 = vpop.permute.xlu1 %3127  ;;  %9071 = vset.pattern.permute.xlu0 %v14805_v32 }
 0x41c   :  { %14935 = vst [vmem:[#allocation167_spill] sm:$0xff] %v11315_v42  ;;  %9057 = vset.pattern.permute.xlu1 %v14808_v51  ;;  %3154 = vperm.xlu0 %9071, %v10545_v7  }
 0x41d   :  { %3483 = vperm.xlu1 %9057, %v10525_v36  }
 0x41f   :  { %v11321_v33 = vpop.permute.xlu0 %3136 }
 0x420   :  { %14936 = vst [vmem:[#allocation168_spill] sm:$0xff] %v11321_v33  ;;  %v11323_v0 = vpop.permute.xlu1 %3465  ;;  %9072 = vset.pattern.permute.xlu0 %v14808_v51 }
 0x421   :  { %14937 = vst [vmem:[#allocation169_spill] sm:$0xff] %v11323_v0  ;;  %9058 = vset.pattern.permute.xlu1 %v14806_v19  ;;  %3486 = vperm.xlu0 %9072, %v10542_v39  }
 0x422   :  { %3823 = vperm.xlu1 %9058, %v10522_v4  }
 0x424   :  { %v11329_v18 = vpop.permute.xlu0 %3468 }
 0x425   :  { %14938 = vst [vmem:[#allocation170_spill] sm:$0xff] %v11329_v18  ;;  %v11331_v42 = vpop.permute.xlu1 %3805  ;;  %9075 = vset.pattern.permute.xlu0 %v14806_v19 }
 0x426   :  { %9061 = vset.pattern.permute.xlu1 %v14809_v59  ;;  %3832 = vperm.xlu0 %9075, %v10545_v7  }
 0x427   :  { %4167 = vperm.xlu1 %9061, %v10525_v36  }
 0x429   :  { %v11337_v33 = vpop.permute.xlu0 %3814 }
 0x42a   :  { %14939 = vst [vmem:[#allocation171_spill] sm:$0xff] %v11337_v33  ;;  %v11339_v0 = vpop.permute.xlu1 %4146  ;;  %9076 = vset.pattern.permute.xlu0 %v14809_v59 }
 0x42b   :  { %14940 = vst [vmem:[#allocation172_spill] sm:$0xff] %v11339_v0  ;;  %9062 = vset.pattern.permute.xlu1 %v14802_v9  ;;  %4170 = vperm.xlu0 %9076, %v10542_v39  }
 0x42c   :  { %1784 = vperm.xlu1 %9062, %v10542_v39  }
 0x42e   :  { %v11345_v4 = vpop.permute.xlu0 %4152 }
 0x42f   :  { %14941 = vst [vmem:[#allocation173_spill] sm:$0xff] %v11345_v4  ;;  %v11347_v18 = vpop.permute.xlu1 %1766  ;;  %9079 = vset.pattern.permute.xlu0 %v14802_v9 }
 0x430   :  { %9065 = vset.pattern.permute.xlu1 %v14803_v8  ;;  %1793 = vperm.xlu0 %9079, %v10557_v54  }
 0x431   :  { %2139 = vperm.xlu1 %9065, %v10545_v7  }
 0x433   :  { %v11353_v36 = vpop.permute.xlu0 %1775 }
 0x434   :  { %14942 = vst [vmem:[#allocation174_spill] sm:$0xff] %v11353_v36  ;;  %v11355_v0 = vpop.permute.xlu1 %2121  ;;  %9080 = vset.pattern.permute.xlu0 %v14803_v8 }
 0x435   :  { %14943 = vst [vmem:[#allocation175_spill] sm:$0xff] %v11355_v0  ;;  %9066 = vset.pattern.permute.xlu1 %v14804_v41  ;;  %2142 = vperm.xlu0 %9080, %v10555_v27  }
 0x436   :  { %2469 = vperm.xlu1 %9066, %v10542_v39  }
 0x438   :  { %v11361_v4 = vpop.permute.xlu0 %2124 }
 0x439   :  { %14944 = vst [vmem:[#allocation176_spill] sm:$0xff] %v11361_v4  ;;  %v11363_v33 = vpop.permute.xlu1 %2451  ;;  %9083 = vset.pattern.permute.xlu0 %v14804_v41 }
 0x43a   :  { %14945 = vst [vmem:[#allocation177_spill] sm:$0xff] %v11363_v33  ;;  %9069 = vset.pattern.permute.xlu1 %v14807_v44  ;;  %2478 = vperm.xlu0 %9083, %v10557_v54  }
 0x43b   :  { %2813 = vperm.xlu1 %9069, %v10545_v7  }
 0x43d   :  { %v11369_v36 = vpop.permute.xlu0 %2460 }
 0x43e   :  { %14946 = vst [vmem:[#allocation178_spill] sm:$0xff] %v11369_v36  ;;  %v11371_v0 = vpop.permute.xlu1 %2795  ;;  %9084 = vset.pattern.permute.xlu0 %v14807_v44 }
 0x43f   :  { %14947 = vst [vmem:[#allocation179_spill] sm:$0xff] %v11371_v0  ;;  %9070 = vset.pattern.permute.xlu1 %v14805_v32  ;;  %2816 = vperm.xlu0 %9084, %v10555_v27  }
 0x440   :  { %3151 = vperm.xlu1 %9070, %v10542_v39  }
 0x442   :  { %v11377_v33 = vpop.permute.xlu0 %2798 }
 0x443   :  { %14948 = vst [vmem:[#allocation180_spill] sm:$0xff] %v11377_v33  ;;  %v11379_v4 = vpop.permute.xlu1 %3133  ;;  %9087 = vset.pattern.permute.xlu0 %v14805_v32 }
 0x444   :  { %14949 = vst [vmem:[#allocation181_spill] sm:$0xff] %v11379_v4  ;;  %9073 = vset.pattern.permute.xlu1 %v14808_v51  ;;  %3160 = vperm.xlu0 %9087, %v10557_v54  }
 0x445   :  { %3489 = vperm.xlu1 %9073, %v10545_v7  }
 0x447   :  { %v11385_v0 = vpop.permute.xlu0 %3142 }
 0x448   :  { %14950 = vst [vmem:[#allocation182_spill] sm:$0xff] %v11385_v0  ;;  %v11387_v36 = vpop.permute.xlu1 %3471  ;;  %9088 = vset.pattern.permute.xlu0 %v14808_v51 }
 0x449   :  { %14951 = vst [vmem:[#allocation183_spill] sm:$0xff] %v11387_v36  ;;  %9074 = vset.pattern.permute.xlu1 %v14806_v19  ;;  %3492 = vperm.xlu0 %9088, %v10555_v27  }
 0x44a   :  { %3829 = vperm.xlu1 %9074, %v10542_v39  }
 0x44c   :  { %v11395_v33 = vpop.permute.xlu0 %3474 }
 0x44d   :  { %v11393_v4 = vpop.permute.xlu1 %3811  ;;  %14953 = vst [vmem:[#allocation185_spill] sm:$0xff] %v11395_v33  ;;  %9091 = vset.pattern.permute.xlu0 %v14806_v19 }
 0x44e   :  { %14952 = vst [vmem:[#allocation184_spill] sm:$0xff] %v11393_v4  ;;  %9077 = vset.pattern.permute.xlu1 %v14809_v59  ;;  %3838 = vperm.xlu0 %9091, %v10557_v54  }
 0x44f   :  { %4173 = vperm.xlu1 %9077, %v10545_v7  }
 0x451   :  { %v11405_v0 = vpop.permute.xlu0 %3820 }
 0x452   :  { %v11401_v36 = vpop.permute.xlu1 %4155  ;;  %9092 = vset.pattern.permute.xlu0 %v14809_v59  ;;  %14955 = vst [vmem:[#allocation187_spill] sm:$0xff] %v11405_v0 }
 0x453   :  { %14954 = vst [vmem:[#allocation186_spill] sm:$0xff] %v11401_v36  ;;  %9078 = vset.pattern.permute.xlu1 %v14802_v9  ;;  %4176 = vperm.xlu0 %9092, %v10555_v27  }
 0x454   :  { %1790 = vperm.xlu1 %9078, %v10555_v27  }
 0x456   :  { %v11416_v7 = vpop.permute.xlu0 %4158 }
 0x457   :  { %v11409_v39 = vpop.permute.xlu1 %1772  ;;  %4341 = vrot.lane.b32.xlu0 %v9873_v40, %s9533_s4  ;;  %14956 = vst [vmem:[#allocation188_spill] sm:$0xff] %v11416_v7 }
 0x458   :  { %9081 = vset.pattern.permute.xlu1 %v14803_v8  ;;  %9094 = vset.pattern.permute.xlu0 %v14802_v9 }
 0x459   :  { %2145 = vperm.xlu1 %9081, %v10557_v54  }
 0x45b   :  { %v11422_v0 = vpop.permute.xlu0 %1781 }
 0x45c   :  { %v11418_v36 = vpop.permute.xlu1 %2127 }
 0x45d   :  { %14957 = vst [vmem:[#allocation189_spill] sm:$0xff] %v11418_v36  ;;  %9082 = vset.pattern.permute.xlu1 %v14804_v41 }
 0x45e   :  { %2475 = vperm.xlu1 %9082, %v10555_v27  }
 0x460   :  { %v11428_v8 = vpop.permute.xlu0 %2130 }
 0x461   :  { %v11424_v4 = vpop.permute.xlu1 %2457  ;;  %14959 = vst [vmem:[#allocation191_spill] sm:$0xff] %v11428_v8 }
 0x462   :  { %14958 = vst [vmem:[#allocation190_spill] sm:$0xff] %v11424_v4  ;;  %9085 = vset.pattern.permute.xlu1 %v14807_v44 }
 0x463   :  { %2819 = vperm.xlu1 %9085, %v10557_v54  }
 0x465   :  { %v11436_v41 = vpop.permute.xlu0 %2466 }
 0x466   :  { %v11430_v40 = vpop.permute.xlu1 %2801  ;;  %14962 = vst [vmem:[#allocation194_spill] sm:$0xff] %v11436_v41 }
 0x467   :  { %14960 = vst [vmem:[#allocation192_spill] sm:$0xff] %v11430_v40  ;;  %9086 = vset.pattern.permute.xlu1 %v14805_v32 }
 0x468   :  { %3157 = vperm.xlu1 %9086, %v10555_v27  }
 0x46a   :  { %v11443_v44 = vpop.permute.xlu0 %2804 }
 0x46b   :  { %v11434_v7 = vpop.permute.xlu1 %3139  ;;  %14964 = vst [vmem:[#allocation196_spill] sm:$0xff] %v11443_v44 }
 0x46c   :  { %14961 = vst [vmem:[#allocation193_spill] sm:$0xff] %v11434_v7  ;;  %9089 = vset.pattern.permute.xlu1 %v14808_v51  ;;  %v2154_v51 = vrot.slane %v10573_v48, %v11026_v10  ;;  %v2828_v48 = vrot.slane %v10589_v23, %v11026_v10  ;;  %v3843_v23 = vrot.slane %v10613_v14, %v11023_v62 }
 0x46d   :  { %3495 = vperm.xlu1 %9089, %v10557_v54  }
 0x46f   :  { %v11450_v32 = vpop.permute.xlu0 %3148 }
 0x470   :  { %v11440_v33 = vpop.permute.xlu1 %3477  ;;  %14966 = vst [vmem:[#allocation198_spill] sm:$0xff] %v11450_v32 }
 0x471   :  { %14963 = vst [vmem:[#allocation195_spill] sm:$0xff] %v11440_v33  ;;  %9090 = vset.pattern.permute.xlu1 %v14806_v19  ;;  %v2150_v19 = vrot.slane %v10571_v15, %v11023_v62  ;;  %v2824_v15 = vrot.slane %v10587_v22, %v11023_v62  ;;  %v3847_v22 = vrot.slane %v10611_v30, %v11026_v10  ;;  %v14971_v30 = vld [vmem:[#allocation55_spill] sm:$0xff] }
 0x472   :  { %3835 = vperm.xlu1 %9090, %v10555_v27   ;;  %v3174_v33 = vrot.slane %v14971_v30, %v11023_v62 }
 0x474   :  { %v11461_v27 = vpop.permute.xlu0 %3480 }
 0x475   :  { %v11446_v40 = vpop.permute.xlu1 %3817  ;;  %14968 = vst [vmem:[#allocation200_spill] sm:$0xff] %v11461_v27 }
 0x476   :  { %14965 = vst [vmem:[#allocation197_spill] sm:$0xff] %v11446_v40  ;;  %9093 = vset.pattern.permute.xlu1 %v14809_v59  ;;  %v2483_v40 = vrot.slane %v10581_v21, %v11023_v62  ;;  %v2492_v21 = vrot.slane %v10651_v13, %v11023_v62  ;;  %v14970_v13 = vld [vmem:[#allocation49_spill] sm:$0xff] }
 0x477   :  { %4179 = vperm.xlu1 %9093, %v10557_v54   ;;  %v2155_v54 = vsel %vm1806_vm2, %v2154_v51, %v2150_v19  ;;  %v3500_v19 = vrot.slane %v10603_v46, %v11023_v62  ;;  %v3504_v51 = vrot.slane %v10605_v57, %v11026_v10  ;;  %v4188_v46 = vrot.slane %v10621_v11, %v11026_v10  ;;  %v14974_v11 = vld [vmem:[#allocation53_spill] sm:$0xff] }
 0x478   :  { %v2159_v27 = vrot.slane %v14970_v13, %v11023_v62  ;;  %v2833_v41 = vrot.slane %v14974_v11, %v11023_v62  ;;  %v14975_v13 = vld [vmem:[#allocation51_spill] sm:$0xff]  ;;  %v14984_v11 = vld [vmem:[#allocation69_spill] sm:$0xff] }
 0x479   :  { %v11502_v32 = vpop.permute.xlu0 %3826  ;;  %v3178_v4 = vrot.slane %v14975_v13, %v11026_v10 }
 0x47a   :  { %v11452_v7 = vpop.permute.xlu1 %4161 }
 0x47b   :  { %14967 = vst [vmem:[#allocation199_spill] sm:$0xff] %v11452_v7  ;;  %4339 = vrot.lane.b32.xlu1 %v9847_v25, %s9533_s4  ;;  %v2487_v7 = vrot.slane %v10579_v26, %v11026_v10  ;;  %v3165_v25 = vrot.slane %v10597_v49, %v11023_v62  ;;  %v2163_v26 = vrot.slane %v10643_v28, %v11026_v10  ;;  %v14969_v28 = vld [vmem:[#allocation50_spill] sm:$0xff] }
 0x47c   :  { %9095 = vset.pattern.permute.xlu1 %v14802_v9  ;;  %v3169_v9 = vrot.slane %v10595_v52, %v11026_v10  ;;  %v4184_v52 = vrot.slane %v10619_v1, %v11023_v62  ;;  %v2837_v49 = vrot.slane %v10666_v3, %v11026_v10  ;;  %v2496_v57 = vrot.slane %v14969_v28, %v11026_v10 }
 0x47d   :  { %14972 = vst [vmem:[#allocation50_spill] sm:$0xff] %v11502_v32  ;;  %v2488_v1 = vsel %vm1806_vm2, %v2487_v7, %v2483_v40  ;;  %v2829_v3 = vsel %vm1806_vm2, %v2828_v48, %v2824_v15  ;;  %v2164_v28 = vsel %vm1806_vm2, %v2163_v26, %v2159_v27  ;;  %v14976_v32 = vld [vmem:[#allocation59_spill] sm:$0xff]  ;;  %v3848_v40 = vsel %vm1806_vm2, %v3847_v22, %v3843_v23  ;;  %v14978_v48 = vld [vmem:[#allocation57_spill] sm:$0xff] }
 0x47e   :  { %v3170_v44 = vsel %vm1806_vm2, %v3169_v9, %v3165_v25  ;;  %v2497_v30 = vsel %vm1806_vm2, %v2496_v57, %v2492_v21  ;;  %v3513_v8 = vrot.slane %v14976_v32, %v11026_v10  ;;  %v2838_v7 = vsel %vm1806_vm2, %v2837_v49, %v2833_v41  ;;  %v14977_v25 = vld [vmem:[#allocation61_spill] sm:$0xff]  ;;  %v14981_v22 = vld [vmem:[#allocation67_spill] sm:$0xff] }
 0x47f   :  { %v11463_v59 = vpop.permute.xlu1 %1778  ;;  %v3852_v9 = vrot.slane %v14977_v25, %v11023_v62  ;;  %v4189_v15 = vsel %vm1806_vm2, %v4188_v46, %v4184_v52  ;;  %v3179_v27 = vsel %vm1806_vm2, %v3178_v4, %v3174_v33  ;;  %v3509_v26 = vrot.slane %v14978_v48, %v11023_v62  ;;  %v14979_v21 = vld [vmem:[#allocation65_spill] sm:$0xff]  ;;  %v14983_v52 = vld [vmem:[#allocation63_spill] sm:$0xff] }
 0x480   :  { %v4197_v57 = vrot.slane %v14979_v21, %v11026_v10  ;;  %v2291_v32 = vsel %vm1943_vm3, %v2164_v28, %v2155_v54  ;;  %v2172_v23 = vrot.slane %v14981_v22, %v11026_v10  ;;  %v2965_v33 = vsel %vm1943_vm3, %v2838_v7, %v2829_v3  ;;  %v11542_v28 = vpop.permute.xlu0 %4164  ;;  %v14987_v48 = vld [vmem:[#allocation71_spill] sm:$0xff]  ;;  %v14990_v22 = vld [vmem:[#allocation73_spill] sm:$0xff] }
 0x481   :  { %v3514_v4 = vsel %vm1806_vm2, %v3513_v8, %v3509_v26  ;;  %v4193_v46 = vrot.slane %v14983_v52, %v11023_v62  ;;  %v2501_v54 = vrot.slane %v14984_v11, %v11023_v62  ;;  %14985 = vst [vmem:[#allocation53_spill] sm:$0xff] %v11542_v28  ;;  %v2846_v3 = vrot.slane %v14987_v48, %v11026_v10  ;;  %v14988_v8 = vld [vmem:[#allocation56_spill] sm:$0xff]  ;;  %v14989_v26 = vld [vmem:[#allocation58_spill] sm:$0xff] }
 0x482   :  { %v2505_v7 = vrot.slane %v14988_v8, %v11026_v10  ;;  %v2842_v21 = vrot.slane %v14989_v26, %v11023_v62  ;;  %v3183_v52 = vrot.slane %v14990_v22, %v11023_v62  ;;  %v14993_v8 = vld [vmem:[#allocation62_spill] sm:$0xff] }
 0x483   :  { %v3518_v26 = vrot.slane %v14993_v8, %v11023_v62  ;;  %v14999_v8 = vld [vmem:[#allocation81_spill] sm:$0xff] }
 0x484   :  { %v11504_v14 = vpop.permute.xlu1 %2133 }
 0x485   :  { %14973 = vst [vmem:[#allocation49_spill] sm:$0xff] %v11504_v14  ;;  %v3505_v14 = vsel %vm1806_vm2, %v3504_v51, %v3500_v19  ;;  %v2624_v19 = vsel %vm1943_vm3, %v2497_v30, %v2488_v1  ;;  %v14980_v51 = vld [vmem:[#allocation52_spill] sm:$0xff]  ;;  %v14986_v1 = vld [vmem:[#allocation54_spill] sm:$0xff]  ;;  %v3306_v30 = vsel %vm1943_vm3, %v3179_v27, %v3170_v44 }
 0x486   :  { %v3856_v41 = vrot.slane %v14980_v51, %v11026_v10  ;;  %v2168_v13 = vrot.slane %v14986_v1, %v11023_v62  ;;  %v4198_v51 = vsel %vm1806_vm2, %v4197_v57, %v4193_v46  ;;  %v3641_v11 = vsel %vm1943_vm3, %v3514_v4, %v3505_v14  ;;  %v14991_v44 = vld [vmem:[#allocation60_spill] sm:$0xff]  ;;  %v14994_v46 = vld [vmem:[#allocation77_spill] sm:$0xff] }
 0x487   :  { %v3187_v27 = vrot.slane %v14991_v44, %v11026_v10  ;;  %v2506_v57 = vsel %vm1806_vm2, %v2505_v7, %v2501_v54  ;;  %v3861_v22 = vrot.slane %v14994_v46, %v11023_v62  ;;  %v14996_v14 = vld [vmem:[#allocation64_spill] sm:$0xff]  ;;  %v14997_v44 = vld [vmem:[#allocation79_spill] sm:$0xff]  ;;  %v2181_v46 = vrot.slane %v14999_v8, %v11026_v10 }
 0x488   :  { %v3857_v25 = vsel %vm1806_vm2, %v3856_v41, %v3852_v9  ;;  %v2173_v9 = vsel %vm1806_vm2, %v2172_v23, %v2168_v13  ;;  %v14992_v41 = vld [vmem:[#allocation75_spill] sm:$0xff]  ;;  %v3865_v4 = vrot.slane %v14996_v14, %v11026_v10  ;;  %v4325_v23 = vsel %vm1943_vm3, %v4198_v51, %v4189_v15  ;;  %v15001_v14 = vld [vmem:[#allocation68_spill] sm:$0xff] }
 0x489   :  { %v11534_v49 = vpop.permute.xlu1 %2463  ;;  %v3522_v1 = vrot.slane %v14992_v41, %v11026_v10  ;;  %v3984_v48 = vsel %vm1943_vm3, %v3857_v25, %v3848_v40  ;;  %v2847_v13 = vsel %vm1806_vm2, %v2846_v3, %v2842_v21  ;;  %v4206_v40 = vrot.slane %v14997_v44, %v11026_v10  ;;  %v14998_v25 = vld [vmem:[#allocation66_spill] sm:$0xff]  ;;  %v15002_v51 = vld [vmem:[#allocation83_spill] sm:$0xff] }
 0x48a   :  { %14982 = vst [vmem:[#allocation55_spill] sm:$0xff] %v11534_v49  ;;  %v4202_v41 = vrot.slane %v14998_v25, %v11023_v62  ;;  %v2292_v54 = vsel %vm1945_vm4, %v2173_v9, %v2291_v32  ;;  %v3188_v7 = vsel %vm1806_vm2, %v3187_v27, %v3183_v52  ;;  %v2177_v15 = vrot.slane %v15001_v14, %v11023_v62  ;;  %v15003_v25 = vld [vmem:[#allocation70_spill] sm:$0xff]  ;;  %v15004_v9 = vld [vmem:[#allocation85_spill] sm:$0xff]  ;;  %v15005_v49 = vld [vmem:[#allocation72_spill] sm:$0xff] }
 0x48b   :  { %v2625_v3 = vsel %vm1945_vm4, %v2506_v57, %v2624_v19  ;;  %v3523_v21 = vsel %vm1806_vm2, %v3522_v1, %v3518_v26  ;;  %v2510_v44 = vrot.slane %v15002_v51, %v11023_v62  ;;  %v2514_v32 = vrot.slane %v15003_v25, %v11026_v10  ;;  %v15006_v26 = vld [vmem:[#allocation87_spill] sm:$0xff]  ;;  %v15008_v25 = vld [vmem:[#allocation74_spill] sm:$0xff] }
 0x48c   :  { %v2966_v52 = vsel %vm1945_vm4, %v2847_v13, %v2965_v33  ;;  %v3866_v27 = vsel %vm1806_vm2, %v3865_v4, %v3861_v22  ;;  %v2855_v8 = vrot.slane %v15004_v9, %v11026_v10  ;;  %v2851_v14 = vrot.slane %v15005_v49, %v11023_v62  ;;  %v15009_v13 = vld [vmem:[#allocation89_spill] sm:$0xff]  ;;  %v15010_v49 = vld [vmem:[#allocation76_spill] sm:$0xff] }
 0x48d   :  { %v3307_v19 = vsel %vm1945_vm4, %v3188_v7, %v3306_v30  ;;  %v4207_v1 = vsel %vm1806_vm2, %v4206_v40, %v4202_v41  ;;  %v3192_v57 = vrot.slane %v15006_v26, %v11023_v62  ;;  %v3196_v33 = vrot.slane %v15008_v25, %v11026_v10  ;;  %v15011_v7 = vld [vmem:[#allocation91_spill] sm:$0xff] }
 0x48e   :  { %v11569_v28 = vpop.permute.xlu1 %2807  ;;  %v3642_v22 = vsel %vm1945_vm4, %v3523_v21, %v3641_v11  ;;  %v2182_v4 = vsel %vm1806_vm2, %v2181_v46, %v2177_v15  ;;  %v3531_v9 = vrot.slane %v15009_v13, %v11026_v10  ;;  %v3527_v30 = vrot.slane %v15010_v49, %v11023_v62  ;;  %v15013_v15 = vld [vmem:[#allocation93_spill] sm:$0xff]  ;;  %v15015_v49 = vld [vmem:[#allocation80_spill] sm:$0xff] }
 0x48f   :  { %14995 = vst [vmem:[#allocation51_spill] sm:$0xff] %v11569_v28  ;;  %v11583_v28 = vpop.permute.xlu0 %1787  ;;  %v3985_v40 = vsel %vm1945_vm4, %v3866_v27, %v3984_v48  ;;  %v2515_v41 = vsel %vm1806_vm2, %v2514_v32, %v2510_v44  ;;  %v3870_v26 = vrot.slane %v15011_v7, %v11023_v62  ;;  %v4326_v11 = vsel %vm1945_vm4, %v4207_v1, %v4325_v23  ;;  %v15016_v27 = vld [vmem:[#allocation95_spill] sm:$0xff]  ;;  %v15018_v1 = vld [vmem:[#allocation97_spill] sm:$0xff] }
 0x490   :  { %15000 = vst [vmem:[#allocation59_spill] sm:$0xff] %v11583_v28  ;;  %v2856_v46 = vsel %vm1806_vm2, %v2855_v8, %v2851_v14  ;;  %v4215_v21 = vrot.slane %v15013_v15, %v11026_v10  ;;  %v4211_v48 = vrot.slane %v15015_v49, %v11023_v62  ;;  %v2293_v44 = vsel %vm1947_vm5, %v2182_v4, %v2292_v54  ;;  %v15020_v49 = vld [vmem:[#allocation84_spill] sm:$0xff]  ;;  %v15021_v4 = vld [vmem:[#allocation99_spill] sm:$0xff] }
 0x491   :  { %v3197_v32 = vsel %vm1806_vm2, %v3196_v33, %v3192_v57  ;;  %v2190_v7 = vrot.slane %v15016_v27, %v11026_v10  ;;  %v2626_v8 = vsel %vm1947_vm5, %v2515_v41, %v2625_v3  ;;  %v3532_v14 = vsel %vm1806_vm2, %v3531_v9, %v3527_v30  ;;  %v15023_v41 = vld [vmem:[#allocation101_spill] sm:$0xff] }
 0x492   :  { %v2519_v15 = vrot.slane %v15018_v1, %v11023_v62  ;;  %v2523_v54 = vrot.slane %v15020_v49, %v11026_v10  ;;  %v2967_v57 = vsel %vm1947_vm5, %v2856_v46, %v2966_v52  ;;  %v2864_v27 = vrot.slane %v15021_v4, %v11026_v10  ;;  %v15026_v4 = vld [vmem:[#allocation90_spill] sm:$0xff] }
 0x493   :  { %v11603_v51 = vpop.permute.xlu1 %3145  ;;  %v11623_v13 = vpop.permute.xlu0 %2136  ;;  %v3308_v9 = vsel %vm1947_vm5, %v3197_v32, %v3307_v19  ;;  %v4216_v30 = vsel %vm1806_vm2, %v4215_v21, %v4211_v48  ;;  %v3201_v1 = vrot.slane %v15023_v41, %v11023_v62  ;;  %v3643_v52 = vsel %vm1947_vm5, %v3532_v14, %v3642_v22  ;;  %v15027_v48 = vld [vmem:[#allocation105_spill] sm:$0xff]  ;;  %v15030_v14 = vld [vmem:[#allocation107_spill] sm:$0xff] }
 0x494   :  { %15007 = vst [vmem:[#allocation61_spill] sm:$0xff] %v11603_v51  ;;  %v15012_v51 = vld [vmem:[#allocation78_spill] sm:$0xff]  ;;  %15014 = vst [vmem:[#allocation57_spill] sm:$0xff] %v11623_v13  ;;  %v2524_v21 = vsel %vm1806_vm2, %v2523_v54, %v2519_v15  ;;  %v3879_v32 = vrot.slane %v15027_v48, %v11023_v62  ;;  %v15033_v48 = vld [vmem:[#allocation109_spill] sm:$0xff] }
 0x495   :  { %v3874_v25 = vrot.slane %v15012_v51, %v11026_v10  ;;  %v15017_v51 = vld [vmem:[#allocation82_spill] sm:$0xff] }
 0x496   :  { %v2186_v23 = vrot.slane %v15017_v51, %v11023_v62  ;;  %v15022_v51 = vld [vmem:[#allocation86_spill] sm:$0xff] }
 0x497   :  { %v3875_v33 = vsel %vm1806_vm2, %v3874_v25, %v3870_v26  ;;  %v2860_v3 = vrot.slane %v15022_v51, %v11023_v62  ;;  %v15025_v25 = vld [vmem:[#allocation103_spill] sm:$0xff]  ;;  %v3536_v51 = vrot.slane %v15026_v4, %v11023_v62  ;;  %v11663_v41 = vpop.permute.xlu0 %2472 }
 0x498   :  { %v11637_v13 = vpop.permute.xlu1 %3483  ;;  %v2191_v26 = vsel %vm1806_vm2, %v2190_v7, %v2186_v23  ;;  %v3540_v46 = vrot.slane %v15025_v25, %v11026_v10  ;;  %v3986_v19 = vsel %vm1947_vm5, %v3875_v33, %v3985_v40  ;;  %15028 = vst [vmem:[#allocation52_spill] sm:$0xff] %v11663_v41  ;;  %v4327_v7 = vsel %vm1947_vm5, %v4216_v30, %v4326_v11  ;;  %v15032_v40 = vld [vmem:[#allocation94_spill] sm:$0xff]  ;;  %v15035_v30 = vld [vmem:[#allocation111_spill] sm:$0xff] }
 0x499   :  { %15019 = vst [vmem:[#allocation65_spill] sm:$0xff] %v11637_v13  ;;  %v15024_v13 = vld [vmem:[#allocation88_spill] sm:$0xff]  ;;  %v2865_v23 = vsel %vm1806_vm2, %v2864_v27, %v2860_v3  ;;  %v4224_v25 = vrot.slane %v15030_v14, %v11026_v10  ;;  %v4220_v15 = vrot.slane %v15032_v40, %v11023_v62  ;;  %v2294_v54 = vsel %vm1949_vm6, %v2191_v26, %v2293_v44 }
 0x49a   :  { %v3205_v49 = vrot.slane %v15024_v13, %v11026_v10  ;;  %v15029_v13 = vld [vmem:[#allocation92_spill] sm:$0xff]  ;;  %v2199_v41 = vrot.slane %v15033_v48, %v11026_v10  ;;  %v2627_v27 = vsel %vm1949_vm6, %v2524_v21, %v2626_v8  ;;  %v3541_v3 = vsel %vm1806_vm2, %v3540_v46, %v3536_v51  ;;  %v15039_v51 = vld [vmem:[#allocation115_spill] sm:$0xff] }
 0x49b   :  { %v3883_v22 = vrot.slane %v15029_v13, %v11026_v10  ;;  %v15034_v13 = vld [vmem:[#allocation96_spill] sm:$0xff]  ;;  %v2528_v14 = vrot.slane %v15035_v30, %v11023_v62  ;;  %v2968_v44 = vsel %vm1949_vm6, %v2865_v23, %v2967_v57  ;;  %v4225_v46 = vsel %vm1806_vm2, %v4224_v25, %v4220_v15  ;;  %v15040_v30 = vld [vmem:[#allocation102_spill] sm:$0xff] }
 0x49c   :  { %v3206_v33 = vsel %vm1806_vm2, %v3205_v49, %v3201_v1  ;;  %v2195_v11 = vrot.slane %v15034_v13, %v11023_v62  ;;  %v15037_v49 = vld [vmem:[#allocation113_spill] sm:$0xff]  ;;  %v15038_v48 = vld [vmem:[#allocation100_spill] sm:$0xff]  ;;  %v3210_v21 = vrot.slane %v15039_v51, %v11023_v62  ;;  %v3644_v57 = vsel %vm1949_vm6, %v3541_v3, %v3643_v52  ;;  %v15045_v51 = vld [vmem:[#allocation119_spill] sm:$0xff] }
 0x49d   :  { %v11671_v4 = vpop.permute.xlu1 %3823  ;;  %v3884_v1 = vsel %vm1806_vm2, %v3883_v22, %v3879_v32  ;;  %v2873_v26 = vrot.slane %v15037_v49, %v11026_v10  ;;  %v2869_v13 = vrot.slane %v15038_v48, %v11023_v62  ;;  %v3309_v8 = vsel %vm1949_vm6, %v3206_v33, %v3308_v9  ;;  %v15041_v22 = vld [vmem:[#allocation117_spill] sm:$0xff]  ;;  %v11703_v49 = vpop.permute.xlu0 %2810  ;;  %v15044_v9 = vld [vmem:[#allocation104_spill] sm:$0xff]  ;;  %v15046_v52 = vld [vmem:[#allocation106_spill] sm:$0xff] }
 0x49e   :  { %15031 = vst [vmem:[#allocation67_spill] sm:$0xff] %v11671_v4  ;;  %v15036_v4 = vld [vmem:[#allocation98_spill] sm:$0xff]  ;;  %v2200_v32 = vsel %vm1806_vm2, %v2199_v41, %v2195_v11  ;;  %v3549_v23 = vrot.slane %v15041_v22, %v11026_v10  ;;  %15042 = vst [vmem:[#allocation63_spill] sm:$0xff] %v11703_v49  ;;  %v3545_v25 = vrot.slane %v15044_v9, %v11023_v62  ;;  %v15047_v22 = vld [vmem:[#allocation121_spill] sm:$0xff] }
 0x49f   :  { %v2532_v40 = vrot.slane %v15036_v4, %v11026_v10  ;;  %v3214_v4 = vrot.slane %v15040_v30, %v11026_v10  ;;  %v3987_v15 = vsel %vm1949_vm6, %v3884_v1, %v3986_v19  ;;  %v3888_v30 = vrot.slane %v15045_v51, %v11023_v62  ;;  %v15048_v49 = vld [vmem:[#allocation108_spill] sm:$0xff]  ;;  %v15050_v51 = vld [vmem:[#allocation110_spill] sm:$0xff] }
 0x4a0   :  { %v3892_v41 = vrot.slane %v15046_v52, %v11026_v10  ;;  %v4328_v11 = vsel %vm1949_vm6, %v4225_v46, %v4327_v7  ;;  %v2874_v3 = vsel %vm1806_vm2, %v2873_v26, %v2869_v13  ;;  %v4229_v9 = vrot.slane %v15048_v49, %v11023_v62  ;;  %v15051_v26 = vld [vmem:[#allocation125_spill] sm:$0xff] }
 0x4a1   :  { %v2533_v33 = vsel %vm1806_vm2, %v2532_v40, %v2528_v14  ;;  %v3215_v19 = vsel %vm1806_vm2, %v3214_v4, %v3210_v21  ;;  %v15049_v14 = vld [vmem:[#allocation123_spill] sm:$0xff]  ;;  %v2295_v1 = vsel %vm1951_vm7, %v2200_v32, %v2294_v54  ;;  %v2204_v52 = vrot.slane %v15050_v51, %v11023_v62  ;;  %v15054_v32 = vld [vmem:[#allocation114_spill] sm:$0xff] }
 0x4a2   :  { %v11705_v48 = vpop.permute.xlu1 %4167  ;;  %v2208_v40 = vrot.slane %v15049_v14, %v11026_v10  ;;  %v3550_v7 = vsel %vm1806_vm2, %v3549_v23, %v3545_v25  ;;  %v2537_v13 = vrot.slane %v15051_v26, %v11023_v62  ;;  %v2628_v46 = vsel %vm1951_vm7, %v2533_v33, %v2627_v27  ;;  %v15053_v4 = vld [vmem:[#allocation127_spill] sm:$0xff]  ;;  %v15055_v25 = vld [vmem:[#allocation116_spill] sm:$0xff]  ;;  %v11744_v33 = vpop.permute.xlu0 %3154 }
 0x4a3   :  { %15043 = vst [vmem:[#allocation69_spill] sm:$0xff] %v11705_v48  ;;  %v4233_v48 = vrot.slane %v15047_v22, %v11026_v10  ;;  %v15052_v22 = vld [vmem:[#allocation112_spill] sm:$0xff]  ;;  %v3893_v21 = vsel %vm1806_vm2, %v3892_v41, %v3888_v30  ;;  %v2882_v14 = vrot.slane %v15053_v4, %v11026_v10  ;;  %v2969_v54 = vsel %vm1951_vm7, %v2874_v3, %v2968_v44  ;;  %v15056_v30 = vld [vmem:[#allocation118_spill] sm:$0xff]  ;;  %v15057_v4 = vld [vmem:[#allocation129_spill] sm:$0xff] }
 0x4a4   :  { %v2541_v49 = vrot.slane %v15052_v22, %v11026_v10  ;;  %v2878_v23 = vrot.slane %v15054_v32, %v11023_v62  ;;  %v3223_v51 = vrot.slane %v15055_v25, %v11026_v10  ;;  %v3310_v26 = vsel %vm1951_vm7, %v3215_v19, %v3309_v8  ;;  %v15058_v25 = vld [vmem:[#allocation131_spill] sm:$0xff]  ;;  %v15060_v19 = vld [vmem:[#allocation120_spill] sm:$0xff] }
 0x4a5   :  { %v4234_v27 = vsel %vm1806_vm2, %v4233_v48, %v4229_v9  ;;  %v3554_v41 = vrot.slane %v15056_v30, %v11023_v62  ;;  %v2209_v22 = vsel %vm1806_vm2, %v2208_v40, %v2204_v52  ;;  %v3219_v44 = vrot.slane %v15057_v4, %v11023_v62  ;;  %v15059_v48 = vld [vmem:[#allocation133_spill] sm:$0xff] }
 0x4a6   :  { %v3645_v3 = vsel %vm1951_vm7, %v3550_v7, %v3644_v57  ;;  %v2542_v32 = vsel %vm1806_vm2, %v2541_v49, %v2537_v13  ;;  %v3558_v36 = vrot.slane %v15058_v25, %v11026_v10  ;;  %v3897_v9 = vrot.slane %v15059_v48, %v11023_v62  ;;  %v15061_v7 = vld [vmem:[#allocation122_spill] sm:$0xff]  ;;  %v15062_v49 = vld [vmem:[#allocation124_spill] sm:$0xff] }
 0x4a7   :  { %v11736_v28 = vpop.permute.xlu1 %1784  ;;  %v3988_v8 = vsel %vm1951_vm7, %v3893_v21, %v3987_v15  ;;  %v3901_v30 = vrot.slane %v15060_v19, %v11026_v10  ;;  %v2883_v40 = vsel %vm1806_vm2, %v2882_v14, %v2878_v23  ;;  %v4242_v52 = vrot.slane %v11059_v5, %v11026_v10  ;;  %v15063_v14 = vld [vmem:[#allocation126_spill] sm:$0xff] }
 0x4a8   :  { %v4329_v57 = vsel %vm1951_vm7, %v4234_v27, %v4328_v11  ;;  %v4238_v13 = vrot.slane %v15061_v7, %v11023_v62  ;;  %v2213_v4 = vrot.slane %v15062_v49, %v11023_v62  ;;  %v2217_v25 = vrot.slane %v11099_v12, %v11026_v10  ;;  %v11784_v7 = vpop.permute.xlu0 %3486 }
 0x4a9   :  { %v2296_v21 = vsel %vm1953_vm8, %v2209_v22, %v2295_v1  ;;  %v2550_v23 = vrot.slane %v15063_v14, %v11026_v10  ;;  %v3224_v5 = vsel %vm1806_vm2, %v3223_v51, %v3219_v44  ;;  %v2546_v11 = vrot.slane %v11107_v2, %v11023_v62  ;;  %v15064_v22 = vld [vmem:[#allocation128_spill] sm:$0xff] }
 0x4aa   :  { %v2629_v27 = vsel %vm1953_vm8, %v2542_v32, %v2628_v46  ;;  %v3559_v48 = vsel %vm1806_vm2, %v3558_v36, %v3554_v41  ;;  %v3902_v19 = vsel %vm1806_vm2, %v3901_v30, %v3897_v9  ;;  %v2891_v12 = vrot.slane %v11115_v53, %v11026_v10  ;;  %v15065_v46 = vld [vmem:[#allocation130_spill] sm:$0xff]  ;;  %v15066_v32 = vld [vmem:[#allocation132_spill] sm:$0xff] }
 0x4ab   :  { %v2970_v1 = vsel %vm1953_vm8, %v2883_v40, %v2969_v54  ;;  %v2887_v49 = vrot.slane %v15064_v22, %v11023_v62  ;;  %v4243_v51 = vsel %vm1806_vm2, %v4242_v52, %v4238_v13  ;;  %v3228_v2 = vrot.slane %v11123_v61, %v11023_v62  ;;  %v15068_v22 = vld [vmem:[#allocation139_spill] sm:$0xff] }
 0x4ac   :  { %v11771_v15 = vpop.permute.xlu1 %2139  ;;  %v3567_v36 = vrot.slane %v11131_v6, %v11026_v10  ;;  %v3232_v41 = vrot.slane %v15065_v46, %v11026_v10  ;;  %v3906_v53 = vrot.slane %v11139_v56, %v11023_v62  ;;  %v2218_v44 = vsel %vm1806_vm2, %v2217_v25, %v2213_v4  ;;  %v11826_v14 = vpop.permute.xlu0 %3832 }
 0x4ad   :  { %v3311_v54 = vsel %vm1953_vm8, %v3224_v5, %v3310_v26  ;;  %v3563_v9 = vrot.slane %v15066_v32, %v11023_v62  ;;  %v2551_v61 = vsel %vm1806_vm2, %v2550_v23, %v2546_v11  ;;  %v3646_v40 = vsel %vm1953_vm8, %v3559_v48, %v3645_v3 }
 0x4ae   :  { %v3989_v6 = vsel %vm1953_vm8, %v3902_v19, %v3988_v8  ;;  %v3910_v52 = vrot.slane %v11057_v60, %v11026_v10  ;;  %v4247_v56 = vrot.slane %v11082_v35, %v11023_v62  ;;  %v2892_v13 = vsel %vm1806_vm2, %v2891_v12, %v2887_v49  ;;  %v15067_v12 = vld [vmem:[#allocation137_spill] sm:$0xff] }
 0x4af   :  { %v11813_v26 = vsel %vm1953_vm8, %v4243_v51, %v4329_v57  ;;  %v1878_v4 = vrot.slane %v11096_v37, %v11026_v10  ;;  %v11818_v25 = vsel %vm1955_vm9, %v2218_v44, %v2296_v21  ;;  %v3233_v3 = vsel %vm1806_vm2, %v3232_v41, %v3228_v2  ;;  %v15069_v51 = vld [vmem:[#allocation134_spill] sm:$0xff]  ;;  %v15070_v2 = vld [vmem:[#allocation141_spill] sm:$0xff]  ;;  %v15071_v41 = vld [vmem:[#allocation135_spill] sm:$0xff] }
 0x4b0   :  { %v3568_v8 = vsel %vm1806_vm2, %v3567_v36, %v3563_v9  ;;  %v2222_v60 = vrot.slane %v11105_v50, %v11023_v62  ;;  %v4251_v35 = vrot.slane %v11147_v24, %v11026_v10  ;;  %v11829_v57 = vsel %vm1955_vm9, %v2551_v61, %v2629_v27  ;;  %v11885_v9 = vpop.permute.xlu0 %4170 }
 0x4b1   :  { %v11802_v30 = vpop.permute.xlu1 %2469  ;;  %v3911_v37 = vsel %vm1806_vm2, %v3910_v52, %v3906_v53  ;;  %v2559_v21 = vrot.slane %v11113_v63, %v11026_v10  ;;  %v2896_v23 = vrot.slane %v11121_v31, %v11023_v62  ;;  %v1874_v5 = vrot.slane %v11155_v16, %v11023_v62 }
 0x4b2   :  { %v11839_v50 = vsel %vm1955_vm9, %v2892_v13, %v2970_v1  ;;  %v3241_v24 = vrot.slane %v11129_v34, %v11026_v10  ;;  %v2226_v11 = vrot.slane %v11163_v43, %v11026_v10  ;;  %v11848_v48 = vsel %vm1955_vm9, %v3233_v3, %v3311_v54  ;;  %v15072_v54 = vld [vmem:[#allocation144_spill] sm:$0xff]  ;;  %v15076_v3 = vld [vmem:[#allocation138_spill] sm:$0xff] }
 0x4b3   :  { %v11851_v63 = vsel %vm1955_vm9, %v3568_v8, %v3646_v40  ;;  %v3572_v31 = vrot.slane %v11137_v38, %v11023_v62  ;;  %v3919_v16 = vrot.slane %v11145_v29, %v11026_v10  ;;  %v2555_v34 = vrot.slane %v11171_v17, %v11023_v62  ;;  %v15073_v40 = vld [vmem:[#allocation136_spill] sm:$0xff] }
 0x4b4   :  { %v11860_v19 = vsel %vm1955_vm9, %v3911_v37, %v3989_v6  ;;  %v4260_v43 = vrot.slane %v11153_v58, %v11026_v10  ;;  %v2900_v1 = vrot.slane %v15067_v12, %v11026_v10  ;;  %v3237_v49 = vrot.slane %v15068_v22, %v11023_v62  ;;  %v15079_v12 = vld [vmem:[#allocation153_spill] sm:$0xff] }
 0x4b5   :  { %v11869_v38 = vsel %vm1806_vm2, %v4251_v35, %v4247_v56  ;;  %v1879_v29 = vsel %vm1806_vm2, %v1878_v4, %v1874_v5  ;;  %v1887_v17 = vrot.slane %v15069_v51, %v11026_v10  ;;  %v3576_v36 = vrot.slane %v15070_v2, %v11026_v10  ;;  %v15075_v56 = vld [vmem:[#allocation149_spill] sm:$0xff]  ;;  %v15077_v35 = vld [vmem:[#allocation151_spill] sm:$0xff] }
 0x4b6   :  { %v11845_v27 = vpop.permute.xlu1 %2813  ;;  %v1883_v58 = vrot.slane %v11219_v45, %v11023_v62  ;;  %v2227_v46 = vsel %vm1806_vm2, %v2226_v11, %v2222_v60  ;;  %v2231_v53 = vrot.slane %v15071_v41, %v11023_v62  ;;  %v3915_v44 = vrot.slane %v11203_v20, %v11023_v62  ;;  %v15074_v45 = vld [vmem:[#allocation147_spill] sm:$0xff] }
 0x4b7   :  { %v4256_v32 = vrot.slane %v15072_v54, %v11023_v62  ;;  %v2560_v61 = vsel %vm1806_vm2, %v2559_v21, %v2555_v34  ;;  %v2568_v6 = vrot.slane %v15073_v40, %v11026_v10  ;;  %v2235_v52 = vrot.slane %v15074_v45, %v11026_v10  ;;  %v15078_v21 = vld [vmem:[#allocation140_spill] sm:$0xff]  ;;  %v15083_v54 = vld [vmem:[#allocation145_spill] sm:$0xff] }
 0x4b8   :  { %v2564_v13 = vrot.slane %v15075_v56, %v11023_v62  ;;  %v2901_v20 = vsel %vm1806_vm2, %v2900_v1, %v2896_v23  ;;  %v2905_v8 = vrot.slane %v15076_v3, %v11023_v62  ;;  %v3242_v60 = vsel %vm1806_vm2, %v3241_v24, %v3237_v49  ;;  %v15080_v23 = vld [vmem:[#allocation142_spill] sm:$0xff]  ;;  %v15081_v24 = vld [vmem:[#allocation143_spill] sm:$0xff] }
 0x4b9   :  { %v2909_v37 = vrot.slane %v15077_v35, %v11026_v10  ;;  %v3250_v5 = vrot.slane %v15078_v21, %v11026_v10  ;;  %v3577_v11 = vsel %vm1806_vm2, %v3576_v36, %v3572_v31  ;;  %v1888_v34 = vsel %vm1806_vm2, %v1887_v17, %v1883_v58  ;;  %v15082_v17 = vld [vmem:[#allocation155_spill] sm:$0xff] }
 0x4ba   :  { %v3246_v22 = vrot.slane %v15079_v12, %v11023_v62  ;;  %v3581_v1 = vrot.slane %v15080_v23, %v11023_v62  ;;  %v3920_v51 = vsel %vm1806_vm2, %v3919_v16, %v3915_v44  ;;  %v3928_v49 = vrot.slane %v15081_v24, %v11026_v10  ;;  %v15090_v24 = vld [vmem:[#allocation152_spill] sm:$0xff] }
 0x4bb   :  { %v11894_v4 = vpop.permute.xlu1 %3151  ;;  %v11914_v2 = vsel %vm1806_vm2, %v4260_v43, %v4256_v32  ;;  %v2236_v41 = vsel %vm1806_vm2, %v2235_v52, %v2231_v53  ;;  %v2569_v31 = vsel %vm1806_vm2, %v2568_v6, %v2564_v13  ;;  %v3585_v36 = vrot.slane %v15082_v17, %v11026_v10  ;;  %v11928_v32 = vpop.permute.xlu0 %1793  ;;  %v15084_v6 = vld [vmem:[#allocation146_spill] sm:$0xff]  ;;  %v15086_v13 = vld [vmem:[#allocation163_spill] sm:$0xff] }
 0x4bc   :  { %v3924_v58 = vrot.slane %v11267_v55, %v11023_v62  ;;  %v1957_v16 = vsel %vm1943_vm3, %v1888_v34, %v1879_v29  ;;  %v2910_v44 = vsel %vm1806_vm2, %v2909_v37, %v2905_v8  ;;  %v1892_v43 = vrot.slane %v11283_v47, %v11023_v62  ;;  %v15085_v55 = vld [vmem:[#allocation161_spill] sm:$0xff]  ;;  %v15087_v8 = vld [vmem:[#allocation148_spill] sm:$0xff]  ;;  %v15088_v37 = vld [vmem:[#allocation150_spill] sm:$0xff] }
 0x4bd   :  { %v1896_v45 = vrot.slane %v15084_v6, %v11026_v10  ;;  %v3251_v52 = vsel %vm1806_vm2, %v3250_v5, %v3246_v22  ;;  %v2244_v56 = vrot.slane %v15085_v55, %v11026_v10  ;;  %v2573_v29 = vrot.slane %v15086_v13, %v11023_v62  ;;  %v15089_v22 = vld [vmem:[#allocation165_spill] sm:$0xff]  ;;  %v15091_v17 = vld [vmem:[#allocation154_spill] sm:$0xff] }
 0x4be   :  { %v2298_v3 = vsel %vm1943_vm3, %v2236_v41, %v2227_v46  ;;  %v2240_v47 = vrot.slane %v15087_v8, %v11023_v62  ;;  %v2631_v35 = vsel %vm1943_vm3, %v2569_v31, %v2560_v61  ;;  %v2577_v21 = vrot.slane %v15088_v37, %v11026_v10 }
 0x4bf   :  { %v2972_v34 = vsel %vm1943_vm3, %v2910_v44, %v2901_v20  ;;  %v3586_v5 = vsel %vm1806_vm2, %v3585_v36, %v3581_v1  ;;  %v3929_v12 = vsel %vm1806_vm2, %v3928_v49, %v3924_v58  ;;  %v2918_v23 = vrot.slane %v15089_v22, %v11026_v10  ;;  %v15092_v1 = vld [vmem:[#allocation167_spill] sm:$0xff]  ;;  %v15093_v36 = vld [vmem:[#allocation169_spill] sm:$0xff] }
 0x4c0   :  { %v11930_v53 = vpop.permute.xlu1 %3489  ;;  %v2914_v46 = vrot.slane %v15090_v24, %v11023_v62  ;;  %v3313_v41 = vsel %vm1943_vm3, %v3251_v52, %v3242_v60  ;;  %v3259_v61 = vrot.slane %v15091_v17, %v11026_v10  ;;  %v1897_v31 = vsel %vm1806_vm2, %v1896_v45, %v1892_v43  ;;  %v15094_v60 = vld [vmem:[#allocation156_spill] sm:$0xff]  ;;  %v15095_v43 = vld [vmem:[#allocation157_spill] sm:$0xff] }
 0x4c1   :  { %v2245_v6 = vsel %vm1806_vm2, %v2244_v56, %v2240_v47  ;;  %v2578_v20 = vsel %vm1806_vm2, %v2577_v21, %v2573_v29  ;;  %v3255_v49 = vrot.slane %v15092_v1, %v11023_v62  ;;  %v3594_v58 = vrot.slane %v15093_v36, %v11026_v10  ;;  %v11972_v56 = vpop.permute.xlu0 %2142  ;;  %v15096_v29 = vld [vmem:[#allocation158_spill] sm:$0xff]  ;;  %v15097_v21 = vld [vmem:[#allocation160_spill] sm:$0xff] }
 0x4c2   :  { %v3648_v55 = vsel %vm1943_vm3, %v3586_v5, %v3577_v11  ;;  %v3590_v52 = vrot.slane %v15094_v60, %v11023_v62  ;;  %v11968_v13 = vsel %vm1943_vm3, %v3929_v12, %v3920_v51  ;;  %v3937_v45 = vrot.slane %v15095_v43, %v11026_v10  ;;  %v15098_v12 = vld [vmem:[#allocation162_spill] sm:$0xff]  ;;  %v15099_v17 = vld [vmem:[#allocation164_spill] sm:$0xff] }
 0x4c3   :  { %v4265_v8 = vrot.slane %v15096_v29, %v11023_v62  ;;  %v1958_v47 = vsel %vm1945_vm4, %v1897_v31, %v1957_v16  ;;  %v2919_v37 = vsel %vm1806_vm2, %v2918_v23, %v2914_v46  ;;  %v1901_v11 = vrot.slane %v11347_v18, %v11023_v62  ;;  %v15100_v31 = vld [vmem:[#allocation175_spill] sm:$0xff]  ;;  %v15103_v60 = vld [vmem:[#allocation168_spill] sm:$0xff] }
 0x4c4   :  { %v1905_v5 = vrot.slane %v15097_v21, %v11026_v10  ;;  %v2299_v51 = vsel %vm1945_vm4, %v2245_v6, %v2298_v3  ;;  %v2249_v22 = vrot.slane %v15098_v12, %v11023_v62  ;;  %v2632_v24 = vsel %vm1945_vm4, %v2578_v20, %v2631_v35  ;;  %v15106_v12 = vld [vmem:[#allocation59_spill] sm:$0xff] }
 0x4c5   :  { %v11962_v44 = vpop.permute.xlu1 %3829  ;;  %v2586_v1 = vrot.slane %v15099_v17, %v11026_v10  ;;  %v3260_v16 = vsel %vm1806_vm2, %v3259_v61, %v3255_v49  ;;  %v3595_v23 = vsel %vm1806_vm2, %v3594_v58, %v3590_v52  ;;  %v1910_v18 = vrot.slane %v11409_v39, %v11023_v62  ;;  %v15101_v61 = vld [vmem:[#allocation166_spill] sm:$0xff] }
 0x4c6   :  { %v11993_v46 = vsel %vm1945_vm4, %v2919_v37, %v2972_v34  ;;  %v3933_v3 = vrot.slane %v11331_v42, %v11023_v62  ;;  %v2253_v6 = vrot.slane %v15100_v31, %v11026_v10  ;;  %v1919_v35 = vrot.slane %v11463_v59, %v11023_v62  ;;  %v15102_v39 = vld [vmem:[#allocation174_spill] sm:$0xff]  ;;  %v12020_v37 = vpop.permute.xlu0 %2478  ;;  %v15107_v31 = vld [vmem:[#allocation176_spill] sm:$0xff] }
 0x4c7   :  { %v2923_v49 = vrot.slane %v15101_v61, %v11023_v62  ;;  %v1906_v36 = vsel %vm1806_vm2, %v1905_v5, %v1901_v11  ;;  %v1914_v34 = vrot.slane %v15102_v39, %v11026_v10  ;;  %v1928_v58 = vrot.slane %v11736_v28, %v11023_v62  ;;  %v15104_v11 = vld [vmem:[#allocation170_spill] sm:$0xff]  ;;  %v15105_v28 = vld [vmem:[#allocation189_spill] sm:$0xff] }
 0x4c8   :  { %v12011_v42 = vsel %vm1945_vm4, %v3260_v16, %v3313_v41  ;;  %v3268_v52 = vrot.slane %v15103_v60, %v11026_v10  ;;  %v12016_v59 = vsel %vm1945_vm4, %v3595_v23, %v3648_v55  ;;  %v1923_v43 = vrot.slane %v11422_v0, %v11026_v10 }
 0x4c9   :  { %v3599_v21 = vrot.slane %v15104_v11, %v11023_v62  ;;  %v1915_v5 = vsel %vm1806_vm2, %v1914_v34, %v1910_v18  ;;  %v2262_v41 = vrot.slane %v15105_v28, %v11026_v10  ;;  %v1932_v17 = vrot.slane %v15106_v12, %v11026_v10  ;;  %v15108_v18 = vld [vmem:[#allocation177_spill] sm:$0xff] }
 0x4ca   :  { %v12001_v20 = vpop.permute.xlu1 %4173  ;;  %v12030_v16 = vsel %vm1806_vm2, %v3937_v45, %v3933_v3  ;;  %v1959_v55 = vsel %vm1947_vm5, %v1906_v36, %v1958_v47  ;;  %v2254_v0 = vsel %vm1806_vm2, %v2253_v6, %v2249_v22  ;;  %v1924_v23 = vsel %vm1806_vm2, %v1923_v43, %v1919_v35  ;;  %v15109_v34 = vld [vmem:[#allocation49_spill] sm:$0xff]  ;;  %v15110_v36 = vld [vmem:[#allocation191_spill] sm:$0xff] }
 0x4cb   :  { %v2258_v61 = vrot.slane %v15107_v31, %v11023_v62  ;;  %v2582_v39 = vrot.slane %v15108_v18, %v11023_v62  ;;  %v2271_v28 = vrot.slane %v15109_v34, %v11026_v10  ;;  %v1933_v12 = vsel %vm1806_vm2, %v1932_v17, %v1928_v58  ;;  %v15111_v17 = vld [vmem:[#allocation190_spill] sm:$0xff]  ;;  %v12057_v31 = vpop.permute.xlu0 %2816  ;;  %v15114_v18 = vld [vmem:[#allocation179_spill] sm:$0xff] }
 0x4cc   :  { %v1960_v45 = vsel %vm1949_vm6, %v1915_v5, %v1959_v55  ;;  %v1941_v47 = vrot.slane %v11928_v32, %v11026_v10  ;;  %v2280_v22 = vrot.slane %v11771_v15, %v11026_v10  ;;  %v2300_v6 = vsel %vm1947_vm5, %v2254_v0, %v2299_v51  ;;  %v15112_v55 = vld [vmem:[#allocation57_spill] sm:$0xff] }
 0x4cd   :  { %v2263_v35 = vsel %vm1806_vm2, %v2262_v41, %v2258_v61  ;;  %v2267_v43 = vrot.slane %v15110_v36, %v11023_v62  ;;  %v1961_v58 = vsel %vm1951_vm7, %v1924_v23, %v1960_v45  ;;  %v2591_v5 = vrot.slane %v15111_v17, %v11023_v62  ;;  %v15113_v41 = vld [vmem:[#allocation178_spill] sm:$0xff]  ;;  %v15115_v36 = vld [vmem:[#allocation55_spill] sm:$0xff] }
 0x4ce   :  { %v2276_v32 = vrot.slane %v15112_v55, %v11023_v62  ;;  %v2587_v51 = vsel %vm1806_vm2, %v2586_v1, %v2582_v39  ;;  %v2595_v0 = vrot.slane %v15113_v41, %v11026_v10  ;;  %v2927_v34 = vrot.slane %v15114_v18, %v11026_v10  ;;  %v15123_v18 = vld [vmem:[#allocation181_spill] sm:$0xff] }
 0x4cf   :  { %v1791_v40 = vpop.permute.xlu1 %1790  ;;  %v2272_v61 = vsel %vm1806_vm2, %v2271_v28, %v2267_v43  ;;  %v2301_v45 = vsel %vm1949_vm6, %v2263_v35, %v2300_v6  ;;  %v2600_v17 = vrot.slane %v15115_v36, %v11023_v62  ;;  %v2285_v39 = vrot.slane %v11972_v56, %v11023_v62  ;;  %v15117_v35 = vld [vmem:[#allocation194_spill] sm:$0xff]  ;;  %v15118_v56 = vld [vmem:[#allocation4_spill] sm:$0xff] }
 0x4d0   :  { %v1937_v3 = vrot.slane %v1791_v40, %v11023_v62  ;;  %v1962_v40 = vsel %vm1953_vm8, %v1933_v12, %v1961_v58  ;;  %v2609_v28 = vrot.slane %v11802_v30, %v11023_v62  ;;  %v15116_v12 = vld [vmem:[#allocation6_spill] sm:$0xff]  ;;  %v2633_v6 = vsel %vm1947_vm5, %v2587_v51, %v2632_v24  ;;  %v15119_v30 = vld [vmem:[#allocation192_spill] sm:$0xff] }
 0x4d1   :  { %v2604_v43 = vrot.slane %v15117_v35, %v11026_v10  ;;  %v2302_v58 = vsel %vm1951_vm7, %v2272_v61, %v2301_v45  ;;  %v2936_v55 = vrot.slane %v15119_v30, %v11026_v10  ;;  %v2928_v24 = vsel %vm1806_vm2, %v2927_v34, %v2923_v49  ;;  %v15122_v61 = vld [vmem:[#allocation45_spill] sm:$0xff]  ;;  %v15126_v35 = vld [vmem:[#allocation43_spill] sm:$0xff] }
 0x4d2   :  { %v1942_v15 = vsel %vm1806_vm2, %v1941_v47, %v1937_v3  ;;  %v2281_v47 = vsel %vm1806_vm2, %v2280_v22, %v2276_v32  ;;  %v2596_v22 = vsel %vm1806_vm2, %v2595_v0, %v2591_v5  ;;  %v15120_v32 = vld [vmem:[#allocation52_spill] sm:$0xff]  ;;  %v12098_v0 = vpop.permute.xlu0 %3160  ;;  %v3264_v45 = vrot.slane %v15123_v18, %v11023_v62 }
 0x4d3   :  { %v1963_v23 = vsel %vm1955_vm9, %v1942_v15, %v1962_v40  ;;  %v2613_v15 = vrot.slane %v15120_v32, %v11026_v10  ;;  %v15121_v5 = vld [vmem:[#allocation180_spill] sm:$0xff]  ;;  %v2605_v41 = vsel %vm1806_vm2, %v2604_v43, %v2600_v17  ;;  %v2634_v36 = vsel %vm1949_vm6, %v2596_v22, %v2633_v6 }
 0x4d4   :  { %8641 = vmatmul.mubr.msk.f32.vlgmr.msra.gmra.mxu0 %vm285_vm0, %v1963_v23  ;;  %v2146_v1 = vpop.permute.xlu1 %2145  ;;  %v2932_v51 = vrot.slane %v15121_v5, %v11023_v62  ;;  %v2622_v17 = vrot.slane %v12020_v37, %v11026_v10  ;;  %v15125_v6 = vld [vmem:[#allocation196_spill] sm:$0xff]  ;;  %v2635_v37 = vsel %vm1951_vm7, %v2605_v41, %v2634_v36  ;;  %v3269_v30 = vsel %vm1806_vm2, %v3268_v52, %v3264_v45  ;;  %v15132_v41 = vld [vmem:[#allocation61_spill] sm:$0xff] }
 0x4d5   :  { %8644 = vmatpush3.msra.mxu0 %v15116_v12  ;;  %v2289_v3 = vrot.slane %v2146_v1, %v11026_v10  ;;  %8647 = vmatprep.mubr.msk.f32.mxu0 %vm285_vm0, %v11818_v25  ;;  %v2303_v25 = vsel %vm1953_vm8, %v2281_v47, %v2302_v58  ;;  %v15124_v47 = vld [vmem:[#allocation51_spill] sm:$0xff]  ;;  %v2614_v49 = vsel %vm1806_vm2, %v2613_v15, %v2609_v28 }
 0x4d6   :  { %8645 = vmatprep.subr.mxu0 %v15118_v56  ;;  %v2945_v1 = vrot.slane %v15124_v47, %v11026_v10  ;;  %v2937_v28 = vsel %vm1806_vm2, %v2936_v55, %v2932_v51  ;;  %v2941_v22 = vrot.slane %v15125_v6, %v11023_v62  ;;  %v15128_v58 = vld [vmem:[#allocation63_spill] sm:$0xff]  ;;  %v15129_v55 = vld [vmem:[#allocation182_spill] sm:$0xff]  ;;  %v12146_v52 = vpop.permute.xlu0 %3492  ;;  %v2959_v18 = vrot.slane %v12057_v31, %v11023_v62 }
 0x4d7   :  { %v2290_v40 = vsel %vm1806_vm2, %v2289_v3, %v2285_v39  ;;  %8646 = vmatpush3.msra.mxu0 %v15118_v56  ;;  %v2954_v39 = vrot.slane %v11845_v27, %v11026_v10  ;;  %v2974_v3 = vsel %vm1947_vm5, %v2928_v24, %v11993_v46  ;;  %v15127_v27 = vld [vmem:[#allocation193_spill] sm:$0xff]  ;;  %v2950_v56 = vrot.slane %v15128_v58, %v11023_v62  ;;  %v15131_v24 = vld [vmem:[#allocation183_spill] sm:$0xff] }
 0x4d8   :  { %8650 = vmatprep.subr.mxu0 %v15122_v61  ;;  %v2304_v23 = vsel %vm1955_vm9, %v2290_v40, %v2303_v25  ;;  %v3273_v43 = vrot.slane %v15127_v27, %v11023_v62  ;;  %v2636_v46 = vsel %vm1953_vm8, %v2614_v49, %v2635_v37  ;;  %v3277_v32 = vrot.slane %v15129_v55, %v11026_v10  ;;  %v15130_v40 = vld [vmem:[#allocation46_spill] sm:$0xff]  ;;  %v15137_v37 = vld [vmem:[#allocation8_spill] sm:$0xff]  ;;  %v15139_v58 = vld [vmem:[#allocation65_spill] sm:$0xff] }
 0x4d9   :  { %8648 = vmatmul.mubr.msk.f32.vlgmr.msra.gmra.mxu0 %vm285_vm0, %v2304_v23  ;;  %v2476_v34 = vpop.permute.xlu1 %2475  ;;  %v2946_v15 = vsel %vm1806_vm2, %v2945_v1, %v2941_v22  ;;  %v3603_v5 = vrot.slane %v15131_v24, %v11026_v10  ;;  %v2975_v51 = vsel %vm1949_vm6, %v2937_v28, %v2974_v3  ;;  %v2955_v60 = vsel %vm1806_vm2, %v2954_v39, %v2950_v56  ;;  %v15133_v49 = vld [vmem:[#allocation198_spill] sm:$0xff]  ;;  %v15136_v28 = vld [vmem:[#allocation185_spill] sm:$0xff] }
 0x4da   :  { %8651 = vmatpush3.msra.mxu0 %v15122_v61  ;;  %v2618_v12 = vrot.slane %v2476_v34, %v11023_v62  ;;  %8654 = vmatprep.mubr.msk.f32.mxu0 %vm285_vm0, %v11829_v57  ;;  %v3282_v61 = vrot.slane %v15132_v41, %v11023_v62  ;;  %v3291_v45 = vrot.slane %v11894_v4, %v11023_v62  ;;  %v15135_v4 = vld [vmem:[#allocation195_spill] sm:$0xff] }
 0x4db   :  { %8652 = vmatprep.subr.mxu0 %v15126_v35  ;;  %v3315_v47 = vsel %vm1947_vm5, %v3269_v30, %v12011_v42  ;;  %v3278_v1 = vsel %vm1806_vm2, %v3277_v32, %v3273_v43  ;;  %v3286_v34 = vrot.slane %v15133_v49, %v11026_v10  ;;  %v2976_v31 = vsel %vm1951_vm7, %v2946_v15, %v2975_v51  ;;  %v12191_v30 = vpop.permute.xlu0 %3838  ;;  %v15140_v32 = vld [vmem:[#allocation171_spill] sm:$0xff] }
 0x4dc   :  { %v2623_v57 = vsel %vm1806_vm2, %v2622_v17, %v2618_v12  ;;  %8653 = vmatpush3.msra.mxu0 %v15126_v35  ;;  %v15134_v17 = vld [vmem:[#allocation40_spill] sm:$0xff]  ;;  %v3612_v39 = vrot.slane %v15135_v4, %v11026_v10  ;;  %v3295_v12 = vrot.slane %v11744_v33, %v11026_v10  ;;  %v2977_v42 = vsel %vm1953_vm8, %v2955_v60, %v2976_v31  ;;  %v15146_v49 = vld [vmem:[#allocation67_spill] sm:$0xff] }
 0x4dd   :  { %8657 = vmatprep.subr.mxu0 %v15130_v40  ;;  %v2637_v25 = vsel %vm1955_vm9, %v2623_v57, %v2636_v46  ;;  %v3604_v3 = vsel %vm1806_vm2, %v3603_v5, %v3599_v21  ;;  %v3608_v6 = vrot.slane %v15136_v28, %v11023_v62  ;;  %v3287_v22 = vsel %vm1806_vm2, %v3286_v34, %v3282_v61  ;;  %v15138_v35 = vld [vmem:[#allocation184_spill] sm:$0xff]  ;;  %v15143_v5 = vld [vmem:[#allocation197_spill] sm:$0xff] }
 0x4de   :  { %8655 = vmatmul.mubr.msk.f32.vlgmr.msra.gmra.mxu0 %vm285_vm0, %v2637_v25  ;;  %v2820_v23 = vpop.permute.xlu1 %2819  ;;  %v3942_v27 = vrot.slane %v15138_v35, %v11023_v62  ;;  %v3316_v43 = vsel %vm1949_vm6, %v3278_v1, %v3315_v47  ;;  %v3621_v56 = vrot.slane %v15139_v58, %v11026_v10  ;;  %v3296_v11 = vsel %vm1806_vm2, %v3295_v12, %v3291_v45  ;;  %v15141_v25 = vld [vmem:[#allocation200_spill] sm:$0xff]  ;;  %v15145_v47 = vld [vmem:[#allocation187_spill] sm:$0xff] }
 0x4df   :  { %8658 = vmatpush3.msra.mxu0 %v15130_v40  ;;  %v2963_v36 = vrot.slane %v2820_v23, %v11026_v10  ;;  %8661 = vmatprep.mubr.msk.f32.mxu0 %vm285_vm0, %v11839_v50  ;;  %v3304_v57 = vrot.slane %v12098_v0, %v11026_v10  ;;  %v3630_v46 = vrot.slane %v11930_v53, %v11026_v10  ;;  %v15142_v53 = vld [vmem:[#allocation5_spill] sm:$0xff]  ;;  %v15144_v45 = vld [vmem:[#allocation48_spill] sm:$0xff]  ;;  %v4177_v28 = vpop.permute.xlu0 %4176  ;;  %v15152_v58 = vld [vmem:[#allocation159_spill] sm:$0xff] }
 0x4e0   :  { %8659 = vmatprep.subr.mxu0 %v15134_v17  ;;  %v3946_v15 = vrot.slane %v15140_v32, %v11026_v10  ;;  %v3613_v40 = vsel %vm1806_vm2, %v3612_v39, %v3608_v6  ;;  %v3617_v0 = vrot.slane %v15141_v25, %v11023_v62  ;;  %v3317_v24 = vsel %vm1951_vm7, %v3287_v22, %v3316_v43  ;;  %v15149_v6 = vld [vmem:[#allocation172_spill] sm:$0xff]  ;;  %v15151_v43 = vld [vmem:[#allocation47_spill] sm:$0xff] }
 0x4e1   :  { %v2964_v50 = vsel %vm1806_vm2, %v2963_v36, %v2959_v18  ;;  %8660 = vmatpush3.msra.mxu0 %v15134_v17  ;;  %v3951_v51 = vrot.slane %v15143_v5, %v11023_v62  ;;  %v3626_v41 = vrot.slane %v11784_v7, %v11023_v62  ;;  %v3318_v61 = vsel %vm1953_vm8, %v3296_v11, %v3317_v24  ;;  %v15153_v11 = vld [vmem:[#allocation186_spill] sm:$0xff]  ;;  %v15156_v24 = vld [vmem:[#allocation69_spill] sm:$0xff]  ;;  %v15157_v5 = vld [vmem:[#allocation44_spill] sm:$0xff] }
 0x4e2   :  { %8664 = vmatprep.subr.mxu0 %v15137_v37  ;;  %v2978_v33 = vsel %vm1955_vm9, %v2964_v50, %v2977_v42  ;;  %v3650_v60 = vsel %vm1947_vm5, %v3604_v3, %v12016_v59  ;;  %v3947_v23 = vsel %vm1806_vm2, %v3946_v15, %v3942_v27  ;;  %v3622_v18 = vsel %vm1806_vm2, %v3621_v56, %v3617_v0  ;;  %v15147_v42 = vld [vmem:[#allocation50_spill] sm:$0xff] }
 0x4e3   :  { %8662 = vmatmul.mubr.msk.f32.vlgmr.msra.gmra.mxu0 %vm285_vm0, %v2978_v33  ;;  %v3158_v21 = vpop.permute.xlu1 %3157  ;;  %v3955_v7 = vrot.slane %v15145_v47, %v11026_v10  ;;  %v3651_v1 = vsel %vm1949_vm6, %v3613_v40, %v3650_v60  ;;  %v3960_v34 = vrot.slane %v15146_v49, %v11023_v62  ;;  %v3631_v31 = vsel %vm1806_vm2, %v3630_v46, %v3626_v41  ;;  %v15155_v40 = vld [vmem:[#allocation173_spill] sm:$0xff] }
 0x4e4   :  { %8665 = vmatpush3.msra.mxu0 %v15137_v37  ;;  %v3300_v55 = vrot.slane %v3158_v21, %v11023_v62  ;;  %8668 = vmatprep.mubr.msk.f32.mxu0 %vm285_vm0, %v11848_v48  ;;  %v3635_v17 = vrot.slane %v12146_v52, %v11023_v62  ;;  %v3969_v4 = vrot.slane %v11962_v44, %v11023_v62  ;;  %v15148_v44 = vld [vmem:[#allocation42_spill] sm:$0xff] }
 0x4e5   :  { %8666 = vmatprep.subr.mxu0 %v15142_v53  ;;  %v3992_v12 = vsel %vm1945_vm4, %v12030_v16, %v11968_v13  ;;  %v3956_v50 = vsel %vm1806_vm2, %v3955_v7, %v3951_v51  ;;  %v3964_v3 = vrot.slane %v15147_v42, %v11026_v10  ;;  %v3652_v52 = vsel %vm1951_vm7, %v3622_v18, %v3651_v1  ;;  %v15159_v18 = vld [vmem:[#allocation53_spill] sm:$0xff]  ;;  %v4440_v42 = vld [vmem:[%s14653_s6 + $0x10] sm:$0xff] }
 0x4e6   :  { %v3305_v48 = vsel %vm1806_vm2, %v3304_v57, %v3300_v55  ;;  %8667 = vmatpush3.msra.mxu0 %v15142_v53  ;;  %v4274_v22 = vrot.slane %v15149_v6, %v11023_v62  ;;  %v3653_v13 = vsel %vm1953_vm8, %v3631_v31, %v3652_v52  ;;  %v15150_v16 = vrot.slane %v15083_v54, %v11026_v10  ;;  %v15154_v57 = vld [vmem:[#allocation199_spill] sm:$0xff]  ;;  %v4438_v52 = vld [vmem:[%s14653_s6] sm:$0xff] }
 0x4e7   :  { %8671 = vmatprep.subr.mxu0 %v15144_v45  ;;  %v3319_v36 = vsel %vm1955_vm9, %v3305_v48, %v3318_v61  ;;  %v3993_v35 = vsel %vm1947_vm5, %v3947_v23, %v3992_v12  ;;  %v3965_v27 = vsel %vm1806_vm2, %v3964_v3, %v3960_v34  ;;  %v4278_v56 = vrot.slane %v15152_v58, %v11026_v10  ;;  %v4342_v48 = vpop.permute.xlu0 %4341  ;;  %v4439_v3 = vld [vmem:[%s14653_s6 + $0x8] sm:$0xff] }
 0x4e8   :  { %8669 = vmatmul.mubr.msk.f32.vlgmr.msra.gmra.mxu0 %vm285_vm0, %v3319_v36  ;;  %v3496_v59 = vpop.permute.xlu1 %3495  ;;  %v4270_v33 = vsel %vm1806_vm2, %v15150_v16, %v4265_v8  ;;  %v4287_v21 = vrot.slane %v15153_v11, %v11026_v10  ;;  %v3994_v29 = vsel %vm1949_vm6, %v3956_v50, %v3993_v35  ;;  %v4296_v46 = vrot.slane %v15154_v57, %v11026_v10  ;;  %v4441_v50 = vld [vmem:[%s14653_s6 + $0x18] sm:$0xff] }
 0x4e9   :  { %8672 = vmatpush3.msra.mxu0 %v15144_v45  ;;  %v3639_v39 = vrot.slane %v3496_v59, %v11026_v10  ;;  %8675 = vmatprep.mubr.msk.f32.mxu0 %vm285_vm0, %v11851_v63  ;;  %v3973_v63 = vrot.slane %v11826_v14, %v11026_v10  ;;  %v3982_v55 = vrot.slane %v12191_v30, %v11026_v10  ;;  %v15158_v30 = vld [vmem:[#allocation188_spill] sm:$0xff] }
 0x4ea   :  { %8673 = vmatprep.subr.mxu0 %v15148_v44  ;;  %v4279_v15 = vsel %vm1806_vm2, %v4278_v56, %v4274_v22  ;;  %v4283_v25 = vrot.slane %v15155_v40, %v11023_v62  ;;  %v3995_v0 = vsel %vm1951_vm7, %v3965_v27, %v3994_v29  ;;  %v4305_v53 = vrot.slane %v15156_v24, %v11026_v10 }
 0x4eb   :  { %v3640_v37 = vsel %vm1806_vm2, %v3639_v39, %v3635_v17  ;;  %8674 = vmatpush3.msra.mxu0 %v15148_v44  ;;  %v3974_v54 = vsel %vm1806_vm2, %v3973_v63, %v3969_v4  ;;  %v4292_v51 = vrot.slane %v15158_v30, %v11023_v62  ;;  %v4314_v41 = vrot.slane %v12001_v20, %v11026_v10  ;;  %v8462_v30 = vld [vmem:[%s14654_s5] ss:$0 sm:$0xff] }
 0x4ec   :  { %8678 = vmatprep.subr.mxu0 %v15151_v43  ;;  %v3654_v14 = vsel %vm1955_vm9, %v3640_v37, %v3653_v13  ;;  %v3996_v61 = vsel %vm1953_vm8, %v3974_v54, %v3995_v0  ;;  %v4332_v60 = vsel %vm1943_vm3, %v4270_v33, %v11914_v2  ;;  %v4288_v23 = vsel %vm1806_vm2, %v4287_v21, %v4283_v25 }
 0x4ed   :  { %8676 = vmatmul.mubr.msk.f32.vlgmr.msra.gmra.mxu0 %vm285_vm0, %v3654_v14  ;;  %v3836_v8 = vpop.permute.xlu1 %3835  ;;  %v4301_v45 = vrot.slane %v15159_v18, %v11023_v62  ;;  %v4333_v20 = vsel %vm1945_vm4, %v4279_v15, %v4332_v60  ;;  %v4297_v47 = vsel %vm1806_vm2, %v4296_v46, %v4292_v51  ;;  %v4310_v7 = vrot.slane %v11885_v9, %v11023_v62  ;;  %v4450_v18 = vld [vmem:[%s14655_s8 + $0x38] sm:$0xff] }
 0x4ee   :  { %8679 = vmatpush3.msra.mxu0 %v15151_v43  ;;  %v3978_v32 = vrot.slane %v3836_v8, %v11023_v62  ;;  %8682 = vmatprep.mubr.msk.f32.mxu0 %vm285_vm0, %v11860_v19  ;;  %v4331_v2 = vsel %vm1955_vm9, %v11869_v38, %v11813_v26  ;;  %v4319_v34 = vrot.slane %v4177_v28, %v11023_v62  ;;  %v12325_v28 = vpop.f32.mrf.mxu0 }
 0x4ef   :  { %8680 = vmatprep.subr.mxu0 %v15157_v5  ;;  %v4306_v49 = vsel %vm1806_vm2, %v4305_v53, %v4301_v45  ;;  %v4334_v59 = vsel %vm1947_vm5, %v4288_v23, %v4333_v20  ;;  %v4315_v9 = vsel %vm1806_vm2, %v4314_v41, %v4310_v7  ;;  %15160 = vst [vmem:[#allocation54_spill] sm:$0xff] %v12325_v28  ;;  %v4449_v45 = vld [vmem:[%s14655_s8 + $0x30] sm:$0xff]  ;;  %v4447_v20 = vld [vmem:[%s14655_s8 + $0x20] sm:$0xff] }
 0x4f0   :  { %v3983_v19 = vsel %vm1806_vm2, %v3982_v55, %v3978_v32  ;;  %8681 = vmatpush3.msra.mxu0 %v15157_v5  ;;  %v4335_v17 = vsel %vm1949_vm6, %v4297_v47, %v4334_v59  ;;  %v12327_v44 = vpop.f32.mrf.mxu0  ;;  %v4446_v47 = vld [vmem:[%s14655_s8 + $0x18] sm:$0xff]  ;;  %v4445_v7 = vld [vmem:[%s14655_s8 + $0x10] sm:$0xff] }
 0x4f1   :  { %8685 = vmatprep.subr.mxu0 %v4342_v48  ;;  %v3997_v36 = vsel %vm1955_vm9, %v3983_v19, %v3996_v61  ;;  %v4336_v39 = vsel %vm1951_vm7, %v4306_v49, %v4335_v17  ;;  %15161 = vst [vmem:[#allocation71_spill] sm:$0xff] %v12327_v44  ;;  %v8463_v49 = vld [vmem:[%s14656_s7] ss:$0 sm:$0xff]  ;;  %s9548_s7 = smov 88   ;;  %v15164_v17 = vld [vmem:[#allocation7_spill] sm:$0xff]  ;;  %v15217_v28 = vld [vmem:[#allocation24_spill] sm:$0xff] }
 0x4f2   :  { %8683 = vmatmul.mubr.msk.f32.vlgmr.msra.gmra.mxu0 %vm285_vm0, %v3997_v36  ;;  %v4180_v1 = vpop.permute.xlu1 %4179  ;;  %v4337_v38 = vsel %vm1953_vm8, %v4315_v9, %v4336_v39  ;;  %v4448_v36 = vld [vmem:[%s14655_s8 + $0x28] sm:$0xff] }
 0x4f3   :  { %8686 = vmatpush3.msra.mxu0 %v4342_v48  ;;  %v4323_v31 = vrot.slane %v4180_v1, %v11026_v10  ;;  %8689 = vmatprep.mubr.msk.f32.mxu0 %vm285_vm0, %v4331_v2  ;;  %v4444_v1 = vld [vmem:[%s14655_s8 + $0x8] sm:$0xff]  ;;  %v4443_v2 = vld [vmem:[%s14655_s8] sm:$0xff]  ;;  %s9547_s8 = smov 104  }
 0x4f5   :  { %v4324_v4 = vsel %vm1806_vm2, %v4323_v31, %v4319_v34 }
 0x4f6   :  { %v4340_v26 = vpop.permute.xlu1 %4339  ;;  %v4338_v12 = vsel %vm1955_vm9, %v4324_v4, %v4337_v38 }
 0x4f7   :  { %8687 = vmatprep.subr.mxu0 %v4340_v26 }
 0x4f8   :  { %8688 = vmatpush3.msra.mxu0 %v4340_v26 }
 0x4f9   :  { %8690 = vmatmul.mubr.msk.f32.vlgmr.msra.gmra.mxu0 %vm285_vm0, %v4338_v12  ;;  %8692 = vmatprep.subr.mxu0 %v4441_v50  ;;  %v15165_v12 = vld [vmem:[#allocation2_spill] sm:$0xff] }
 0x4fa   :  { %8693 = vmatpush3.msra.mxu0 %v4441_v50 }
 0x4fb   :  { %8694 = vmatprep.subr.mxu0 %v4440_v42 }
 0x4fc   :  { %8695 = vmatpush3.msra.mxu0 %v4440_v42 }
 0x4fd   :  { %8696 = vmatprep.subr.mxu0 %v4439_v3 }
 0x4fe   :  { %8697 = vmatpush3.msra.mxu0 %v4439_v3 }
 0x4ff   :  { %8698 = vmatprep.subr.mxu0 %v4438_v52 }
 0x500   :  { %8699 = vmatpush3.msra.mxu0 %v4438_v52 }
 0x501   :  { %8703 = vmatprep.subr.mxu0 %v4450_v18 }
 0x594   :  { %v8642_v6 = vpop.f32.mrf.mxu0 }
 0x596   :  { %v2042_v22 = vpop.f32.mrf.mxu0 }
 0x599   :  { %v8649_v63 = vpop.f32.mrf.mxu0 }
 0x59a   :  { %v2381_v58 = vadd.f32 %v8649_v63, %v8642_v6 }
 0x59b   :  { %v2375_v37 = vpop.f32.mrf.mxu0 }
 0x59c   :  { %v2376_v11 = vadd.f32 %v2375_v37, %v2042_v22 }
 0x59e   :  { %v8656_v13 = vpop.f32.mrf.mxu0 }
 0x59f   :  { %v2724_v21 = vadd.f32 %v8656_v13, %v2381_v58 }
 0x5a0   :  { %v2714_v16 = vpop.f32.mrf.mxu0 }
 0x5a1   :  { %v2723_v29 = vadd.f32 %v2714_v16, %v2376_v11 }
 0x5a3   :  { %v8663_v33 = vpop.f32.mrf.mxu0 }
 0x5a4   :  { %v3065_v54 = vadd.f32 %v8663_v33, %v2724_v21 }
 0x5a5   :  { %v3055_v35 = vpop.f32.mrf.mxu0 }
 0x5a6   :  { %v3064_v57 = vadd.f32 %v3055_v35, %v2723_v29 }
 0x5a8   :  { %v8670_v27 = vpop.f32.mrf.mxu0 }
 0x5a9   :  { %v3400_v46 = vadd.f32 %v8670_v27, %v3065_v54 }
 0x5aa   :  { %v3390_v43 = vpop.f32.mrf.mxu0 }
 0x5ab   :  { %v3399_v55 = vadd.f32 %v3390_v43, %v3064_v57 }
 0x5ad   :  { %v8677_v14 = vpop.f32.mrf.mxu0 }
 0x5ae   :  { %v3743_v32 = vadd.f32 %v8677_v14, %v3400_v46 }
 0x5af   :  { %v3733_v56 = vpop.f32.mrf.mxu0 }
 0x5b0   :  { %v3742_v40 = vadd.f32 %v3733_v56, %v3399_v55 }
 0x5b2   :  { %v8684_v8 = vpop.f32.mrf.mxu0 }
 0x5b3   :  { %v4084_v25 = vadd.f32 %v8684_v8, %v3743_v32 }
 0x5b4   :  { %v4074_v15 = vpop.f32.mrf.mxu0 }
 0x5b5   :  { %v4083_v24 = vadd.f32 %v4074_v15, %v3742_v40 }
 0x5b9   :  { %v8691_v0 = vpop.f32.mrf.mxu0 }
 0x5ba   :  { %v4425_v53 = vadd.f32 %v8691_v0, %v4084_v25 }
 0x5bb   :  { %v4415_v5 = vpop.f32.mrf.mxu0 }
 0x5bc   :  { %v4427_v51 = vmul.f32 0.125, %v4425_v53  ;;  %v4424_v41 = vadd.f32 %v4415_v5, %v4083_v24 }
 0x5be   :  { %v4426_v48 = vmul.f32 0.125, %v4424_v41  ;;  %v4435_v19 = vadd.f32 %v8462_v30, %v4427_v51 }
 0x5c0   :  { %v4434_v61 = vadd.f32 %v8462_v30, %v4426_v48  ;;  %v4437_v23 = vmax.f32 %v4435_v19, 0.0 }
 0x5c2   :  { %v4436_v60 = vmax.f32 %v4434_v61, 0.0 }
 0x5c4   :  { %8700 = vmatprep.mubr.msk.f32.mxu0 %vm4458_vm10, %v4436_v60 }
 0x5c5   :  { %8701 = vmatmul.mubr.msk.f32.vlgmr.msra.gmra.mxu0 %vm4458_vm10, %v4437_v23 }
 0x5c6   :  { %8704 = vmatpush3.msra.mxu0 %v4450_v18 }
 0x5c7   :  { %8705 = vmatprep.subr.mxu0 %v4449_v45 }
 0x5c8   :  { %8706 = vmatpush3.msra.mxu0 %v4449_v45 }
 0x5c9   :  { %8707 = vmatprep.subr.mxu0 %v4448_v36 }
 0x5ca   :  { %8708 = vmatpush3.msra.mxu0 %v4448_v36 }
 0x5cb   :  { %8709 = vmatprep.subr.mxu0 %v4447_v20 }
 0x5cc   :  { %8710 = vmatpush3.msra.mxu0 %v4447_v20 }
 0x5cd   :  { %8711 = vmatprep.subr.mxu0 %v4446_v47 }
 0x5ce   :  { %8712 = vmatpush3.msra.mxu0 %v4446_v47 }
 0x5cf   :  { %8713 = vmatprep.subr.mxu0 %v4445_v7 }
 0x5d0   :  { %8714 = vmatpush3.msra.mxu0 %v4445_v7 }
 0x5d1   :  { %8715 = vmatprep.subr.mxu0 %v4444_v1 }
 0x5d2   :  { %8716 = vmatpush3.msra.mxu0 %v4444_v1 }
 0x5d3   :  { %8717 = vmatprep.subr.mxu0 %v4443_v2 }
 0x5d4   :  { %8718 = vmatpush3.msra.mxu0 %v4443_v2 }
 0x685   :  { %v8702_v34 = vpop.f32.mrf.mxu0 }
 0x686   :  { %v12359_v31 = vadd.f32 %v8702_v34, %v8463_v49 }
 0x687   :  { %v4531_v59 = vpop.f32.mrf.mxu0 }
 0x688   :  { %15162 = vst [vmem:[#allocation56_spill] sm:$0xff] %v12359_v31  ;;  %5960 = vrot.lane.b32.xlu0 %v12359_v31, %s9545_s26  ;;  %4722 = vrot.lane.b32.xlu1 %v12359_v31, %s9536_s21  ;;  %v12366_v9 = vadd.f32 %v8463_v49, %v4531_v59  ;;  %v4598_v19 = vrot.slane %v12359_v31, %v15164_v17 }
 0x68a   :  { %15163 = vst [vmem:[#allocation58_spill] sm:$0xff] %v12366_v9  ;;  %v4549_v4 = vrot.slane %v12366_v9, %v15164_v17  ;;  %v4542_v52 = vcombine.high %v12366_v9, %v12366_v9  ;;  %v4614_v47 = vrot.slane %v4598_v19, %v15164_v17  ;;  %v4606_v7 = vcombine.high %v4598_v19, %v4598_v19 }
 0x68c   :  { %6632 = vrot.lane.b32.xlu0 %v12359_v31, %s9546_s1  ;;  %6973 = vrot.lane.b32.xlu1 %v12359_v31, %s9547_s8  ;;  %v4557_v39 = vcombine.high %v4549_v4, %v4549_v4  ;;  %v4565_v26 = vrot.slane %v4549_v4, %v15164_v17  ;;  %v4556_v35 = vrot.slane %v4542_v52, %v15164_v17 }
 0x68e   :  { %v4579_v38 = vrot.slane %v4557_v39, %v15164_v17  ;;  %v4643_v50 = vrot.slane %v4565_v26, %v15165_v12  ;;  %v4587_v3 = vcombine.high %v4565_v26, %v4565_v26  ;;  %v4572_v11 = vrot.slane %v4556_v35, %v15164_v17 }
 0x68f   :  { %v4558_v21 = vcombine.high %v4556_v35, %v4556_v35  ;;  %v4675_v26 = vrot.slane %v4614_v47, %v15165_v12 }
 0x690   :  { %7314 = vrot.lane.b32.xlu0 %v12359_v31, %s9534_s2  ;;  %5958 = vrot.lane.b32.xlu1 %v12366_v9, %s9545_s26  ;;  %v4647_v42 = vrot.slane %v4579_v38, %v15165_v12  ;;  %v4651_v16 = vrot.slane %v4587_v3, %v15165_v12  ;;  %v4589_v33 = vcombine.high %v4579_v38, %v4579_v38 }
 0x691   :  { %v4659_v46 = vrot.slane %v4572_v11, %v15165_v12  ;;  %v4586_v55 = vrot.slane %v4558_v21, %v15164_v17  ;;  %v4588_v0 = vcombine.high %v4572_v11, %v4572_v11  ;;  %v4628_v38 = vrot.slane %v4606_v7, %v15164_v17 }
 0x692   :  { %v4655_v56 = vrot.slane %v4589_v33, %v15165_v12  ;;  %v4636_v33 = vcombine.high %v4614_v47, %v4614_v47 }
 0x693   :  { %v4663_v24 = vrot.slane %v4586_v55, %v15165_v12  ;;  %v12419_v41 = vrot.slane %v4588_v0, %v15165_v12  ;;  %v4590_v48 = vcombine.high %v4586_v55, %v4586_v55 }
 0x694   :  { %7655 = vrot.lane.b32.xlu0 %v12359_v31, %s9548_s7  ;;  %6630 = vrot.lane.b32.xlu1 %v12366_v9, %s9546_s1 }
 0x695   :  { %v12431_v20 = vrot.slane %v4590_v48, %v15165_v12 }
 0x698   :  { %7996 = vrot.lane.b32.xlu0 %v12359_v31, %s9549_s27  ;;  %7312 = vrot.lane.b32.xlu1 %v12366_v9, %s9534_s2  ;;  %s9550_s2 = smov 72  }
 0x69c   :  { %7653 = vrot.lane.b32.xlu1 %v12366_v9, %s9548_s7  ;;  %4720 = vrot.lane.b32.xlu0 %v12366_v9, %s9536_s21 }
 0x6a0   :  { %6971 = vrot.lane.b32.xlu0 %v12366_v9, %s9547_s8 }
 0x6fa   :  { %v12389_v6 = vpop.permute.xlu0 %5960  ;;  %v12391_v22 = vpop.permute.xlu1 %4722 }
 0x6fb   :  { %8767 = vmatprep.subr.mxu0 %v12389_v6  ;;  %v4727_v63 = vadd.f32 %v12391_v22, %v4643_v50  ;;  %v4729_v37 = vadd.f32 %v12391_v22, %v4647_v42  ;;  %v4731_v58 = vadd.f32 %v12391_v22, %v4651_v16  ;;  %v4733_v57 = vadd.f32 %v12391_v22, %v4655_v56 }
 0x6fc   :  { %v4735_v25 = vadd.f32 %v12391_v22, %v4659_v46  ;;  %v4737_v51 = vadd.f32 %v12391_v22, %v4663_v24  ;;  %v4739_v60 = vadd.f32 %v12391_v22, %v12419_v41  ;;  %v4741_v49 = vadd.f32 %v12391_v22, %v12431_v20 }
 0x6fd   :  { %v4759_v13 = vmul.f32 0.2, %v4727_v63  ;;  %v4761_v14 = vmul.f32 0.2, %v4729_v37  ;;  %v4763_v8 = vmul.f32 0.2, %v4731_v58 }
 0x6fe   :  { %v12398_v27 = vpop.permute.xlu0 %6632  ;;  %v4765_v40 = vmul.f32 0.2, %v4733_v57  ;;  %v4767_v30 = vmul.f32 0.2, %v4735_v25  ;;  %v4769_v45 = vmul.f32 0.2, %v4737_v51 }
 0x6ff   :  { %15166 = vst [vmem:[#allocation73_spill] sm:$0xff] %v12398_v27  ;;  %v4791_v43 = vmax.f32 %v4727_v63, %v4759_v13  ;;  %v4793_v54 = vmax.f32 %v4729_v37, %v4761_v14  ;;  %v4795_v15 = vmax.f32 %v4731_v58, %v4763_v8  ;;  %v4771_v2 = vmul.f32 0.2, %v4739_v60 }
 0x700   :  { %v4797_v5 = vmax.f32 %v4733_v57, %v4765_v40  ;;  %v4799_v23 = vmax.f32 %v4735_v25, %v4767_v30  ;;  %v4801_v59 = vmax.f32 %v4737_v51, %v4769_v45  ;;  %v4679_v13 = vrot.slane %v4628_v38, %v15165_v12 }
 0x701   :  { %4856 = vrot.lane.b32.xlu1 %v4791_v43, %s9536_s21  ;;  %v4803_v52 = vmax.f32 %v4739_v60, %v4771_v2 }
 0x702   :  { %v12404_v29 = vpop.permute.xlu0 %7314  ;;  %v4745_v43 = vadd.f32 %v12391_v22, %v4679_v13 }
 0x703   :  { %15167 = vst [vmem:[#allocation60_spill] sm:$0xff] %v12404_v29 }
 0x704   :  { %v4777_v57 = vmul.f32 0.2, %v4745_v43 }
 0x705   :  { %4860 = vrot.lane.b32.xlu1 %v4793_v54, %s9536_s21  ;;  %v4638_v54 = vcombine.high %v4628_v38, %v4628_v38 }
 0x706   :  { %v12410_v32 = vpop.permute.xlu0 %7655  ;;  %v4809_v51 = vmax.f32 %v4745_v43, %v4777_v57 }
 0x707   :  { %15168 = vst [vmem:[#allocation75_spill] sm:$0xff] %v12410_v32 }
 0x709   :  { %4864 = vrot.lane.b32.xlu1 %v4795_v15, %s9536_s21 }
 0x70a   :  { %v12415_v53 = vpop.permute.xlu0 %7996 }
 0x70b   :  { %15169 = vst [vmem:[#allocation62_spill] sm:$0xff] %v12415_v53 }
 0x70d   :  { %4868 = vrot.lane.b32.xlu1 %v4797_v5, %s9536_s21  ;;  %v4687_v5 = vrot.slane %v4638_v54, %v15165_v12 }
 0x70e   :  { %v12424_v61 = vpop.permute.xlu0 %4720 }
 0x70f   :  { %v4726_v18 = vadd.f32 %v12424_v61, %v4643_v50  ;;  %v4728_v36 = vadd.f32 %v12424_v61, %v4647_v42  ;;  %v4730_v39 = vadd.f32 %v12424_v61, %v4651_v16  ;;  %v4773_v50 = vmul.f32 0.2, %v4741_v49 }
 0x710   :  { %v4743_v42 = vadd.f32 %v12391_v22, %v4675_v26  ;;  %v4732_v37 = vadd.f32 %v12424_v61, %v4655_v56  ;;  %v4591_v16 = vcombine.high %v12359_v31, %v12359_v31  ;;  %v4734_v21 = vadd.f32 %v12424_v61, %v4659_v46 }
 0x711   :  { %4872 = vrot.lane.b32.xlu1 %v4799_v23, %s9536_s21  ;;  %v4758_v1 = vmul.f32 0.2, %v4726_v18  ;;  %v4760_v4 = vmul.f32 0.2, %v4728_v36  ;;  %v4762_v63 = vmul.f32 0.2, %v4730_v39  ;;  %v4805_v58 = vmax.f32 %v4741_v49, %v4773_v50 }
 0x712   :  { %v4775_v35 = vmul.f32 0.2, %v4743_v42  ;;  %v4764_v11 = vmul.f32 0.2, %v4732_v37  ;;  %v4683_v56 = vrot.slane %v4636_v33, %v15165_v12  ;;  %v4605_v8 = vrot.slane %v4591_v16, %v15164_v17 }
 0x713   :  { %v4790_v34 = vmax.f32 %v4726_v18, %v4758_v1  ;;  %v4792_v3 = vmax.f32 %v4728_v36, %v4760_v4  ;;  %v4794_v14 = vmax.f32 %v4730_v39, %v4762_v63  ;;  %v4766_v25 = vmul.f32 0.2, %v4734_v21 }
 0x714   :  { %v4747_v55 = vadd.f32 %v12391_v22, %v4683_v56  ;;  %v4796_v15 = vmax.f32 %v4732_v37, %v4764_v11  ;;  %v4807_v40 = vmax.f32 %v4743_v42, %v4775_v35  ;;  %v4736_v0 = vadd.f32 %v12424_v61, %v4663_v24 }
 0x715   :  { %4854 = vrot.lane.b32.xlu0 %v4790_v34, %s9536_s21  ;;  %4876 = vrot.lane.b32.xlu1 %v4801_v59, %s9536_s21  ;;  %v4621_v46 = vrot.slane %v4605_v8, %v15164_v17  ;;  %v4607_v30 = vcombine.high %v4605_v8, %v4605_v8  ;;  %v4749_v48 = vadd.f32 %v12391_v22, %v4687_v5 }
 0x716   :  { %v4798_v19 = vmax.f32 %v4734_v21, %v4766_v25  ;;  %v4768_v60 = vmul.f32 0.2, %v4736_v0  ;;  %v4779_v23 = vmul.f32 0.2, %v4747_v55  ;;  %v4738_v18 = vadd.f32 %v12424_v61, %v12419_v41 }
 0x717   :  { %v4691_v24 = vrot.slane %v4621_v46, %v15165_v12  ;;  %v4635_v45 = vrot.slane %v4607_v30, %v15164_v17  ;;  %v4781_v36 = vmul.f32 0.2, %v4749_v48  ;;  %v4740_v49 = vadd.f32 %v12424_v61, %v12431_v20 }
 0x718   :  { %v4800_v7 = vmax.f32 %v4736_v0, %v4768_v60  ;;  %v4811_v1 = vmax.f32 %v4747_v55, %v4779_v23  ;;  %v4770_v2 = vmul.f32 0.2, %v4738_v18  ;;  %v4637_v41 = vcombine.high %v4621_v46, %v4621_v46 }
 0x719   :  { %4858 = vrot.lane.b32.xlu0 %v4792_v3, %s9536_s21  ;;  %4880 = vrot.lane.b32.xlu1 %v4803_v52, %s9536_s21  ;;  %v4751_v47 = vadd.f32 %v12391_v22, %v4691_v24  ;;  %v4695_v34 = vrot.slane %v4635_v45, %v15165_v12  ;;  %v4813_v39 = vmax.f32 %v4749_v48, %v4781_v36  ;;  %v4772_v38 = vmul.f32 0.2, %v4740_v49 }
 0x71a   :  { %v4802_v4 = vmax.f32 %v4738_v18, %v4770_v2  ;;  %v4742_v50 = vadd.f32 %v12424_v61, %v4675_v26  ;;  %v4699_v42 = vrot.slane %v4637_v41, %v15165_v12  ;;  %v4639_v3 = vcombine.high %v4635_v45, %v4635_v45 }
 0x71b   :  { %v4783_v17 = vmul.f32 0.2, %v4751_v47  ;;  %v4753_v59 = vadd.f32 %v12391_v22, %v4695_v34  ;;  %v4804_v37 = vmax.f32 %v4740_v49, %v4772_v38  ;;  %v4744_v16 = vadd.f32 %v12424_v61, %v4679_v13 }
 0x71c   :  { %v4755_v52 = vadd.f32 %v12391_v22, %v4699_v42  ;;  %v4774_v33 = vmul.f32 0.2, %v4742_v50  ;;  %v4703_v35 = vrot.slane %v4639_v3, %v15165_v12  ;;  %v4746_v21 = vadd.f32 %v12424_v61, %v4683_v56 }
 0x71d   :  { %4862 = vrot.lane.b32.xlu0 %v4794_v14, %s9536_s21  ;;  %4884 = vrot.lane.b32.xlu1 %v4805_v58, %s9536_s21  ;;  %v4785_v20 = vmul.f32 0.2, %v4753_v59  ;;  %v4815_v63 = vmax.f32 %v4751_v47, %v4783_v17  ;;  %v4776_v11 = vmul.f32 0.2, %v4744_v16  ;;  %v4748_v57 = vadd.f32 %v12424_v61, %v4687_v5 }
 0x71e   :  { %v4787_v26 = vmul.f32 0.2, %v4755_v52  ;;  %v4757_v43 = vadd.f32 %v12391_v22, %v4703_v35  ;;  %v4806_v58 = vmax.f32 %v4742_v50, %v4774_v33  ;;  %v4778_v12 = vmul.f32 0.2, %v4746_v21 }
 0x71f   :  { %v4817_v14 = vmax.f32 %v4753_v59, %v4785_v20  ;;  %v4808_v8 = vmax.f32 %v4744_v16, %v4776_v11  ;;  %v4752_v0 = vadd.f32 %v12424_v61, %v4695_v34  ;;  %v4754_v30 = vadd.f32 %v12424_v61, %v4699_v42  ;;  %v12510_v34 = vpop.permute.xlu0 %6971 }
 0x720   :  { %v4789_v54 = vmul.f32 0.2, %v4757_v43  ;;  %v4819_v13 = vmax.f32 %v4755_v52, %v4787_v26  ;;  %v4810_v55 = vmax.f32 %v4746_v21, %v4778_v12  ;;  %15174 = vst [vmem:[#allocation81_spill] sm:$0xff] %v12510_v34 }
 0x721   :  { %4866 = vrot.lane.b32.xlu0 %v4796_v15, %s9536_s21  ;;  %4888 = vrot.lane.b32.xlu1 %v4807_v40, %s9536_s21  ;;  %v4780_v15 = vmul.f32 0.2, %v4748_v57  ;;  %v4750_v40 = vadd.f32 %v12424_v61, %v4691_v24  ;;  %v4784_v46 = vmul.f32 0.2, %v4752_v0  ;;  %v4786_v48 = vmul.f32 0.2, %v4754_v30  ;;  %v12502_v24 = vpop.permute.xlu1 %6973 }
 0x722   :  { %v4821_v22 = vmax.f32 %v4757_v43, %v4789_v54  ;;  %15170 = vst [vmem:[#allocation77_spill] sm:$0xff] %v12502_v24 }
 0x723   :  { %v4812_v56 = vmax.f32 %v4748_v57, %v4780_v15  ;;  %v4782_v25 = vmul.f32 0.2, %v4750_v40  ;;  %v4818_v60 = vmax.f32 %v4754_v30, %v4786_v48  ;;  %v15177_v30 = vld [vmem:[#allocation13_spill] sm:$0xff] }
 0x725   :  { %4870 = vrot.lane.b32.xlu0 %v4798_v19, %s9536_s21  ;;  %4892 = vrot.lane.b32.xlu1 %v4809_v51, %s9536_s21  ;;  %v4814_v5 = vmax.f32 %v4750_v40, %v4782_v25  ;;  %v4816_v51 = vmax.f32 %v4752_v0, %v4784_v46  ;;  %v4756_v19 = vadd.f32 %v12424_v61, %v4703_v35  ;;  %v5959_v45 = vpop.permute.xlu1 %5958 }
 0x727   :  { %v4788_v23 = vmul.f32 0.2, %v4756_v19 }
 0x729   :  { %4874 = vrot.lane.b32.xlu0 %v4800_v7, %s9536_s21  ;;  %4896 = vrot.lane.b32.xlu1 %v4811_v1, %s9536_s21  ;;  %v4820_v18 = vmax.f32 %v4756_v19, %v4788_v23  ;;  %v12504_v36 = vpop.permute.xlu1 %6630 }
 0x72a   :  { %15171 = vst [vmem:[#allocation64_spill] sm:$0xff] %v12504_v36 }
 0x72d   :  { %4878 = vrot.lane.b32.xlu0 %v4802_v4, %s9536_s21  ;;  %4900 = vrot.lane.b32.xlu1 %v4813_v39, %s9536_s21  ;;  %v12506_v47 = vpop.permute.xlu1 %7312 }
 0x72e   :  { %15172 = vst [vmem:[#allocation79_spill] sm:$0xff] %v12506_v47 }
 0x731   :  { %4904 = vrot.lane.b32.xlu1 %v4815_v63, %s9536_s21  ;;  %4882 = vrot.lane.b32.xlu0 %v4804_v37, %s9536_s21  ;;  %v12508_v7 = vpop.permute.xlu1 %7653 }
 0x732   :  { %15173 = vst [vmem:[#allocation66_spill] sm:$0xff] %v12508_v7 }
 0x735   :  { %4908 = vrot.lane.b32.xlu1 %v4817_v14, %s9536_s21  ;;  %4886 = vrot.lane.b32.xlu0 %v4806_v58, %s9536_s21 }
 0x739   :  { %4912 = vrot.lane.b32.xlu1 %v4819_v13, %s9536_s21  ;;  %4890 = vrot.lane.b32.xlu0 %v4808_v8, %s9536_s21 }
 0x73d   :  { %4916 = vrot.lane.b32.xlu1 %v4821_v22, %s9536_s21  ;;  %4894 = vrot.lane.b32.xlu0 %v4810_v55, %s9536_s21  ;;  %v15175_v55 = vld [vmem:[#allocation10_spill] sm:$0xff] }
 0x741   :  { %4898 = vrot.lane.b32.xlu0 %v4812_v56, %s9536_s21  ;;  %v15176_v56 = vld [vmem:[#allocation9_spill] sm:$0xff] }
 0x745   :  { %4902 = vrot.lane.b32.xlu0 %v4814_v5, %s9536_s21 }
 0x749   :  { %4906 = vrot.lane.b32.xlu0 %v4816_v51, %s9536_s21 }
 0x74d   :  { %4910 = vrot.lane.b32.xlu0 %v4818_v60, %s9536_s21  ;;  %v15178_v60 = vld [vmem:[#allocation11_spill] sm:$0xff] }
 0x751   :  { %4914 = vrot.lane.b32.xlu0 %v4820_v18, %s9536_s21 }
 0x773   :  { %v4857_v1 = vpop.permute.xlu1 %4856 }
 0x777   :  { %v4861_v61 = vpop.permute.xlu1 %4860 }
 0x77b   :  { %v4865_v2 = vpop.permute.xlu1 %4864 }
 0x77f   :  { %v4869_v49 = vpop.permute.xlu1 %4868 }
 0x783   :  { %v4873_v41 = vpop.permute.xlu1 %4872 }
 0x787   :  { %v4855_v17 = vpop.permute.xlu0 %4854  ;;  %v4877_v59 = vpop.permute.xlu1 %4876 }
 0x788   :  { %8719 = vmatprep.mubr.msk.f32.mxu0 %vm4918_vm11, %v4855_v17 }
 0x789   :  { %8720 = vmatmul.mubr.msk.f32.vlgmr.msra.gmra.mxu0 %vm4918_vm11, %v4857_v1 }
 0x78a   :  { %8768 = vmatpush3.msra.mxu0 %v12389_v6 }
 0x78b   :  { %8769 = vmatprep.subr.mxu0 %v5959_v45  ;;  %v4859_v4 = vpop.permute.xlu0 %4858  ;;  %v4881_v39 = vpop.permute.xlu1 %4880 }
 0x78c   :  { %8770 = vmatpush3.msra.mxu0 %v5959_v45  ;;  %8722 = vmatprep.mubr.msk.f32.mxu0 %vm4918_vm11, %v4859_v4 }
 0x78d   :  { %8774 = vmatprep.subr.mxu0 %v12359_v31  ;;  %8723 = vmatmul.mubr.msk.f32.gmra.mxu0 %vm4918_vm11, %v4861_v61 }
 0x78f   :  { %v4863_v38 = vpop.permute.xlu0 %4862  ;;  %v4885_v42 = vpop.permute.xlu1 %4884 }
 0x790   :  { %8725 = vmatprep.mubr.msk.f32.mxu0 %vm4918_vm11, %v4863_v38 }
 0x791   :  { %8726 = vmatmul.mubr.msk.f32.gmra.mxu0 %vm4918_vm11, %v4865_v2 }
 0x793   :  { %v4867_v50 = vpop.permute.xlu0 %4866  ;;  %v4889_v3 = vpop.permute.xlu1 %4888 }
 0x794   :  { %8728 = vmatprep.mubr.msk.f32.mxu0 %vm4918_vm11, %v4867_v50  ;;  %v15179_v50 = vld [vmem:[#allocation12_spill] sm:$0xff] }
 0x795   :  { %8729 = vmatmul.mubr.msk.f32.gmra.mxu0 %vm4918_vm11, %v4869_v49 }
 0x797   :  { %v4871_v6 = vpop.permute.xlu0 %4870  ;;  %v4893_v63 = vpop.permute.xlu1 %4892 }
 0x798   :  { %8731 = vmatprep.mubr.msk.f32.mxu0 %vm4918_vm11, %v4871_v6 }
 0x799   :  { %8732 = vmatmul.mubr.msk.f32.gmra.mxu0 %vm4918_vm11, %v4873_v41 }
 0x79b   :  { %v4875_v20 = vpop.permute.xlu0 %4874  ;;  %v4897_v33 = vpop.permute.xlu1 %4896 }
 0x79c   :  { %8734 = vmatprep.mubr.msk.f32.mxu0 %vm4918_vm11, %v4875_v20 }
 0x79d   :  { %8735 = vmatmul.mubr.msk.f32.gmra.mxu0 %vm4918_vm11, %v4877_v59 }
 0x79f   :  { %v4879_v52 = vpop.permute.xlu0 %4878  ;;  %v4901_v26 = vpop.permute.xlu1 %4900 }
 0x7a0   :  { %8737 = vmatprep.mubr.msk.f32.mxu0 %vm4918_vm11, %v4879_v52 }
 0x7a1   :  { %8738 = vmatmul.mubr.msk.f32.gmra.mxu0 %vm4918_vm11, %v4881_v39 }
 0x7a3   :  { %v4883_v37 = vpop.permute.xlu0 %4882  ;;  %v4905_v14 = vpop.permute.xlu1 %4904 }
 0x7a4   :  { %8740 = vmatprep.mubr.msk.f32.mxu0 %vm4918_vm11, %v4883_v37 }
 0x7a5   :  { %8741 = vmatmul.mubr.msk.f32.gmra.mxu0 %vm4918_vm11, %v4885_v42 }
 0x7a7   :  { %v4887_v16 = vpop.permute.xlu0 %4886  ;;  %v4909_v21 = vpop.permute.xlu1 %4908 }
 0x7a8   :  { %8743 = vmatprep.mubr.msk.f32.mxu0 %vm4918_vm11, %v4887_v16 }
 0x7a9   :  { %8744 = vmatmul.mubr.msk.f32.gmra.mxu0 %vm4918_vm11, %v4889_v3  ;;  %v15180_v3 = vld [vmem:[#allocation15_spill] sm:$0xff] }
 0x7ab   :  { %v4891_v35 = vpop.permute.xlu0 %4890  ;;  %v4913_v13 = vpop.permute.xlu1 %4912 }
 0x7ac   :  { %8746 = vmatprep.mubr.msk.f32.mxu0 %vm4918_vm11, %v4891_v35 }
 0x7ad   :  { %8747 = vmatmul.mubr.msk.f32.gmra.mxu0 %vm4918_vm11, %v4893_v63 }
 0x7af   :  { %v4895_v43 = vpop.permute.xlu0 %4894  ;;  %v4917_v57 = vpop.permute.xlu1 %4916 }
 0x7b0   :  { %8749 = vmatprep.mubr.msk.f32.mxu0 %vm4918_vm11, %v4895_v43 }
 0x7b1   :  { %8750 = vmatmul.mubr.msk.f32.gmra.mxu0 %vm4918_vm11, %v4897_v33 }
 0x7b3   :  { %v4899_v58 = vpop.permute.xlu0 %4898 }
 0x7b4   :  { %8752 = vmatprep.mubr.msk.f32.mxu0 %vm4918_vm11, %v4899_v58 }
 0x7b5   :  { %8753 = vmatmul.mubr.msk.f32.gmra.mxu0 %vm4918_vm11, %v4901_v26 }
 0x7b7   :  { %v4903_v11 = vpop.permute.xlu0 %4902 }
 0x7b8   :  { %8755 = vmatprep.mubr.msk.f32.mxu0 %vm4918_vm11, %v4903_v11 }
 0x7b9   :  { %8756 = vmatmul.mubr.msk.f32.gmra.mxu0 %vm4918_vm11, %v4905_v14 }
 0x7bb   :  { %v4907_v54 = vpop.permute.xlu0 %4906 }
 0x7bc   :  { %8758 = vmatprep.mubr.msk.f32.mxu0 %vm4918_vm11, %v4907_v54 }
 0x7bd   :  { %8759 = vmatmul.mubr.msk.f32.gmra.mxu0 %vm4918_vm11, %v4909_v21 }
 0x7bf   :  { %v4911_v8 = vpop.permute.xlu0 %4910 }
 0x7c0   :  { %8761 = vmatprep.mubr.msk.f32.mxu0 %vm4918_vm11, %v4911_v8 }
 0x7c1   :  { %8762 = vmatmul.mubr.msk.f32.gmra.mxu0 %vm4918_vm11, %v4913_v13 }
 0x7c3   :  { %v4915_v12 = vpop.permute.xlu0 %4914 }
 0x7c4   :  { %8764 = vmatprep.mubr.msk.f32.mxu0 %vm4918_vm11, %v4915_v12 }
 0x7c5   :  { %8765 = vmatmul.mubr.msk.f32.gmra.mxu0 %vm4918_vm11, %v4917_v57 }
 0x849   :  { %v8721_v22 = vpop.f32.mrf.mxu0 }
 0x84a   :  { %v5209_v15 = vadd.f32 %v8721_v22, %v15175_v55 }
 0x84b   :  { %v5049_v40 = vpop.f32.mrf.mxu0 }
 0x84c   :  { %v5208_v25 = vadd.f32 %v5049_v40, %v15176_v56  ;;  %v5241_v5 = vsel %vm1234_vm1, %v5209_v15, -inf }
 0x84d   :  { %v8724_v0 = vpop.f32.mrf.mxu0 }
 0x84e   :  { %v5240_v46 = vsel %vm1234_vm1, %v5208_v25, -inf  ;;  %v5211_v51 = vadd.f32 %v8724_v0, %v15177_v30 }
 0x84f   :  { %v5242_v48 = vmax.f32 %v5240_v46, %v5241_v5  ;;  %v5059_v19 = vpop.f32.mrf.mxu0 }
 0x850   :  { %v5210_v23 = vadd.f32 %v5059_v19, %v15178_v60  ;;  %v5250_v45 = vsel %vm1234_vm1, %v5211_v51, -inf }
 0x851   :  { %v5243_v18 = vrot.slane %v5242_v48, 4  ;;  %v8727_v49 = vpop.f32.mrf.mxu0 }
 0x852   :  { %v5249_v1 = vsel %vm1234_vm1, %v5210_v23, -inf  ;;  %v5213_v20 = vadd.f32 %v8727_v49, %v15180_v3 }
 0x853   :  { %v5244_v61 = vmax.f32 %v5242_v48, %v5243_v18  ;;  %v5251_v2 = vmax.f32 %v5249_v1, %v5250_v45  ;;  %v5069_v4 = vpop.f32.mrf.mxu0 }
 0x854   :  { %v5212_v42 = vadd.f32 %v5069_v4, %v15179_v50  ;;  %v5259_v26 = vsel %vm1234_vm1, %v5213_v20, -inf }
 0x855   :  { %v5245_v41 = vrot.slane %v5244_v61, 2  ;;  %v5252_v17 = vrot.slane %v5251_v2, 4  ;;  %v8730_v18 = vpop.f32.mrf.mxu0 }
 0x856   :  { %v5258_v33 = vsel %vm1234_vm1, %v5212_v42, -inf }
 0x857   :  { %v5246_v59 = vmax.f32 %v5244_v61, %v5245_v41  ;;  %v5253_v38 = vmax.f32 %v5251_v2, %v5252_v17  ;;  %v5260_v14 = vmax.f32 %v5258_v33, %v5259_v26  ;;  %v5079_v61 = vpop.f32.mrf.mxu0  ;;  %v15181_v17 = vld [vmem:[#allocation14_spill] sm:$0xff] }
 0x859   :  { %v5247_v39 = vrot.slane %v5246_v59, 1  ;;  %v5254_v37 = vrot.slane %v5253_v38, 2  ;;  %v5261_v11 = vrot.slane %v5260_v14, 4 }
 0x85b   :  { %v5248_v6 = vmax.f32 %v5246_v59, %v5247_v39  ;;  %v5255_v43 = vmax.f32 %v5253_v38, %v5254_v37  ;;  %v5262_v54 = vmax.f32 %v5260_v14, %v5261_v11  ;;  %v12563_v59 = vadd.f32 %v5079_v61, %v15181_v17  ;;  %v15182_v39 = vld [vmem:[#allocation17_spill] sm:$0xff] }
 0x85c   :  { %v12568_v38 = vadd.f32 %v8730_v18, %v15182_v39  ;;  %v15183_v11 = vmov 0   ;;  %v15187_v18 = vld [vmem:[#allocation16_spill] sm:$0xff] }
 0x85d   :  { %v5384_v52 = vsub.f32 %v5208_v25, %v5248_v6  ;;  %v5385_v63 = vsub.f32 %v5209_v15, %v5248_v6  ;;  %v5256_v58 = vrot.slane %v5255_v43, 1  ;;  %v5263_v8 = vrot.slane %v5262_v54, 2 }
 0x85e   :  { %v5267_v6 = vsel %vm1234_vm1, %v12563_v59, -inf  ;;  %v5268_v3 = vsel %vm1234_vm1, %v12568_v38, -inf }
 0x85f   :  { %v5416_v16 = vmul.f32 1.442695, %v5384_v52  ;;  %v5418_v35 = vmul.f32 1.442695, %v5385_v63  ;;  %v5257_v21 = vmax.f32 %v5255_v43, %v5256_v58  ;;  %v5264_v25 = vmax.f32 %v5262_v54, %v5263_v8 }
 0x860   :  { %v5269_v52 = vmax.f32 %v5267_v6, %v5268_v3 }
 0x861   :  { %9435 = vpow2.f32 %v5416_v16  ;;  %v5386_v13 = vsub.f32 %v5210_v23, %v5257_v21  ;;  %v5387_v57 = vsub.f32 %v5211_v51, %v5257_v21  ;;  %v5265_v30 = vrot.slane %v5264_v25, 1 }
 0x862   :  { %9437 = vpow2.f32 %v5418_v35  ;;  %v5270_v35 = vrot.slane %v5269_v52, 4 }
 0x863   :  { %v5420_v56 = vmul.f32 1.442695, %v5386_v13  ;;  %v5422_v0 = vmul.f32 1.442695, %v5387_v57  ;;  %v5266_v60 = vmax.f32 %v5264_v25, %v5265_v30  ;;  %v15185_v25 = vmov 3  }
 0x864   :  { %v5271_v43 = vmax.f32 %v5269_v52, %v5270_v35  ;;  %v15191_v52 = vmov 7  }
 0x865   :  { %9439 = vpow2.f32 %v5420_v56  ;;  %v5388_v45 = vsub.f32 %v5212_v42, %v5266_v60  ;;  %v5389_v1 = vsub.f32 %v5213_v20, %v5266_v60 }
 0x866   :  { %9441 = vpow2.f32 %v5422_v0  ;;  %v5272_v54 = vrot.slane %v5271_v43, 2  ;;  %v8733_v0 = vpop.f32.mrf.mxu0 }
 0x867   :  { %v5424_v2 = vmul.f32 1.442695, %v5388_v45  ;;  %v5426_v41 = vmul.f32 1.442695, %v5389_v1  ;;  %v15188_v1 = vld [vmem:[#allocation19_spill] sm:$0xff] }
 0x868   :  { %v12614_v61 = vadd.f32 %v8733_v0, %v15188_v1 }
 0x86e   :  { %v9436_v12 = vpop.eup %9435 }
 0x86f   :  { %v9438_v22 = vpop.eup %9437  ;;  %v5480_v55 = vsel %vm1234_vm1, %v9436_v12, 0.0 }
 0x870   :  { %v5481_v15 = vsel %vm1234_vm1, %v9438_v22, 0.0 }
 0x871   :  { %v5482_v40 = vadd.f32 %v5481_v15, %v5480_v55  ;;  %v5273_v55 = vmax.f32 %v5271_v43, %v5272_v54  ;;  %v15192_v43 = vmov 1  }
 0x872   :  { %v12560_v49 = vpop.eup %9439 }
 0x873   :  { %v5483_v5 = vrot.slane %v5482_v40, 4  ;;  %v12565_v4 = vpop.eup %9441  ;;  %v5489_v50 = vsel %vm1234_vm1, %v12560_v49, 0.0  ;;  %v5274_v56 = vrot.slane %v5273_v55, 1 }
 0x874   :  { %v5490_v42 = vsel %vm1234_vm1, %v12565_v4, 0.0 }
 0x875   :  { %v5484_v46 = vadd.f32 %v5483_v5, %v5482_v40  ;;  %v5491_v20 = vadd.f32 %v5490_v42, %v5489_v50  ;;  %v5275_v30 = vmax.f32 %v5273_v55, %v5274_v56  ;;  %v15190_v42 = vmov 6  }
 0x877   :  { %v5485_v48 = vrot.slane %v5484_v46, 2  ;;  %v5492_v16 = vrot.slane %v5491_v20, 4  ;;  %v5391_v45 = vsub.f32 %v12568_v38, %v5275_v30  ;;  %v5277_v38 = vsel %vm1234_vm1, %v12614_v61, -inf }
 0x879   :  { %v5486_v19 = vadd.f32 %v5485_v48, %v5484_v46  ;;  %v5493_v26 = vadd.f32 %v5492_v16, %v5491_v20  ;;  %v5089_v48 = vpop.f32.mrf.mxu0 }
 0x87b   :  { %v5487_v23 = vrot.slane %v5486_v19, 1  ;;  %v5494_v21 = vrot.slane %v5493_v26, 2 }
 0x87d   :  { %v5488_v51 = vadd.f32 %v5487_v23, %v5486_v19  ;;  %v5495_v57 = vadd.f32 %v5494_v21, %v5493_v26  ;;  %v15186_v19 = vmov 4   ;;  %v5390_v23 = vsub.f32 %v12563_v59, %v5275_v30 }
 0x87e   :  { %v5430_v59 = vmul.f32 1.442695, %v5391_v45 }
 0x87f   :  { %9443 = vrcp.f32 %v5488_v51  ;;  %v5496_v15 = vrot.slane %v5495_v57, 1  ;;  %v12610_v51 = vadd.f32 %v5089_v48, %v15187_v18  ;;  %v5428_v17 = vmul.f32 1.442695, %v5390_v23 }
 0x880   :  { %9445 = vpow2.f32 %v5424_v2  ;;  %v15189_v2 = vmov 5  }
 0x881   :  { %9447 = vpow2.f32 %v5426_v41  ;;  %v5497_v5 = vadd.f32 %v5496_v15, %v5495_v57  ;;  %v5276_v39 = vsel %vm1234_vm1, %v12610_v51, -inf  ;;  %v8736_v57 = vpop.f32.mrf.mxu0 }
 0x882   :  { %v5278_v50 = vmax.f32 %v5276_v39, %v5277_v38 }
 0x883   :  { %9449 = vrcp.f32 %v5497_v5  ;;  %v5099_v56 = vpop.f32.mrf.mxu0  ;;  %v15193_v5 = vld [vmem:[#allocation18_spill] sm:$0xff] }
 0x884   :  { %9451 = vpow2.f32 %v5428_v17  ;;  %v5279_v3 = vrot.slane %v5278_v50, 4 }
 0x885   :  { %9453 = vpow2.f32 %v5430_v59 }
 0x886   :  { %v5280_v16 = vmax.f32 %v5278_v50, %v5279_v3 }
 0x888   :  { %v5281_v21 = vrot.slane %v5280_v16, 2 }
 0x88c   :  { %v9444_v63 = vpop.eup %9443 }
 0x88d   :  { %v12578_v37 = vmul.f32 %v9444_v63, %v9436_v12  ;;  %v12580_v33 = vmul.f32 %v9444_v63, %v9438_v22  ;;  %v12584_v14 = vpop.eup %9445  ;;  %v15184_v12 = vmov 2  }
 0x88e   :  { %v12586_v58 = vpop.eup %9447  ;;  %v5498_v13 = vsel %vm1234_vm1, %v12584_v14, 0.0 }
 0x88f   :  { %5708 = vperm.xlu1 %9095, %v12580_v33   ;;  %5705 = vperm.xlu0 %9094, %v12578_v37   ;;  %v5499_v8 = vsel %vm1234_vm1, %v12586_v58, 0.0 }
 0x890   :  { %v5500_v22 = vadd.f32 %v5499_v8, %v5498_v13  ;;  %v9450_v63 = vpop.eup %9449 }
 0x891   :  { %v12633_v35 = vmul.f32 %v9450_v63, %v12560_v49  ;;  %v12636_v26 = vmul.f32 %v9450_v63, %v12565_v4  ;;  %v5282_v49 = vmax.f32 %v5280_v16, %v5281_v21 }
 0x892   :  { %v5501_v40 = vrot.slane %v5500_v22, 4 }
 0x893   :  { %9096 = vset.pattern.permute.xlu1 %v15183_v11  ;;  %9097 = vset.pattern.permute.xlu0 %v15183_v11  ;;  %v5283_v13 = vrot.slane %v5282_v49, 1 }
 0x894   :  { %6044 = vperm.xlu1 %9096, %v12578_v37   ;;  %6047 = vperm.xlu0 %9097, %v12580_v33   ;;  %v5502_v46 = vadd.f32 %v5501_v40, %v5500_v22 }
 0x895   :  { %v5284_v55 = vmax.f32 %v5282_v49, %v5283_v13  ;;  %v8739_v13 = vpop.f32.mrf.mxu0 }
 0x896   :  { %v5503_v60 = vrot.slane %v5502_v46, 2 }
 0x897   :  { %v5392_v0 = vsub.f32 %v12610_v51, %v5284_v55  ;;  %v5393_v48 = vsub.f32 %v12614_v61, %v5284_v55 }
 0x898   :  { %9099 = vset.pattern.permute.xlu1 %v15184_v12  ;;  %9098 = vset.pattern.permute.xlu0 %v15184_v12  ;;  %v5504_v41 = vadd.f32 %v5503_v60, %v5502_v46  ;;  %v12666_v46 = vadd.f32 %v5099_v56, %v15193_v5  ;;  %v15194_v60 = vld [vmem:[#allocation21_spill] sm:$0xff]  ;;  %v5109_v56 = vpop.f32.mrf.mxu0 }
 0x899   :  { %6380 = vperm.xlu1 %9099, %v12580_v33   ;;  %6377 = vperm.xlu0 %9098, %v12578_v37   ;;  %v12674_v23 = vadd.f32 %v8736_v57, %v15194_v60  ;;  %v5432_v18 = vmul.f32 1.442695, %v5392_v0  ;;  %v5434_v1 = vmul.f32 1.442695, %v5393_v48  ;;  %v15195_v48 = vld [vmem:[#allocation20_spill] sm:$0xff]  ;;  %v15196_v60 = vld [vmem:[#allocation23_spill] sm:$0xff] }
 0x89a   :  { %v5505_v6 = vrot.slane %v5504_v41, 1  ;;  %v5285_v51 = vsel %vm1234_vm1, %v12666_v46, -inf }
 0x89b   :  { %v5286_v61 = vsel %vm1234_vm1, %v12674_v23, -inf }
 0x89c   :  { %v5506_v20 = vadd.f32 %v5505_v6, %v5504_v41 }
 0x89d   :  { %9100 = vset.pattern.permute.xlu1 %v15185_v25  ;;  %9101 = vset.pattern.permute.xlu0 %v15185_v25 }
 0x89e   :  { %6718 = vperm.xlu1 %9100, %v12578_v37   ;;  %6721 = vperm.xlu0 %9101, %v12580_v33   ;;  %9455 = vrcp.f32 %v5506_v20 }
 0x89f   :  { %9457 = vpow2.f32 %v5432_v18 }
 0x8a0   :  { %9459 = vpow2.f32 %v5434_v1 }
 0x8a2   :  { %9103 = vset.pattern.permute.xlu1 %v15186_v19  ;;  %9102 = vset.pattern.permute.xlu0 %v15186_v19 }
 0x8a3   :  { %7062 = vperm.xlu1 %9103, %v12580_v33   ;;  %7059 = vperm.xlu0 %9102, %v12578_v37  }
 0x8a7   :  { %9104 = vset.pattern.permute.xlu1 %v15189_v2  ;;  %9105 = vset.pattern.permute.xlu0 %v15189_v2 }
 0x8a8   :  { %7400 = vperm.xlu1 %9104, %v12578_v37   ;;  %7403 = vperm.xlu0 %9105, %v12580_v33  }
 0x8ac   :  { %9106 = vset.pattern.permute.xlu1 %v15190_v42  ;;  %9107 = vset.pattern.permute.xlu0 %v15190_v42 }
 0x8ad   :  { %7741 = vperm.xlu1 %9106, %v12578_v37   ;;  %7744 = vperm.xlu0 %9107, %v12580_v33  }
 0x8b1   :  { %9108 = vset.pattern.permute.xlu1 %v15191_v52  ;;  %9109 = vset.pattern.permute.xlu0 %v15191_v52 }
 0x8b2   :  { %8082 = vperm.xlu1 %9108, %v12578_v37   ;;  %8085 = vperm.xlu0 %9109, %v12580_v33   ;;  %v12642_v37 = vpop.eup %9451 }
 0x8b3   :  { %v12644_v33 = vpop.eup %9453  ;;  %v5507_v4 = vsel %vm1234_vm1, %v12642_v37, 0.0 }
 0x8b4   :  { %v5508_v54 = vsel %vm1234_vm1, %v12644_v33, 0.0  ;;  %v9456_v22 = vpop.eup %9455 }
 0x8b5   :  { %v5509_v8 = vadd.f32 %v5508_v54, %v5507_v4  ;;  %v12659_v15 = vmul.f32 %v9456_v22, %v12586_v58  ;;  %v12671_v58 = vmul.f32 %v9456_v22, %v12584_v14  ;;  %v5287_v14 = vmax.f32 %v5285_v51, %v5286_v61  ;;  %v12695_v6 = vpop.eup %9457 }
 0x8b6   :  { %9110 = vset.pattern.permute.xlu1 %v15192_v43  ;;  %9111 = vset.pattern.permute.xlu0 %v15192_v43  ;;  %v12697_v3 = vpop.eup %9459  ;;  %v5516_v63 = vsel %vm1234_vm1, %v12695_v6, 0.0 }
 0x8b7   :  { %5711 = vperm.xlu1 %9110, %v12633_v35   ;;  %5714 = vperm.xlu0 %9111, %v12636_v26   ;;  %v5510_v40 = vrot.slane %v5509_v8, 4  ;;  %v5288_v17 = vrot.slane %v5287_v14, 4  ;;  %v5517_v16 = vsel %vm1234_vm1, %v12697_v3, 0.0 }
 0x8b8   :  { %v5518_v49 = vadd.f32 %v5517_v16, %v5516_v63 }
 0x8b9   :  { %v5511_v30 = vadd.f32 %v5510_v40, %v5509_v8  ;;  %v5289_v59 = vmax.f32 %v5287_v14, %v5288_v17 }
 0x8ba   :  { %v5519_v54 = vrot.slane %v5518_v49, 4 }
 0x8bb   :  { %9112 = vset.pattern.permute.xlu1 %v15183_v11  ;;  %9114 = vset.pattern.permute.xlu0 %v15184_v12  ;;  %v5512_v45 = vrot.slane %v5511_v30, 2  ;;  %v5290_v50 = vrot.slane %v5289_v59, 2 }
 0x8bc   :  { %6050 = vperm.xlu1 %9112, %v12633_v35   ;;  %6386 = vperm.xlu0 %9114, %v12636_v26   ;;  %v5520_v22 = vadd.f32 %v5519_v54, %v5518_v49 }
 0x8bd   :  { %v5513_v41 = vadd.f32 %v5512_v45, %v5511_v30  ;;  %v5291_v20 = vmax.f32 %v5289_v59, %v5290_v50 }
 0x8be   :  { %v5521_v5 = vrot.slane %v5520_v22, 2 }
 0x8bf   :  { %v5514_v39 = vrot.slane %v5513_v41, 1  ;;  %v5292_v21 = vrot.slane %v5291_v20, 1 }
 0x8c0   :  { %6053 = vperm.xlu1 %9112, %v12636_v26   ;;  %9117 = vset.pattern.permute.xlu0 %v15186_v19 }
 0x8c1   :  { %7068 = vperm.xlu0 %9117, %v12636_v26   ;;  %v5515_v38 = vadd.f32 %v5514_v39, %v5513_v41  ;;  %v5293_v4 = vmax.f32 %v5291_v20, %v5292_v21 }
 0x8c3   :  { %9461 = vrcp.f32 %v5515_v38  ;;  %v5394_v57 = vsub.f32 %v12666_v46, %v5293_v4  ;;  %v5395_v55 = vsub.f32 %v12674_v23, %v5293_v4  ;;  %v12729_v23 = vadd.f32 %v8739_v13, %v15196_v60 }
 0x8c4   :  { %9113 = vset.pattern.permute.xlu1 %v15184_v12 }
 0x8c5   :  { %6383 = vperm.xlu1 %9113, %v12633_v35   ;;  %9122 = vset.pattern.permute.xlu0 %v15192_v43  ;;  %v5436_v0 = vmul.f32 1.442695, %v5394_v57  ;;  %v5438_v30 = vmul.f32 1.442695, %v5395_v55 }
 0x8c6   :  { %5720 = vperm.xlu0 %9122, %v12659_v15  }
 0x8c7   :  { %9463 = vpow2.f32 %v5436_v0 }
 0x8c8   :  { %9465 = vpow2.f32 %v5438_v30 }
 0x8c9   :  { %9115 = vset.pattern.permute.xlu1 %v15185_v25 }
 0x8ca   :  { %6724 = vperm.xlu1 %9115, %v12633_v35   ;;  %9123 = vset.pattern.permute.xlu0 %v15183_v11 }
 0x8cb   :  { %6056 = vperm.xlu0 %9123, %v12671_v58  }
 0x8ce   :  { %6727 = vperm.xlu1 %9115, %v12636_v26  }
 0x8cf   :  { %9126 = vset.pattern.permute.xlu0 %v15184_v12 }
 0x8d0   :  { %6392 = vperm.xlu0 %9126, %v12659_v15   ;;  %v9462_v8 = vpop.eup %9461 }
 0x8d1   :  { %v12717_v40 = vmul.f32 %v9462_v8, %v12644_v33  ;;  %v12726_v46 = vmul.f32 %v9462_v8, %v12642_v37  ;;  %v5295_v37 = vsel %vm1234_vm1, %v12729_v23, -inf }
 0x8d2   :  { %9116 = vset.pattern.permute.xlu1 %v15186_v19 }
 0x8d3   :  { %7065 = vperm.xlu1 %9116, %v12633_v35  }
 0x8d4   :  { %9127 = vset.pattern.permute.xlu0 %v15185_v25  ;;  %v12747_v14 = vpop.eup %9463 }
 0x8d5   :  { %6730 = vperm.xlu0 %9127, %v12671_v58   ;;  %v12749_v41 = vpop.eup %9465  ;;  %v5525_v39 = vsel %vm1234_vm1, %v12747_v14, 0.0 }
 0x8d6   :  { %v5526_v59 = vsel %vm1234_vm1, %v12749_v41, 0.0 }
 0x8d7   :  { %9118 = vset.pattern.permute.xlu1 %v15189_v2  ;;  %v5527_v38 = vadd.f32 %v5526_v59, %v5525_v39 }
 0x8d8   :  { %7406 = vperm.xlu1 %9118, %v12633_v35  }
 0x8d9   :  { %9130 = vset.pattern.permute.xlu0 %v15186_v19  ;;  %v5528_v16 = vrot.slane %v5527_v38, 4 }
 0x8da   :  { %7074 = vperm.xlu0 %9130, %v12659_v15  }
 0x8db   :  { %v5529_v4 = vadd.f32 %v5528_v16, %v5527_v38 }
 0x8dc   :  { %7409 = vperm.xlu1 %9118, %v12636_v26  }
 0x8dd   :  { %v5530_v55 = vrot.slane %v5529_v4, 2 }
 0x8de   :  { %9131 = vset.pattern.permute.xlu0 %v15189_v2 }
 0x8df   :  { %7412 = vperm.xlu0 %9131, %v12671_v58  }
 0x8e0   :  { %9119 = vset.pattern.permute.xlu1 %v15190_v42 }
 0x8e1   :  { %7747 = vperm.xlu1 %9119, %v12633_v35  }
 0x8e3   :  { %9133 = vset.pattern.permute.xlu0 %v15190_v42 }
 0x8e4   :  { %7753 = vperm.xlu0 %9133, %v12671_v58  }
 0x8e5   :  { %7750 = vperm.xlu1 %9119, %v12636_v26  }
 0x8e8   :  { %9136 = vset.pattern.permute.xlu0 %v15191_v52 }
 0x8e9   :  { %9120 = vset.pattern.permute.xlu1 %v15191_v52  ;;  %8097 = vperm.xlu0 %9136, %v12659_v15  }
 0x8ea   :  { %8088 = vperm.xlu1 %9120, %v12633_v35   ;;  %v12723_v35 = vadd.f32 %v5109_v56, %v15195_v48 }
 0x8ec   :  { %v5294_v33 = vsel %vm1234_vm1, %v12723_v35, -inf }
 0x8ed   :  { %9138 = vset.pattern.permute.xlu0 %v15192_v43  ;;  %v5296_v18 = vmax.f32 %v5294_v33, %v5295_v37 }
 0x8ee   :  { %8091 = vperm.xlu1 %9120, %v12636_v26   ;;  %5726 = vperm.xlu0 %9138, %v12717_v40   ;;  %v5522_v26 = vadd.f32 %v5521_v5, %v5520_v22  ;;  %v8742_v22 = vpop.f32.mrf.mxu0 }
 0x8ef   :  { %v5297_v45 = vrot.slane %v5296_v18, 4 }
 0x8f0   :  { %v5523_v51 = vrot.slane %v5522_v26, 1 }
 0x8f1   :  { %v5298_v61 = vmax.f32 %v5296_v18, %v5297_v45 }
 0x8f2   :  { %9121 = vset.pattern.permute.xlu1 %v15192_v43  ;;  %9139 = vset.pattern.permute.xlu0 %v15183_v11  ;;  %v5524_v1 = vadd.f32 %v5523_v51, %v5522_v26 }
 0x8f3   :  { %5717 = vperm.xlu1 %9121, %v12671_v58   ;;  %6062 = vperm.xlu0 %9139, %v12726_v46   ;;  %v5299_v17 = vrot.slane %v5298_v61, 2 }
 0x8f4   :  { %9467 = vrcp.f32 %v5524_v1 }
 0x8f5   :  { %v5300_v50 = vmax.f32 %v5298_v61, %v5299_v17 }
 0x8f7   :  { %9124 = vset.pattern.permute.xlu1 %v15183_v11  ;;  %9142 = vset.pattern.permute.xlu0 %v15184_v12  ;;  %v5301_v21 = vrot.slane %v5300_v50, 1 }
 0x8f8   :  { %6059 = vperm.xlu1 %9124, %v12659_v15   ;;  %6398 = vperm.xlu0 %9142, %v12717_v40  }
 0x8f9   :  { %v5302_v54 = vmax.f32 %v5300_v50, %v5301_v21 }
 0x8fb   :  { %v5396_v56 = vsub.f32 %v12723_v35, %v5302_v54  ;;  %v5397_v0 = vsub.f32 %v12729_v23, %v5302_v54  ;;  %v15201_v23 = vld [vmem:[#allocation22_spill] sm:$0xff] }
 0x8fc   :  { %9125 = vset.pattern.permute.xlu1 %v15184_v12  ;;  %9143 = vset.pattern.permute.xlu0 %v15185_v25 }
 0x8fd   :  { %6389 = vperm.xlu1 %9125, %v12671_v58   ;;  %6736 = vperm.xlu0 %9143, %v12726_v46   ;;  %v5440_v60 = vmul.f32 1.442695, %v5396_v56  ;;  %v5442_v35 = vmul.f32 1.442695, %v5397_v0 }
 0x8ff   :  { %9469 = vpow2.f32 %v5440_v60 }
 0x900   :  { %9471 = vpow2.f32 %v5442_v35 }
 0x901   :  { %9128 = vset.pattern.permute.xlu1 %v15185_v25  ;;  %9146 = vset.pattern.permute.xlu0 %v15186_v19  ;;  %v9468_v49 = vpop.eup %9467 }
 0x902   :  { %6733 = vperm.xlu1 %9128, %v12659_v15   ;;  %7080 = vperm.xlu0 %9146, %v12717_v40   ;;  %v12776_v57 = vmul.f32 %v9468_v49, %v12697_v3  ;;  %v12787_v30 = vmul.f32 %v9468_v49, %v12695_v6  ;;  %v5119_v3 = vpop.f32.mrf.mxu0  ;;  %v15203_v6 = vld [vmem:[#allocation25_spill] sm:$0xff] }
 0x903   :  { %v12796_v26 = vadd.f32 %v5119_v3, %v15201_v23  ;;  %v12801_v37 = vadd.f32 %v8742_v22, %v15203_v6 }
 0x905   :  { %v5304_v45 = vsel %vm1234_vm1, %v12801_v37, -inf }
 0x906   :  { %9129 = vset.pattern.permute.xlu1 %v15186_v19  ;;  %9147 = vset.pattern.permute.xlu0 %v15189_v2 }
 0x907   :  { %7071 = vperm.xlu1 %9129, %v12671_v58   ;;  %7418 = vperm.xlu0 %9147, %v12726_v46  }
 0x90a   :  { %v12763_v20 = vpop.permute.xlu1 %5708  ;;  %v12765_v63 = vpop.permute.xlu0 %5705 }
 0x90b   :  { %9132 = vset.pattern.permute.xlu1 %v15189_v2  ;;  %9151 = vset.pattern.permute.xlu0 %v15191_v52 }
 0x90c   :  { %7415 = vperm.xlu1 %9132, %v12659_v15   ;;  %8103 = vperm.xlu0 %9151, %v12717_v40   ;;  %v12829_v21 = vpop.eup %9469 }
 0x90f   :  { %v12771_v13 = vpop.permute.xlu1 %6044  ;;  %v12773_v8 = vpop.permute.xlu0 %6047 }
 0x910   :  { %15197 = vst [vmem:[#allocation68_spill] sm:$0xff] %v12771_v13  ;;  %15198 = vst [vmem:[#allocation83_spill] sm:$0xff] %v12773_v8  ;;  %9134 = vset.pattern.permute.xlu1 %v15190_v42  ;;  %9153 = vset.pattern.permute.xlu0 %v15192_v43 }
 0x911   :  { %7756 = vperm.xlu1 %9134, %v12659_v15   ;;  %5732 = vperm.xlu0 %9153, %v12776_v57   ;;  %v5531_v15 = vadd.f32 %v5530_v55, %v5529_v4  ;;  %v12833_v4 = vpop.eup %9471  ;;  %v5534_v55 = vsel %vm1234_vm1, %v12829_v21, 0.0 }
 0x912   :  { %v5535_v56 = vsel %vm1234_vm1, %v12833_v4, 0.0 }
 0x913   :  { %v5532_v51 = vrot.slane %v5531_v15, 1 }
 0x914   :  { %v12784_v5 = vpop.permute.xlu1 %6380  ;;  %v12789_v48 = vpop.permute.xlu0 %6377 }
 0x915   :  { %15199 = vst [vmem:[#allocation70_spill] sm:$0xff] %v12784_v5  ;;  %15200 = vst [vmem:[#allocation85_spill] sm:$0xff] %v12789_v48  ;;  %9135 = vset.pattern.permute.xlu1 %v15191_v52  ;;  %9154 = vset.pattern.permute.xlu0 %v15183_v11  ;;  %v5533_v61 = vadd.f32 %v5532_v51, %v5531_v15  ;;  %v5536_v15 = vadd.f32 %v5535_v56, %v5534_v55 }
 0x916   :  { %8094 = vperm.xlu1 %9135, %v12671_v58   ;;  %6068 = vperm.xlu0 %9154, %v12787_v30   ;;  %v5303_v58 = vsel %vm1234_vm1, %v12796_v26, -inf }
 0x917   :  { %v5305_v17 = vmax.f32 %v5303_v58, %v5304_v45  ;;  %9473 = vrcp.f32 %v5533_v61  ;;  %v5537_v51 = vrot.slane %v5536_v15, 4 }
 0x919   :  { %v12798_v33 = vpop.permute.xlu1 %6718  ;;  %v12803_v18 = vpop.permute.xlu0 %6721  ;;  %v5306_v59 = vrot.slane %v5305_v17, 4  ;;  %v5538_v61 = vadd.f32 %v5537_v51, %v5536_v15 }
 0x91a   :  { %15202 = vst [vmem:[#allocation72_spill] sm:$0xff] %v12798_v33  ;;  %15204 = vst [vmem:[#allocation87_spill] sm:$0xff] %v12803_v18  ;;  %9137 = vset.pattern.permute.xlu1 %v15192_v43  ;;  %9157 = vset.pattern.permute.xlu0 %v15184_v12 }
 0x91b   :  { %5723 = vperm.xlu1 %9137, %v12726_v46   ;;  %6404 = vperm.xlu0 %9157, %v12776_v57   ;;  %v5307_v16 = vmax.f32 %v5305_v17, %v5306_v59  ;;  %v5539_v55 = vrot.slane %v5538_v61, 2 }
 0x91d   :  { %v5308_v22 = vrot.slane %v5307_v16, 2  ;;  %v5540_v51 = vadd.f32 %v5539_v55, %v5538_v61 }
 0x91e   :  { %v12813_v1 = vpop.permute.xlu1 %7062  ;;  %v12815_v39 = vpop.permute.xlu0 %7059 }
 0x91f   :  { %15205 = vst [vmem:[#allocation74_spill] sm:$0xff] %v12813_v1  ;;  %15206 = vst [vmem:[#allocation89_spill] sm:$0xff] %v12815_v39  ;;  %9140 = vset.pattern.permute.xlu1 %v15183_v11  ;;  %9158 = vset.pattern.permute.xlu0 %v15185_v25  ;;  %v5309_v60 = vmax.f32 %v5307_v16, %v5308_v22  ;;  %v8745_v22 = vpop.f32.mrf.mxu0 }
 0x920   :  { %6065 = vperm.xlu1 %9140, %v12717_v40   ;;  %6742 = vperm.xlu0 %9158, %v12787_v30  }
 0x921   :  { %v5310_v58 = vrot.slane %v5309_v60, 1 }
 0x923   :  { %v12821_v38 = vpop.permute.xlu1 %7400  ;;  %v12823_v50 = vpop.permute.xlu0 %7403  ;;  %v5311_v17 = vmax.f32 %v5309_v60, %v5310_v58 }
 0x924   :  { %15207 = vst [vmem:[#allocation76_spill] sm:$0xff] %v12821_v38  ;;  %15208 = vst [vmem:[#allocation91_spill] sm:$0xff] %v12823_v50  ;;  %9141 = vset.pattern.permute.xlu1 %v15184_v12  ;;  %9161 = vset.pattern.permute.xlu0 %v15186_v19  ;;  %v9474_v35 = vpop.eup %9473 }
 0x925   :  { %6395 = vperm.xlu1 %9141, %v12726_v46   ;;  %7086 = vperm.xlu0 %9161, %v12776_v57   ;;  %v12856_v6 = vmul.f32 %v9474_v35, %v12749_v41  ;;  %v12867_v16 = vmul.f32 %v9474_v35, %v12747_v14  ;;  %v5398_v56 = vsub.f32 %v12796_v26, %v5311_v17  ;;  %v5129_v14 = vpop.f32.mrf.mxu0 }
 0x926   :  { %v5399_v60 = vsub.f32 %v12801_v37, %v5311_v17  ;;  %v12885_v53 = vadd.f32 %v5129_v14, %v15217_v28  ;;  %v15219_v37 = vld [vmem:[#allocation27_spill] sm:$0xff] }
 0x927   :  { %v5444_v58 = vmul.f32 1.442695, %v5398_v56  ;;  %v12891_v17 = vadd.f32 %v8745_v22, %v15219_v37 }
 0x928   :  { %v12831_v49 = vpop.permute.xlu1 %7741  ;;  %v12835_v54 = vpop.permute.xlu0 %7744  ;;  %v5446_v44 = vmul.f32 1.442695, %v5399_v60  ;;  %v5312_v28 = vsel %vm1234_vm1, %v12885_v53, -inf }
 0x929   :  { %15209 = vst [vmem:[#allocation78_spill] sm:$0xff] %v12831_v49  ;;  %15210 = vst [vmem:[#allocation93_spill] sm:$0xff] %v12835_v54  ;;  %9144 = vset.pattern.permute.xlu1 %v15185_v25  ;;  %9162 = vset.pattern.permute.xlu0 %v15189_v2  ;;  %9475 = vpow2.f32 %v5444_v58  ;;  %v5313_v22 = vsel %vm1234_vm1, %v12891_v17, -inf }
 0x92a   :  { %6739 = vperm.xlu1 %9144, %v12717_v40   ;;  %7424 = vperm.xlu0 %9162, %v12787_v30   ;;  %9477 = vpow2.f32 %v5446_v44  ;;  %v5314_v56 = vmax.f32 %v5312_v28, %v5313_v22 }
 0x92c   :  { %v5315_v60 = vrot.slane %v5314_v56, 4 }
 0x92d   :  { %v12845_v0 = vpop.permute.xlu1 %8082  ;;  %v12847_v3 = vpop.permute.xlu0 %8085 }
 0x92e   :  { %15211 = vst [vmem:[#allocation80_spill] sm:$0xff] %v12845_v0  ;;  %15212 = vst [vmem:[#allocation95_spill] sm:$0xff] %v12847_v3  ;;  %9145 = vset.pattern.permute.xlu1 %v15186_v19  ;;  %9166 = vset.pattern.permute.xlu0 %v15191_v52  ;;  %v5316_v58 = vmax.f32 %v5314_v56, %v5315_v60 }
 0x92f   :  { %7077 = vperm.xlu1 %9145, %v12726_v46   ;;  %8109 = vperm.xlu0 %9166, %v12776_v57  }
 0x930   :  { %v5317_v22 = vrot.slane %v5316_v58, 2 }
 0x932   :  { %v12853_v23 = vpop.permute.xlu1 %5711  ;;  %v12858_v45 = vpop.permute.xlu0 %5714  ;;  %v5318_v47 = vmax.f32 %v5316_v58, %v5317_v22 }
 0x933   :  { %9148 = vset.pattern.permute.xlu1 %v15189_v2  ;;  %9168 = vset.pattern.permute.xlu0 %v15192_v43 }
 0x934   :  { %7421 = vperm.xlu1 %9148, %v12717_v40   ;;  %5738 = vperm.xlu0 %9168, %v12856_v6   ;;  %v5319_v27 = vrot.slane %v5318_v47, 1 }
 0x936   :  { %v12920_v37 = vpop.eup %9475 }
 0x937   :  { %v12864_v59 = vpop.permute.xlu1 %6050  ;;  %v12869_v41 = vpop.permute.xlu0 %6386  ;;  %v5543_v56 = vsel %vm1234_vm1, %v12920_v37, 0.0 }
 0x938   :  { %15213 = vst [vmem:[#allocation82_spill] sm:$0xff] %v12864_v59  ;;  %15214 = vst [vmem:[#allocation97_spill] sm:$0xff] %v12869_v41  ;;  %9149 = vset.pattern.permute.xlu1 %v15190_v42  ;;  %9169 = vset.pattern.permute.xlu0 %v15183_v11 }
 0x939   :  { %7759 = vperm.xlu1 %9149, %v12726_v46   ;;  %6074 = vperm.xlu0 %9169, %v12867_v16  }
 0x93b   :  { %v12876_v15 = vpop.permute.xlu1 %6053 }
 0x93c   :  { %15215 = vst [vmem:[#allocation84_spill] sm:$0xff] %v12876_v15  ;;  %v12879_v35 = vpop.permute.xlu0 %7068 }
 0x93d   :  { %15216 = vst [vmem:[#allocation99_spill] sm:$0xff] %v12879_v35  ;;  %7762 = vperm.xlu1 %9149, %v12717_v40   ;;  %9172 = vset.pattern.permute.xlu0 %v15184_v12  ;;  %v5541_v40 = vrot.slane %v5540_v51, 1 }
 0x93e   :  { %6410 = vperm.xlu0 %9172, %v12856_v6  }
 0x93f   :  { %v5542_v55 = vadd.f32 %v5541_v40, %v5540_v51  ;;  %v12923_v40 = vpop.eup %9477 }
 0x940   :  { %v12887_v26 = vpop.permute.xlu1 %6383  ;;  %v5544_v60 = vsel %vm1234_vm1, %v12923_v40, 0.0 }
 0x941   :  { %15218 = vst [vmem:[#allocation86_spill] sm:$0xff] %v12887_v26  ;;  %9150 = vset.pattern.permute.xlu1 %v15191_v52  ;;  %v12893_v3 = vpop.permute.xlu0 %5720  ;;  %9479 = vrcp.f32 %v5542_v55  ;;  %v5545_v32 = vadd.f32 %v5544_v60, %v5543_v56  ;;  %v5320_v56 = vmax.f32 %v5318_v47, %v5319_v27  ;;  %v15233_v27 = vld [vmem:[#allocation26_spill] sm:$0xff] }
 0x942   :  { %8100 = vperm.xlu1 %9150, %v12726_v46   ;;  %9173 = vset.pattern.permute.xlu0 %v15185_v25 }
 0x943   :  { %6748 = vperm.xlu0 %9173, %v12867_v16   ;;  %v5546_v36 = vrot.slane %v5545_v32, 4  ;;  %v5401_v47 = vsub.f32 %v12891_v17, %v5320_v56 }
 0x945   :  { %v12900_v61 = vpop.permute.xlu1 %6724  ;;  %v5547_v22 = vadd.f32 %v5546_v36, %v5545_v32  ;;  %v5400_v32 = vsub.f32 %v12885_v53, %v5320_v56  ;;  %v5450_v17 = vmul.f32 1.442695, %v5401_v47 }
 0x946   :  { %15220 = vst [vmem:[#allocation101_spill] sm:$0xff] %v12900_v61  ;;  %9152 = vset.pattern.permute.xlu1 %v15192_v43  ;;  %v12905_v46 = vpop.permute.xlu0 %6056  ;;  %v15263_v61 = vld [vmem:[#allocation30_spill] sm:$0xff] }
 0x947   :  { %15221 = vst [vmem:[#allocation88_spill] sm:$0xff] %v12905_v46  ;;  %5729 = vperm.xlu1 %9152, %v12787_v30   ;;  %9176 = vset.pattern.permute.xlu0 %v15186_v19  ;;  %v5448_v53 = vmul.f32 1.442695, %v5400_v32 }
 0x948   :  { %7092 = vperm.xlu0 %9176, %v12856_v6  }
 0x949   :  { %v12910_v44 = vpop.permute.xlu1 %6727  ;;  %9481 = vpow2.f32 %v5448_v53 }
 0x94a   :  { %15222 = vst [vmem:[#allocation103_spill] sm:$0xff] %v12910_v44  ;;  %9483 = vpow2.f32 %v5450_v17 }
 0x94b   :  { %9155 = vset.pattern.permute.xlu1 %v15183_v11  ;;  %v12913_v14 = vpop.permute.xlu0 %6392 }
 0x94c   :  { %15223 = vst [vmem:[#allocation90_spill] sm:$0xff] %v12913_v14  ;;  %6071 = vperm.xlu1 %9155, %v12776_v57   ;;  %9177 = vset.pattern.permute.xlu0 %v15189_v2 }
 0x94d   :  { %7430 = vperm.xlu0 %9177, %v12867_v16  }
 0x94e   :  { %v12918_v51 = vpop.permute.xlu1 %7065  ;;  %v9480_v34 = vpop.eup %9479 }
 0x94f   :  { %15224 = vst [vmem:[#allocation105_spill] sm:$0xff] %v12918_v51  ;;  %v12946_v24 = vmul.f32 %v9480_v34, %v12833_v4  ;;  %v12957_v4 = vmul.f32 %v9480_v34, %v12829_v21  ;;  %v15234_v34 = vld [vmem:[#allocation29_spill] sm:$0xff] }
 0x950   :  { %9156 = vset.pattern.permute.xlu1 %v15184_v12  ;;  %v12925_v28 = vpop.permute.xlu0 %6730 }
 0x951   :  { %15225 = vst [vmem:[#allocation92_spill] sm:$0xff] %v12925_v28  ;;  %6401 = vperm.xlu1 %9156, %v12787_v30   ;;  %9180 = vset.pattern.permute.xlu0 %v15190_v42  ;;  %v8748_v28 = vpop.f32.mrf.mxu0 }
 0x952   :  { %7774 = vperm.xlu0 %9180, %v12856_v6   ;;  %v12973_v21 = vadd.f32 %v8748_v28, %v15234_v34 }
 0x953   :  { %v12930_v55 = vpop.permute.xlu1 %7406  ;;  %v5139_v60 = vpop.f32.mrf.mxu0 }
 0x954   :  { %15226 = vst [vmem:[#allocation107_spill] sm:$0xff] %v12930_v55  ;;  %v12968_v36 = vadd.f32 %v5139_v60, %v15233_v27  ;;  %v5322_v28 = vsel %vm1234_vm1, %v12973_v21, -inf }
 0x955   :  { %9159 = vset.pattern.permute.xlu1 %v15185_v25  ;;  %v12937_v7 = vpop.permute.xlu0 %7074 }
 0x956   :  { %15227 = vst [vmem:[#allocation94_spill] sm:$0xff] %v12937_v7  ;;  %6745 = vperm.xlu1 %9159, %v12776_v57   ;;  %9182 = vset.pattern.permute.xlu0 %v15191_v52  ;;  %v5321_v60 = vsel %vm1234_vm1, %v12968_v36, -inf }
 0x957   :  { %v12941_v29 = vpop.permute.xlu1 %7409  ;;  %8115 = vperm.xlu0 %9182, %v12856_v6   ;;  %v5323_v27 = vmax.f32 %v5321_v60, %v5322_v28 }
 0x958   :  { %15228 = vst [vmem:[#allocation109_spill] sm:$0xff] %v12941_v29 }
 0x95a   :  { %9160 = vset.pattern.permute.xlu1 %v15186_v19  ;;  %v12948_v7 = vpop.permute.xlu0 %7412 }
 0x95b   :  { %15229 = vst [vmem:[#allocation96_spill] sm:$0xff] %v12948_v7  ;;  %7083 = vperm.xlu1 %9160, %v12787_v30   ;;  %9184 = vset.pattern.permute.xlu0 %v15192_v43 }
 0x95c   :  { %v12952_v58 = vpop.permute.xlu1 %7747  ;;  %5744 = vperm.xlu0 %9184, %v12946_v24  }
 0x95d   :  { %15230 = vst [vmem:[#allocation111_spill] sm:$0xff] %v12952_v58  ;;  %v5548_v58 = vrot.slane %v5547_v22, 2 }
 0x95f   :  { %9163 = vset.pattern.permute.xlu1 %v15189_v2  ;;  %v12959_v14 = vpop.permute.xlu0 %7753  ;;  %v5549_v55 = vadd.f32 %v5548_v58, %v5547_v22  ;;  %v5324_v58 = vrot.slane %v5323_v27, 4 }
 0x960   :  { %15231 = vst [vmem:[#allocation98_spill] sm:$0xff] %v12959_v14  ;;  %7427 = vperm.xlu1 %9163, %v12776_v57   ;;  %v12962_v7 = vpop.permute.xlu1 %7750  ;;  %9185 = vset.pattern.permute.xlu0 %v15183_v11 }
 0x961   :  { %15232 = vst [vmem:[#allocation113_spill] sm:$0xff] %v12962_v7  ;;  %6080 = vperm.xlu0 %9185, %v12957_v4   ;;  %v5325_v47 = vmax.f32 %v5323_v27, %v5324_v58 }
 0x964   :  { %9164 = vset.pattern.permute.xlu1 %v15190_v42  ;;  %v12975_v14 = vpop.permute.xlu0 %8097 }
 0x965   :  { %15235 = vst [vmem:[#allocation100_spill] sm:$0xff] %v12975_v14  ;;  %7765 = vperm.xlu1 %9164, %v12787_v30   ;;  %v12978_v46 = vpop.permute.xlu1 %8088  ;;  %9188 = vset.pattern.permute.xlu0 %v15184_v12  ;;  %v5550_v14 = vrot.slane %v5549_v55, 1 }
 0x966   :  { %15236 = vst [vmem:[#allocation115_spill] sm:$0xff] %v12978_v46  ;;  %6416 = vperm.xlu0 %9188, %v12946_v24  }
 0x969   :  { %7768 = vperm.xlu1 %9164, %v12776_v57   ;;  %v12987_v56 = vpop.permute.xlu1 %8091  ;;  %v12989_v34 = vpop.permute.xlu0 %5726  ;;  %v5551_v57 = vadd.f32 %v5550_v14, %v5549_v55 }
 0x96a   :  { %15237 = vst [vmem:[#allocation102_spill] sm:$0xff] %v12987_v56  ;;  %9189 = vset.pattern.permute.xlu0 %v15185_v25  ;;  %v13010_v14 = vpop.eup %9481 }
 0x96b   :  { %6754 = vperm.xlu0 %9189, %v12957_v4   ;;  %9485 = vrcp.f32 %v5551_v57  ;;  %v13015_v17 = vpop.eup %9483  ;;  %v5552_v58 = vsel %vm1234_vm1, %v13010_v14, 0.0 }
 0x96c   :  { %v5553_v57 = vsel %vm1234_vm1, %v13015_v17, 0.0 }
 0x96d   :  { %9165 = vset.pattern.permute.xlu1 %v15191_v52 }
 0x96e   :  { %8106 = vperm.xlu1 %9165, %v12787_v30   ;;  %v12995_v22 = vpop.permute.xlu1 %5717  ;;  %v12997_v32 = vpop.permute.xlu0 %6062  ;;  %v5326_v30 = vrot.slane %v5325_v47, 2 }
 0x96f   :  { %15238 = vst [vmem:[#allocation117_spill] sm:$0xff] %v12997_v32  ;;  %9192 = vset.pattern.permute.xlu0 %v15186_v19 }
 0x970   :  { %7098 = vperm.xlu0 %9192, %v12946_v24   ;;  %v5327_v27 = vmax.f32 %v5325_v47, %v5326_v30  ;;  %v5554_v47 = vadd.f32 %v5553_v57, %v5552_v58 }
 0x972   :  { %9167 = vset.pattern.permute.xlu1 %v15192_v43  ;;  %v5328_v56 = vrot.slane %v5327_v27, 1 }
 0x973   :  { %5735 = vperm.xlu1 %9167, %v12867_v16   ;;  %v13003_v53 = vpop.permute.xlu1 %6059  ;;  %v13005_v60 = vpop.permute.xlu0 %6398 }
 0x974   :  { %15239 = vst [vmem:[#allocation104_spill] sm:$0xff] %v13003_v53  ;;  %15240 = vst [vmem:[#allocation119_spill] sm:$0xff] %v13005_v60  ;;  %9193 = vset.pattern.permute.xlu0 %v15189_v2 }
 0x975   :  { %7436 = vperm.xlu0 %9193, %v12957_v4  }
 0x977   :  { %9170 = vset.pattern.permute.xlu1 %v15183_v11 }
 0x978   :  { %6077 = vperm.xlu1 %9170, %v12856_v6   ;;  %v13013_v55 = vpop.permute.xlu1 %6389  ;;  %v13017_v28 = vpop.permute.xlu0 %6736 }
 0x979   :  { %15241 = vst [vmem:[#allocation106_spill] sm:$0xff] %v13013_v55  ;;  %15242 = vst [vmem:[#allocation121_spill] sm:$0xff] %v13017_v28  ;;  %9195 = vset.pattern.permute.xlu0 %v15190_v42  ;;  %v9486_v30 = vpop.eup %9485  ;;  %v5329_v28 = vmax.f32 %v5327_v27, %v5328_v56 }
 0x97a   :  { %7777 = vperm.xlu0 %9195, %v12957_v4   ;;  %v13038_v55 = vmul.f32 %v9486_v30, %v12923_v40  ;;  %v13051_v40 = vmul.f32 %v9486_v30, %v12920_v37  ;;  %v15251_v37 = vld [vmem:[#allocation31_spill] sm:$0xff] }
 0x97b   :  { %v5402_v58 = vsub.f32 %v12968_v36, %v5329_v28  ;;  %v5403_v27 = vsub.f32 %v12973_v21, %v5329_v28 }
 0x97c   :  { %9171 = vset.pattern.permute.xlu1 %v15184_v12 }
 0x97d   :  { %6407 = vperm.xlu1 %9171, %v12867_v16   ;;  %v13027_v46 = vpop.permute.xlu1 %6733  ;;  %v13029_v60 = vpop.permute.xlu0 %7080  ;;  %v5452_v0 = vmul.f32 1.442695, %v5402_v58  ;;  %v5454_v7 = vmul.f32 1.442695, %v5403_v27 }
 0x97e   :  { %15243 = vst [vmem:[#allocation108_spill] sm:$0xff] %v13027_v46  ;;  %15244 = vst [vmem:[#allocation123_spill] sm:$0xff] %v13029_v60  ;;  %9198 = vset.pattern.permute.xlu0 %v15191_v52  ;;  %v5555_v46 = vrot.slane %v5554_v47, 4  ;;  %v8751_v60 = vpop.f32.mrf.mxu0 }
 0x97f   :  { %8121 = vperm.xlu0 %9198, %v12946_v24   ;;  %v13065_v28 = vadd.f32 %v8751_v60, %v15251_v37  ;;  %9487 = vpow2.f32 %v5452_v0 }
 0x980   :  { %v5556_v56 = vadd.f32 %v5555_v46, %v5554_v47  ;;  %v15249_v46 = vld [vmem:[#allocation28_spill] sm:$0xff]  ;;  %9489 = vpow2.f32 %v5454_v7 }
 0x981   :  { %9174 = vset.pattern.permute.xlu1 %v15185_v25 }
 0x982   :  { %6751 = vperm.xlu1 %9174, %v12856_v6   ;;  %v13035_v32 = vpop.permute.xlu1 %7071  ;;  %v13040_v53 = vpop.permute.xlu0 %7418  ;;  %v5557_v36 = vrot.slane %v5556_v56, 2 }
 0x983   :  { %15245 = vst [vmem:[#allocation110_spill] sm:$0xff] %v13035_v32  ;;  %15246 = vst [vmem:[#allocation125_spill] sm:$0xff] %v13040_v53  ;;  %9200 = vset.pattern.permute.xlu0 %v15192_v43  ;;  %v5149_v53 = vpop.f32.mrf.mxu0 }
 0x984   :  { %5750 = vperm.xlu0 %9200, %v13038_v55   ;;  %v13058_v47 = vadd.f32 %v5149_v53, %v15249_v46  ;;  %v5558_v58 = vadd.f32 %v5557_v36, %v5556_v56 }
 0x985   :  { %v8754_v29 = vpop.f32.mrf.mxu0 }
 0x986   :  { %9175 = vset.pattern.permute.xlu1 %v15186_v19  ;;  %v5330_v53 = vsel %vm1234_vm1, %v13058_v47, -inf  ;;  %v5559_v46 = vrot.slane %v5558_v58, 1 }
 0x987   :  { %7089 = vperm.xlu1 %9175, %v12867_v16   ;;  %v13048_v57 = vpop.permute.xlu1 %7415  ;;  %v13053_v32 = vpop.permute.xlu0 %8103 }
 0x988   :  { %15247 = vst [vmem:[#allocation112_spill] sm:$0xff] %v13048_v57  ;;  %15248 = vst [vmem:[#allocation127_spill] sm:$0xff] %v13053_v32  ;;  %9201 = vset.pattern.permute.xlu0 %v15183_v11  ;;  %v5560_v36 = vadd.f32 %v5559_v46, %v5558_v58 }
 0x989   :  { %6086 = vperm.xlu0 %9201, %v13051_v40  }
 0x98a   :  { %9491 = vrcp.f32 %v5560_v36 }
 0x98b   :  { %9178 = vset.pattern.permute.xlu1 %v15189_v2 }
 0x98c   :  { %7433 = vperm.xlu1 %9178, %v12856_v6   ;;  %v13062_v21 = vpop.permute.xlu1 %7756  ;;  %v13067_v30 = vpop.permute.xlu0 %5732  ;;  %v5331_v6 = vsel %vm1234_vm1, %v13065_v28, -inf }
 0x98d   :  { %15250 = vst [vmem:[#allocation114_spill] sm:$0xff] %v13062_v21  ;;  %9204 = vset.pattern.permute.xlu0 %v15184_v12  ;;  %v5332_v27 = vmax.f32 %v5330_v53, %v5331_v6  ;;  %v13092_v6 = vpop.eup %9487 }
 0x98e   :  { %6422 = vperm.xlu0 %9204, %v13038_v55  }
 0x98f   :  { %v5333_v7 = vrot.slane %v5332_v27, 4 }
 0x990   :  { %9179 = vset.pattern.permute.xlu1 %v15190_v42 }
 0x991   :  { %7771 = vperm.xlu1 %9179, %v12867_v16   ;;  %v13077_v60 = vpop.permute.xlu1 %8094  ;;  %v13079_v0 = vpop.permute.xlu0 %6068  ;;  %v5334_v53 = vmax.f32 %v5332_v27, %v5333_v7  ;;  %v5561_v27 = vsel %vm1234_vm1, %v13092_v6, 0.0 }
 0x992   :  { %15252 = vst [vmem:[#allocation116_spill] sm:$0xff] %v13077_v60  ;;  %15253 = vst [vmem:[#allocation118_spill] sm:$0xff] %v13079_v0  ;;  %9205 = vset.pattern.permute.xlu0 %v15185_v25 }
 0x993   :  { %6760 = vperm.xlu0 %9205, %v13051_v40   ;;  %v5335_v58 = vrot.slane %v5334_v53, 2 }
 0x995   :  { %9181 = vset.pattern.permute.xlu1 %v15191_v52 }
 0x996   :  { %8112 = vperm.xlu1 %9181, %v12867_v16   ;;  %v13085_v56 = vpop.permute.xlu1 %5723  ;;  %v13087_v37 = vpop.permute.xlu0 %6404 }
 0x997   :  { %15254 = vst [vmem:[#allocation129_spill] sm:$0xff] %v13087_v37  ;;  %9208 = vset.pattern.permute.xlu0 %v15186_v19  ;;  %v13097_v16 = vpop.eup %9489  ;;  %v5336_v37 = vmax.f32 %v5334_v53, %v5335_v58 }
 0x998   :  { %7104 = vperm.xlu0 %9208, %v13038_v55   ;;  %v5562_v46 = vsel %vm1234_vm1, %v13097_v16, 0.0 }
 0x999   :  { %v5337_v21 = vrot.slane %v5336_v37, 1 }
 0x99a   :  { %9183 = vset.pattern.permute.xlu1 %v15192_v43 }
 0x99b   :  { %5741 = vperm.xlu1 %9183, %v12957_v4   ;;  %v13095_v32 = vpop.permute.xlu1 %6065  ;;  %v13099_v60 = vpop.permute.xlu0 %6742  ;;  %v5338_v58 = vmax.f32 %v5336_v37, %v5337_v21  ;;  %v15265_v37 = vld [vmem:[#allocation33_spill] sm:$0xff] }
 0x99c   :  { %15255 = vst [vmem:[#allocation131_spill] sm:$0xff] %v13095_v32  ;;  %15256 = vst [vmem:[#allocation133_spill] sm:$0xff] %v13099_v60  ;;  %9209 = vset.pattern.permute.xlu0 %v15189_v2  ;;  %v5563_v60 = vadd.f32 %v5562_v46, %v5561_v27 }
 0x99d   :  { %7442 = vperm.xlu0 %9209, %v13051_v40   ;;  %v5404_v35 = vsub.f32 %v13058_v47, %v5338_v58  ;;  %v5405_v21 = vsub.f32 %v13065_v28, %v5338_v58 }
 0x99e   :  { %v5564_v32 = vrot.slane %v5563_v60, 4 }
 0x99f   :  { %9186 = vset.pattern.permute.xlu1 %v15183_v11  ;;  %v5456_v47 = vmul.f32 1.442695, %v5404_v35  ;;  %v5458_v28 = vmul.f32 1.442695, %v5405_v21 }
 0x9a0   :  { %6083 = vperm.xlu1 %9186, %v12946_v24   ;;  %v13109_v7 = vpop.permute.xlu1 %6395  ;;  %v13111_v36 = vpop.permute.xlu0 %7086  ;;  %v5565_v53 = vadd.f32 %v5564_v32, %v5563_v60 }
 0x9a1   :  { %15257 = vst [vmem:[#allocation120_spill] sm:$0xff] %v13109_v7  ;;  %15258 = vst [vmem:[#allocation122_spill] sm:$0xff] %v13111_v36  ;;  %9211 = vset.pattern.permute.xlu0 %v15190_v42  ;;  %v9492_v36 = vpop.eup %9491  ;;  %9493 = vpow2.f32 %v5456_v47 }
 0x9a2   :  { %7783 = vperm.xlu0 %9211, %v13051_v40   ;;  %v13128_v46 = vmul.f32 %v9492_v36, %v13015_v17  ;;  %v13144_v60 = vmul.f32 %v9492_v36, %v13010_v14  ;;  %9495 = vpow2.f32 %v5458_v28 }
 0x9a4   :  { %9187 = vset.pattern.permute.xlu1 %v15184_v12 }
 0x9a5   :  { %6413 = vperm.xlu1 %9187, %v12957_v4   ;;  %v13117_v0 = vpop.permute.xlu1 %6739  ;;  %v13119_v57 = vpop.permute.xlu0 %7424 }
 0x9a6   :  { %15259 = vst [vmem:[#allocation124_spill] sm:$0xff] %v13117_v0  ;;  %15260 = vst [vmem:[#allocation126_spill] sm:$0xff] %v13119_v57  ;;  %9213 = vset.pattern.permute.xlu0 %v15191_v52  ;;  %v5159_v0 = vpop.f32.mrf.mxu0  ;;  %v5566_v57 = vrot.slane %v5565_v53, 2 }
 0x9a7   :  { %8124 = vperm.xlu0 %9213, %v13051_v40   ;;  %v13136_v32 = vadd.f32 %v5159_v0, %v15263_v61 }
 0x9a8   :  { %v5567_v61 = vadd.f32 %v5566_v57, %v5565_v53 }
 0x9a9   :  { %9190 = vset.pattern.permute.xlu1 %v15185_v25  ;;  %v5339_v0 = vsel %vm1234_vm1, %v13136_v32, -inf }
 0x9aa   :  { %6757 = vperm.xlu1 %9190, %v12946_v24   ;;  %v13125_v27 = vpop.permute.xlu1 %7077  ;;  %v13130_v7 = vpop.permute.xlu0 %8109  ;;  %v5568_v57 = vrot.slane %v5567_v61, 1 }
 0x9ab   :  { %15261 = vst [vmem:[#allocation128_spill] sm:$0xff] %v13125_v27  ;;  %15262 = vst [vmem:[#allocation130_spill] sm:$0xff] %v13130_v7  ;;  %9216 = vset.pattern.permute.xlu0 %v15192_v43  ;;  %v13147_v7 = vadd.f32 %v8754_v29, %v15265_v37 }
 0x9ac   :  { %5756 = vperm.xlu0 %9216, %v13128_v46   ;;  %v5569_v21 = vadd.f32 %v5568_v57, %v5567_v61 }
 0x9ad   :  { %v5340_v14 = vsel %vm1234_vm1, %v13147_v7, -inf }
 0x9ae   :  { %9191 = vset.pattern.permute.xlu1 %v15186_v19  ;;  %v5341_v36 = vmax.f32 %v5339_v0, %v5340_v14  ;;  %9497 = vrcp.f32 %v5569_v21  ;;  %v13184_v14 = vpop.eup %9493 }
 0x9af   :  { %7095 = vperm.xlu1 %9191, %v12957_v4   ;;  %v13141_v17 = vpop.permute.xlu1 %7421  ;;  %v13149_v27 = vpop.permute.xlu0 %5738 }
 0x9b0   :  { %15264 = vst [vmem:[#allocation132_spill] sm:$0xff] %v13141_v17  ;;  %9217 = vset.pattern.permute.xlu0 %v15183_v11  ;;  %v5342_v53 = vrot.slane %v5341_v36, 4 }
 0x9b1   :  { %6092 = vperm.xlu0 %9217, %v13144_v60  }
 0x9b2   :  { %v5343_v47 = vmax.f32 %v5341_v36, %v5342_v53  ;;  %v13187_v36 = vpop.eup %9495  ;;  %v5570_v53 = vsel %vm1234_vm1, %v13184_v14, 0.0 }
 0x9b3   :  { %9194 = vset.pattern.permute.xlu1 %v15189_v2  ;;  %v5571_v21 = vsel %vm1234_vm1, %v13187_v36, 0.0 }
 0x9b4   :  { %7439 = vperm.xlu1 %9194, %v12946_v24   ;;  %v13159_v29 = vpop.permute.xlu1 %7759  ;;  %v13161_v58 = vpop.permute.xlu0 %6074 }
 0x9b5   :  { %15266 = vst [vmem:[#allocation137_spill] sm:$0xff] %v13159_v29  ;;  %15267 = vst [vmem:[#allocation139_spill] sm:$0xff] %v13161_v58  ;;  %9220 = vset.pattern.permute.xlu0 %v15184_v12 }
 0x9b6   :  { %6428 = vperm.xlu0 %9220, %v13128_v46  }
 0x9b8   :  { %9196 = vset.pattern.permute.xlu1 %v15190_v42  ;;  %v13166_v35 = vpop.permute.xlu1 %7762 }
 0x9b9   :  { %15268 = vst [vmem:[#allocation134_spill] sm:$0xff] %v13166_v35  ;;  %7780 = vperm.xlu1 %9196, %v12946_v24   ;;  %v13169_v37 = vpop.permute.xlu0 %6410  ;;  %v5344_v24 = vrot.slane %v5343_v47, 2 }
 0x9ba   :  { %15269 = vst [vmem:[#allocation141_spill] sm:$0xff] %v13169_v37  ;;  %9221 = vset.pattern.permute.xlu0 %v15185_v25 }
 0x9bb   :  { %6766 = vperm.xlu0 %9221, %v13144_v60  }
 0x9bd   :  { %9197 = vset.pattern.permute.xlu1 %v15191_v52  ;;  %v13174_v0 = vpop.permute.xlu1 %8100 }
 0x9be   :  { %15270 = vst [vmem:[#allocation135_spill] sm:$0xff] %v13174_v0  ;;  %8118 = vperm.xlu1 %9197, %v12957_v4   ;;  %v13177_v28 = vpop.permute.xlu0 %6748  ;;  %v5345_v4 = vmax.f32 %v5343_v47, %v5344_v24  ;;  %v5572_v47 = vadd.f32 %v5571_v21, %v5570_v53  ;;  %v8757_v24 = vpop.f32.mrf.mxu0  ;;  %v15277_v21 = vld [vmem:[#allocation32_spill] sm:$0xff] }
 0x9bf   :  { %15271 = vst [vmem:[#allocation144_spill] sm:$0xff] %v13177_v28  ;;  %9224 = vset.pattern.permute.xlu0 %v15186_v19 }
 0x9c0   :  { %7110 = vperm.xlu0 %9224, %v13128_v46   ;;  %v5346_v28 = vrot.slane %v5345_v4, 1  ;;  %v5573_v35 = vrot.slane %v5572_v47, 4  ;;  %v5169_v17 = vpop.f32.mrf.mxu0 }
 0x9c2   :  { %9199 = vset.pattern.permute.xlu1 %v15192_v43  ;;  %v13182_v61 = vpop.permute.xlu1 %5729  ;;  %v5347_v29 = vmax.f32 %v5345_v4, %v5346_v28  ;;  %v5574_v28 = vadd.f32 %v5573_v35, %v5572_v47 }
 0x9c3   :  { %5747 = vperm.xlu1 %9199, %v13051_v40   ;;  %v13189_v57 = vpop.permute.xlu0 %7092 }
 0x9c4   :  { %15272 = vst [vmem:[#allocation136_spill] sm:$0xff] %v13189_v57  ;;  %9225 = vset.pattern.permute.xlu0 %v15189_v2  ;;  %v9498_v57 = vpop.eup %9497  ;;  %v5406_v53 = vsub.f32 %v13136_v32, %v5347_v29  ;;  %v5575_v35 = vrot.slane %v5574_v28, 2 }
 0x9c5   :  { %7448 = vperm.xlu0 %9225, %v13144_v60   ;;  %v13226_v4 = vmul.f32 %v9498_v57, %v13092_v6 }
 0x9c6   :  { %v5460_v32 = vmul.f32 1.442695, %v5406_v53 }
 0x9c7   :  { %v13197_v0 = vpop.permute.xlu1 %6071  ;;  %9202 = vset.pattern.permute.xlu1 %v15183_v11 }
 0x9c8   :  { %15273 = vst [vmem:[#allocation147_spill] sm:$0xff] %v13197_v0  ;;  %6089 = vperm.xlu1 %9202, %v13038_v55   ;;  %v13201_v37 = vpop.permute.xlu0 %7430  ;;  %v13210_v0 = vmul.f32 %v9498_v57, %v13097_v16  ;;  %v5407_v16 = vsub.f32 %v13147_v7, %v5347_v29  ;;  %9499 = vpow2.f32 %v5460_v32  ;;  %v5576_v57 = vadd.f32 %v5575_v35, %v5574_v28 }
 0x9c9   :  { %15274 = vst [vmem:[#allocation149_spill] sm:$0xff] %v13201_v37  ;;  %9227 = vset.pattern.permute.xlu0 %v15190_v42 }
 0x9ca   :  { %7789 = vperm.xlu0 %9227, %v13144_v60   ;;  %v5462_v7 = vmul.f32 1.442695, %v5407_v16 }
 0x9cc   :  { %v13205_v58 = vpop.permute.xlu1 %6401  ;;  %9203 = vset.pattern.permute.xlu1 %v15184_v12  ;;  %9501 = vpow2.f32 %v5462_v7 }
 0x9cd   :  { %15275 = vst [vmem:[#allocation138_spill] sm:$0xff] %v13205_v58  ;;  %6419 = vperm.xlu1 %9203, %v13051_v40   ;;  %v13212_v37 = vpop.permute.xlu0 %7774  ;;  %v13218_v58 = vadd.f32 %v5169_v17, %v15277_v21  ;;  %v5577_v21 = vrot.slane %v5576_v57, 1 }
 0x9ce   :  { %15276 = vst [vmem:[#allocation151_spill] sm:$0xff] %v13212_v37  ;;  %9231 = vset.pattern.permute.xlu0 %v15192_v43  ;;  %v15279_v37 = vld [vmem:[#allocation35_spill] sm:$0xff] }
 0x9cf   :  { %5762 = vperm.xlu0 %9231, %v13210_v0   ;;  %v13229_v41 = vadd.f32 %v8757_v24, %v15279_v37  ;;  %v5348_v17 = vsel %vm1234_vm1, %v13218_v58, -inf  ;;  %v5578_v32 = vadd.f32 %v5577_v21, %v5576_v57 }
 0x9d1   :  { %v13220_v51 = vpop.permute.xlu1 %6745  ;;  %9206 = vset.pattern.permute.xlu1 %v15185_v25  ;;  %v5349_v6 = vsel %vm1234_vm1, %v13229_v41, -inf  ;;  %9503 = vrcp.f32 %v5578_v32 }
 0x9d2   :  { %15278 = vst [vmem:[#allocation140_spill] sm:$0xff] %v13220_v51  ;;  %6763 = vperm.xlu1 %9206, %v13038_v55   ;;  %v13231_v59 = vpop.permute.xlu0 %8115  ;;  %v5350_v37 = vmax.f32 %v5348_v17, %v5349_v6 }
 0x9d3   :  { %15280 = vst [vmem:[#allocation153_spill] sm:$0xff] %v13231_v59  ;;  %9232 = vset.pattern.permute.xlu0 %v15183_v11 }
 0x9d4   :  { %6098 = vperm.xlu0 %9232, %v13226_v4   ;;  %v5351_v53 = vrot.slane %v5350_v37, 4 }
 0x9d5   :  { %v13264_v7 = vpop.eup %9499 }
 0x9d6   :  { %v13237_v29 = vpop.permute.xlu1 %7083  ;;  %9207 = vset.pattern.permute.xlu1 %v15186_v19  ;;  %v5579_v21 = vsel %vm1234_vm1, %v13264_v7, 0.0 }
 0x9d7   :  { %15281 = vst [vmem:[#allocation142_spill] sm:$0xff] %v13237_v29  ;;  %7101 = vperm.xlu1 %9207, %v13051_v40   ;;  %v13244_v47 = vpop.permute.xlu0 %5744  ;;  %v5352_v40 = vmax.f32 %v5350_v37, %v5351_v53  ;;  %v15291_v29 = vld [vmem:[#allocation34_spill] sm:$0xff] }
 0x9d8   :  { %9235 = vset.pattern.permute.xlu0 %v15184_v12 }
 0x9d9   :  { %6434 = vperm.xlu0 %9235, %v13210_v0   ;;  %v5353_v17 = vrot.slane %v5352_v40, 2  ;;  %v13269_v37 = vpop.eup %9501 }
 0x9da   :  { %v5580_v59 = vsel %vm1234_vm1, %v13269_v37, 0.0 }
 0x9db   :  { %v13247_v24 = vpop.permute.xlu1 %7427  ;;  %9210 = vset.pattern.permute.xlu1 %v15189_v2  ;;  %v5354_v53 = vmax.f32 %v5352_v40, %v5353_v17  ;;  %v5581_v40 = vadd.f32 %v5580_v59, %v5579_v21 }
 0x9dc   :  { %15282 = vst [vmem:[#allocation143_spill] sm:$0xff] %v13247_v24  ;;  %7445 = vperm.xlu1 %9210, %v13038_v55   ;;  %v13253_v16 = vpop.permute.xlu0 %6080 }
 0x9dd   :  { %9236 = vset.pattern.permute.xlu0 %v15185_v25  ;;  %15283 = vst [vmem:[#allocation155_spill] sm:$0xff] %v13253_v16 }
 0x9de   :  { %6772 = vperm.xlu0 %9236, %v13226_v4   ;;  %v9504_v16 = vpop.eup %9503 }
 0x9df   :  { %v13300_v24 = vmul.f32 %v9504_v16, %v13187_v36  ;;  %v13317_v36 = vmul.f32 %v9504_v16, %v13184_v14 }
 0x9e0   :  { %v13255_v28 = vpop.permute.xlu1 %7765  ;;  %9212 = vset.pattern.permute.xlu1 %v15190_v42 }
 0x9e1   :  { %15284 = vst [vmem:[#allocation145_spill] sm:$0xff] %v13255_v28  ;;  %7786 = vperm.xlu1 %9212, %v13038_v55   ;;  %v13266_v6 = vpop.permute.xlu0 %6416  ;;  %v5582_v28 = vrot.slane %v5581_v40, 4 }
 0x9e2   :  { %9239 = vset.pattern.permute.xlu0 %v15186_v19  ;;  %15286 = vst [vmem:[#allocation161_spill] sm:$0xff] %v13266_v6 }
 0x9e3   :  { %7116 = vperm.xlu0 %9239, %v13210_v0  }
 0x9e4   :  { %v13261_v35 = vpop.permute.xlu1 %7768 }
 0x9e5   :  { %15285 = vst [vmem:[#allocation146_spill] sm:$0xff] %v13261_v35  ;;  %9214 = vset.pattern.permute.xlu1 %v15191_v52  ;;  %v8760_v35 = vpop.f32.mrf.mxu0 }
 0x9e6   :  { %8127 = vperm.xlu1 %9214, %v13038_v55   ;;  %v5355_v55 = vrot.slane %v5354_v53, 1  ;;  %v13281_v32 = vpop.permute.xlu0 %6754 }
 0x9e7   :  { %9240 = vset.pattern.permute.xlu0 %v15189_v2  ;;  %15288 = vst [vmem:[#allocation148_spill] sm:$0xff] %v13281_v32  ;;  %v5583_v32 = vadd.f32 %v5582_v28, %v5581_v40 }
 0x9e8   :  { %7454 = vperm.xlu0 %9240, %v13226_v4  }
 0x9e9   :  { %v13273_v57 = vpop.permute.xlu1 %8106  ;;  %v5584_v28 = vrot.slane %v5583_v32, 2 }
 0x9ea   :  { %15287 = vst [vmem:[#allocation163_spill] sm:$0xff] %v13273_v57  ;;  %9215 = vset.pattern.permute.xlu1 %v15192_v43  ;;  %v5356_v57 = vmax.f32 %v5354_v53, %v5355_v55  ;;  %v5179_v55 = vpop.f32.mrf.mxu0 }
 0x9eb   :  { %5753 = vperm.xlu1 %9215, %v13144_v60   ;;  %v13289_v6 = vpop.permute.xlu0 %7098  ;;  %v13304_v51 = vadd.f32 %v5179_v55, %v15291_v29 }
 0x9ec   :  { %9242 = vset.pattern.permute.xlu0 %v15190_v42  ;;  %15289 = vst [vmem:[#allocation150_spill] sm:$0xff] %v13289_v6  ;;  %v5408_v21 = vsub.f32 %v13218_v58, %v5356_v57  ;;  %v5409_v53 = vsub.f32 %v13229_v41, %v5356_v57  ;;  %v15294_v57 = vld [vmem:[#allocation37_spill] sm:$0xff] }
 0x9ed   :  { %7795 = vperm.xlu0 %9242, %v13226_v4   ;;  %v13313_v40 = vadd.f32 %v8760_v35, %v15294_v57  ;;  %v5357_v29 = vsel %vm1234_vm1, %v13304_v51, -inf }
 0x9ee   :  { %v13285_v17 = vpop.permute.xlu1 %5735  ;;  %v5464_v6 = vmul.f32 1.442695, %v5408_v21  ;;  %v5466_v41 = vmul.f32 1.442695, %v5409_v53  ;;  %v5585_v21 = vadd.f32 %v5584_v28, %v5583_v32 }
 0x9ef   :  { %9218 = vset.pattern.permute.xlu1 %v15183_v11  ;;  %v5358_v35 = vsel %vm1234_vm1, %v13313_v40, -inf }
 0x9f0   :  { %6095 = vperm.xlu1 %9218, %v13128_v46   ;;  %9505 = vpow2.f32 %v5464_v6  ;;  %v5359_v14 = vmax.f32 %v5357_v29, %v5358_v35  ;;  %v5586_v16 = vrot.slane %v5585_v21, 1 }
 0x9f1   :  { %9244 = vset.pattern.permute.xlu0 %v15191_v52  ;;  %9507 = vpow2.f32 %v5466_v41 }
 0x9f2   :  { %8136 = vperm.xlu0 %9244, %v13226_v4   ;;  %v5360_v32 = vrot.slane %v5359_v14, 4  ;;  %v5587_v41 = vadd.f32 %v5586_v16, %v5585_v21 }
 0x9f3   :  { %v13293_v59 = vpop.permute.xlu1 %6077 }
 0x9f4   :  { %15290 = vst [vmem:[#allocation165_spill] sm:$0xff] %v13293_v59  ;;  %9219 = vset.pattern.permute.xlu1 %v15184_v12  ;;  %v13306_v59 = vpop.permute.xlu0 %7436  ;;  %v5361_v57 = vmax.f32 %v5359_v14, %v5360_v32  ;;  %9509 = vrcp.f32 %v5587_v41 }
 0x9f5   :  { %6425 = vperm.xlu1 %9219, %v13144_v60   ;;  %15292 = vst [vmem:[#allocation152_spill] sm:$0xff] %v13306_v59 }
 0x9f6   :  { %9247 = vset.pattern.permute.xlu0 %v15192_v43  ;;  %v5362_v59 = vrot.slane %v5361_v57, 2 }
 0x9f7   :  { %5768 = vperm.xlu0 %9247, %v13300_v24  }
 0x9f8   :  { %v13309_v58 = vpop.permute.xlu1 %6407  ;;  %v13327_v55 = vpop.permute.xlu0 %7777  ;;  %v5363_v32 = vmax.f32 %v5361_v57, %v5362_v59 }
 0x9f9   :  { %15293 = vst [vmem:[#allocation154_spill] sm:$0xff] %v13309_v58  ;;  %9222 = vset.pattern.permute.xlu1 %v15185_v25  ;;  %15296 = vst [vmem:[#allocation169_spill] sm:$0xff] %v13327_v55 }
 0x9fa   :  { %6769 = vperm.xlu1 %9222, %v13128_v46  }
 0x9fb   :  { %9248 = vset.pattern.permute.xlu0 %v15183_v11 }
 0x9fc   :  { %6104 = vperm.xlu0 %9248, %v13317_v36   ;;  %v13336_v28 = vpop.permute.xlu0 %8121 }
 0x9fd   :  { %v13323_v53 = vpop.permute.xlu1 %6751  ;;  %15298 = vst [vmem:[#allocation157_spill] sm:$0xff] %v13336_v28  ;;  %v13344_v35 = vpop.eup %9505 }
 0x9fe   :  { %15295 = vst [vmem:[#allocation167_spill] sm:$0xff] %v13323_v53  ;;  %9223 = vset.pattern.permute.xlu1 %v15186_v19  ;;  %v13347_v55 = vpop.eup %9507  ;;  %v5588_v14 = vsel %vm1234_vm1, %v13344_v35, 0.0 }
 0x9ff   :  { %7107 = vperm.xlu1 %9223, %v13144_v60   ;;  %v5589_v16 = vsel %vm1234_vm1, %v13347_v55, 0.0 }
 0xa00   :  { %9251 = vset.pattern.permute.xlu0 %v15184_v12  ;;  %v13349_v28 = vpop.permute.xlu0 %5750  ;;  %v5590_v41 = vadd.f32 %v5589_v16, %v5588_v14  ;;  %v8763_v14 = vpop.f32.mrf.mxu0 }
 0xa01   :  { %6440 = vperm.xlu0 %9251, %v13300_v24   ;;  %v9510_v58 = vpop.eup %9509 }
 0xa02   :  { %v13333_v6 = vpop.permute.xlu1 %7089  ;;  %v5591_v53 = vrot.slane %v5590_v41, 4 }
 0xa03   :  { %15297 = vst [vmem:[#allocation156_spill] sm:$0xff] %v13333_v6  ;;  %9226 = vset.pattern.permute.xlu1 %v15189_v2 }
 0xa04   :  { %7451 = vperm.xlu1 %9226, %v13128_v46   ;;  %v5592_v57 = vadd.f32 %v5591_v53, %v5590_v41  ;;  %v15306_v41 = vld [vmem:[#allocation36_spill] sm:$0xff] }
 0xa05   :  { %9252 = vset.pattern.permute.xlu0 %v15185_v25 }
 0xa06   :  { %6778 = vperm.xlu0 %9252, %v13317_v36  }
 0xa07   :  { %v13341_v29 = vpop.permute.xlu1 %7433 }
 0xa08   :  { %15299 = vst [vmem:[#allocation158_spill] sm:$0xff] %v13341_v29  ;;  %9228 = vset.pattern.permute.xlu1 %v15190_v42  ;;  %v13361_v29 = vpop.permute.xlu0 %6086 }
 0xa09   :  { %7792 = vperm.xlu1 %9228, %v13128_v46   ;;  %15301 = vst [vmem:[#allocation162_spill] sm:$0xff] %v13361_v29 }
 0xa0a   :  { %9255 = vset.pattern.permute.xlu0 %v15186_v19 }
 0xa0b   :  { %7122 = vperm.xlu0 %9255, %v13300_v24  }
 0xa0c   :  { %v13353_v21 = vpop.permute.xlu1 %7771  ;;  %v13369_v44 = vpop.permute.xlu0 %6422 }
 0xa0d   :  { %15300 = vst [vmem:[#allocation160_spill] sm:$0xff] %v13353_v21  ;;  %9229 = vset.pattern.permute.xlu1 %v15191_v52  ;;  %v5364_v21 = vrot.slane %v5363_v32, 1  ;;  %15303 = vst [vmem:[#allocation175_spill] sm:$0xff] %v13369_v44  ;;  %v5593_v44 = vrot.slane %v5592_v57, 2 }
 0xa0e   :  { %8130 = vperm.xlu1 %9229, %v13144_v60  }
 0xa0f   :  { %9256 = vset.pattern.permute.xlu0 %v15189_v2  ;;  %v5365_v59 = vmax.f32 %v5363_v32, %v5364_v21  ;;  %v5189_v32 = vpop.f32.mrf.mxu0 }
 0xa10   :  { %7460 = vperm.xlu0 %9256, %v13317_v36   ;;  %v13386_v29 = vpop.permute.xlu0 %6760 }
 0xa11   :  { %v13365_v6 = vpop.permute.xlu1 %8112  ;;  %v5410_v16 = vsub.f32 %v13304_v51, %v5365_v59  ;;  %v5411_v21 = vsub.f32 %v13313_v40, %v5365_v59  ;;  %15305 = vst [vmem:[#allocation174_spill] sm:$0xff] %v13386_v29  ;;  %v13393_v51 = vadd.f32 %v5189_v32, %v15306_v41  ;;  %v15308_v40 = vld [vmem:[#allocation39_spill] sm:$0xff]  ;;  %v5830_v29 = vrot.slane %v13085_v56, %v11023_v62 }
 0xa12   :  { %15302 = vst [vmem:[#allocation164_spill] sm:$0xff] %v13365_v6  ;;  %8133 = vperm.xlu1 %9229, %v13128_v46   ;;  %v13377_v46 = vmul.f32 %v9510_v58, %v13269_v37  ;;  %v13390_v37 = vmul.f32 %v9510_v58, %v13264_v7  ;;  %v13401_v59 = vadd.f32 %v8763_v14, %v15308_v40 }
 0xa13   :  { %v5468_v53 = vmul.f32 1.442695, %v5410_v16  ;;  %v5470_v54 = vmul.f32 1.442695, %v5411_v21  ;;  %v5366_v58 = vsel %vm1234_vm1, %v13393_v51, -inf }
 0xa14   :  { %9258 = vset.pattern.permute.xlu0 %v15190_v42  ;;  %v13404_v7 = vpop.permute.xlu0 %7104 }
 0xa15   :  { %7801 = vperm.xlu0 %9258, %v13317_v36   ;;  %15309 = vst [vmem:[#allocation170_spill] sm:$0xff] %v13404_v7  ;;  %9511 = vpow2.f32 %v5468_v53  ;;  %v5821_v7 = vrot.slane %v12995_v22, %v11023_v62 }
 0xa16   :  { %v13372_v60 = vpop.permute.xlu1 %5741  ;;  %9230 = vset.pattern.permute.xlu1 %v15192_v43  ;;  %9513 = vpow2.f32 %v5470_v54 }
 0xa17   :  { %5759 = vperm.xlu1 %9230, %v13226_v4  }
 0xa18   :  { %v13416_v32 = vpop.permute.xlu0 %7442 }
 0xa19   :  { %9262 = vset.pattern.permute.xlu0 %v15192_v43  ;;  %15311 = vst [vmem:[#allocation59_spill] sm:$0xff] %v13416_v32  ;;  %v5816_v32 = vrot.slane %v12858_v45, %v11026_v10  ;;  %v5839_v45 = vrot.slane %v13182_v61, %v11023_v62 }
 0xa1a   :  { %5774 = vperm.xlu0 %9262, %v13377_v46  }
 0xa1b   :  { %v13382_v6 = vpop.permute.xlu1 %6083  ;;  %9233 = vset.pattern.permute.xlu1 %v15183_v11 }
 0xa1c   :  { %15304 = vst [vmem:[#allocation166_spill] sm:$0xff] %v13382_v6  ;;  %6101 = vperm.xlu1 %9233, %v13210_v0   ;;  %v5594_v6 = vadd.f32 %v5593_v44, %v5592_v57  ;;  %v5367_v44 = vsel %vm1234_vm1, %v13401_v59, -inf }
 0xa1d   :  { %v5368_v14 = vmax.f32 %v5366_v58, %v5367_v44  ;;  %v13424_v40 = vpop.permute.xlu0 %7783 }
 0xa1e   :  { %9263 = vset.pattern.permute.xlu0 %v15183_v11  ;;  %v5595_v16 = vrot.slane %v5594_v6, 1  ;;  %15313 = vst [vmem:[#allocation177_spill] sm:$0xff] %v13424_v40  ;;  %v5812_v40 = vrot.slane %v12853_v23, %v11023_v62  ;;  %v5825_v23 = vrot.slane %v12893_v3, %v11026_v10 }
 0xa1f   :  { %6110 = vperm.xlu0 %9263, %v13390_v37   ;;  %v5369_v54 = vrot.slane %v5368_v14, 4 }
 0xa20   :  { %v13397_v49 = vpop.permute.xlu1 %6413  ;;  %9234 = vset.pattern.permute.xlu1 %v15184_v12  ;;  %v5596_v21 = vadd.f32 %v5595_v16, %v5594_v6  ;;  %v5817_v22 = vsel %vm1806_vm2, %v5816_v32, %v5812_v40  ;;  %v5826_v61 = vsel %vm1806_vm2, %v5825_v23, %v5821_v7  ;;  %v5857_v32 = vrot.slane %v13372_v60, %v11023_v62 }
 0xa21   :  { %15307 = vst [vmem:[#allocation168_spill] sm:$0xff] %v13397_v49  ;;  %6431 = vperm.xlu1 %9234, %v13226_v4   ;;  %v5370_v41 = vmax.f32 %v5368_v14, %v5369_v54  ;;  %v5861_v60 = vrot.slane %v13244_v47, %v11026_v10  ;;  %v5870_v47 = vrot.slane %v13349_v28, %v11026_v10 }
 0xa22   :  { %9515 = vrcp.f32 %v5596_v21  ;;  %v13431_v58 = vpop.eup %9511  ;;  %v13441_v21 = vpop.permute.xlu0 %8124 }
 0xa23   :  { %9266 = vset.pattern.permute.xlu0 %v15184_v12  ;;  %v13434_v16 = vpop.eup %9513  ;;  %v5371_v44 = vrot.slane %v5370_v41, 2  ;;  %15315 = vst [vmem:[#allocation191_spill] sm:$0xff] %v13441_v21  ;;  %v5807_v21 = vrot.slane %v12763_v20, %v11026_v10  ;;  %v5834_v20 = vrot.slane %v12989_v34, %v11026_v10 }
 0xa24   :  { %6446 = vperm.xlu0 %9266, %v13377_v46   ;;  %v5598_v14 = vsel %vm1234_vm1, %v13434_v16, 0.0 }
 0xa25   :  { %v13412_v57 = vpop.permute.xlu1 %6757  ;;  %9237 = vset.pattern.permute.xlu1 %v15185_v25 }
 0xa26   :  { %15310 = vst [vmem:[#allocation189_spill] sm:$0xff] %v13412_v57  ;;  %6775 = vperm.xlu1 %9237, %v13210_v0  }
 0xa27   :  { %v13479_v40 = vpop.permute.xlu0 %5756 }
 0xa28   :  { %9267 = vset.pattern.permute.xlu0 %v15185_v25 }
 0xa29   :  { %6784 = vperm.xlu0 %9267, %v13390_v37  }
 0xa2a   :  { %v13420_v53 = vpop.permute.xlu1 %7095  ;;  %9238 = vset.pattern.permute.xlu1 %v15186_v19 }
 0xa2b   :  { %15312 = vst [vmem:[#allocation176_spill] sm:$0xff] %v13420_v53  ;;  %7113 = vperm.xlu1 %9238, %v13226_v4   ;;  %v5597_v4 = vsel %vm1234_vm1, %v13431_v58, 0.0 }
 0xa2c   :  { %v5599_v53 = vadd.f32 %v5598_v14, %v5597_v4  ;;  %v5835_v4 = vsel %vm1806_vm2, %v5834_v20, %v5830_v29  ;;  %v5852_v14 = vrot.slane %v13149_v27, %v11026_v10  ;;  %v5862_v27 = vsel %vm1806_vm2, %v5861_v60, %v5857_v32  ;;  %v13505_v20 = vpop.permute.xlu0 %6092 }
 0xa2d   :  { %9270 = vset.pattern.permute.xlu0 %v15186_v19 }
 0xa2e   :  { %7128 = vperm.xlu0 %9270, %v13377_v46   ;;  %v5600_v34 = vrot.slane %v5599_v53, 4 }
 0xa2f   :  { %v13428_v6 = vpop.permute.xlu1 %7439  ;;  %9241 = vset.pattern.permute.xlu1 %v15189_v2 }
 0xa30   :  { %15314 = vst [vmem:[#allocation49_spill] sm:$0xff] %v13428_v6  ;;  %7457 = vperm.xlu1 %9241, %v13210_v0   ;;  %v5372_v6 = vmax.f32 %v5370_v41, %v5371_v44  ;;  %v9516_v41 = vpop.eup %9515  ;;  %v5843_v44 = vrot.slane %v13067_v30, %v11026_v10 }
 0xa31   :  { %v13487_v7 = vmul.f32 %v9516_v41, %v13347_v55 }
 0xa32   :  { %9271 = vset.pattern.permute.xlu0 %v15189_v2  ;;  %v5373_v3 = vrot.slane %v5372_v6, 1  ;;  %v5844_v23 = vsel %vm1806_vm2, %v5843_v44, %v5839_v45  ;;  %v5601_v45 = vadd.f32 %v5600_v34, %v5599_v53 }
 0xa33   :  { %7466 = vperm.xlu0 %9271, %v13390_v37  }
 0xa34   :  { %v13444_v54 = vpop.permute.xlu1 %7780  ;;  %9243 = vset.pattern.permute.xlu1 %v15190_v42  ;;  %v5602_v53 = vrot.slane %v5601_v45, 2 }
 0xa35   :  { %15316 = vst [vmem:[#allocation190_spill] sm:$0xff] %v13444_v54  ;;  %7798 = vperm.xlu1 %9243, %v13210_v0   ;;  %v5803_v54 = vrot.slane %v12765_v63, %v11023_v62  ;;  %v5848_v63 = vrot.slane %v13285_v17, %v11023_v62 }
 0xa37   :  { %9273 = vset.pattern.permute.xlu0 %v15190_v42  ;;  %v5808_v17 = vsel %vm1806_vm2, %v5807_v21, %v5803_v54 }
 0xa38   :  { %7807 = vperm.xlu0 %9273, %v13390_v37   ;;  %v5944_v30 = vsel %vm1943_vm3, %v5817_v22, %v5808_v17  ;;  %v5374_v22 = vmax.f32 %v5372_v6, %v5373_v3  ;;  %v5603_v3 = vadd.f32 %v5602_v53, %v5601_v45 }
 0xa39   :  { %v13471_v56 = vpop.permute.xlu1 %8118  ;;  %9245 = vset.pattern.permute.xlu1 %v15191_v52 }
 0xa3a   :  { %15317 = vst [vmem:[#allocation57_spill] sm:$0xff] %v13471_v56  ;;  %8139 = vperm.xlu1 %9245, %v13210_v0   ;;  %v5945_v0 = vsel %vm1945_vm4, %v5826_v61, %v5944_v30  ;;  %v5853_v56 = vsel %vm1806_vm2, %v5852_v14, %v5848_v63  ;;  %v13509_v61 = vmul.f32 %v9516_v41, %v13344_v35  ;;  %v8766_v41 = vpop.f32.mrf.mxu0  ;;  %v5604_v30 = vrot.slane %v5603_v3, 1 }
 0xa3b   :  { %v5946_v29 = vsel %vm1947_vm5, %v5835_v4, %v5945_v0  ;;  %v5412_v6 = vsub.f32 %v13393_v51, %v5374_v22  ;;  %v5413_v35 = vsub.f32 %v13401_v59, %v5374_v22 }
 0xa3c   :  { %9277 = vset.pattern.permute.xlu0 %v15192_v43  ;;  %v5947_v21 = vsel %vm1949_vm6, %v5844_v23, %v5946_v29  ;;  %v5199_v14 = vpop.f32.mrf.mxu0  ;;  %v15320_v23 = vld [vmem:[#allocation38_spill] sm:$0xff]  ;;  %v15322_v29 = vld [vmem:[#allocation41_spill] sm:$0xff] }
 0xa3d   :  { %5780 = vperm.xlu0 %9277, %v13487_v7   ;;  %v5948_v63 = vsel %vm1951_vm7, %v5853_v56, %v5947_v21  ;;  %v13523_v56 = vpop.permute.xlu0 %6428  ;;  %v5472_v34 = vmul.f32 1.442695, %v5412_v6  ;;  %v5474_v51 = vmul.f32 1.442695, %v5413_v35  ;;  %v13535_v60 = vadd.f32 %v5199_v14, %v15320_v23 }
 0xa3e   :  { %v5748_v55 = vpop.permute.xlu1 %5747  ;;  %9246 = vset.pattern.permute.xlu1 %v15192_v43  ;;  %v5949_v32 = vsel %vm1953_vm8, %v5862_v27, %v5948_v63  ;;  %v13543_v27 = vadd.f32 %v8766_v41, %v15322_v29 }
 0xa3f   :  { %v5866_v54 = vrot.slane %v5748_v55, %v11023_v62  ;;  %5765 = vperm.xlu1 %9246, %v13317_v36   ;;  %9517 = vpow2.f32 %v5472_v34  ;;  %v5605_v55 = vadd.f32 %v5604_v30, %v5603_v3  ;;  %v5375_v21 = vsel %vm1234_vm1, %v13535_v60, -inf }
 0xa40   :  { %9519 = vpow2.f32 %v5474_v51  ;;  %v5376_v45 = vsel %vm1234_vm1, %v13543_v27, -inf }
 0xa41   :  { %v5871_v44 = vsel %vm1806_vm2, %v5870_v47, %v5866_v54  ;;  %9278 = vset.pattern.permute.xlu0 %v15183_v11  ;;  %v13531_v59 = vpop.permute.xlu0 %6766  ;;  %9521 = vrcp.f32 %v5605_v55  ;;  %v5377_v22 = vmax.f32 %v5375_v21, %v5376_v45 }
 0xa42   :  { %v5950_v28 = vsel %vm1955_vm9, %v5871_v44, %v5949_v32  ;;  %6116 = vperm.xlu0 %9278, %v13509_v61  }
 0xa43   :  { %v13516_v17 = vpop.permute.xlu1 %6089  ;;  %9249 = vset.pattern.permute.xlu1 %v15183_v11  ;;  %8771 = vmatprep.mubr.msk.f32.mxu0 %vm285_vm0, %v5950_v28  ;;  %v5378_v44 = vrot.slane %v5377_v22, 4 }
 0xa44   :  { %15318 = vst [vmem:[#allocation178_spill] sm:$0xff] %v13516_v17  ;;  %6107 = vperm.xlu1 %9249, %v13300_v24  }
 0xa45   :  { %v13548_v47 = vpop.permute.xlu0 %7110  ;;  %v5379_v6 = vmax.f32 %v5377_v22, %v5378_v44 }
 0xa46   :  { %9281 = vset.pattern.permute.xlu0 %v15184_v12 }
 0xa47   :  { %6452 = vperm.xlu0 %9281, %v13487_v7   ;;  %v5380_v14 = vrot.slane %v5379_v6, 2 }
 0xa48   :  { %v13527_v4 = vpop.permute.xlu1 %6419  ;;  %9250 = vset.pattern.permute.xlu1 %v15184_v12 }
 0xa49   :  { %15319 = vst [vmem:[#allocation179_spill] sm:$0xff] %v13527_v4  ;;  %6437 = vperm.xlu1 %9250, %v13317_v36   ;;  %v13562_v32 = vpop.permute.xlu0 %7448  ;;  %v5381_v21 = vmax.f32 %v5379_v6, %v5380_v14 }
 0xa4a   :  { %15325 = vst [vmem:[#allocation4_spill] sm:$0xff] %v13562_v32 }
 0xa4b   :  { %9282 = vset.pattern.permute.xlu0 %v15185_v25 }
 0xa4c   :  { %6790 = vperm.xlu0 %9282, %v13509_v61   ;;  %v13565_v28 = vpop.eup %9517 }
 0xa4d   :  { %v13538_v0 = vpop.permute.xlu1 %6763  ;;  %9253 = vset.pattern.permute.xlu1 %v15185_v25  ;;  %v13567_v53 = vpop.eup %9519  ;;  %v5606_v41 = vsel %vm1234_vm1, %v13565_v28, 0.0 }
 0xa4e   :  { %15321 = vst [vmem:[#allocation55_spill] sm:$0xff] %v13538_v0  ;;  %6781 = vperm.xlu1 %9253, %v13300_v24   ;;  %v5607_v3 = vsel %vm1234_vm1, %v13567_v53, 0.0  ;;  %v13579_v34 = vpop.permute.xlu0 %7789  ;;  %v9522_v30 = vpop.eup %9521 }
 0xa4f   :  { %15327 = vst [vmem:[#allocation52_spill] sm:$0xff] %v13579_v34  ;;  %v5608_v51 = vadd.f32 %v5607_v3, %v5606_v41  ;;  %v13588_v29 = vmul.f32 %v9522_v30, %v13434_v16  ;;  %v5382_v41 = vrot.slane %v5381_v21, 1  ;;  %v13598_v3 = vmul.f32 %v9522_v30, %v13431_v58 }
 0xa50   :  { %9285 = vset.pattern.permute.xlu0 %v15186_v19 }
 0xa51   :  { %7134 = vperm.xlu0 %9285, %v13487_v7   ;;  %v5609_v55 = vrot.slane %v5608_v51, 4  ;;  %v5383_v14 = vmax.f32 %v5381_v21, %v5382_v41 }
 0xa52   :  { %v13551_v54 = vpop.permute.xlu1 %7101  ;;  %9254 = vset.pattern.permute.xlu1 %v15186_v19  ;;  %v13590_v45 = vpop.permute.xlu0 %5762 }
 0xa53   :  { %15323 = vst [vmem:[#allocation6_spill] sm:$0xff] %v13551_v54  ;;  %7119 = vperm.xlu1 %9254, %v13317_v36   ;;  %v5610_v44 = vadd.f32 %v5609_v55, %v5608_v51  ;;  %v5414_v58 = vsub.f32 %v13535_v60, %v5383_v14  ;;  %v5415_v55 = vsub.f32 %v13543_v27, %v5383_v14 }
 0xa55   :  { %9286 = vset.pattern.permute.xlu0 %v15189_v2  ;;  %v5611_v6 = vrot.slane %v5610_v44, 2  ;;  %v5478_v21 = vmul.f32 1.442695, %v5415_v55 }
 0xa56   :  { %7472 = vperm.xlu0 %9286, %v13509_v61  }
 0xa57   :  { %v13559_v63 = vpop.permute.xlu1 %7445  ;;  %9257 = vset.pattern.permute.xlu1 %v15189_v2 }
 0xa58   :  { %15324 = vst [vmem:[#allocation194_spill] sm:$0xff] %v13559_v63  ;;  %7463 = vperm.xlu1 %9257, %v13300_v24  }
 0xa5a   :  { %9289 = vset.pattern.permute.xlu0 %v15190_v42 }
 0xa5b   :  { %7816 = vperm.xlu0 %9289, %v13487_v7  }
 0xa5c   :  { %v13571_v35 = vpop.permute.xlu1 %7786  ;;  %9259 = vset.pattern.permute.xlu1 %v15190_v42 }
 0xa5d   :  { %15326 = vst [vmem:[#allocation192_spill] sm:$0xff] %v13571_v35  ;;  %7804 = vperm.xlu1 %9259, %v13300_v24   ;;  %v5476_v35 = vmul.f32 1.442695, %v5414_v58 }
 0xa5f   :  { %9291 = vset.pattern.permute.xlu0 %v15191_v52  ;;  %9523 = vpow2.f32 %v5476_v35 }
 0xa60   :  { %8157 = vperm.xlu0 %9291, %v13487_v7   ;;  %9525 = vpow2.f32 %v5478_v21 }
 0xa61   :  { %v13583_v23 = vpop.permute.xlu1 %8127  ;;  %9260 = vset.pattern.permute.xlu1 %v15191_v52 }
 0xa62   :  { %15328 = vst [vmem:[#allocation180_spill] sm:$0xff] %v13583_v23  ;;  %8142 = vperm.xlu1 %9260, %v13317_v36   ;;  %v13600_v36 = vpop.permute.xlu0 %6098 }
 0xa64   :  { %9293 = vset.pattern.permute.xlu0 %v15192_v43 }
 0xa65   :  { %5786 = vperm.xlu0 %9293, %v13588_v29  }
 0xa66   :  { %v13594_v22 = vpop.permute.xlu1 %5753  ;;  %8145 = vperm.xlu1 %9260, %v13300_v24   ;;  %v5612_v24 = vadd.f32 %v5611_v6, %v5610_v44  ;;  %v13611_v51 = vpop.permute.xlu0 %6434 }
 0xa68   :  { %v5613_v23 = vrot.slane %v5612_v24, 1 }
 0xa69   :  { %9294 = vset.pattern.permute.xlu0 %v15183_v11 }
 0xa6a   :  { %9261 = vset.pattern.permute.xlu1 %v15192_v43  ;;  %6122 = vperm.xlu0 %9294, %v13598_v3   ;;  %v13624_v44 = vpop.permute.xlu0 %6772  ;;  %v5614_v41 = vadd.f32 %v5613_v23, %v5612_v24 }
 0xa6b   :  { %v13605_v16 = vpop.permute.xlu1 %6095  ;;  %5771 = vperm.xlu1 %9261, %v13390_v37  }
 0xa6c   :  { %9527 = vrcp.f32 %v5614_v41  ;;  %v13648_v24 = vpop.eup %9523 }
 0xa6d   :  { %v13650_v58 = vpop.eup %9525  ;;  %v5615_v41 = vsel %vm1234_vm1, %v13648_v24, 0.0 }
 0xa6e   :  { %9297 = vset.pattern.permute.xlu0 %v15184_v12  ;;  %v13632_v6 = vpop.permute.xlu0 %7116  ;;  %v5616_v63 = vsel %vm1234_vm1, %v13650_v58, 0.0 }
 0xa6f   :  { %9264 = vset.pattern.permute.xlu1 %v15183_v11  ;;  %6458 = vperm.xlu0 %9297, %v13588_v29   ;;  %v5617_v57 = vadd.f32 %v5616_v63, %v5615_v41 }
 0xa70   :  { %v13614_v30 = vpop.permute.xlu1 %6425  ;;  %6113 = vperm.xlu1 %9264, %v13377_v46  }
 0xa71   :  { %v5618_v17 = vrot.slane %v5617_v57, 4 }
 0xa72   :  { %v13640_v23 = vpop.permute.xlu0 %7454 }
 0xa73   :  { %9298 = vset.pattern.permute.xlu0 %v15185_v25  ;;  %v5619_v63 = vadd.f32 %v5618_v17, %v5617_v57 }
 0xa74   :  { %9265 = vset.pattern.permute.xlu1 %v15184_v12  ;;  %6796 = vperm.xlu0 %9298, %v13598_v3  }
 0xa75   :  { %v13621_v60 = vpop.permute.xlu1 %6769  ;;  %6443 = vperm.xlu1 %9265, %v13390_v37  }
 0xa76   :  { %v13652_v55 = vpop.permute.xlu0 %7795 }
 0xa77   :  { %15330 = vst [vmem:[#allocation181_spill] sm:$0xff] %v13652_v55 }
 0xa78   :  { %9301 = vset.pattern.permute.xlu0 %v15186_v19 }
 0xa79   :  { %9268 = vset.pattern.permute.xlu1 %v15185_v25  ;;  %7140 = vperm.xlu0 %9301, %v13588_v29   ;;  %v9528_v21 = vpop.eup %9527 }
 0xa7a   :  { %v13629_v27 = vpop.permute.xlu1 %7107  ;;  %6787 = vperm.xlu1 %9268, %v13377_v46   ;;  %v13665_v0 = vmul.f32 %v9528_v21, %v13567_v53  ;;  %v13671_v49 = vpop.permute.xlu0 %8136  ;;  %v13676_v50 = vmul.f32 %v9528_v21, %v13565_v28  ;;  %v5620_v28 = vrot.slane %v5619_v63, 2 }
 0xa7d   :  { %9302 = vset.pattern.permute.xlu0 %v15189_v2 }
 0xa7e   :  { %9269 = vset.pattern.permute.xlu1 %v15186_v19  ;;  %7478 = vperm.xlu0 %9302, %v13598_v3   ;;  %v13683_v41 = vpop.permute.xlu0 %5768 }
 0xa7f   :  { %v13637_v35 = vpop.permute.xlu1 %7451  ;;  %7125 = vperm.xlu1 %9269, %v13390_v37  }
 0xa82   :  { %9305 = vset.pattern.permute.xlu0 %v15190_v42  ;;  %v13691_v21 = vpop.permute.xlu0 %6104 }
 0xa83   :  { %9272 = vset.pattern.permute.xlu1 %v15189_v2  ;;  %7822 = vperm.xlu0 %9305, %v13588_v29  }
 0xa84   :  { %v13645_v14 = vpop.permute.xlu1 %7792  ;;  %7469 = vperm.xlu1 %9272, %v13377_v46  }
 0xa85   :  { %15329 = vst [vmem:[#allocation45_spill] sm:$0xff] %v13645_v14 }
 0xa86   :  { %v6441_v26 = vpop.permute.xlu0 %6440 }
 0xa87   :  { %9307 = vset.pattern.permute.xlu0 %v15191_v52 }
 0xa88   :  { %9274 = vset.pattern.permute.xlu1 %v15190_v42  ;;  %8163 = vperm.xlu0 %9307, %v13588_v29  }
 0xa89   :  { %v13661_v54 = vpop.permute.xlu1 %8130  ;;  %7810 = vperm.xlu1 %9274, %v13377_v46  }
 0xa8c   :  { %9309 = vset.pattern.permute.xlu0 %v15192_v43 }
 0xa8d   :  { %v13668_v4 = vpop.permute.xlu1 %8133  ;;  %9275 = vset.pattern.permute.xlu1 %v15191_v52  ;;  %5792 = vperm.xlu0 %9309, %v13665_v0  }
 0xa8e   :  { %8148 = vperm.xlu1 %9275, %v13390_v37  }
 0xa91   :  { %9310 = vset.pattern.permute.xlu0 %v15183_v11 }
 0xa92   :  { %v13679_v53 = vpop.permute.xlu1 %5759  ;;  %8151 = vperm.xlu1 %9275, %v13377_v46   ;;  %6128 = vperm.xlu0 %9310, %v13676_v50   ;;  %v5621_v46 = vadd.f32 %v5620_v28, %v5619_v63  ;;  %v6779_v28 = vpop.permute.xlu0 %6778 }
 0xa93   :  { %v6906_v14 = vrot.slane %v6779_v28, %v11023_v62 }
 0xa94   :  { %v5622_v17 = vrot.slane %v5621_v46, 1 }
 0xa96   :  { %9276 = vset.pattern.permute.xlu1 %v15192_v43  ;;  %9313 = vset.pattern.permute.xlu0 %v15184_v12  ;;  %v5623_v63 = vadd.f32 %v5622_v17, %v5621_v46  ;;  %v7123_v46 = vpop.permute.xlu0 %7122 }
 0xa97   :  { %v13687_v37 = vpop.permute.xlu1 %6101  ;;  %5777 = vperm.xlu1 %9276, %v13509_v61   ;;  %6464 = vperm.xlu0 %9313, %v13665_v0  }
 0xa98   :  { %9529 = vrcp.f32 %v5623_v63 }
 0xa9a   :  { %v7461_v63 = vpop.permute.xlu0 %7460 }
 0xa9b   :  { %9279 = vset.pattern.permute.xlu1 %v15183_v11  ;;  %9314 = vset.pattern.permute.xlu0 %v15185_v25 }
 0xa9c   :  { %v13695_v57 = vpop.permute.xlu1 %6431  ;;  %6119 = vperm.xlu1 %9279, %v13487_v7   ;;  %6802 = vperm.xlu0 %9314, %v13676_v50  }
 0xa9e   :  { %v7802_v48 = vpop.permute.xlu0 %7801 }
 0xaa0   :  { %9280 = vset.pattern.permute.xlu1 %v15184_v12  ;;  %9317 = vset.pattern.permute.xlu0 %v15186_v19 }
 0xaa1   :  { %v13701_v15 = vpop.permute.xlu1 %6775  ;;  %6449 = vperm.xlu1 %9280, %v13509_v61   ;;  %7146 = vperm.xlu0 %9317, %v13665_v0  }
 0xaa2   :  { %v13740_v8 = vpop.permute.xlu0 %5774 }
 0xaa5   :  { %9283 = vset.pattern.permute.xlu1 %v15185_v25  ;;  %9318 = vset.pattern.permute.xlu0 %v15189_v2  ;;  %v9530_v1 = vpop.eup %9529 }
 0xaa6   :  { %v13707_v38 = vpop.permute.xlu1 %7113  ;;  %6793 = vperm.xlu1 %9283, %v13487_v7   ;;  %7484 = vperm.xlu0 %9318, %v13676_v50   ;;  %v13729_v33 = vmul.f32 %v9530_v1, %v13650_v58  ;;  %v13738_v5 = vmul.f32 %v9530_v1, %v13648_v24  ;;  %v6569_v24 = vrot.slane %v6441_v26, %v11026_v10 }
 0xaa8   :  { %15332 = vst [vmem:[#allocation196_spill] sm:$0xff] %v13729_v33  ;;  %15333 = vst [vmem:[#allocation43_spill] sm:$0xff] %v13738_v5 }
 0xaaa   :  { %9284 = vset.pattern.permute.xlu1 %v15186_v19  ;;  %7487 = vperm.xlu0 %9318, %v13665_v0  }
 0xaab   :  { %v13713_v39 = vpop.permute.xlu1 %7457  ;;  %7131 = vperm.xlu1 %9284, %v13509_v61  }
 0xaae   :  { %9320 = vset.pattern.permute.xlu0 %v15190_v42 }
 0xaaf   :  { %9287 = vset.pattern.permute.xlu1 %v15189_v2  ;;  %7828 = vperm.xlu0 %9320, %v13665_v0  }
 0xab0   :  { %v13719_v17 = vpop.permute.xlu1 %7798  ;;  %7475 = vperm.xlu1 %9287, %v13487_v7  }
 0xab1   :  { %15331 = vst [vmem:[#allocation51_spill] sm:$0xff] %v13719_v17 }
 0xab3   :  { %9321 = vset.pattern.permute.xlu0 %v15191_v52 }
 0xab4   :  { %9288 = vset.pattern.permute.xlu1 %v15190_v42  ;;  %8166 = vperm.xlu0 %9321, %v13676_v50  }
 0xab5   :  { %v13725_v18 = vpop.permute.xlu1 %8139  ;;  %7813 = vperm.xlu1 %9288, %v13509_v61  }
 0xab8   :  { %9324 = vset.pattern.permute.xlu0 %v15192_v43 }
 0xab9   :  { %9290 = vset.pattern.permute.xlu1 %v15191_v52  ;;  %5798 = vperm.xlu0 %9324, %v13729_v33  }
 0xaba   :  { %v13734_v7 = vpop.permute.xlu1 %5765  ;;  %8154 = vperm.xlu1 %9290, %v13509_v61   ;;  %v13750_v61 = vpop.permute.xlu0 %6110 }
 0xabd   :  { %9325 = vset.pattern.permute.xlu0 %v15183_v11 }
 0xabe   :  { %9292 = vset.pattern.permute.xlu1 %v15192_v43  ;;  %6134 = vperm.xlu0 %9325, %v13738_v5   ;;  %v13764_v55 = vpop.permute.xlu0 %6446 }
 0xabf   :  { %v13745_v58 = vpop.permute.xlu1 %6107  ;;  %5783 = vperm.xlu1 %9292, %v13598_v3  }
 0xac2   :  { %9328 = vset.pattern.permute.xlu0 %v15184_v12  ;;  %v13776_v17 = vpop.permute.xlu0 %6784 }
 0xac3   :  { %9295 = vset.pattern.permute.xlu1 %v15183_v11  ;;  %6470 = vperm.xlu0 %9328, %v13729_v33  }
 0xac4   :  { %v6438_v1 = vpop.permute.xlu1 %6437  ;;  %6125 = vperm.xlu1 %9295, %v13588_v29  }
 0xac5   :  { %v6565_v13 = vrot.slane %v6438_v1, %v11023_v62 }
 0xac6   :  { %v13787_v32 = vpop.permute.xlu0 %7128 }
 0xac7   :  { %v13757_v9 = vsel %vm1806_vm2, %v6569_v24, %v6565_v13  ;;  %9329 = vset.pattern.permute.xlu0 %v15185_v25  ;;  %v7251_v24 = vrot.slane %v7123_v46, %v11026_v10 }
 0xac8   :  { %9296 = vset.pattern.permute.xlu1 %v15184_v12  ;;  %6808 = vperm.xlu0 %9329, %v13738_v5  }
 0xac9   :  { %v6782_v34 = vpop.permute.xlu1 %6781  ;;  %6455 = vperm.xlu1 %9296, %v13598_v3  }
 0xaca   :  { %v6910_v26 = vrot.slane %v6782_v34, %v11026_v10 }
 0xacc   :  { %v13768_v1 = vsel %vm1806_vm2, %v6910_v26, %v6906_v14  ;;  %9332 = vset.pattern.permute.xlu0 %v15186_v19  ;;  %v7588_v26 = vrot.slane %v7461_v63, %v11023_v62 }
 0xacd   :  { %9299 = vset.pattern.permute.xlu1 %v15185_v25  ;;  %7152 = vperm.xlu0 %9332, %v13729_v33  }
 0xace   :  { %v7120_v13 = vpop.permute.xlu1 %7119  ;;  %6799 = vperm.xlu1 %9299, %v13588_v29  }
 0xacf   :  { %v7247_v28 = vrot.slane %v7120_v13, %v11023_v62 }
 0xad1   :  { %v13779_v34 = vsel %vm1806_vm2, %v7251_v24, %v7247_v28  ;;  %9334 = vset.pattern.permute.xlu0 %v15189_v2  ;;  %v7929_v28 = vrot.slane %v7802_v48, %v11023_v62  ;;  %v8261_v48 = vrot.slane %v13671_v49, %v11023_v62  ;;  %v5893_v49 = vrot.slane %v13734_v7, %v11023_v62 }
 0xad2   :  { %9300 = vset.pattern.permute.xlu1 %v15186_v19  ;;  %7493 = vperm.xlu0 %9334, %v13729_v33   ;;  %v13801_v33 = vpop.permute.xlu0 %7466 }
 0xad3   :  { %v7464_v14 = vpop.permute.xlu1 %7463  ;;  %7137 = vperm.xlu1 %9300, %v13598_v3  }
 0xad4   :  { %v7592_v46 = vrot.slane %v7464_v14, %v11026_v10 }
 0xad6   :  { %v13790_v13 = vsel %vm1806_vm2, %v7592_v46, %v7588_v26  ;;  %9335 = vset.pattern.permute.xlu0 %v15190_v42  ;;  %v8265_v26 = vrot.slane %v13725_v18, %v11026_v10 }
 0xad7   :  { %9303 = vset.pattern.permute.xlu1 %v15189_v2  ;;  %7831 = vperm.xlu0 %9335, %v13738_v5   ;;  %v13821_v2 = vpop.permute.xlu0 %7807 }
 0xad8   :  { %v7805_v24 = vpop.permute.xlu1 %7804  ;;  %7481 = vperm.xlu1 %9303, %v13588_v29   ;;  %v8256_v29 = vrot.slane %v13668_v4, %v11026_v10 }
 0xad9   :  { %v7933_v63 = vrot.slane %v7805_v24, %v11026_v10  ;;  %v8252_v24 = vrot.slane %v13661_v54, %v11023_v62 }
 0xadb   :  { %v13799_v14 = vsel %vm1806_vm2, %v7933_v63, %v7929_v28  ;;  %9337 = vset.pattern.permute.xlu0 %v15191_v52  ;;  %v5884_v28 = vrot.slane %v13679_v53, %v11023_v62  ;;  %v8266_v63 = vsel %vm1806_vm2, %v8265_v26, %v8261_v48  ;;  %v5888_v53 = vrot.slane %v13590_v45, %v11026_v10 }
 0xadc   :  { %9304 = vset.pattern.permute.xlu1 %v15190_v42  ;;  %8172 = vperm.xlu0 %9337, %v13738_v5   ;;  %v5875_v26 = vrot.slane %v13594_v22, %v11023_v62  ;;  %v8257_v48 = vsel %vm1806_vm2, %v8256_v29, %v8252_v24  ;;  %v6227_v45 = vrot.slane %v13687_v37, %v11026_v10 }
 0xadd   :  { %v8143_v46 = vpop.permute.xlu1 %8142  ;;  %7819 = vperm.xlu1 %9304, %v13598_v3   ;;  %v8328_v5 = vsel %vm1943_vm3, %v8266_v63, %v8257_v48  ;;  %v5906_v24 = vrot.slane %v13740_v8, %v11026_v10  ;;  %v13859_v63 = vpop.permute.xlu0 %5780  ;;  %v6232_v8 = vrot.slane %v13691_v21, %v11023_v62  ;;  %v6241_v48 = vrot.slane %v13750_v61, %v11023_v62 }
 0xade   :  { %v8270_v4 = vrot.slane %v8143_v46, %v11023_v62  ;;  %v5879_v46 = vrot.slane %v13479_v40, %v11026_v10  ;;  %v6236_v40 = vrot.slane %v13745_v58, %v11026_v10  ;;  %v6551_v61 = vrot.slane %v13523_v56, %v11026_v10 }
 0xadf   :  { %v6897_v56 = vrot.slane %v13624_v44, %v11023_v62 }
 0xae0   :  { %8337 = vrot.lane.b32.xlu0 %v12359_v31, %s9550_s2  ;;  %v5897_v31 = vrot.slane %v13683_v41, %v11026_v10  ;;  %v5880_v41 = vsel %vm1806_vm2, %v5879_v46, %v5875_v26 }
 0xae1   :  { %v8146_v18 = vpop.permute.xlu1 %8145  ;;  %9306 = vset.pattern.permute.xlu1 %v15191_v52 }
 0xae2   :  { %v8274_v54 = vrot.slane %v8146_v18, %v11026_v10  ;;  %8160 = vperm.xlu1 %9306, %v13598_v3   ;;  %v5889_v3 = vsel %vm1806_vm2, %v5888_v53, %v5884_v28  ;;  %v5898_v22 = vsel %vm1806_vm2, %v5897_v31, %v5893_v49  ;;  %v6218_v31 = vrot.slane %v13605_v16, %v11026_v10 }
 0xae3   :  { %v5951_v37 = vsel %vm1943_vm3, %v5889_v3, %v5880_v41  ;;  %v6556_v16 = vrot.slane %v13695_v57, %v11023_v62  ;;  %v6237_v53 = vsel %vm1806_vm2, %v6236_v40, %v6232_v8  ;;  %v6547_v57 = vrot.slane %v13614_v30, %v11023_v62  ;;  %v13885_v3 = vpop.permute.xlu0 %6116 }
 0xae4   :  { %v8275_v7 = vsel %vm1806_vm2, %v8274_v54, %v8270_v4  ;;  %v5952_v49 = vsel %vm1945_vm4, %v5898_v22, %v5951_v37  ;;  %v6214_v4 = vrot.slane %v13505_v20, %v11023_v62  ;;  %v6578_v40 = vrot.slane %v13764_v55, %v11026_v10 }
 0xae5   :  { %v13841_v18 = vsel %vm1945_vm4, %v8275_v7, %v8328_v5  ;;  %v6223_v5 = vrot.slane %v13600_v36, %v11023_v62  ;;  %v6560_v7 = vrot.slane %v13611_v51, %v11026_v10  ;;  %v6901_v51 = vrot.slane %v13701_v15, %v11026_v10 }
 0xae6   :  { %v5772_v29 = vpop.permute.xlu1 %5771  ;;  %9308 = vset.pattern.permute.xlu1 %v15192_v43  ;;  %v6219_v21 = vsel %vm1806_vm2, %v6218_v31, %v6214_v4  ;;  %v6888_v55 = vrot.slane %v13531_v59, %v11023_v62  ;;  %v6915_v4 = vrot.slane %v13776_v17, %v11023_v62  ;;  %v7233_v17 = vrot.slane %v13548_v47, %v11026_v10 }
 0xae7   :  { %v5902_v28 = vrot.slane %v5772_v29, %v11023_v62  ;;  %5789 = vperm.xlu1 %9308, %v13676_v50   ;;  %v6228_v54 = vsel %vm1806_vm2, %v6227_v45, %v6223_v5  ;;  %v6561_v29 = vsel %vm1806_vm2, %v6560_v7, %v6556_v16  ;;  %v6892_v5 = vrot.slane %v13621_v60, %v11026_v10 }
 0xae8   :  { %v6290_v46 = vsel %vm1943_vm3, %v6228_v54, %v6219_v21  ;;  %v6902_v8 = vsel %vm1806_vm2, %v6901_v51, %v6897_v56  ;;  %v7238_v60 = vrot.slane %v13707_v38, %v11023_v62  ;;  %v7242_v54 = vrot.slane %v13632_v6, %v11026_v10  ;;  %v15336_v56 = vld [vmem:[#allocation181_spill] sm:$0xff] }
 0xae9   :  { %v5907_v58 = vsel %vm1806_vm2, %v5906_v24, %v5902_v28  ;;  %v6291_v45 = vsel %vm1945_vm4, %v6237_v53, %v6290_v46  ;;  %v6552_v24 = vsel %vm1806_vm2, %v6551_v61, %v6547_v57  ;;  %v7229_v16 = vrot.slane %v13629_v27, %v11023_v62  ;;  %v15334_v61 = vld [vmem:[#allocation4_spill] sm:$0xff] }
 0xaea   :  { %v13869_v36 = vsel %vm1947_vm5, %v5907_v58, %v5952_v49  ;;  %v6623_v15 = vsel %vm1943_vm3, %v6561_v29, %v6552_v24  ;;  %v13914_v49 = vpop.permute.xlu0 %6452  ;;  %v7243_v21 = vsel %vm1806_vm2, %v7242_v54, %v7238_v60  ;;  %v7583_v6 = vrot.slane %v13713_v39, %v11026_v10 }
 0xaeb   :  { %v6114_v26 = vpop.permute.xlu1 %6113  ;;  %9311 = vset.pattern.permute.xlu1 %v15183_v11  ;;  %v6624_v31 = vsel %vm1945_vm4, %v13757_v9, %v6623_v15  ;;  %v6893_v9 = vsel %vm1806_vm2, %v6892_v5, %v6888_v55  ;;  %v7260_v7 = vrot.slane %v13787_v32, %v11026_v10  ;;  %v7579_v57 = vrot.slane %v13640_v23, %v11023_v62  ;;  %v15335_v23 = vld [vmem:[#allocation51_spill] sm:$0xff]  ;;  %v15337_v15 = vld [vmem:[#allocation45_spill] sm:$0xff] }
 0xaec   :  { %v6245_v20 = vrot.slane %v6114_v26, %v11026_v10  ;;  %6131 = vperm.xlu1 %9311, %v13665_v0   ;;  %v6964_v38 = vsel %vm1943_vm3, %v6902_v8, %v6893_v9  ;;  %v7574_v39 = vrot.slane %v13637_v35, %v11026_v10  ;;  %v7570_v32 = vrot.slane %v15334_v61, %v11023_v62 }
 0xaed   :  { %v6965_v53 = vsel %vm1945_vm4, %v13768_v1, %v6964_v38  ;;  %v7234_v1 = vsel %vm1806_vm2, %v7233_v17, %v7229_v16  ;;  %v7584_v29 = vsel %vm1806_vm2, %v7583_v6, %v7579_v57  ;;  %v7920_v5 = vrot.slane %v15336_v56, %v11023_v62 }
 0xaee   :  { %v6246_v22 = vsel %vm1806_vm2, %v6245_v20, %v6241_v48  ;;  %v13943_v20 = vpop.permute.xlu0 %6790  ;;  %v7305_v46 = vsel %vm1943_vm3, %v7243_v21, %v7234_v1  ;;  %v7575_v35 = vsel %vm1806_vm2, %v7574_v39, %v7570_v32  ;;  %v15339_v21 = vld [vmem:[#allocation43_spill] sm:$0xff]  ;;  %v15340_v1 = vld [vmem:[#allocation196_spill] sm:$0xff] }
 0xaef   :  { %v13893_v41 = vsel %vm1947_vm5, %v6246_v22, %v6291_v45  ;;  %v7306_v45 = vsel %vm1945_vm4, %v13779_v34, %v7305_v46  ;;  %v7597_v34 = vrot.slane %v13801_v33, %v11023_v62  ;;  %v15338_v33 = vld [vmem:[#allocation52_spill] sm:$0xff] }
 0xaf0   :  { %v6444_v30 = vpop.permute.xlu1 %6443  ;;  %9312 = vset.pattern.permute.xlu1 %v15184_v12  ;;  %v7911_v60 = vrot.slane %v15338_v33, %v11023_v62 }
 0xaf1   :  { %v6574_v28 = vrot.slane %v6444_v30, %v11023_v62  ;;  %6461 = vperm.xlu1 %9312, %v13676_v50   ;;  %v7924_v30 = vrot.slane %v15335_v23, %v11026_v10 }
 0xaf3   :  { %v6579_v37 = vsel %vm1806_vm2, %v6578_v40, %v6574_v28  ;;  %v13971_v40 = vpop.permute.xlu0 %7134 }
 0xaf4   :  { %v13917_v58 = vsel %vm1947_vm5, %v6579_v37, %v6624_v31  ;;  %v7915_v31 = vrot.slane %v15337_v15, %v11026_v10  ;;  %v7646_v37 = vsel %vm1943_vm3, %v7584_v29, %v7575_v35  ;;  %v15341_v35 = vmov 5  }
 0xaf5   :  { %v6788_v44 = vpop.permute.xlu1 %6787  ;;  %9315 = vset.pattern.permute.xlu1 %v15185_v25  ;;  %v7647_v55 = vsel %vm1945_vm4, %v13790_v13, %v7646_v37 }
 0xaf6   :  { %v6919_v59 = vrot.slane %v6788_v44, %v11026_v10  ;;  %6805 = vperm.xlu1 %9315, %v13665_v0   ;;  %v7925_v44 = vsel %vm1806_vm2, %v7924_v30, %v7920_v5 }
 0xaf7   :  { %v7473_v16 = vpop.permute.xlu0 %7472 }
 0xaf8   :  { %v6920_v26 = vsel %vm1806_vm2, %v6919_v59, %v6915_v4  ;;  %v7916_v4 = vsel %vm1806_vm2, %v7915_v31, %v7911_v60  ;;  %v7938_v59 = vrot.slane %v13821_v2, %v11023_v62  ;;  %v7606_v37 = vrot.slane %v7473_v16, %v11023_v62  ;;  %v15342_v60 = vld [vmem:[#allocation58_spill] sm:$0xff] }
 0xaf9   :  { %v13939_v48 = vsel %vm1947_vm5, %v6920_v26, %v6965_v53  ;;  %v7987_v54 = vsel %vm1943_vm3, %v7925_v44, %v7916_v4 }
 0xafa   :  { %v7126_v27 = vpop.permute.xlu1 %7125  ;;  %9316 = vset.pattern.permute.xlu1 %v15186_v19  ;;  %v7988_v38 = vsel %vm1945_vm4, %v13799_v14, %v7987_v54 }
 0xafb   :  { %v7256_v47 = vrot.slane %v7126_v27, %v11023_v62  ;;  %7143 = vperm.xlu1 %9316, %v13676_v50   ;;  %v7817_v2 = vpop.permute.xlu0 %7816 }
 0xafc   :  { %v7951_v33 = vrot.slane %v7817_v2, %v11026_v10 }
 0xafd   :  { %v7261_v22 = vsel %vm1806_vm2, %v7260_v7, %v7256_v47 }
 0xafe   :  { %v13963_v51 = vsel %vm1947_vm5, %v7261_v22, %v7306_v45 }
 0xaff   :  { %v7470_v24 = vpop.permute.xlu1 %7469  ;;  %9319 = vset.pattern.permute.xlu1 %v15190_v42  ;;  %v8158_v47 = vpop.permute.xlu0 %8157 }
 0xb00   :  { %v7601_v28 = vrot.slane %v7470_v24, %v11026_v10  ;;  %7825 = vperm.xlu1 %9319, %v13676_v50  }
 0xb02   :  { %v7602_v8 = vsel %vm1806_vm2, %v7601_v28, %v7597_v34 }
 0xb03   :  { %v13987_v50 = vsel %vm1947_vm5, %v7602_v8, %v7647_v55  ;;  %v5787_v22 = vpop.permute.xlu0 %5786 }
 0xb04   :  { %v7811_v9 = vpop.permute.xlu1 %7810  ;;  %9322 = vset.pattern.permute.xlu1 %v15191_v52 }
 0xb05   :  { %v7942_v13 = vrot.slane %v7811_v9, %v11026_v10  ;;  %8169 = vperm.xlu1 %9322, %v13665_v0  }
 0xb07   :  { %v7943_v53 = vsel %vm1806_vm2, %v7942_v13, %v7938_v59 }
 0xb08   :  { %v14000_v26 = vsel %vm1947_vm5, %v7943_v53, %v7988_v38  ;;  %v5924_v38 = vrot.slane %v5787_v22, %v11026_v10 }
 0xb09   :  { %v8149_v17 = vpop.permute.xlu1 %8148  ;;  %9323 = vset.pattern.permute.xlu1 %v15192_v43  ;;  %v5915_v43 = vrot.slane %v13859_v63, %v11026_v10 }
 0xb0a   :  { %5795 = vperm.xlu1 %9323, %v15339_v21   ;;  %v8279_v0 = vrot.slane %v8149_v17, %v11023_v62 }
 0xb0d   :  { %v8152_v6 = vpop.permute.xlu1 %8151 }
 0xb0e   :  { %v8283_v27 = vrot.slane %v8152_v6, %v11026_v10  ;;  %9326 = vset.pattern.permute.xlu1 %v15183_v11 }
 0xb0f   :  { %6137 = vperm.xlu1 %9326, %v15340_v1  }
 0xb10   :  { %v8284_v14 = vsel %vm1806_vm2, %v8283_v27, %v8279_v0 }
 0xb11   :  { %v8330_v7 = vsel %vm1947_vm5, %v8284_v14, %v13841_v18  ;;  %v6250_v18 = vrot.slane %v13885_v3, %v11023_v62  ;;  %v6123_v3 = vpop.permute.xlu0 %6122 }
 0xb12   :  { %v5778_v57 = vpop.permute.xlu1 %5777  ;;  %v6259_v6 = vrot.slane %v6123_v3, %v11023_v62 }
 0xb13   :  { %v5911_v39 = vrot.slane %v5778_v57, %v11023_v62  ;;  %9327 = vset.pattern.permute.xlu1 %v15184_v12 }
 0xb14   :  { %6467 = vperm.xlu1 %9327, %v15339_v21  }
 0xb15   :  { %v5916_v11 = vsel %vm1806_vm2, %v5915_v43, %v5911_v39 }
 0xb16   :  { %v5954_v46 = vsel %vm1949_vm6, %v5916_v11, %v13869_v36  ;;  %v6587_v36 = vrot.slane %v13914_v49, %v11026_v10  ;;  %v6459_v49 = vpop.permute.xlu0 %6458 }
 0xb17   :  { %v6120_v45 = vpop.permute.xlu1 %6119 }
 0xb18   :  { %v6254_v61 = vrot.slane %v6120_v45, %v11026_v10  ;;  %9330 = vset.pattern.permute.xlu1 %v15185_v25 }
 0xb19   :  { %6811 = vperm.xlu1 %9330, %v15340_v1  }
 0xb1a   :  { %v6255_v12 = vsel %vm1806_vm2, %v6254_v61, %v6250_v18  ;;  %v6797_v5 = vpop.permute.xlu0 %6796 }
 0xb1b   :  { %v6293_v63 = vsel %vm1949_vm6, %v6255_v12, %v13893_v41  ;;  %v6924_v41 = vrot.slane %v13943_v20, %v11023_v62  ;;  %v6933_v45 = vrot.slane %v6797_v5, %v11023_v62 }
 0xb1c   :  { %v6450_v32 = vpop.permute.xlu1 %6449 }
 0xb1d   :  { %v6583_v29 = vrot.slane %v6450_v32, %v11023_v62  ;;  %9331 = vset.pattern.permute.xlu1 %v15186_v19 }
 0xb1e   :  { %7149 = vperm.xlu1 %9331, %v15339_v21   ;;  %v7141_v55 = vpop.permute.xlu0 %7140 }
 0xb1f   :  { %v6588_v25 = vsel %vm1806_vm2, %v6587_v36, %v6583_v29  ;;  %v7278_v32 = vrot.slane %v7141_v55, %v11026_v10 }
 0xb20   :  { %v6626_v23 = vsel %vm1949_vm6, %v6588_v25, %v13917_v58  ;;  %v7269_v58 = vrot.slane %v13971_v40, %v11026_v10 }
 0xb21   :  { %v6794_v30 = vpop.permute.xlu1 %6793 }
 0xb22   :  { %v6928_v24 = vrot.slane %v6794_v30, %v11026_v10  ;;  %9333 = vset.pattern.permute.xlu1 %v15341_v35  ;;  %v7479_v4 = vpop.permute.xlu0 %7478 }
 0xb23   :  { %7490 = vperm.xlu1 %9333, %v15339_v21  }
 0xb24   :  { %v6929_v19 = vsel %vm1806_vm2, %v6928_v24, %v6924_v41 }
 0xb25   :  { %v6967_v34 = vsel %vm1949_vm6, %v6929_v19, %v13939_v48 }
 0xb26   :  { %v7132_v28 = vpop.permute.xlu1 %7131  ;;  %v7823_v17 = vpop.permute.xlu0 %7822 }
 0xb27   :  { %v7265_v56 = vrot.slane %v7132_v28, %v11023_v62  ;;  %9336 = vset.pattern.permute.xlu1 %v15190_v42  ;;  %v7960_v19 = vrot.slane %v7823_v17, %v11026_v10 }
 0xb28   :  { %7834 = vperm.xlu1 %9336, %v15340_v1  }
 0xb29   :  { %v7270_v20 = vsel %vm1806_vm2, %v7269_v58, %v7265_v56 }
 0xb2a   :  { %v7308_v15 = vsel %vm1949_vm6, %v7270_v20, %v13963_v51  ;;  %v8164_v27 = vpop.permute.xlu0 %8163 }
 0xb2b   :  { %v7476_v31 = vpop.permute.xlu1 %7475  ;;  %v8301_v5 = vrot.slane %v8164_v27, %v11026_v10 }
 0xb2c   :  { %v7610_v48 = vrot.slane %v7476_v31, %v11026_v10  ;;  %9338 = vset.pattern.permute.xlu1 %v15191_v52 }
 0xb2d   :  { %8175 = vperm.xlu1 %9338, %v15340_v1  }
 0xb2e   :  { %v7611_v40 = vsel %vm1806_vm2, %v7610_v48, %v7606_v37  ;;  %v14086_v39 = vpop.permute.xlu0 %5792 }
 0xb2f   :  { %v7649_v42 = vsel %vm1949_vm6, %v7611_v40, %v13987_v50  ;;  %v8292_v50 = vrot.slane %v8158_v47, %v11026_v10  ;;  %v6596_v47 = vrot.slane %v6459_v49, %v11026_v10 }
 0xb30   :  { %v7814_v8 = vpop.permute.xlu1 %7813 }
 0xb31   :  { %v7947_v51 = vrot.slane %v7814_v8, %v11023_v62  ;;  %7994 = vrot.lane.b32.xlu1 %v15342_v60, %s9549_s27  ;;  %v15344_v8 = vld [vmem:[#allocation83_spill] sm:$0xff] }
 0xb32   :  { %v14097_v12 = vpop.permute.xlu0 %6128 }
 0xb33   :  { %v7952_v44 = vsel %vm1806_vm2, %v7951_v33, %v7947_v51  ;;  %v6146_v33 = vrot.slane %v15344_v8, %v11026_v10  ;;  %v15345_v51 = vld [vmem:[#allocation70_spill] sm:$0xff] }
 0xb34   :  { %v7990_v52 = vsel %vm1949_vm6, %v7952_v44, %v14000_v26  ;;  %v6479_v44 = vrot.slane %v15345_v51, %v11026_v10 }
 0xb35   :  { %v8155_v9 = vpop.permute.xlu1 %8154  ;;  %8335 = vrot.lane.b32.xlu1 %v15342_v60, %s9550_s2 }
 0xb36   :  { %v8288_v59 = vrot.slane %v8155_v9, %v11023_v62  ;;  %v14106_v30 = vpop.permute.xlu0 %6464 }
 0xb38   :  { %v8293_v13 = vsel %vm1806_vm2, %v8292_v50, %v8288_v59 }
 0xb39   :  { %v8331_v54 = vsel %vm1949_vm6, %v8293_v13, %v8330_v7  ;;  %v15348_v13 = vld [vmem:[#allocation87_spill] sm:$0xff] }
 0xb3a   :  { %v5784_v16 = vpop.permute.xlu1 %5783  ;;  %v14115_v28 = vpop.permute.xlu0 %6802 }
 0xb3b   :  { %v5920_v53 = vrot.slane %v5784_v16, %v11023_v62  ;;  %v15349_v16 = vld [vmem:[#allocation74_spill] sm:$0xff] }
 0xb3d   :  { %v5925_v26 = vsel %vm1806_vm2, %v5924_v38, %v5920_v53  ;;  %v7161_v38 = vrot.slane %v15349_v16, %v11026_v10  ;;  %v15350_v53 = vld [vmem:[#allocation89_spill] sm:$0xff] }
 0xb3e   :  { %v14075_v21 = vsel %vm1951_vm7, %v5925_v26, %v5954_v46  ;;  %v14123_v31 = vpop.permute.xlu0 %7146  ;;  %v7157_v17 = vrot.slane %v15350_v53, %v11023_v62 }
 0xb3f   :  { %v6126_v2 = vpop.permute.xlu1 %6125 }
 0xb40   :  { %v6263_v0 = vrot.slane %v6126_v2, %v11026_v10  ;;  %v15351_v2 = vld [vmem:[#allocation76_spill] sm:$0xff] }
 0xb42   :  { %v6264_v1 = vsel %vm1806_vm2, %v6263_v0, %v6259_v6  ;;  %v14139_v50 = vpop.permute.xlu0 %7484  ;;  %v7498_v6 = vrot.slane %v15351_v2, %v11023_v62  ;;  %v15352_v0 = vld [vmem:[#allocation84_spill] sm:$0xff] }
 0xb43   :  { %v14081_v14 = vsel %vm1951_vm7, %v6264_v1, %v6293_v63  ;;  %v6155_v27 = vrot.slane %v15352_v0, %v11026_v10  ;;  %v15353_v1 = vld [vmem:[#allocation86_spill] sm:$0xff] }
 0xb44   :  { %v6456_v7 = vpop.permute.xlu1 %6455 }
 0xb45   :  { %v6592_v57 = vrot.slane %v6456_v7, %v11023_v62  ;;  %v6484_v7 = vrot.slane %v15353_v1, %v11023_v62 }
 0xb47   :  { %v6597_v43 = vsel %vm1806_vm2, %v6596_v47, %v6592_v57  ;;  %v15354_v47 = vld [vmem:[#allocation91_spill] sm:$0xff] }
 0xb48   :  { %v14089_v11 = vsel %vm1951_vm7, %v6597_v43, %v6626_v23  ;;  %v7615_v23 = vrot.slane %v7479_v4, %v11023_v62  ;;  %v15347_v4 = vld [vmem:[#allocation72_spill] sm:$0xff]  ;;  %v7502_v57 = vrot.slane %v15354_v47, %v11026_v10  ;;  %v15355_v43 = vld [vmem:[#allocation78_spill] sm:$0xff] }
 0xb49   :  { %v6800_v46 = vpop.permute.xlu1 %6799  ;;  %v6816_v59 = vrot.slane %v15347_v4, %v11023_v62  ;;  %v15364_v4 = vld [vmem:[#allocation113_spill] sm:$0xff] }
 0xb4a   :  { %v6937_v18 = vrot.slane %v6800_v46, %v11026_v10  ;;  %v7839_v46 = vrot.slane %v15355_v43, %v11023_v62  ;;  %v15370_v43 = vld [vmem:[#allocation90_spill] sm:$0xff] }
 0xb4c   :  { %v6938_v22 = vsel %vm1806_vm2, %v6937_v18, %v6933_v45  ;;  %v15356_v45 = vld [vmem:[#allocation93_spill] sm:$0xff] }
 0xb4d   :  { %v14095_v61 = vsel %vm1951_vm7, %v6938_v22, %v6967_v34  ;;  %v7843_v18 = vrot.slane %v15356_v45, %v11026_v10  ;;  %v15357_v22 = vld [vmem:[#allocation103_spill] sm:$0xff] }
 0xb4e   :  { %v7138_v63 = vpop.permute.xlu1 %7137 }
 0xb4f   :  { %v7274_v36 = vrot.slane %v7138_v63, %v11023_v62  ;;  %v6829_v63 = vrot.slane %v15357_v22, %v11026_v10 }
 0xb51   :  { %v7279_v29 = vsel %vm1806_vm2, %v7278_v32, %v7274_v36  ;;  %v15358_v36 = vld [vmem:[#allocation82_spill] sm:$0xff] }
 0xb52   :  { %v14103_v3 = vsel %vm1951_vm7, %v7279_v29, %v7308_v15  ;;  %v6151_v29 = vrot.slane %v15358_v36, %v11023_v62 }
 0xb53   :  { %v7482_v25 = vpop.permute.xlu1 %7481 }
 0xb54   :  { %v7619_v41 = vrot.slane %v7482_v25, %v11026_v10  ;;  %v15359_v25 = vld [vmem:[#allocation97_spill] sm:$0xff] }
 0xb56   :  { %v7620_v24 = vsel %vm1806_vm2, %v7619_v41, %v7615_v23  ;;  %v6488_v23 = vrot.slane %v15359_v25, %v11026_v10  ;;  %v15360_v41 = vld [vmem:[#allocation105_spill] sm:$0xff]  ;;  %v15373_v25 = vld [vmem:[#allocation108_spill] sm:$0xff] }
 0xb57   :  { %v14111_v35 = vsel %vm1951_vm7, %v7620_v24, %v7649_v42  ;;  %v15343_v42 = vld [vmem:[#allocation68_spill] sm:$0xff]  ;;  %v7166_v24 = vrot.slane %v15360_v41, %v11023_v62 }
 0xb58   :  { %v7820_v49 = vpop.permute.xlu1 %7819  ;;  %v6142_v55 = vrot.slane %v15343_v42, %v11023_v62  ;;  %v6489_v42 = vsel %vm1806_vm2, %v6488_v23, %v6484_v7  ;;  %v15369_v7 = vld [vmem:[#allocation111_spill] sm:$0xff]  ;;  %v6838_v23 = vrot.slane %v15373_v25, %v11026_v10 }
 0xb59   :  { %v7956_v34 = vrot.slane %v7820_v49, %v11023_v62  ;;  %v7848_v47 = vrot.slane %v15369_v7, %v11023_v62 }
 0xb5a   :  { %v6147_v32 = vsel %vm1806_vm2, %v6146_v33, %v6142_v55  ;;  %v15363_v55 = vld [vmem:[#allocation109_spill] sm:$0xff]  ;;  %v14183_v33 = vpop.permute.xlu0 %7487 }
 0xb5b   :  { %v7961_v58 = vsel %vm1806_vm2, %v7960_v19, %v7956_v34  ;;  %v7162_v34 = vsel %vm1806_vm2, %v7161_v38, %v7157_v17  ;;  %v7511_v8 = vrot.slane %v15363_v55, %v11026_v10  ;;  %v15366_v38 = vld [vmem:[#allocation107_spill] sm:$0xff]  ;;  %v15367_v17 = vld [vmem:[#allocation104_spill] sm:$0xff] }
 0xb5c   :  { %v14119_v56 = vsel %vm1951_vm7, %v7961_v58, %v7990_v52  ;;  %v15346_v52 = vld [vmem:[#allocation85_spill] sm:$0xff]  ;;  %v7507_v53 = vrot.slane %v15366_v38, %v11023_v62  ;;  %v6164_v2 = vrot.slane %v15367_v17, %v11026_v10  ;;  %v15381_v17 = vld [vmem:[#allocation119_spill] sm:$0xff] }
 0xb5d   :  { %v8161_v20 = vpop.permute.xlu1 %8160  ;;  %v6475_v9 = vrot.slane %v15346_v52, %v11023_v62  ;;  %v15361_v58 = vld [vmem:[#allocation101_spill] sm:$0xff]  ;;  %v7844_v52 = vsel %vm1806_vm2, %v7843_v18, %v7839_v46  ;;  %v6497_v46 = vrot.slane %v15370_v43, %v11026_v10  ;;  %v15371_v18 = vld [vmem:[#allocation106_spill] sm:$0xff]  ;;  %v15383_v43 = vld [vmem:[#allocation131_spill] sm:$0xff] }
 0xb5e   :  { %v8297_v15 = vrot.slane %v8161_v20, %v11023_v62  ;;  %v6825_v20 = vrot.slane %v15361_v58, %v11023_v62  ;;  %v7512_v45 = vsel %vm1806_vm2, %v7511_v8, %v7507_v53  ;;  %v6493_v22 = vrot.slane %v15371_v18, %v11023_v62  ;;  %v15375_v58 = vld [vmem:[#allocation112_spill] sm:$0xff]  ;;  %v15380_v38 = vld [vmem:[#allocation117_spill] sm:$0xff] }
 0xb5f   :  { %v6480_v49 = vsel %vm1806_vm2, %v6479_v44, %v6475_v9  ;;  %v7503_v44 = vsel %vm1806_vm2, %v7502_v57, %v7498_v6  ;;  %v15378_v8 = vld [vmem:[#allocation96_spill] sm:$0xff]  ;;  %v6169_v53 = vrot.slane %v15380_v38, %v11023_v62 }
 0xb60   :  { %v8302_v37 = vsel %vm1806_vm2, %v8301_v5, %v8297_v15  ;;  %v6156_v5 = vsel %vm1806_vm2, %v6155_v27, %v6151_v29  ;;  %v15362_v15 = vld [vmem:[#allocation99_spill] sm:$0xff]  ;;  %v6830_v9 = vsel %vm1806_vm2, %v6829_v63, %v6825_v20  ;;  %v6616_v0 = vsel %vm1943_vm3, %v6489_v42, %v6480_v49  ;;  %v15368_v27 = vld [vmem:[#allocation88_spill] sm:$0xff]  ;;  %v15374_v49 = vld [vmem:[#allocation110_spill] sm:$0xff] }
 0xb61   :  { %v14127_v48 = vsel %vm1951_vm7, %v8302_v37, %v8331_v54  ;;  %v6820_v54 = vrot.slane %v15348_v13, %v11026_v10  ;;  %v7170_v37 = vrot.slane %v15362_v15, %v11026_v10  ;;  %v15365_v13 = vld [vmem:[#allocation80_spill] sm:$0xff]  ;;  %v6283_v6 = vsel %vm1943_vm3, %v6156_v5, %v6147_v32  ;;  %v14226_v15 = vpop.permute.xlu0 %7828 }
 0xb62   :  { %v14129_v40 = vpop.permute.xlu1 %5789  ;;  %v6160_v1 = vrot.slane %v15368_v27, %v11023_v62  ;;  %v15372_v32 = vld [vmem:[#allocation92_spill] sm:$0xff]  ;;  %v7520_v20 = vrot.slane %v15375_v58, %v11026_v10  ;;  %v7639_v55 = vsel %vm1943_vm3, %v7512_v45, %v7503_v44  ;;  %v6498_v27 = vsel %vm1806_vm2, %v6497_v46, %v6493_v22  ;;  %v15382_v44 = vld [vmem:[#allocation121_spill] sm:$0xff] }
 0xb63   :  { %v6821_v19 = vsel %vm1806_vm2, %v6820_v54, %v6816_v59  ;;  %v7852_v59 = vrot.slane %v15364_v4, %v11026_v10  ;;  %v7171_v16 = vsel %vm1806_vm2, %v7170_v37, %v7166_v24  ;;  %v6834_v36 = vrot.slane %v15372_v32, %v11023_v62  ;;  %v15377_v37 = vld [vmem:[#allocation94_spill] sm:$0xff]  ;;  %v15385_v22 = vld [vmem:[#allocation124_spill] sm:$0xff] }
 0xb64   :  { %v6957_v57 = vsel %vm1943_vm3, %v6830_v9, %v6821_v19  ;;  %v7298_v63 = vsel %vm1943_vm3, %v7171_v16, %v7162_v34  ;;  %v6165_v24 = vsel %vm1806_vm2, %v6164_v2, %v6160_v1  ;;  %v7175_v19 = vrot.slane %v15374_v49, %v11023_v62  ;;  %v15376_v34 = vld [vmem:[#allocation114_spill] sm:$0xff]  ;;  %v15387_v49 = vld [vmem:[#allocation132_spill] sm:$0xff] }
 0xb65   :  { %v7853_v29 = vsel %vm1806_vm2, %v7852_v59, %v7848_v47  ;;  %v7861_v5 = vrot.slane %v15376_v34, %v11026_v10  ;;  %v7179_v42 = vrot.slane %v15377_v37, %v11026_v10  ;;  %v7516_v9 = vrot.slane %v15378_v8, %v11023_v62  ;;  %v15379_v4 = vld [vmem:[#allocation98_spill] sm:$0xff]  ;;  %v14268_v8 = vpop.permute.xlu0 %8166 }
 0xb66   :  { %v7857_v59 = vrot.slane %v15379_v4, %v11023_v62  ;;  %v7980_v16 = vsel %vm1943_vm3, %v7853_v29, %v7844_v52  ;;  %v6506_v2 = vrot.slane %v15381_v17, %v11026_v10  ;;  %v6284_v1 = vsel %vm1945_vm4, %v6165_v24, %v6283_v6  ;;  %v15384_v29 = vld [vmem:[#allocation120_spill] sm:$0xff] }
 0xb67   :  { %v14149_v26 = vpop.permute.xlu1 %6131  ;;  %v6843_v7 = vrot.slane %v15382_v44, %v11023_v62  ;;  %v6839_v47 = vsel %vm1806_vm2, %v6838_v23, %v6834_v36  ;;  %v6173_v45 = vrot.slane %v15383_v43, %v11026_v10  ;;  %v7180_v52 = vsel %vm1806_vm2, %v7179_v42, %v7175_v19  ;;  %v15386_v36 = vld [vmem:[#allocation128_spill] sm:$0xff]  ;;  %v15390_v42 = vld [vmem:[#allocation134_spill] sm:$0xff]  ;;  %v15393_v43 = vld [vmem:[#allocation137_spill] sm:$0xff] }
 0xb68   :  { %v7521_v18 = vsel %vm1806_vm2, %v7520_v20, %v7516_v9  ;;  %v7862_v32 = vsel %vm1806_vm2, %v7861_v5, %v7857_v59  ;;  %v6502_v25 = vrot.slane %v15384_v29, %v11023_v62  ;;  %v6617_v6 = vsel %vm1945_vm4, %v6498_v27, %v6616_v0  ;;  %v15388_v20 = vld [vmem:[#allocation123_spill] sm:$0xff]  ;;  %v15389_v5 = vld [vmem:[#allocation125_spill] sm:$0xff] }
 0xb69   :  { %v6847_v24 = vrot.slane %v15385_v22, %v11026_v10  ;;  %v7184_v23 = vrot.slane %v15386_v36, %v11023_v62  ;;  %v7529_v19 = vrot.slane %v15387_v49, %v11026_v10  ;;  %v6958_v58 = vsel %vm1945_vm4, %v6839_v47, %v6957_v57  ;;  %v15391_v57 = vld [vmem:[#allocation118_spill] sm:$0xff]  ;;  %v15392_v27 = vld [vmem:[#allocation129_spill] sm:$0xff]  ;;  %v15398_v49 = vld [vmem:[#allocation140_spill] sm:$0xff] }
 0xb6a   :  { %v7188_v34 = vrot.slane %v15388_v20, %v11026_v10  ;;  %v7525_v37 = vrot.slane %v15389_v5, %v11023_v62  ;;  %v7870_v0 = vrot.slane %v15390_v42, %v11026_v10  ;;  %v7299_v9 = vsel %vm1945_vm4, %v7180_v52, %v7298_v63  ;;  %v15399_v20 = vld [vmem:[#allocation142_spill] sm:$0xff] }
 0xb6b   :  { %v7640_v4 = vsel %vm1945_vm4, %v7521_v18, %v7639_v55  ;;  %v7981_v59 = vsel %vm1945_vm4, %v7862_v32, %v7980_v16  ;;  %v6174_v38 = vsel %vm1806_vm2, %v6173_v45, %v6169_v53  ;;  %v6178_v17 = vrot.slane %v15391_v57, %v11023_v62  ;;  %v15394_v16 = vld [vmem:[#allocation147_spill] sm:$0xff]  ;;  %v15395_v18 = vld [vmem:[#allocation133_spill] sm:$0xff]  ;;  %v15400_v5 = vld [vmem:[#allocation126_spill] sm:$0xff] }
 0xb6c   :  { %v14185_v51 = vpop.permute.xlu1 %6461  ;;  %v6515_v44 = vrot.slane %v15392_v27, %v11026_v10  ;;  %v6507_v47 = vsel %vm1806_vm2, %v6506_v2, %v6502_v25  ;;  %v7866_v29 = vrot.slane %v15393_v43, %v11023_v62  ;;  %v6848_v22 = vsel %vm1806_vm2, %v6847_v24, %v6843_v7  ;;  %v15396_v25 = vld [vmem:[#allocation138_spill] sm:$0xff] }
 0xb6d   :  { %v7189_v63 = vsel %vm1806_vm2, %v7188_v34, %v7184_v23  ;;  %v7530_v55 = vsel %vm1806_vm2, %v7529_v19, %v7525_v37  ;;  %v6182_v53 = vrot.slane %v15394_v16, %v11026_v10  ;;  %v6285_v52 = vsel %vm1947_vm5, %v6174_v38, %v6284_v1  ;;  %v15397_v24 = vld [vmem:[#allocation122_spill] sm:$0xff]  ;;  %v15401_v38 = vld [vmem:[#allocation139_spill] sm:$0xff] }
 0xb6e   :  { %v6852_v32 = vrot.slane %v15395_v18, %v11023_v62  ;;  %v7871_v2 = vsel %vm1806_vm2, %v7870_v0, %v7866_v29  ;;  %v6511_v36 = vrot.slane %v15396_v25, %v11023_v62  ;;  %v6618_v7 = vsel %vm1947_vm5, %v6507_v47, %v6617_v6  ;;  %v5799_v6 = vpop.permute.xlu0 %5798  ;;  %v15402_v47 = vld [vmem:[#allocation141_spill] sm:$0xff]  ;;  %v15403_v29 = vld [vmem:[#allocation144_spill] sm:$0xff]  ;;  %v15406_v25 = vld [vmem:[#allocation166_spill] sm:$0xff] }
 0xb6f   :  { %v7197_v23 = vrot.slane %v15397_v24, %v11026_v10  ;;  %v6856_v19 = vrot.slane %v15398_v49, %v11026_v10  ;;  %v7193_v34 = vrot.slane %v15399_v20, %v11023_v62  ;;  %v6959_v1 = vsel %vm1947_vm5, %v6848_v22, %v6958_v58  ;;  %v15408_v49 = vld [vmem:[#allocation149_spill] sm:$0xff] }
 0xb70   :  { %v7534_v37 = vrot.slane %v15400_v5, %v11023_v62  ;;  %v7300_v42 = vsel %vm1947_vm5, %v7189_v63, %v7299_v9  ;;  %v14306_v0 = vsel %vm1947_vm5, %v7530_v55, %v7640_v4  ;;  %v6187_v57 = vrot.slane %v15401_v38, %v11023_v62  ;;  %v15404_v4 = vld [vmem:[#allocation143_spill] sm:$0xff]  ;;  %v15405_v55 = vld [vmem:[#allocation165_spill] sm:$0xff] }
 0xb71   :  { %v14217_v41 = vpop.permute.xlu1 %6805  ;;  %v14311_v27 = vsel %vm1947_vm5, %v7871_v2, %v7981_v59  ;;  %v6524_v43 = vrot.slane %v15402_v47, %v11026_v10  ;;  %v6183_v58 = vsel %vm1806_vm2, %v6182_v53, %v6178_v17  ;;  %v6861_v22 = vrot.slane %v15403_v29, %v11023_v62  ;;  %v15409_v5 = vld [vmem:[#allocation151_spill] sm:$0xff] }
 0xb72   :  { %v6516_v9 = vsel %vm1806_vm2, %v6515_v44, %v6511_v36  ;;  %v7538_v63 = vrot.slane %v15404_v4, %v11026_v10  ;;  %v6191_v16 = vrot.slane %v15405_v55, %v11026_v10  ;;  %v6857_v59 = vsel %vm1806_vm2, %v6856_v19, %v6852_v32  ;;  %v15407_v44 = vld [vmem:[#allocation136_spill] sm:$0xff]  ;;  %v15412_v4 = vld [vmem:[#allocation154_spill] sm:$0xff] }
 0xb73   :  { %v7198_v2 = vsel %vm1806_vm2, %v7197_v23, %v7193_v34  ;;  %v6200_v17 = vrot.slane %v15406_v25, %v11026_v10  ;;  %v5929_v53 = vrot.slane %v14129_v40, %v11023_v62  ;;  %v7206_v36 = vrot.slane %v15407_v44, %v11026_v10  ;;  %v15410_v23 = vld [vmem:[#allocation155_spill] sm:$0xff]  ;;  %v15411_v34 = vld [vmem:[#allocation178_spill] sm:$0xff] }
 0xb74   :  { %v6286_v24 = vsel %vm1949_vm6, %v6183_v58, %v6285_v52  ;;  %v7543_v20 = vrot.slane %v15408_v49, %v11023_v62  ;;  %v7888_v38 = vrot.slane %v15409_v5, %v11026_v10  ;;  %v6619_v32 = vsel %vm1949_vm6, %v6516_v9, %v6618_v7  ;;  %v6135_v9 = vpop.permute.xlu0 %6134  ;;  %v15413_v25 = vld [vmem:[#allocation162_spill] sm:$0xff] }
 0xb75   :  { %v6196_v19 = vrot.slane %v15410_v23, %v11023_v62  ;;  %v6209_v47 = vrot.slane %v15411_v34, %v11026_v10  ;;  %v5933_v40 = vrot.slane %v14086_v39, %v11026_v10  ;;  %v14346_v29 = vsel %vm1949_vm6, %v6857_v59, %v6959_v1  ;;  %v15448_v5 = vld [vmem:[#allocation102_spill] sm:$0xff] }
 0xb76   :  { %v14252_v46 = vpop.permute.xlu1 %7143  ;;  %v14349_v52 = vsel %vm1949_vm6, %v7198_v2, %v7300_v42  ;;  %v14352_v58 = vsel %vm1806_vm2, %v7538_v63, %v7534_v37  ;;  %v6192_v7 = vsel %vm1806_vm2, %v6191_v16, %v6187_v57  ;;  %v6520_v55 = vrot.slane %v15412_v4, %v11023_v62  ;;  %v15414_v42 = vld [vmem:[#allocation168_spill] sm:$0xff]  ;;  %v15415_v16 = vld [vmem:[#allocation161_spill] sm:$0xff]  ;;  %v15416_v4 = vld [vmem:[#allocation167_spill] sm:$0xff] }
 0xb77   :  { %v6205_v23 = vrot.slane %v15413_v25, %v11023_v62  ;;  %v6201_v39 = vsel %vm1806_vm2, %v6200_v17, %v6196_v19  ;;  %v5934_v1 = vsel %vm1806_vm2, %v5933_v40, %v5929_v53  ;;  %v6529_v2 = vrot.slane %v15414_v42, %v11023_v62  ;;  %v15417_v19 = vld [vmem:[#allocation179_spill] sm:$0xff] }
 0xb78   :  { %v5942_v37 = vrot.slane %v5799_v6, %v11026_v10  ;;  %v6272_v57 = vrot.slane %v14149_v26, %v11026_v10  ;;  %v6533_v34 = vrot.slane %v15415_v16, %v11026_v10  ;;  %v6865_v25 = vrot.slane %v15416_v4, %v11026_v10  ;;  %v15418_v16 = vld [vmem:[#allocation175_spill] sm:$0xff] }
 0xb79   :  { %v6210_v17 = vsel %vm1806_vm2, %v6209_v47, %v6205_v23  ;;  %v6287_v53 = vsel %vm1951_vm7, %v6192_v7, %v6286_v24  ;;  %v6538_v40 = vrot.slane %v15417_v19, %v11023_v62  ;;  %v6268_v6 = vrot.slane %v14097_v12, %v11023_v62  ;;  %v15419_v23 = vld [vmem:[#allocation189_spill] sm:$0xff]  ;;  %v6471_v12 = vpop.permute.xlu0 %6470 }
 0xb7a   :  { %v5956_v26 = vsel %vm1953_vm8, %v5934_v1, %v14075_v21  ;;  %v6525_v42 = vsel %vm1806_vm2, %v6524_v43, %v6520_v55  ;;  %v6542_v4 = vrot.slane %v15418_v16, %v11026_v10  ;;  %v6288_v24 = vsel %vm1953_vm8, %v6201_v39, %v6287_v53 }
 0xb7b   :  { %v14286_v45 = vpop.permute.xlu1 %7825  ;;  %v6534_v7 = vsel %vm1806_vm2, %v6533_v34, %v6529_v2  ;;  %v6874_v19 = vrot.slane %v15419_v23, %v11026_v10  ;;  %v6273_v54 = vsel %vm1806_vm2, %v6272_v57, %v6268_v6  ;;  %v6289_v43 = vsel %vm1955_vm9, %v6210_v17, %v6288_v24  ;;  %v15421_v2 = vld [vmem:[#allocation148_spill] sm:$0xff]  ;;  %v15422_v17 = vld [vmem:[#allocation55_spill] sm:$0xff] }
 0xb7c   :  { %v6277_v55 = vrot.slane %v6135_v9, %v11023_v62  ;;  %v6601_v1 = vrot.slane %v14185_v51, %v11023_v62  ;;  %v6866_v57 = vsel %vm1806_vm2, %v6865_v25, %v6861_v22  ;;  %v6543_v34 = vsel %vm1806_vm2, %v6542_v4, %v6538_v40  ;;  %v15423_v22 = vld [vmem:[#allocation156_spill] sm:$0xff]  ;;  %v15424_v40 = vld [vmem:[#allocation174_spill] sm:$0xff] }
 0xb7d   :  { %v6620_v9 = vsel %vm1951_vm7, %v6525_v42, %v6619_v32  ;;  %v6883_v51 = vrot.slane %v15422_v17, %v11026_v10  ;;  %v6605_v53 = vrot.slane %v14106_v30, %v11026_v10  ;;  %v6295_v6 = vsel %vm1953_vm8, %v6273_v54, %v14081_v14  ;;  %v15425_v32 = vld [vmem:[#allocation73_spill] sm:$0xff]  ;;  %v15426_v14 = vld [vmem:[#allocation176_spill] sm:$0xff]  ;;  %v6809_v23 = vpop.permute.xlu0 %6808 }
 0xb7e   :  { %v7202_v25 = vrot.slane %v15423_v22, %v11023_v62  ;;  %v6621_v16 = vsel %vm1953_vm8, %v6534_v7, %v6620_v9  ;;  %v7211_v54 = vrot.slane %v15426_v14, %v11023_v62  ;;  %v6614_v24 = vrot.slane %v6471_v12, %v11026_v10  ;;  %v15436_v14 = vld [vmem:[#allocation194_spill] sm:$0xff] }
 0xb7f   :  { %v6606_v4 = vsel %vm1806_vm2, %v6605_v53, %v6601_v1  ;;  %v15428_v1 = vld [vmem:[#allocation64_spill] sm:$0xff] }
 0xb80   :  { %v14323_v18 = vpop.permute.xlu1 %8169 }
 0xb85   :  { %v5796_v59 = vpop.permute.xlu1 %5795 }
 0xb86   :  { %v5938_v63 = vrot.slane %v5796_v59, %v11023_v62 }
 0xb88   :  { %v5943_v59 = vsel %vm1806_vm2, %v5942_v37, %v5938_v63  ;;  %v15420_v37 = vld [vmem:[#allocation56_spill] sm:$0xff]  ;;  %v6870_v63 = vrot.slane %v15421_v2, %v11023_v62  ;;  %v6942_v2 = vrot.slane %v14115_v28, %v11023_v62 }
 0xb89   :  { %v5957_v47 = vsel %vm1955_vm9, %v5943_v59, %v5956_v26  ;;  %v6879_v59 = vrot.slane %v15424_v40, %v11023_v62 }
 0xb8a   :  { %v6138_v21 = vpop.permute.xlu1 %6137  ;;  %8772 = vmatmul.mubr.msk.f32.vlgmr.msra.gmra.mxu0 %vm285_vm0, %v5957_v47  ;;  %v6875_v30 = vsel %vm1806_vm2, %v6874_v19, %v6870_v63  ;;  %v6622_v47 = vsel %vm1955_vm9, %v6543_v34, %v6621_v16  ;;  %v7642_v19 = vsel %vm1949_vm6, %v14352_v58, %v14306_v0  ;;  %v6628_v63 = vsel %vm1953_vm8, %v6606_v4, %v14089_v11  ;;  %v15431_v34 = vld [vmem:[#allocation77_spill] sm:$0xff]  ;;  %v15432_v11 = vld [vmem:[#allocation170_spill] sm:$0xff] }
 0xb8b   :  { %v6281_v39 = vrot.slane %v6138_v21, %v11026_v10  ;;  %8775 = vmatpush3.msra.mxu0 %v15420_v37  ;;  %8778 = vmatprep.mubr.msk.f32.mxu0 %vm285_vm0, %v6289_v43  ;;  %v6946_v21 = vrot.slane %v14217_v41, %v11026_v10  ;;  %v15427_v43 = vld [vmem:[#allocation150_spill] sm:$0xff]  ;;  %v6884_v12 = vsel %vm1806_vm2, %v6883_v51, %v6879_v59  ;;  %v15434_v59 = vld [vmem:[#allocation49_spill] sm:$0xff] }
 0xb8c   :  { %8776 = vmatprep.subr.mxu0 %v15342_v60  ;;  %v6961_v41 = vsel %vm1951_vm7, %v6866_v57, %v14346_v29  ;;  %v7207_v58 = vsel %vm1806_vm2, %v7206_v36, %v7202_v25  ;;  %v15430_v29 = vld [vmem:[#allocation158_spill] sm:$0xff]  ;;  %v7224_v17 = vrot.slane %v15432_v11, %v11026_v10  ;;  %v6951_v36 = vrot.slane %v6809_v23, %v11023_v62  ;;  %v15435_v16 = vld [vmem:[#allocation81_spill] sm:$0xff] }
 0xb8d   :  { %v6282_v26 = vsel %vm1806_vm2, %v6281_v39, %v6277_v55  ;;  %8777 = vmatpush3.msra.mxu0 %v15342_v60  ;;  %v7215_v55 = vrot.slane %v15427_v43, %v11026_v10  ;;  %v15429_v39 = vld [vmem:[#allocation6_spill] sm:$0xff]  ;;  %v7547_v57 = vrot.slane %v15430_v29, %v11026_v10  ;;  %v6962_v28 = vsel %vm1953_vm8, %v6875_v30, %v6961_v41  ;;  %v15443_v29 = vld [vmem:[#allocation79_spill] sm:$0xff] }
 0xb8e   :  { %8781 = vmatprep.subr.mxu0 %v15425_v32  ;;  %v6296_v42 = vsel %vm1955_vm9, %v6282_v26, %v6295_v6  ;;  %v7220_v37 = vrot.slane %v15429_v39, %v11023_v62  ;;  %v6947_v53 = vsel %vm1806_vm2, %v6946_v21, %v6942_v2  ;;  %v6963_v44 = vsel %vm1955_vm9, %v6884_v12, %v6962_v28  ;;  %v15433_v25 = vld [vmem:[#allocation146_spill] sm:$0xff]  ;;  %v15438_v21 = vld [vmem:[#allocation60_spill] sm:$0xff]  ;;  %v15441_v2 = vld [vmem:[#allocation145_spill] sm:$0xff] }
 0xb8f   :  { %v6468_v60 = vpop.permute.xlu1 %6467  ;;  %8779 = vmatmul.mubr.msk.f32.vlgmr.msra.gmra.mxu0 %vm285_vm0, %v6296_v42  ;;  %v7216_v51 = vsel %vm1806_vm2, %v7215_v55, %v7211_v54  ;;  %v7283_v26 = vrot.slane %v14252_v46, %v11023_v62  ;;  %v7879_v40 = vrot.slane %v15433_v25, %v11026_v10  ;;  %v7153_v42 = vpop.permute.xlu0 %7152  ;;  %v7302_v46 = vsel %vm1951_vm7, %v7207_v58, %v14349_v52  ;;  %v15440_v55 = vld [vmem:[#allocation59_spill] sm:$0xff] }
 0xb90   :  { %v6610_v7 = vrot.slane %v6468_v60, %v11023_v62  ;;  %8782 = vmatpush3.msra.mxu0 %v15425_v32  ;;  %8785 = vmatprep.mubr.msk.f32.mxu0 %vm285_vm0, %v6622_v47  ;;  %v7556_v32 = vrot.slane %v15434_v59, %v11026_v10  ;;  %v7225_v30 = vsel %vm1806_vm2, %v7224_v17, %v7220_v37 }
 0xb91   :  { %8783 = vmatprep.subr.mxu0 %v15428_v1  ;;  %v7565_v54 = vrot.slane %v15436_v14, %v11026_v10  ;;  %v7287_v4 = vrot.slane %v14123_v31, %v11026_v10  ;;  %v6969_v60 = vsel %vm1953_vm8, %v6947_v53, %v14095_v61  ;;  %v7548_v52 = vsel %vm1806_vm2, %v7547_v57, %v7543_v20  ;;  %v15439_v61 = vld [vmem:[#allocation160_spill] sm:$0xff]  ;;  %v15449_v14 = vld [vmem:[#allocation66_spill] sm:$0xff] }
 0xb92   :  { %v6615_v0 = vsel %vm1806_vm2, %v6614_v24, %v6610_v7  ;;  %8784 = vmatpush3.msra.mxu0 %v15428_v1  ;;  %v15437_v24 = vld [vmem:[#allocation152_spill] sm:$0xff]  ;;  %v7303_v31 = vsel %vm1953_vm8, %v7216_v51, %v7302_v46  ;;  %v7884_v43 = vrot.slane %v15439_v61, %v11023_v62  ;;  %v7561_v1 = vrot.slane %v15440_v55, %v11023_v62  ;;  %v15453_v61 = vld [vmem:[#allocation62_spill] sm:$0xff] }
 0xb93   :  { %8788 = vmatprep.subr.mxu0 %v15431_v34  ;;  %v6629_v9 = vsel %vm1955_vm9, %v6615_v0, %v6628_v63  ;;  %v7552_v23 = vrot.slane %v15437_v24, %v11023_v62  ;;  %v7288_v12 = vsel %vm1806_vm2, %v7287_v4, %v7283_v26  ;;  %v7304_v49 = vsel %vm1955_vm9, %v7225_v30, %v7303_v31  ;;  %v15442_v0 = vld [vmem:[#allocation190_spill] sm:$0xff]  ;;  %v7494_v17 = vpop.permute.xlu0 %7493  ;;  %v15450_v4 = vld [vmem:[#allocation95_spill] sm:$0xff] }
 0xb94   :  { %v6812_v6 = vpop.permute.xlu1 %6811  ;;  %8786 = vmatmul.mubr.msk.f32.vlgmr.msra.gmra.mxu0 %vm285_vm0, %v6629_v9  ;;  %v7296_v39 = vrot.slane %v7153_v42, %v11026_v10  ;;  %v7875_v63 = vrot.slane %v15441_v2, %v11023_v62  ;;  %v7897_v58 = vrot.slane %v15442_v0, %v11026_v10  ;;  %v7566_v57 = vsel %vm1806_vm2, %v7565_v54, %v7561_v1  ;;  %v15444_v9 = vld [vmem:[#allocation192_spill] sm:$0xff] }
 0xb95   :  { %v6955_v22 = vrot.slane %v6812_v6, %v11026_v10  ;;  %8789 = vmatpush3.msra.mxu0 %v15431_v34  ;;  %8792 = vmatprep.mubr.msk.f32.mxu0 %vm285_vm0, %v6963_v44  ;;  %v7557_v20 = vsel %vm1806_vm2, %v7556_v32, %v7552_v23  ;;  %v7643_v34 = vsel %vm1951_vm7, %v7548_v52, %v7642_v19  ;;  %v15445_v44 = vld [vmem:[#allocation169_spill] sm:$0xff]  ;;  %v15446_v19 = vld [vmem:[#allocation75_spill] sm:$0xff] }
 0xb96   :  { %8790 = vmatprep.subr.mxu0 %v15435_v16  ;;  %v7906_v28 = vrot.slane %v15444_v9, %v11026_v10  ;;  %v7628_v11 = vrot.slane %v14183_v33, %v11026_v10  ;;  %v7310_v51 = vsel %vm1953_vm8, %v7288_v12, %v14103_v3  ;;  %v7880_v6 = vsel %vm1806_vm2, %v7879_v40, %v7875_v63  ;;  %v15447_v33 = vld [vmem:[#allocation177_spill] sm:$0xff]  ;;  %v15454_v12 = vld [vmem:[#allocation100_spill] sm:$0xff]  ;;  %v15457_v63 = vld [vmem:[#allocation163_spill] sm:$0xff] }
 0xb97   :  { %v6956_v47 = vsel %vm1806_vm2, %v6955_v22, %v6951_v36  ;;  %8791 = vmatpush3.msra.mxu0 %v15435_v16  ;;  %v7893_v36 = vrot.slane %v15445_v44, %v11023_v62  ;;  %v7644_v22 = vsel %vm1953_vm8, %v7557_v20, %v7643_v34  ;;  %v7889_v3 = vsel %vm1806_vm2, %v7888_v38, %v7884_v43  ;;  %v7832_v31 = vpop.permute.xlu0 %7831  ;;  %v15455_v20 = vld [vmem:[#allocation135_spill] sm:$0xff]  ;;  %v15459_v34 = vld [vmem:[#allocation164_spill] sm:$0xff] }
 0xb98   :  { %8795 = vmatprep.subr.mxu0 %v15438_v21  ;;  %v6970_v7 = vsel %vm1955_vm9, %v6956_v47, %v6969_v60  ;;  %v7902_v25 = vrot.slane %v15447_v33, %v11023_v62  ;;  %v7624_v40 = vrot.slane %v14139_v50, %v11023_v62  ;;  %v7645_v32 = vsel %vm1955_vm9, %v7566_v57, %v7644_v22 }
 0xb99   :  { %v7150_v41 = vpop.permute.xlu1 %7149  ;;  %8793 = vmatmul.mubr.msk.f32.vlgmr.msra.gmra.mxu0 %vm285_vm0, %v6970_v7  ;;  %v7898_v42 = vsel %vm1806_vm2, %v7897_v58, %v7893_v36  ;;  %v7637_v16 = vrot.slane %v7494_v17, %v11026_v10  ;;  %v8193_v38 = vrot.slane %v15448_v5, %v11026_v10  ;;  %v7983_v50 = vsel %vm1949_vm6, %v7880_v6, %v14311_v27  ;;  %v15451_v27 = vld [vmem:[#allocation115_spill] sm:$0xff]  ;;  %v15462_v36 = vld [vmem:[#allocation153_spill] sm:$0xff] }
 0xb9a   :  { %v7292_v37 = vrot.slane %v7150_v41, %v11023_v62  ;;  %8796 = vmatpush3.msra.mxu0 %v15438_v21  ;;  %8799 = vmatprep.mubr.msk.f32.mxu0 %vm285_vm0, %v7304_v49  ;;  %v7629_v46 = vsel %vm1806_vm2, %v7628_v11, %v7624_v40  ;;  %v7907_v54 = vsel %vm1806_vm2, %v7906_v28, %v7902_v25  ;;  %v15452_v21 = vld [vmem:[#allocation116_spill] sm:$0xff]  ;;  %v15458_v58 = vld [vmem:[#allocation127_spill] sm:$0xff] }
 0xb9b   :  { %8797 = vmatprep.subr.mxu0 %v15443_v29  ;;  %v8184_v60 = vrot.slane %v15450_v4, %v11026_v10  ;;  %v7651_v24 = vsel %vm1953_vm8, %v7629_v46, %v14111_v35  ;;  %v7984_v23 = vsel %vm1951_vm7, %v7889_v3, %v7983_v50  ;;  %v8189_v52 = vrot.slane %v15451_v27, %v11023_v62  ;;  %v8173_v3 = vpop.permute.xlu0 %8172 }
 0xb9c   :  { %v7297_v53 = vsel %vm1806_vm2, %v7296_v39, %v7292_v37  ;;  %8798 = vmatpush3.msra.mxu0 %v15443_v29  ;;  %v8198_v7 = vrot.slane %v15452_v21, %v11023_v62  ;;  %v7985_v55 = vsel %vm1953_vm8, %v7898_v42, %v7984_v23  ;;  %v8202_v41 = vrot.slane %v15454_v12, %v11026_v10 }
 0xb9d   :  { %8802 = vmatprep.subr.mxu0 %v15446_v19  ;;  %v7311_v26 = vsel %vm1955_vm9, %v7297_v53, %v7310_v51  ;;  %v7986_v35 = vsel %vm1955_vm9, %v7907_v54, %v7985_v55  ;;  %v8194_v49 = vsel %vm1806_vm2, %v8193_v38, %v8189_v52  ;;  %v8207_v39 = vrot.slane %v15455_v20, %v11023_v62  ;;  %v15461_v51 = vld [vmem:[#allocation57_spill] sm:$0xff] }
 0xb9e   :  { %v7491_v59 = vpop.permute.xlu1 %7490  ;;  %8800 = vmatmul.mubr.msk.f32.vlgmr.msra.gmra.mxu0 %vm285_vm0, %v7311_v26  ;;  %v15456_v37 = vrot.slane %v15365_v13, %v11023_v62  ;;  %v8216_v0 = vrot.slane %v15457_v63, %v11023_v62  ;;  %v8211_v29 = vrot.slane %v15458_v58, %v11026_v10  ;;  %v8203_v57 = vsel %vm1806_vm2, %v8202_v41, %v8198_v7  ;;  %v15460_v13 = vld [vmem:[#allocation130_spill] sm:$0xff]  ;;  %v15463_v26 = vld [vmem:[#allocation180_spill] sm:$0xff] }
 0xb9f   :  { %v7633_v30 = vrot.slane %v7491_v59, %v11023_v62  ;;  %8803 = vmatpush3.msra.mxu0 %v15446_v19  ;;  %8806 = vmatprep.mubr.msk.f32.mxu0 %vm285_vm0, %v7645_v32  ;;  %v8225_v9 = vrot.slane %v15459_v34, %v11023_v62  ;;  %v7965_v28 = vrot.slane %v14286_v45, %v11023_v62  ;;  %v15464_v59 = vld [vmem:[#allocation157_spill] sm:$0xff]  ;;  %v8338_v52 = vpop.permute.xlu0 %8337 }
 0xba0   :  { %8804 = vmatprep.subr.mxu0 %v15449_v14  ;;  %v8185_v2 = vsel %vm1806_vm2, %v8184_v60, %v15456_v37  ;;  %v8220_v17 = vrot.slane %v15460_v13, %v11026_v10  ;;  %v8234_v53 = vrot.slane %v15461_v51, %v11023_v62  ;;  %v8212_v44 = vsel %vm1806_vm2, %v8211_v29, %v8207_v39 }
 0xba1   :  { %v7638_v47 = vsel %vm1806_vm2, %v7637_v16, %v7633_v30  ;;  %8805 = vmatpush3.msra.mxu0 %v15449_v14  ;;  %v8321_v11 = vsel %vm1943_vm3, %v8194_v49, %v8185_v2  ;;  %v8229_v19 = vrot.slane %v15462_v36, %v11026_v10  ;;  %v8247_v22 = vrot.slane %v15463_v26, %v11026_v10  ;;  %v15465_v30 = vld [vmem:[#allocation191_spill] sm:$0xff] }
 0xba2   :  { %8809 = vmatprep.subr.mxu0 %v15453_v61  ;;  %v7652_v43 = vsel %vm1955_vm9, %v7638_v47, %v7651_v24  ;;  %v7969_v45 = vrot.slane %v14226_v15, %v11026_v10  ;;  %v8322_v25 = vsel %vm1945_vm4, %v8203_v57, %v8321_v11  ;;  %v8221_v40 = vsel %vm1806_vm2, %v8220_v17, %v8216_v0  ;;  %v15466_v36 = vld [vmem:[#allocation3_spill] sm:$0xff] }
 0xba3   :  { %v7835_v1 = vpop.permute.xlu1 %7834  ;;  %8807 = vmatmul.mubr.msk.f32.vlgmr.msra.gmra.mxu0 %vm285_vm0, %v7652_v43  ;;  %v8238_v32 = vrot.slane %v15464_v59, %v11026_v10  ;;  %v7974_v42 = vrot.slane %v7832_v31, %v11023_v62  ;;  %v8230_v16 = vsel %vm1806_vm2, %v8229_v19, %v8225_v9  ;;  %v8243_v5 = vrot.slane %v15465_v30, %v11023_v62 }
 0xba4   :  { %8810 = vmatpush3.msra.mxu0 %v15453_v61  ;;  %8813 = vmatprep.mubr.msk.f32.mxu0 %vm285_vm0, %v7986_v35  ;;  %v7978_v6 = vrot.slane %v7835_v1, %v11026_v10  ;;  %v7970_v38 = vsel %vm1806_vm2, %v7969_v45, %v7965_v28  ;;  %v8310_v15 = vrot.slane %v14323_v18, %v11026_v10  ;;  %v8514_v45 = vld [vmem:[%s14657_s9] ss:$0 sm:$0xff] }
 0xba5   :  { %v8323_v50 = vsel %vm1947_vm5, %v8212_v44, %v8322_v25  ;;  %v8239_v46 = vsel %vm1806_vm2, %v8238_v32, %v8234_v53  ;;  %v8306_v60 = vrot.slane %v14268_v8, %v11023_v62  ;;  %v8248_v24 = vsel %vm1806_vm2, %v8247_v22, %v8243_v5  ;;  %v9531_v44 = vld [vmem:[%s14652_s3] sm:$0x1f] }
 0xba6   :  { %v7979_v14 = vsel %vm1806_vm2, %v7978_v6, %v7974_v42  ;;  %v8324_v4 = vsel %vm1949_vm6, %v8221_v40, %v8323_v50  ;;  %v8315_v23 = vrot.slane %v8173_v3, %v11023_v62  ;;  %v7992_v18 = vsel %vm1953_vm8, %v7970_v38, %v14119_v56  ;;  %v15467_v40 = vld [vmem:[#allocation54_spill] sm:$0xff] }
 0xba7   :  { %v8325_v27 = vsel %vm1951_vm7, %v8230_v16, %v8324_v4  ;;  %v8311_v21 = vsel %vm1806_vm2, %v8310_v15, %v8306_v60  ;;  %v279_v19 = vrot.slane %v9531_v44, %v15466_v36  ;;  %v15468_v16 = vld [vmem:[#allocation71_spill] sm:$0xff] }
 0xba8   :  { %v8176_v33 = vpop.permute.xlu1 %8175  ;;  %v8326_v7 = vsel %vm1953_vm8, %v8239_v46, %v8325_v27  ;;  %v8333_v56 = vsel %vm1953_vm8, %v8311_v21, %v14127_v48 }
 0xba9   :  { %v8319_v54 = vrot.slane %v8176_v33, %v11026_v10  ;;  %v7993_v10 = vsel %vm1955_vm9, %v7979_v14, %v7992_v18  ;;  %v8327_v62 = vsel %vm1955_vm9, %v8248_v24, %v8326_v7  ;;  %v518_v59 = vadd.f32 %v15467_v40, %v279_v19 }
 0xbaa   :  { %v513_v30 = vadd.f32 %v15468_v16, %v279_v19 }
 0xbab   :  { %v8320_v8 = vsel %vm1806_vm2, %v8319_v54, %v8315_v23 }
 0xbac   :  { %v7995_v47 = vpop.permute.xlu1 %7994  ;;  %v8334_v61 = vsel %vm1955_vm9, %v8320_v8, %v8333_v56 }
 0xbad   :  { %8811 = vmatprep.subr.mxu0 %v7995_v47 }
 0xbae   :  { %8812 = vmatpush3.msra.mxu0 %v7995_v47 }
 0xbaf   :  { %8814 = vmatmul.mubr.msk.f32.vlgmr.msra.gmra.mxu0 %vm285_vm0, %v7993_v10  ;;  %8816 = vmatprep.subr.mxu0 %v8338_v52 }
 0xbb0   :  { %v8336_v31 = vpop.permute.xlu1 %8335  ;;  %8817 = vmatpush3.msra.mxu0 %v8338_v52  ;;  %8820 = vmatprep.mubr.msk.f32.mxu0 %vm285_vm0, %v8327_v62 }
 0xbb1   :  { %8818 = vmatprep.subr.mxu0 %v8336_v31 }
 0xbb2   :  { %8819 = vmatpush3.msra.mxu0 %v8336_v31 }
 0xbb3   :  { %8821 = vmatmul.mubr.msk.f32.vlgmr.msra.gmra.mxu0 %vm285_vm0, %v8334_v61 }
 0xc4a   :  { %v8773_v43 = vpop.f32.mrf.mxu0 }
 0xc4c   :  { %v6034_v55 = vpop.f32.mrf.mxu0 }
 0xc4f   :  { %v8780_v1 = vpop.f32.mrf.mxu0 }
 0xc50   :  { %v6373_v2 = vadd.f32 %v8780_v1, %v8773_v43 }
 0xc51   :  { %v6367_v35 = vpop.f32.mrf.mxu0 }
 0xc52   :  { %v6368_v0 = vadd.f32 %v6367_v35, %v6034_v55 }
 0xc54   :  { %v8787_v12 = vpop.f32.mrf.mxu0 }
 0xc55   :  { %v6716_v48 = vadd.f32 %v8787_v12, %v6373_v2 }
 0xc56   :  { %v6706_v41 = vpop.f32.mrf.mxu0 }
 0xc57   :  { %v6715_v58 = vadd.f32 %v6706_v41, %v6368_v0 }
 0xc59   :  { %v8794_v49 = vpop.f32.mrf.mxu0 }
 0xc5a   :  { %v7057_v29 = vadd.f32 %v8794_v49, %v6716_v48 }
 0xc5b   :  { %v7047_v20 = vpop.f32.mrf.mxu0 }
 0xc5c   :  { %v7056_v34 = vadd.f32 %v7047_v20, %v6715_v58 }
 0xc5e   :  { %v8801_v39 = vpop.f32.mrf.mxu0 }
 0xc5f   :  { %v7398_v9 = vadd.f32 %v8801_v39, %v7057_v29 }
 0xc60   :  { %v7388_v37 = vpop.f32.mrf.mxu0 }
 0xc61   :  { %v7397_v11 = vadd.f32 %v7388_v37, %v7056_v34 }
 0xc63   :  { %v8808_v63 = vpop.f32.mrf.mxu0 }
 0xc64   :  { %v7739_v13 = vadd.f32 %v8808_v63, %v7398_v9 }
 0xc65   :  { %v7729_v57 = vpop.f32.mrf.mxu0 }
 0xc66   :  { %v7738_v51 = vadd.f32 %v7729_v57, %v7397_v11 }
 0xc6f   :  { %v8815_v28 = vpop.f32.mrf.mxu0 }
 0xc70   :  { %v8080_v53 = vadd.f32 %v8815_v28, %v7739_v13 }
 0xc71   :  { %v8070_v17 = vpop.f32.mrf.mxu0 }
 0xc72   :  { %v8079_v26 = vadd.f32 %v8070_v17, %v7738_v51 }
 0xc73   :  { %v8822_v6 = vpop.f32.mrf.mxu0 }
 0xc74   :  { %v8421_v22 = vadd.f32 %v8822_v6, %v8080_v53 }
 0xc75   :  { %v8411_v3 = vpop.f32.mrf.mxu0 }
 0xc76   :  { %v8423_v33 = vmul.f32 0.125, %v8421_v22  ;;  %v8420_v25 = vadd.f32 %v8411_v3, %v8079_v26 }
 0xc78   :  { %v8431_v32 = vadd.f32 %v8514_v45, %v8423_v33  ;;  %v8422_v42 = vmul.f32 0.125, %v8420_v25 }
 0xc7a   :  { %v8433_v5 = vadd.f32 %v8431_v32, %v518_v59  ;;  %v8430_v38 = vadd.f32 %v8514_v45, %v8422_v42 }
 0xc7c   :  { %8435 = vst.msk [vmem:[%s14658_s10 + $0x8] sm:$0xff] %vm1234_vm1, %v8433_v5  ;;  %v8432_v15 = vadd.f32 %v8430_v38, %v513_v30 }
 0xc7e   :  { %8434 = vst.msk [vmem:[%s14658_s10] sm:$0xff] %vm1234_vm1, %v8432_v15 }

</bundles_post_ra>
